<compile_context>
chip_gen: v5e
topology: v5e:2x2
jax: 0.10.0
libtpu: 0.0.40
codegen_flags: <defaults>
</compile_context>

<pallas_src>
import functools
from typing import NamedTuple

import numpy as np

import jax
import jax.numpy as jnp
from jax.experimental import pallas as pl
from jax.experimental.pallas import tpu as pltpu


class LayerPlan(NamedTuple):
    taps: int    # number of kernel-row taps folded into this stage
    has_s: bool  # a row-selection matmul precedes the lane-mapping matmul
    relu: bool   # apply the ReLU epilogue


_CONV_CFG = (("w1", "b1", 5, 2), ("w2", "b2", 5, 2),
             ("w3", "b3", 3, 2), ("w4", "b4", 3, 1))


def conv_out_hw(h, w, k, s):
    return (h - k) // s + 1, (w - k) // s + 1


def _pick_batch_block(batch_size):
    """Batch block size: multiple of 8 when the batch splits, else whole batch
    (single grid step) so no padding pass is ever needed."""
    if batch_size > 8 and batch_size % 8 == 0:
        return 8
    return batch_size


def _vmem_limit_bytes():
    """Per-generation scoped-VMEM budget: leave headroom on v7x (64 MiB phys),
    open up v5e/v6e (128 MiB phys); safe flat fallback if the query fails."""
    try:
        phys = int(pltpu.get_tpu_info().vmem_capacity_bytes)
        return max(32 * 1024 * 1024,
                   min(phys - 16 * 1024 * 1024, 100 * 1024 * 1024))
    except Exception:
        return 32 * 1024 * 1024


# ----------------------------------------------------------------------------
# Parameters (PyTorch layout) and one-time kernel-operand preparation
# ----------------------------------------------------------------------------
def init_qnetwork_params(key, state_dim, action_dim):
    """PyTorch-layout float32 parameters (what a converted checkpoint looks like)."""
    c, h, w = state_dim
    k = jax.random.split(key, 12)

    def nrm(kk, shape, scale=0.05):
        return scale * jax.random.normal(kk, shape, dtype=jnp.float32)

    h1, w1 = conv_out_hw(h, w, 5, 2)
    h2, w2 = conv_out_hw(h1, w1, 5, 2)
    h3, w3 = conv_out_hw(h2, w2, 3, 2)
    h4, w4 = conv_out_hw(h3, w3, 3, 1)
    n_flatten = 64 * h4 * w4

    return {
        "w1": nrm(k[0], (32, c, 5, 5)),      "b1": nrm(k[1], (32,)),
        "w2": nrm(k[2], (64, 32, 5, 5)),     "b2": nrm(k[3], (64,)),
        "w3": nrm(k[4], (64, 64, 3, 3)),     "b3": nrm(k[5], (64,)),
        "w4": nrm(k[6], (64, 64, 3, 3)),     "b4": nrm(k[7], (64,)),
        "wl": nrm(k[8], (n_flatten, 512)),   "bl": nrm(k[9], (512,)),
        "wh": nrm(k[10], (512, action_dim)), "bh": nrm(k[11], (action_dim,)),
    }


def prepare_params(params, state_dim, action_dim, batch_size):
    """One-time conversion of PyTorch-layout params into the fused kernel's
    constant operands.

    Per conv layer and kernel row kh:
      S[kh] : (tb*Ho, tb*H)     0/1 row-selection (block-diag over the batch
                                block) picking image row ho*stride + kh.
      R[kh] : (W*Cin, Wo*Cout)  lane-mapping matrix folding the kw taps and
                                Cin->Cout mixing of kernel row kh.
    so conv(X) = relu( sum_kh (S[kh] @ X) @ R[kh] + bias_row ).
    The first Linear is expressed the same way (taps over conv4's H rows) so it
    consumes the (n,h)-row / (w,c)-lane layout directly; the head is a plain
    matmul with its N dim zero-padded to 128 lanes.
    """
    c, h, w = state_dim
    tb = _pick_batch_block(batch_size)

    consts, plan = [], []

    H, W, Cin = h, w, c
    for wname, bname, k, s in _CONV_CFG:
        wt = np.asarray(params[wname], np.float32)          # (Cout, Cin, k, k)
        bt = np.asarray(params[bname], np.float32)
        Cout = wt.shape[0]
        Ho, Wo = conv_out_hw(H, W, k, s)

        R = np.zeros((k, W * Cin, Wo * Cout), np.float32)
        for kh in range(k):
            for wo in range(Wo):
                for kw in range(k):
                    wc = wo * s + kw
                    R[kh, wc * Cin:(wc + 1) * Cin,
                      wo * Cout:(wo + 1) * Cout] = wt[:, :, kh, kw].T
        S = np.zeros((k, tb * Ho, tb * H), np.float32)
        for kh in range(k):
            for n in range(tb):
                for ho in range(Ho):
                    S[kh, n * Ho + ho, n * H + ho * s + kh] = 1.0
        bias_row = np.tile(bt, Wo)[None, :]                  # (1, Wo*Cout)

        consts += [jnp.asarray(S, jnp.bfloat16),
                   jnp.asarray(R, jnp.bfloat16),
                   jnp.asarray(bias_row, jnp.float32)]
        plan.append(LayerPlan(taps=k, has_s=True, relu=True))
        H, W, Cin = Ho, Wo, Cout

    # Linear(n_flatten, 512) + ReLU as a full-spatial "conv": taps over the H
    # rows of conv4's output; the (w4, c) lanes are folded into R.  Rows of the
    # PyTorch-flatten weight (index = c*H*W + h*W + w) are permuted here, once.
    wl = np.asarray(params["wl"], np.float32)                # (Cin*H*W, 512)
    bl = np.asarray(params["bl"], np.float32)
    hid = wl.shape[1]
    Rl = wl.reshape(Cin, H, W, hid).transpose(1, 2, 0, 3).reshape(H, W * Cin, hid)
    has_s = H > 1
    if has_s:
        Sl = np.zeros((H, tb, tb * H), np.float32)
        for h4 in range(H):
            for n in range(tb):
                Sl[h4, n, n * H + h4] = 1.0
        consts.append(jnp.asarray(Sl, jnp.bfloat16))
    consts += [jnp.asarray(Rl, jnp.bfloat16),
               jnp.asarray(bl[None, :], jnp.float32)]
    plan.append(LayerPlan(taps=H, has_s=has_s, relu=True))

    # Q head Linear(512, action_dim): zero-pad N to 128 lanes once, at prep
    # time, so the kernel's only HBM store is unmasked / lane-dense.
    a_pad = ((action_dim + 127) // 128) * 128
    wh = np.zeros((1, hid, a_pad), np.float32)
    wh[0, :, :action_dim] = np.asarray(params["wh"], np.float32)
    bh = np.zeros((1, a_pad), np.float32)
    bh[0, :action_dim] = np.asarray(params["bh"], np.float32)
    consts += [jnp.asarray(wh, jnp.bfloat16),
               jnp.asarray(bh, jnp.float32)]
    plan.append(LayerPlan(taps=1, has_s=False, relu=False))

    return tuple(consts), tuple(plan), tb, a_pad


# ----------------------------------------------------------------------------
# The fused whole-network Pallas kernel
# ----------------------------------------------------------------------------
def _qnet_fused_kernel(*refs, plan):
    """Whole QNetwork forward for one batch block; every intermediate activation
    stays in VMEM (per-sample activations are tiny), all matmuls hit the MXU."""
    x_ref, o_ref = refs[0], refs[-1]
    consts = refs[1:-1]

    act = x_ref[...]                                   # (tb*H0, W0*C0) bf16
    ci = 0
    for li, lyr in enumerate(plan):
        s_ref = None
        if lyr.has_s:
            s_ref = consts[ci]; ci += 1
        r_ref = consts[ci]; ci += 1
        b_ref = consts[ci]; ci += 1

        acc = None
        for t in range(lyr.taps):                      # static unroll over kernel rows
            z = act
            if s_ref is not None:
                # Row gather as a 0/1 matmul (exact in bf16): picks image row
                # ho*stride + t of every sample in the batch block.
                z = jnp.dot(s_ref[t], z,
                            preferred_element_type=jnp.float32).astype(jnp.bfloat16)
            p = jnp.dot(z, r_ref[t], preferred_element_type=jnp.float32)
            acc = p if acc is None else acc + p

        y = acc + b_ref[...]                           # bias epilogue in f32
        if lyr.relu:
            y = jnp.maximum(y, 0.0)
        if li == len(plan) - 1:
            o_ref[...] = y.astype(o_ref.dtype)         # (tb, a_pad) lane-dense store
        else:
            act = y.astype(jnp.bfloat16)               # next MXU stage in bf16
    assert ci == len(consts)


def _const_block_spec(arr):
    """Full-array block with a constant index map: DMA'd once, reused by every
    grid step (the pipeline skips re-fetch when the block index is unchanged)."""
    ndim = arr.ndim

    def index_map(i):
        return (0,) * ndim

    return pl.BlockSpec(arr.shape, index_map)


def qnetwork_forward(x_nchw, consts, *, plan, tb, state_dim, action_dim, a_pad):
    c, h, w = state_dim
    B = x_nchw.shape[0]
    assert B % tb == 0, (B, tb)

    # NCHW -> rows=(n, h), lanes=(w, c); one tiny fused XLA transpose + bf16 cast.
    # TODO(synk): fold this layout change + cast into the kernel's input DMA.
    x2d = jnp.transpose(x_nchw, (0, 2, 3, 1)).reshape(B * h, w * c)
    x2d = x2d.astype(jnp.bfloat16)

    in_specs = [pl.BlockSpec((tb * h, w * c), lambda i: (i, 0))]
    in_specs += [_const_block_spec(a) for a in consts]

    out = pl.pallas_call(
        functools.partial(_qnet_fused_kernel, plan=plan),
        out_shape=jax.ShapeDtypeStruct((B, a_pad), jnp.float32),
        grid_spec=pltpu.PrefetchScalarGridSpec(
            num_scalar_prefetch=0,
            grid=(B // tb,),
            in_specs=in_specs,
            out_specs=pl.BlockSpec((tb, a_pad), lambda i: (i, 0)),
        ),
        compiler_params=pltpu.CompilerParams(
            dimension_semantics=("parallel",),
            vmem_limit_bytes=_vmem_limit_bytes(),
        ),
    )(x2d, *consts)
    return out[:, :action_dim]


# ----------------------------------------------------------------------------
# Pure-JAX f32 reference (matches the PyTorch module) for tolerance checking
# ----------------------------------------------------------------------------
def qnetwork_reference(params, x_nchw):
    y = x_nchw
    for i, s in zip((1, 2, 3, 4), (2, 2, 2, 1)):
        y = jax.lax.conv_general_dilated(
            y, params[f"w{i}"], window_strides=(s, s), padding="VALID",
            dimension_numbers=("NCHW", "OIHW", "NCHW"))
        y = jax.nn.relu(y + params[f"b{i}"][None, :, None, None])
    y = y.reshape(y.shape[0], -1)                       # NCHW flatten
    y = jax.nn.relu(y @ params["wl"] + params["bl"])
    return y @ params["wh"] + params["bh"]


if __name__ == "__main__":
    # Smallest spatial size that survives the four valid convs: 40 -> 18 -> 7 -> 3 -> 1.
    state_dim = (4, 40, 40)      # (C, H, W)  -> n_flatten = 64
    action_dim = 6
    batch = 2

    key = jax.random.PRNGKey(0)
    pkey, xkey = jax.random.split(key)
    params = init_qnetwork_params(pkey, state_dim, action_dim)
    x = jax.random.normal(xkey, (batch, *state_dim), dtype=jnp.float32)  # NCHW

    consts, plan, tb, a_pad = prepare_params(params, state_dim, action_dim, batch)
    fwd = jax.jit(functools.partial(
        qnetwork_forward, plan=plan, tb=tb, state_dim=state_dim,
        action_dim=action_dim, a_pad=a_pad))

    q = jax.block_until_ready(fwd(x, consts))
    assert q.shape == (batch, action_dim), q.shape
    assert bool(jnp.all(jnp.isfinite(q)))

    # Tolerance check against the f32 reference (kernel runs bf16 on the MXU
    # with f32 accumulation).
    q_ref = qnetwork_reference(params, x)
    assert bool(jnp.allclose(q, q_ref, rtol=5e-2, atol=3e-2)), (
        float(jnp.max(jnp.abs(q - q_ref))))

    print("KERNEL_OK")
</pallas_src>

<mosaic_0001>
module attributes {stable_mosaic.version = 11 : i64} {
  func.func @_qnet_fused_kernel(%arg0: i32, %arg1: memref<80x160xbf16, #tpu.memory_space<vmem>>, %arg2: memref<5x36x80xbf16, #tpu.memory_space<vmem>>, %arg3: memref<5x160x576xbf16, #tpu.memory_space<vmem>>, %arg4: memref<1x576xf32, #tpu.memory_space<vmem>>, %arg5: memref<5x14x36xbf16, #tpu.memory_space<vmem>>, %arg6: memref<5x576x448xbf16, #tpu.memory_space<vmem>>, %arg7: memref<1x448xf32, #tpu.memory_space<vmem>>, %arg8: memref<3x6x14xbf16, #tpu.memory_space<vmem>>, %arg9: memref<3x448x192xbf16, #tpu.memory_space<vmem>>, %arg10: memref<1x192xf32, #tpu.memory_space<vmem>>, %arg11: memref<3x2x6xbf16, #tpu.memory_space<vmem>>, %arg12: memref<3x192x64xbf16, #tpu.memory_space<vmem>>, %arg13: memref<1x64xf32, #tpu.memory_space<vmem>>, %arg14: memref<1x64x512xbf16, #tpu.memory_space<vmem>>, %arg15: memref<1x512xf32, #tpu.memory_space<vmem>>, %arg16: memref<1x512x128xbf16, #tpu.memory_space<vmem>>, %arg17: memref<1x128xf32, #tpu.memory_space<vmem>>, %arg18: memref<2x128xf32, #tpu.memory_space<vmem>>) attributes {dimension_semantics = [#tpu.dimension_semantics<parallel>], iteration_bounds = array<i64: 1>, scalar_prefetch = 0 : i64, scratch_operands = 0 : i64, tpu.core_type = #tpu.core_type<tc>, window_params = [{transform_indices = @transform_0, window_bounds = array<i64: 80, 160>}, {pipeline_mode = #tpu.pipeline_mode<synchronous>, transform_indices = @transform_1, window_bounds = array<i64: 5, 36, 80>}, {pipeline_mode = #tpu.pipeline_mode<synchronous>, transform_indices = @transform_2, window_bounds = array<i64: 5, 160, 576>}, {pipeline_mode = #tpu.pipeline_mode<synchronous>, transform_indices = @transform_3, window_bounds = array<i64: 1, 576>}, {pipeline_mode = #tpu.pipeline_mode<synchronous>, transform_indices = @transform_4, window_bounds = array<i64: 5, 14, 36>}, {pipeline_mode = #tpu.pipeline_mode<synchronous>, transform_indices = @transform_5, window_bounds = array<i64: 5, 576, 448>}, {pipeline_mode = #tpu.pipeline_mode<synchronous>, transform_indices = @transform_6, window_bounds = array<i64: 1, 448>}, {pipeline_mode = #tpu.pipeline_mode<synchronous>, transform_indices = @transform_7, window_bounds = array<i64: 3, 6, 14>}, {pipeline_mode = #tpu.pipeline_mode<synchronous>, transform_indices = @transform_8, window_bounds = array<i64: 3, 448, 192>}, {pipeline_mode = #tpu.pipeline_mode<synchronous>, transform_indices = @transform_9, window_bounds = array<i64: 1, 192>}, {pipeline_mode = #tpu.pipeline_mode<synchronous>, transform_indices = @transform_10, window_bounds = array<i64: 3, 2, 6>}, {pipeline_mode = #tpu.pipeline_mode<synchronous>, transform_indices = @transform_11, window_bounds = array<i64: 3, 192, 64>}, {pipeline_mode = #tpu.pipeline_mode<synchronous>, transform_indices = @transform_12, window_bounds = array<i64: 1, 64>}, {pipeline_mode = #tpu.pipeline_mode<synchronous>, transform_indices = @transform_13, window_bounds = array<i64: 1, 64, 512>}, {pipeline_mode = #tpu.pipeline_mode<synchronous>, transform_indices = @transform_14, window_bounds = array<i64: 1, 512>}, {pipeline_mode = #tpu.pipeline_mode<synchronous>, transform_indices = @transform_15, window_bounds = array<i64: 1, 512, 128>}, {pipeline_mode = #tpu.pipeline_mode<synchronous>, transform_indices = @transform_16, window_bounds = array<i64: 1, 128>}, {transform_indices = @transform_17, window_bounds = array<i64: 2, 128>}]} {
    %c0 = arith.constant 0 : index
    %c0_0 = arith.constant 0 : index
    %0 = vector.load %arg1[%c0, %c0_0] : memref<80x160xbf16, #tpu.memory_space<vmem>>, vector<80x160xbf16>
    %c0_1 = arith.constant 0 : index
    %c0_2 = arith.constant 0 : index
    %c0_3 = arith.constant 0 : index
    %1 = vector.load %arg2[%c0_1, %c0_2, %c0_3] : memref<5x36x80xbf16, #tpu.memory_space<vmem>>, vector<1x36x80xbf16>
    %2 = vector.shape_cast %1 : vector<1x36x80xbf16> to vector<36x80xbf16>
    %cst = arith.constant dense<0.000000e+00> : vector<36x160xf32>
    %3 = tpu.matmul %2, %0, %cst {dimension_numbers = #tpu.dot_dimension_numbers<[1], [0], [0], [1], [0, 0, 1, 1], [], []>} : vector<36x80xbf16>, vector<80x160xbf16>, vector<36x160xf32> -> vector<36x160xf32>
    %4 = arith.truncf %3 : vector<36x160xf32> to vector<36x160xbf16>
    %c0_4 = arith.constant 0 : index
    %c0_5 = arith.constant 0 : index
    %c0_6 = arith.constant 0 : index
    %5 = vector.load %arg3[%c0_4, %c0_5, %c0_6] : memref<5x160x576xbf16, #tpu.memory_space<vmem>>, vector<1x160x576xbf16>
    %6 = vector.shape_cast %5 : vector<1x160x576xbf16> to vector<160x576xbf16>
    %cst_7 = arith.constant dense<0.000000e+00> : vector<36x576xf32>
    %7 = tpu.matmul %4, %6, %cst_7 {dimension_numbers = #tpu.dot_dimension_numbers<[1], [0], [0], [1], [0, 0, 1, 1], [], []>} : vector<36x160xbf16>, vector<160x576xbf16>, vector<36x576xf32> -> vector<36x576xf32>
    %c1 = arith.constant 1 : index
    %c0_8 = arith.constant 0 : index
    %c0_9 = arith.constant 0 : index
    %8 = vector.load %arg2[%c1, %c0_8, %c0_9] : memref<5x36x80xbf16, #tpu.memory_space<vmem>>, vector<1x36x80xbf16>
    %9 = vector.shape_cast %8 : vector<1x36x80xbf16> to vector<36x80xbf16>
    %cst_10 = arith.constant dense<0.000000e+00> : vector<36x160xf32>
    %10 = tpu.matmul %9, %0, %cst_10 {dimension_numbers = #tpu.dot_dimension_numbers<[1], [0], [0], [1], [0, 0, 1, 1], [], []>} : vector<36x80xbf16>, vector<80x160xbf16>, vector<36x160xf32> -> vector<36x160xf32>
    %11 = arith.truncf %10 : vector<36x160xf32> to vector<36x160xbf16>
    %c1_11 = arith.constant 1 : index
    %c0_12 = arith.constant 0 : index
    %c0_13 = arith.constant 0 : index
    %12 = vector.load %arg3[%c1_11, %c0_12, %c0_13] : memref<5x160x576xbf16, #tpu.memory_space<vmem>>, vector<1x160x576xbf16>
    %13 = vector.shape_cast %12 : vector<1x160x576xbf16> to vector<160x576xbf16>
    %cst_14 = arith.constant dense<0.000000e+00> : vector<36x576xf32>
    %14 = tpu.matmul %11, %13, %cst_14 {dimension_numbers = #tpu.dot_dimension_numbers<[1], [0], [0], [1], [0, 0, 1, 1], [], []>} : vector<36x160xbf16>, vector<160x576xbf16>, vector<36x576xf32> -> vector<36x576xf32>
    %15 = arith.addf %7, %14 : vector<36x576xf32>
    %c2 = arith.constant 2 : index
    %c0_15 = arith.constant 0 : index
    %c0_16 = arith.constant 0 : index
    %16 = vector.load %arg2[%c2, %c0_15, %c0_16] : memref<5x36x80xbf16, #tpu.memory_space<vmem>>, vector<1x36x80xbf16>
    %17 = vector.shape_cast %16 : vector<1x36x80xbf16> to vector<36x80xbf16>
    %cst_17 = arith.constant dense<0.000000e+00> : vector<36x160xf32>
    %18 = tpu.matmul %17, %0, %cst_17 {dimension_numbers = #tpu.dot_dimension_numbers<[1], [0], [0], [1], [0, 0, 1, 1], [], []>} : vector<36x80xbf16>, vector<80x160xbf16>, vector<36x160xf32> -> vector<36x160xf32>
    %19 = arith.truncf %18 : vector<36x160xf32> to vector<36x160xbf16>
    %c2_18 = arith.constant 2 : index
    %c0_19 = arith.constant 0 : index
    %c0_20 = arith.constant 0 : index
    %20 = vector.load %arg3[%c2_18, %c0_19, %c0_20] : memref<5x160x576xbf16, #tpu.memory_space<vmem>>, vector<1x160x576xbf16>
    %21 = vector.shape_cast %20 : vector<1x160x576xbf16> to vector<160x576xbf16>
    %cst_21 = arith.constant dense<0.000000e+00> : vector<36x576xf32>
    %22 = tpu.matmul %19, %21, %cst_21 {dimension_numbers = #tpu.dot_dimension_numbers<[1], [0], [0], [1], [0, 0, 1, 1], [], []>} : vector<36x160xbf16>, vector<160x576xbf16>, vector<36x576xf32> -> vector<36x576xf32>
    %23 = arith.addf %15, %22 : vector<36x576xf32>
    %c3 = arith.constant 3 : index
    %c0_22 = arith.constant 0 : index
    %c0_23 = arith.constant 0 : index
    %24 = vector.load %arg2[%c3, %c0_22, %c0_23] : memref<5x36x80xbf16, #tpu.memory_space<vmem>>, vector<1x36x80xbf16>
    %25 = vector.shape_cast %24 : vector<1x36x80xbf16> to vector<36x80xbf16>
    %cst_24 = arith.constant dense<0.000000e+00> : vector<36x160xf32>
    %26 = tpu.matmul %25, %0, %cst_24 {dimension_numbers = #tpu.dot_dimension_numbers<[1], [0], [0], [1], [0, 0, 1, 1], [], []>} : vector<36x80xbf16>, vector<80x160xbf16>, vector<36x160xf32> -> vector<36x160xf32>
    %27 = arith.truncf %26 : vector<36x160xf32> to vector<36x160xbf16>
    %c3_25 = arith.constant 3 : index
    %c0_26 = arith.constant 0 : index
    %c0_27 = arith.constant 0 : index
    %28 = vector.load %arg3[%c3_25, %c0_26, %c0_27] : memref<5x160x576xbf16, #tpu.memory_space<vmem>>, vector<1x160x576xbf16>
    %29 = vector.shape_cast %28 : vector<1x160x576xbf16> to vector<160x576xbf16>
    %cst_28 = arith.constant dense<0.000000e+00> : vector<36x576xf32>
    %30 = tpu.matmul %27, %29, %cst_28 {dimension_numbers = #tpu.dot_dimension_numbers<[1], [0], [0], [1], [0, 0, 1, 1], [], []>} : vector<36x160xbf16>, vector<160x576xbf16>, vector<36x576xf32> -> vector<36x576xf32>
    %31 = arith.addf %23, %30 : vector<36x576xf32>
    %c4 = arith.constant 4 : index
    %c0_29 = arith.constant 0 : index
    %c0_30 = arith.constant 0 : index
    %32 = vector.load %arg2[%c4, %c0_29, %c0_30] : memref<5x36x80xbf16, #tpu.memory_space<vmem>>, vector<1x36x80xbf16>
    %33 = vector.shape_cast %32 : vector<1x36x80xbf16> to vector<36x80xbf16>
    %cst_31 = arith.constant dense<0.000000e+00> : vector<36x160xf32>
    %34 = tpu.matmul %33, %0, %cst_31 {dimension_numbers = #tpu.dot_dimension_numbers<[1], [0], [0], [1], [0, 0, 1, 1], [], []>} : vector<36x80xbf16>, vector<80x160xbf16>, vector<36x160xf32> -> vector<36x160xf32>
    %35 = arith.truncf %34 : vector<36x160xf32> to vector<36x160xbf16>
    %c4_32 = arith.constant 4 : index
    %c0_33 = arith.constant 0 : index
    %c0_34 = arith.constant 0 : index
    %36 = vector.load %arg3[%c4_32, %c0_33, %c0_34] : memref<5x160x576xbf16, #tpu.memory_space<vmem>>, vector<1x160x576xbf16>
    %37 = vector.shape_cast %36 : vector<1x160x576xbf16> to vector<160x576xbf16>
    %cst_35 = arith.constant dense<0.000000e+00> : vector<36x576xf32>
    %38 = tpu.matmul %35, %37, %cst_35 {dimension_numbers = #tpu.dot_dimension_numbers<[1], [0], [0], [1], [0, 0, 1, 1], [], []>} : vector<36x160xbf16>, vector<160x576xbf16>, vector<36x576xf32> -> vector<36x576xf32>
    %39 = arith.addf %31, %38 : vector<36x576xf32>
    %c0_36 = arith.constant 0 : index
    %c0_37 = arith.constant 0 : index
    %40 = vector.load %arg4[%c0_36, %c0_37] : memref<1x576xf32, #tpu.memory_space<vmem>>, vector<1x576xf32>
    %41 = vector.broadcast %40 : vector<1x576xf32> to vector<36x576xf32>
    %42 = arith.addf %39, %41 : vector<36x576xf32>
    %cst_38 = arith.constant 0.000000e+00 : f32
    %43 = vector.broadcast %cst_38 : f32 to vector<36x576xf32>
    %44 = arith.maximumf %42, %43 : vector<36x576xf32>
    %45 = arith.truncf %44 : vector<36x576xf32> to vector<36x576xbf16>
    %c0_39 = arith.constant 0 : index
    %c0_40 = arith.constant 0 : index
    %c0_41 = arith.constant 0 : index
    %46 = vector.load %arg5[%c0_39, %c0_40, %c0_41] : memref<5x14x36xbf16, #tpu.memory_space<vmem>>, vector<1x14x36xbf16>
    %47 = vector.shape_cast %46 : vector<1x14x36xbf16> to vector<14x36xbf16>
    %cst_42 = arith.constant dense<0.000000e+00> : vector<14x576xf32>
    %48 = tpu.matmul %47, %45, %cst_42 {dimension_numbers = #tpu.dot_dimension_numbers<[1], [0], [0], [1], [0, 0, 1, 1], [], []>} : vector<14x36xbf16>, vector<36x576xbf16>, vector<14x576xf32> -> vector<14x576xf32>
    %49 = arith.truncf %48 : vector<14x576xf32> to vector<14x576xbf16>
    %c0_43 = arith.constant 0 : index
    %c0_44 = arith.constant 0 : index
    %c0_45 = arith.constant 0 : index
    %50 = vector.load %arg6[%c0_43, %c0_44, %c0_45] : memref<5x576x448xbf16, #tpu.memory_space<vmem>>, vector<1x576x448xbf16>
    %51 = vector.shape_cast %50 : vector<1x576x448xbf16> to vector<576x448xbf16>
    %cst_46 = arith.constant dense<0.000000e+00> : vector<14x448xf32>
    %52 = tpu.matmul %49, %51, %cst_46 {dimension_numbers = #tpu.dot_dimension_numbers<[1], [0], [0], [1], [0, 0, 1, 1], [], []>} : vector<14x576xbf16>, vector<576x448xbf16>, vector<14x448xf32> -> vector<14x448xf32>
    %c1_47 = arith.constant 1 : index
    %c0_48 = arith.constant 0 : index
    %c0_49 = arith.constant 0 : index
    %53 = vector.load %arg5[%c1_47, %c0_48, %c0_49] : memref<5x14x36xbf16, #tpu.memory_space<vmem>>, vector<1x14x36xbf16>
    %54 = vector.shape_cast %53 : vector<1x14x36xbf16> to vector<14x36xbf16>
    %cst_50 = arith.constant dense<0.000000e+00> : vector<14x576xf32>
    %55 = tpu.matmul %54, %45, %cst_50 {dimension_numbers = #tpu.dot_dimension_numbers<[1], [0], [0], [1], [0, 0, 1, 1], [], []>} : vector<14x36xbf16>, vector<36x576xbf16>, vector<14x576xf32> -> vector<14x576xf32>
    %56 = arith.truncf %55 : vector<14x576xf32> to vector<14x576xbf16>
    %c1_51 = arith.constant 1 : index
    %c0_52 = arith.constant 0 : index
    %c0_53 = arith.constant 0 : index
    %57 = vector.load %arg6[%c1_51, %c0_52, %c0_53] : memref<5x576x448xbf16, #tpu.memory_space<vmem>>, vector<1x576x448xbf16>
    %58 = vector.shape_cast %57 : vector<1x576x448xbf16> to vector<576x448xbf16>
    %cst_54 = arith.constant dense<0.000000e+00> : vector<14x448xf32>
    %59 = tpu.matmul %56, %58, %cst_54 {dimension_numbers = #tpu.dot_dimension_numbers<[1], [0], [0], [1], [0, 0, 1, 1], [], []>} : vector<14x576xbf16>, vector<576x448xbf16>, vector<14x448xf32> -> vector<14x448xf32>
    %60 = arith.addf %52, %59 : vector<14x448xf32>
    %c2_55 = arith.constant 2 : index
    %c0_56 = arith.constant 0 : index
    %c0_57 = arith.constant 0 : index
    %61 = vector.load %arg5[%c2_55, %c0_56, %c0_57] : memref<5x14x36xbf16, #tpu.memory_space<vmem>>, vector<1x14x36xbf16>
    %62 = vector.shape_cast %61 : vector<1x14x36xbf16> to vector<14x36xbf16>
    %cst_58 = arith.constant dense<0.000000e+00> : vector<14x576xf32>
    %63 = tpu.matmul %62, %45, %cst_58 {dimension_numbers = #tpu.dot_dimension_numbers<[1], [0], [0], [1], [0, 0, 1, 1], [], []>} : vector<14x36xbf16>, vector<36x576xbf16>, vector<14x576xf32> -> vector<14x576xf32>
    %64 = arith.truncf %63 : vector<14x576xf32> to vector<14x576xbf16>
    %c2_59 = arith.constant 2 : index
    %c0_60 = arith.constant 0 : index
    %c0_61 = arith.constant 0 : index
    %65 = vector.load %arg6[%c2_59, %c0_60, %c0_61] : memref<5x576x448xbf16, #tpu.memory_space<vmem>>, vector<1x576x448xbf16>
    %66 = vector.shape_cast %65 : vector<1x576x448xbf16> to vector<576x448xbf16>
    %cst_62 = arith.constant dense<0.000000e+00> : vector<14x448xf32>
    %67 = tpu.matmul %64, %66, %cst_62 {dimension_numbers = #tpu.dot_dimension_numbers<[1], [0], [0], [1], [0, 0, 1, 1], [], []>} : vector<14x576xbf16>, vector<576x448xbf16>, vector<14x448xf32> -> vector<14x448xf32>
    %68 = arith.addf %60, %67 : vector<14x448xf32>
    %c3_63 = arith.constant 3 : index
    %c0_64 = arith.constant 0 : index
    %c0_65 = arith.constant 0 : index
    %69 = vector.load %arg5[%c3_63, %c0_64, %c0_65] : memref<5x14x36xbf16, #tpu.memory_space<vmem>>, vector<1x14x36xbf16>
    %70 = vector.shape_cast %69 : vector<1x14x36xbf16> to vector<14x36xbf16>
    %cst_66 = arith.constant dense<0.000000e+00> : vector<14x576xf32>
    %71 = tpu.matmul %70, %45, %cst_66 {dimension_numbers = #tpu.dot_dimension_numbers<[1], [0], [0], [1], [0, 0, 1, 1], [], []>} : vector<14x36xbf16>, vector<36x576xbf16>, vector<14x576xf32> -> vector<14x576xf32>
    %72 = arith.truncf %71 : vector<14x576xf32> to vector<14x576xbf16>
    %c3_67 = arith.constant 3 : index
    %c0_68 = arith.constant 0 : index
    %c0_69 = arith.constant 0 : index
    %73 = vector.load %arg6[%c3_67, %c0_68, %c0_69] : memref<5x576x448xbf16, #tpu.memory_space<vmem>>, vector<1x576x448xbf16>
    %74 = vector.shape_cast %73 : vector<1x576x448xbf16> to vector<576x448xbf16>
    %cst_70 = arith.constant dense<0.000000e+00> : vector<14x448xf32>
    %75 = tpu.matmul %72, %74, %cst_70 {dimension_numbers = #tpu.dot_dimension_numbers<[1], [0], [0], [1], [0, 0, 1, 1], [], []>} : vector<14x576xbf16>, vector<576x448xbf16>, vector<14x448xf32> -> vector<14x448xf32>
    %76 = arith.addf %68, %75 : vector<14x448xf32>
    %c4_71 = arith.constant 4 : index
    %c0_72 = arith.constant 0 : index
    %c0_73 = arith.constant 0 : index
    %77 = vector.load %arg5[%c4_71, %c0_72, %c0_73] : memref<5x14x36xbf16, #tpu.memory_space<vmem>>, vector<1x14x36xbf16>
    %78 = vector.shape_cast %77 : vector<1x14x36xbf16> to vector<14x36xbf16>
    %cst_74 = arith.constant dense<0.000000e+00> : vector<14x576xf32>
    %79 = tpu.matmul %78, %45, %cst_74 {dimension_numbers = #tpu.dot_dimension_numbers<[1], [0], [0], [1], [0, 0, 1, 1], [], []>} : vector<14x36xbf16>, vector<36x576xbf16>, vector<14x576xf32> -> vector<14x576xf32>
    %80 = arith.truncf %79 : vector<14x576xf32> to vector<14x576xbf16>
    %c4_75 = arith.constant 4 : index
    %c0_76 = arith.constant 0 : index
    %c0_77 = arith.constant 0 : index
    %81 = vector.load %arg6[%c4_75, %c0_76, %c0_77] : memref<5x576x448xbf16, #tpu.memory_space<vmem>>, vector<1x576x448xbf16>
    %82 = vector.shape_cast %81 : vector<1x576x448xbf16> to vector<576x448xbf16>
    %cst_78 = arith.constant dense<0.000000e+00> : vector<14x448xf32>
    %83 = tpu.matmul %80, %82, %cst_78 {dimension_numbers = #tpu.dot_dimension_numbers<[1], [0], [0], [1], [0, 0, 1, 1], [], []>} : vector<14x576xbf16>, vector<576x448xbf16>, vector<14x448xf32> -> vector<14x448xf32>
    %84 = arith.addf %76, %83 : vector<14x448xf32>
    %c0_79 = arith.constant 0 : index
    %c0_80 = arith.constant 0 : index
    %85 = vector.load %arg7[%c0_79, %c0_80] : memref<1x448xf32, #tpu.memory_space<vmem>>, vector<1x448xf32>
    %86 = vector.broadcast %85 : vector<1x448xf32> to vector<14x448xf32>
    %87 = arith.addf %84, %86 : vector<14x448xf32>
    %cst_81 = arith.constant 0.000000e+00 : f32
    %88 = vector.broadcast %cst_81 : f32 to vector<14x448xf32>
    %89 = arith.maximumf %87, %88 : vector<14x448xf32>
    %90 = arith.truncf %89 : vector<14x448xf32> to vector<14x448xbf16>
    %c0_82 = arith.constant 0 : index
    %c0_83 = arith.constant 0 : index
    %c0_84 = arith.constant 0 : index
    %91 = vector.load %arg8[%c0_82, %c0_83, %c0_84] : memref<3x6x14xbf16, #tpu.memory_space<vmem>>, vector<1x6x14xbf16>
    %92 = vector.shape_cast %91 : vector<1x6x14xbf16> to vector<6x14xbf16>
    %cst_85 = arith.constant dense<0.000000e+00> : vector<6x448xf32>
    %93 = tpu.matmul %92, %90, %cst_85 {dimension_numbers = #tpu.dot_dimension_numbers<[1], [0], [0], [1], [0, 0, 1, 1], [], []>} : vector<6x14xbf16>, vector<14x448xbf16>, vector<6x448xf32> -> vector<6x448xf32>
    %94 = arith.truncf %93 : vector<6x448xf32> to vector<6x448xbf16>
    %c0_86 = arith.constant 0 : index
    %c0_87 = arith.constant 0 : index
    %c0_88 = arith.constant 0 : index
    %95 = vector.load %arg9[%c0_86, %c0_87, %c0_88] : memref<3x448x192xbf16, #tpu.memory_space<vmem>>, vector<1x448x192xbf16>
    %96 = vector.shape_cast %95 : vector<1x448x192xbf16> to vector<448x192xbf16>
    %cst_89 = arith.constant dense<0.000000e+00> : vector<6x192xf32>
    %97 = tpu.matmul %94, %96, %cst_89 {dimension_numbers = #tpu.dot_dimension_numbers<[1], [0], [0], [1], [0, 0, 1, 1], [], []>} : vector<6x448xbf16>, vector<448x192xbf16>, vector<6x192xf32> -> vector<6x192xf32>
    %c1_90 = arith.constant 1 : index
    %c0_91 = arith.constant 0 : index
    %c0_92 = arith.constant 0 : index
    %98 = vector.load %arg8[%c1_90, %c0_91, %c0_92] : memref<3x6x14xbf16, #tpu.memory_space<vmem>>, vector<1x6x14xbf16>
    %99 = vector.shape_cast %98 : vector<1x6x14xbf16> to vector<6x14xbf16>
    %cst_93 = arith.constant dense<0.000000e+00> : vector<6x448xf32>
    %100 = tpu.matmul %99, %90, %cst_93 {dimension_numbers = #tpu.dot_dimension_numbers<[1], [0], [0], [1], [0, 0, 1, 1], [], []>} : vector<6x14xbf16>, vector<14x448xbf16>, vector<6x448xf32> -> vector<6x448xf32>
    %101 = arith.truncf %100 : vector<6x448xf32> to vector<6x448xbf16>
    %c1_94 = arith.constant 1 : index
    %c0_95 = arith.constant 0 : index
    %c0_96 = arith.constant 0 : index
    %102 = vector.load %arg9[%c1_94, %c0_95, %c0_96] : memref<3x448x192xbf16, #tpu.memory_space<vmem>>, vector<1x448x192xbf16>
    %103 = vector.shape_cast %102 : vector<1x448x192xbf16> to vector<448x192xbf16>
    %cst_97 = arith.constant dense<0.000000e+00> : vector<6x192xf32>
    %104 = tpu.matmul %101, %103, %cst_97 {dimension_numbers = #tpu.dot_dimension_numbers<[1], [0], [0], [1], [0, 0, 1, 1], [], []>} : vector<6x448xbf16>, vector<448x192xbf16>, vector<6x192xf32> -> vector<6x192xf32>
    %105 = arith.addf %97, %104 : vector<6x192xf32>
    %c2_98 = arith.constant 2 : index
    %c0_99 = arith.constant 0 : index
    %c0_100 = arith.constant 0 : index
    %106 = vector.load %arg8[%c2_98, %c0_99, %c0_100] : memref<3x6x14xbf16, #tpu.memory_space<vmem>>, vector<1x6x14xbf16>
    %107 = vector.shape_cast %106 : vector<1x6x14xbf16> to vector<6x14xbf16>
    %cst_101 = arith.constant dense<0.000000e+00> : vector<6x448xf32>
    %108 = tpu.matmul %107, %90, %cst_101 {dimension_numbers = #tpu.dot_dimension_numbers<[1], [0], [0], [1], [0, 0, 1, 1], [], []>} : vector<6x14xbf16>, vector<14x448xbf16>, vector<6x448xf32> -> vector<6x448xf32>
    %109 = arith.truncf %108 : vector<6x448xf32> to vector<6x448xbf16>
    %c2_102 = arith.constant 2 : index
    %c0_103 = arith.constant 0 : index
    %c0_104 = arith.constant 0 : index
    %110 = vector.load %arg9[%c2_102, %c0_103, %c0_104] : memref<3x448x192xbf16, #tpu.memory_space<vmem>>, vector<1x448x192xbf16>
    %111 = vector.shape_cast %110 : vector<1x448x192xbf16> to vector<448x192xbf16>
    %cst_105 = arith.constant dense<0.000000e+00> : vector<6x192xf32>
    %112 = tpu.matmul %109, %111, %cst_105 {dimension_numbers = #tpu.dot_dimension_numbers<[1], [0], [0], [1], [0, 0, 1, 1], [], []>} : vector<6x448xbf16>, vector<448x192xbf16>, vector<6x192xf32> -> vector<6x192xf32>
    %113 = arith.addf %105, %112 : vector<6x192xf32>
    %c0_106 = arith.constant 0 : index
    %c0_107 = arith.constant 0 : index
    %114 = vector.load %arg10[%c0_106, %c0_107] : memref<1x192xf32, #tpu.memory_space<vmem>>, vector<1x192xf32>
    %115 = vector.broadcast %114 : vector<1x192xf32> to vector<6x192xf32>
    %116 = arith.addf %113, %115 : vector<6x192xf32>
    %cst_108 = arith.constant 0.000000e+00 : f32
    %117 = vector.broadcast %cst_108 : f32 to vector<6x192xf32>
    %118 = arith.maximumf %116, %117 : vector<6x192xf32>
    %119 = arith.truncf %118 : vector<6x192xf32> to vector<6x192xbf16>
    %c0_109 = arith.constant 0 : index
    %c0_110 = arith.constant 0 : index
    %c0_111 = arith.constant 0 : index
    %120 = vector.load %arg11[%c0_109, %c0_110, %c0_111] : memref<3x2x6xbf16, #tpu.memory_space<vmem>>, vector<1x2x6xbf16>
    %121 = vector.shape_cast %120 : vector<1x2x6xbf16> to vector<2x6xbf16>
    %cst_112 = arith.constant dense<0.000000e+00> : vector<2x192xf32>
    %122 = tpu.matmul %121, %119, %cst_112 {dimension_numbers = #tpu.dot_dimension_numbers<[1], [0], [0], [1], [0, 0, 1, 1], [], []>} : vector<2x6xbf16>, vector<6x192xbf16>, vector<2x192xf32> -> vector<2x192xf32>
    %123 = arith.truncf %122 : vector<2x192xf32> to vector<2x192xbf16>
    %c0_113 = arith.constant 0 : index
    %c0_114 = arith.constant 0 : index
    %c0_115 = arith.constant 0 : index
    %124 = vector.load %arg12[%c0_113, %c0_114, %c0_115] : memref<3x192x64xbf16, #tpu.memory_space<vmem>>, vector<1x192x64xbf16>
    %125 = vector.shape_cast %124 : vector<1x192x64xbf16> to vector<192x64xbf16>
    %cst_116 = arith.constant dense<0.000000e+00> : vector<2x64xf32>
    %126 = tpu.matmul %123, %125, %cst_116 {dimension_numbers = #tpu.dot_dimension_numbers<[1], [0], [0], [1], [0, 0, 1, 1], [], []>} : vector<2x192xbf16>, vector<192x64xbf16>, vector<2x64xf32> -> vector<2x64xf32>
    %c1_117 = arith.constant 1 : index
    %c0_118 = arith.constant 0 : index
    %c0_119 = arith.constant 0 : index
    %127 = vector.load %arg11[%c1_117, %c0_118, %c0_119] : memref<3x2x6xbf16, #tpu.memory_space<vmem>>, vector<1x2x6xbf16>
    %128 = vector.shape_cast %127 : vector<1x2x6xbf16> to vector<2x6xbf16>
    %cst_120 = arith.constant dense<0.000000e+00> : vector<2x192xf32>
    %129 = tpu.matmul %128, %119, %cst_120 {dimension_numbers = #tpu.dot_dimension_numbers<[1], [0], [0], [1], [0, 0, 1, 1], [], []>} : vector<2x6xbf16>, vector<6x192xbf16>, vector<2x192xf32> -> vector<2x192xf32>
    %130 = arith.truncf %129 : vector<2x192xf32> to vector<2x192xbf16>
    %c1_121 = arith.constant 1 : index
    %c0_122 = arith.constant 0 : index
    %c0_123 = arith.constant 0 : index
    %131 = vector.load %arg12[%c1_121, %c0_122, %c0_123] : memref<3x192x64xbf16, #tpu.memory_space<vmem>>, vector<1x192x64xbf16>
    %132 = vector.shape_cast %131 : vector<1x192x64xbf16> to vector<192x64xbf16>
    %cst_124 = arith.constant dense<0.000000e+00> : vector<2x64xf32>
    %133 = tpu.matmul %130, %132, %cst_124 {dimension_numbers = #tpu.dot_dimension_numbers<[1], [0], [0], [1], [0, 0, 1, 1], [], []>} : vector<2x192xbf16>, vector<192x64xbf16>, vector<2x64xf32> -> vector<2x64xf32>
    %134 = arith.addf %126, %133 : vector<2x64xf32>
    %c2_125 = arith.constant 2 : index
    %c0_126 = arith.constant 0 : index
    %c0_127 = arith.constant 0 : index
    %135 = vector.load %arg11[%c2_125, %c0_126, %c0_127] : memref<3x2x6xbf16, #tpu.memory_space<vmem>>, vector<1x2x6xbf16>
    %136 = vector.shape_cast %135 : vector<1x2x6xbf16> to vector<2x6xbf16>
    %cst_128 = arith.constant dense<0.000000e+00> : vector<2x192xf32>
    %137 = tpu.matmul %136, %119, %cst_128 {dimension_numbers = #tpu.dot_dimension_numbers<[1], [0], [0], [1], [0, 0, 1, 1], [], []>} : vector<2x6xbf16>, vector<6x192xbf16>, vector<2x192xf32> -> vector<2x192xf32>
    %138 = arith.truncf %137 : vector<2x192xf32> to vector<2x192xbf16>
    %c2_129 = arith.constant 2 : index
    %c0_130 = arith.constant 0 : index
    %c0_131 = arith.constant 0 : index
    %139 = vector.load %arg12[%c2_129, %c0_130, %c0_131] : memref<3x192x64xbf16, #tpu.memory_space<vmem>>, vector<1x192x64xbf16>
    %140 = vector.shape_cast %139 : vector<1x192x64xbf16> to vector<192x64xbf16>
    %cst_132 = arith.constant dense<0.000000e+00> : vector<2x64xf32>
    %141 = tpu.matmul %138, %140, %cst_132 {dimension_numbers = #tpu.dot_dimension_numbers<[1], [0], [0], [1], [0, 0, 1, 1], [], []>} : vector<2x192xbf16>, vector<192x64xbf16>, vector<2x64xf32> -> vector<2x64xf32>
    %142 = arith.addf %134, %141 : vector<2x64xf32>
    %c0_133 = arith.constant 0 : index
    %c0_134 = arith.constant 0 : index
    %143 = vector.load %arg13[%c0_133, %c0_134] : memref<1x64xf32, #tpu.memory_space<vmem>>, vector<1x64xf32>
    %144 = vector.broadcast %143 : vector<1x64xf32> to vector<2x64xf32>
    %145 = arith.addf %142, %144 : vector<2x64xf32>
    %cst_135 = arith.constant 0.000000e+00 : f32
    %146 = vector.broadcast %cst_135 : f32 to vector<2x64xf32>
    %147 = arith.maximumf %145, %146 : vector<2x64xf32>
    %148 = arith.truncf %147 : vector<2x64xf32> to vector<2x64xbf16>
    %c0_136 = arith.constant 0 : index
    %c0_137 = arith.constant 0 : index
    %c0_138 = arith.constant 0 : index
    %149 = vector.load %arg14[%c0_136, %c0_137, %c0_138] : memref<1x64x512xbf16, #tpu.memory_space<vmem>>, vector<1x64x512xbf16>
    %150 = vector.shape_cast %149 : vector<1x64x512xbf16> to vector<64x512xbf16>
    %cst_139 = arith.constant dense<0.000000e+00> : vector<2x512xf32>
    %151 = tpu.matmul %148, %150, %cst_139 {dimension_numbers = #tpu.dot_dimension_numbers<[1], [0], [0], [1], [0, 0, 1, 1], [], []>} : vector<2x64xbf16>, vector<64x512xbf16>, vector<2x512xf32> -> vector<2x512xf32>
    %c0_140 = arith.constant 0 : index
    %c0_141 = arith.constant 0 : index
    %152 = vector.load %arg15[%c0_140, %c0_141] : memref<1x512xf32, #tpu.memory_space<vmem>>, vector<1x512xf32>
    %153 = vector.broadcast %152 : vector<1x512xf32> to vector<2x512xf32>
    %154 = arith.addf %151, %153 : vector<2x512xf32>
    %cst_142 = arith.constant 0.000000e+00 : f32
    %155 = vector.broadcast %cst_142 : f32 to vector<2x512xf32>
    %156 = arith.maximumf %154, %155 : vector<2x512xf32>
    %157 = arith.truncf %156 : vector<2x512xf32> to vector<2x512xbf16>
    %c0_143 = arith.constant 0 : index
    %c0_144 = arith.constant 0 : index
    %c0_145 = arith.constant 0 : index
    %158 = vector.load %arg16[%c0_143, %c0_144, %c0_145] : memref<1x512x128xbf16, #tpu.memory_space<vmem>>, vector<1x512x128xbf16>
    %159 = vector.shape_cast %158 : vector<1x512x128xbf16> to vector<512x128xbf16>
    %cst_146 = arith.constant dense<0.000000e+00> : vector<2x128xf32>
    %160 = tpu.matmul %157, %159, %cst_146 {dimension_numbers = #tpu.dot_dimension_numbers<[1], [0], [0], [1], [0, 0, 1, 1], [], []>} : vector<2x512xbf16>, vector<512x128xbf16>, vector<2x128xf32> -> vector<2x128xf32>
    %c0_147 = arith.constant 0 : index
    %c0_148 = arith.constant 0 : index
    %161 = vector.load %arg17[%c0_147, %c0_148] : memref<1x128xf32, #tpu.memory_space<vmem>>, vector<1x128xf32>
    %162 = vector.broadcast %161 : vector<1x128xf32> to vector<2x128xf32>
    %163 = arith.addf %160, %162 : vector<2x128xf32>
    %c0_149 = arith.constant 0 : index
    %c0_150 = arith.constant 0 : index
    %164 = vector.load %arg18[%c0_149, %c0_150] : memref<2x128xf32, #tpu.memory_space<vmem>>, vector<2x128xf32>
    tpu.vector_store %arg18[%c0_149, %c0_150], %163 {strides = array<i32>} : memref<2x128xf32, #tpu.memory_space<vmem>>, vector<2x128xf32>,
    return
  }
  func.func @transform_0(%arg0: i32) -> (i32, i32) {
    %c0_i32 = arith.constant 0 : i32
    %c0_i32_0 = arith.constant 0 : i32
    return %arg0, %c0_i32 : i32, i32
  }
  func.func @transform_1(%arg0: i32) -> (i32, i32, i32) {
    %c0_i32 = arith.constant 0 : i32
    %c0_i32_0 = arith.constant 0 : i32
    %c0_i32_1 = arith.constant 0 : i32
    %c0_i32_2 = arith.constant 0 : i32
    return %c0_i32, %c0_i32_0, %c0_i32_1 : i32, i32, i32
  }
  func.func @transform_2(%arg0: i32) -> (i32, i32, i32) {
    %c0_i32 = arith.constant 0 : i32
    %c0_i32_0 = arith.constant 0 : i32
    %c0_i32_1 = arith.constant 0 : i32
    %c0_i32_2 = arith.constant 0 : i32
    return %c0_i32, %c0_i32_0, %c0_i32_1 : i32, i32, i32
  }
  func.func @transform_3(%arg0: i32) -> (i32, i32) {
    %c0_i32 = arith.constant 0 : i32
    %c0_i32_0 = arith.constant 0 : i32
    %c0_i32_1 = arith.constant 0 : i32
    return %c0_i32, %c0_i32_0 : i32, i32
  }
  func.func @transform_4(%arg0: i32) -> (i32, i32, i32) {
    %c0_i32 = arith.constant 0 : i32
    %c0_i32_0 = arith.constant 0 : i32
    %c0_i32_1 = arith.constant 0 : i32
    %c0_i32_2 = arith.constant 0 : i32
    return %c0_i32, %c0_i32_0, %c0_i32_1 : i32, i32, i32
  }
  func.func @transform_5(%arg0: i32) -> (i32, i32, i32) {
    %c0_i32 = arith.constant 0 : i32
    %c0_i32_0 = arith.constant 0 : i32
    %c0_i32_1 = arith.constant 0 : i32
    %c0_i32_2 = arith.constant 0 : i32
    return %c0_i32, %c0_i32_0, %c0_i32_1 : i32, i32, i32
  }
  func.func @transform_6(%arg0: i32) -> (i32, i32) {
    %c0_i32 = arith.constant 0 : i32
    %c0_i32_0 = arith.constant 0 : i32
    %c0_i32_1 = arith.constant 0 : i32
    return %c0_i32, %c0_i32_0 : i32, i32
  }
  func.func @transform_7(%arg0: i32) -> (i32, i32, i32) {
    %c0_i32 = arith.constant 0 : i32
    %c0_i32_0 = arith.constant 0 : i32
    %c0_i32_1 = arith.constant 0 : i32
    %c0_i32_2 = arith.constant 0 : i32
    return %c0_i32, %c0_i32_0, %c0_i32_1 : i32, i32, i32
  }
  func.func @transform_8(%arg0: i32) -> (i32, i32, i32) {
    %c0_i32 = arith.constant 0 : i32
    %c0_i32_0 = arith.constant 0 : i32
    %c0_i32_1 = arith.constant 0 : i32
    %c0_i32_2 = arith.constant 0 : i32
    return %c0_i32, %c0_i32_0, %c0_i32_1 : i32, i32, i32
  }
  func.func @transform_9(%arg0: i32) -> (i32, i32) {
    %c0_i32 = arith.constant 0 : i32
    %c0_i32_0 = arith.constant 0 : i32
    %c0_i32_1 = arith.constant 0 : i32
    return %c0_i32, %c0_i32_0 : i32, i32
  }
  func.func @transform_10(%arg0: i32) -> (i32, i32, i32) {
    %c0_i32 = arith.constant 0 : i32
    %c0_i32_0 = arith.constant 0 : i32
    %c0_i32_1 = arith.constant 0 : i32
    %c0_i32_2 = arith.constant 0 : i32
    return %c0_i32, %c0_i32_0, %c0_i32_1 : i32, i32, i32
  }
  func.func @transform_11(%arg0: i32) -> (i32, i32, i32) {
    %c0_i32 = arith.constant 0 : i32
    %c0_i32_0 = arith.constant 0 : i32
    %c0_i32_1 = arith.constant 0 : i32
    %c0_i32_2 = arith.constant 0 : i32
    return %c0_i32, %c0_i32_0, %c0_i32_1 : i32, i32, i32
  }
  func.func @transform_12(%arg0: i32) -> (i32, i32) {
    %c0_i32 = arith.constant 0 : i32
    %c0_i32_0 = arith.constant 0 : i32
    %c0_i32_1 = arith.constant 0 : i32
    return %c0_i32, %c0_i32_0 : i32, i32
  }
  func.func @transform_13(%arg0: i32) -> (i32, i32, i32) {
    %c0_i32 = arith.constant 0 : i32
    %c0_i32_0 = arith.constant 0 : i32
    %c0_i32_1 = arith.constant 0 : i32
    %c0_i32_2 = arith.constant 0 : i32
    return %c0_i32, %c0_i32_0, %c0_i32_1 : i32, i32, i32
  }
  func.func @transform_14(%arg0: i32) -> (i32, i32) {
    %c0_i32 = arith.constant 0 : i32
    %c0_i32_0 = arith.constant 0 : i32
    %c0_i32_1 = arith.constant 0 : i32
    return %c0_i32, %c0_i32_0 : i32, i32
  }
  func.func @transform_15(%arg0: i32) -> (i32, i32, i32) {
    %c0_i32 = arith.constant 0 : i32
    %c0_i32_0 = arith.constant 0 : i32
    %c0_i32_1 = arith.constant 0 : i32
    %c0_i32_2 = arith.constant 0 : i32
    return %c0_i32, %c0_i32_0, %c0_i32_1 : i32, i32, i32
  }
  func.func @transform_16(%arg0: i32) -> (i32, i32) {
    %c0_i32 = arith.constant 0 : i32
    %c0_i32_0 = arith.constant 0 : i32
    %c0_i32_1 = arith.constant 0 : i32
    return %c0_i32, %c0_i32_0 : i32, i32
  }
  func.func @transform_17(%arg0: i32) -> (i32, i32) {
    %c0_i32 = arith.constant 0 : i32
    %c0_i32_0 = arith.constant 0 : i32
    return %arg0, %c0_i32 : i32, i32
  }
}

</mosaic_0001>

<bundles_post_ra>
// kernel: qnetwork_forward.1
= control target key start
LH: loop header
LB: loop body
LE: loop exit
PB: predicated region body
PF: predicated region fallthrough
CT: control target
= control target key end

     0   :  { %s28797_s0 = inlined_call_operand.vmem [shape: bf16[80,160], index: 0, kind: input, shape index: {}]   ;;  %s28798_s1 = inlined_call_operand.vmem [shape: bf16[5,36,80], index: 1, kind: input, shape index: {}]   ;;  %s28799_s2 = inlined_call_operand.vmem [shape: bf16[5,160,576], index: 2, kind: input, shape index: {}]   ;;  %s28800_s3 = inlined_call_operand.vmem [shape: f32[1,576], index: 3, kind: input, shape index: {}]   ;;  %s28801_s4 = inlined_call_operand.vmem [shape: bf16[5,14,36], index: 4, kind: input, shape index: {}]   ;;  %s28802_s5 = inlined_call_operand.vmem [shape: bf16[5,576,448], index: 5, kind: input, shape index: {}]   ;;  %s28803_s6 = inlined_call_operand.vmem [shape: f32[1,448], index: 6, kind: input, shape index: {}]   ;;  %s28804_s7 = inlined_call_operand.vmem [shape: bf16[3,6,14], index: 7, kind: input, shape index: {}]   ;;  %s28805_s8 = inlined_call_operand.vmem [shape: bf16[3,448,192], index: 8, kind: input, shape index: {}]   ;;  %s28806_s9 = inlined_call_operand.vmem [shape: f32[1,192], index: 9, kind: input, shape index: {}]   ;;  %s28807_s10 = inlined_call_operand.vmem [shape: bf16[3,2,6], index: 10, kind: input, shape index: {}]   ;;  %s28808_s11 = inlined_call_operand.vmem [shape: bf16[3,192,64], index: 11, kind: input, shape index: {}]   ;;  %s28809_s12 = inlined_call_operand.vmem [shape: f32[1,64], index: 12, kind: input, shape index: {}]   ;;  %s28810_s13 = inlined_call_operand.vmem [shape: bf16[1,64,512], index: 13, kind: input, shape index: {}]   ;;  %s28811_s14 = inlined_call_operand.vmem [shape: f32[1,512], index: 14, kind: input, shape index: {}]   ;;  %s28812_s15 = inlined_call_operand.vmem [shape: bf16[1,512,128], index: 15, kind: input, shape index: {}]   ;;  %s28813_s16 = inlined_call_operand.vmem [shape: f32[1,128], index: 16, kind: input, shape index: {}]   ;;  %s28814_s17 = inlined_call_operand.hbm [shape: f32[2,128], index: 17, kind: output, shape index: {}]  }
   0x1   :  { %28817 = sst [smem:[#allocation52_spill]] %s28797_s0 }
   0x2   :  { %28818 = sst [smem:[#allocation53_spill]] %s28798_s1 }
   0x3   :  { %s28819_s26 = sld [smem:[#allocation52_spill]] }
   0x9   :  { %v12282_v0 = vld [vmem:[%s28819_s26 + $0x40] sm:$0xf]  ;;  %v18426_v1 = vld [vmem:[%s28819_s26 + $0x44] sm:$0xf0]  ;;  %v18425_v2 = vld [vmem:[%s28819_s26 + $0x44] sm:$0xf] }
   0xa   :  { %v19793_v3 = vor.u32 %v18426_v1, %v12282_v0  ;;  %v12284_v4 = vld [vmem:[%s28819_s26 + $0x48] sm:$0xf0]  ;;  %v12274_v5 = vld [vmem:[%s28819_s26 + $0x30] sm:$0xf]  ;;  %v18424_v6 = vld [vmem:[%s28819_s26 + $0x34] sm:$0xf0] }
   0xb   :  { %v19804_v7 = vor.u32 %v18425_v2, %v12284_v4  ;;  %v18423_v8 = vld [vmem:[%s28819_s26 + $0x34] sm:$0xf]  ;;  %v12276_v9 = vld [vmem:[%s28819_s26 + $0x38] sm:$0xf0]  ;;  %v19813_v10 = vor.u32 %v18424_v6, %v12274_v5  ;;  %v12266_v12 = vld [vmem:[%s28819_s26 + $0x20] sm:$0xf] }
   0xc   :  { %289 = vmatpush.bf16.msra.mxu2 %v19793_v3  ;;  %149 = vmatpush.bf16.msra.mxu0 %v19793_v3  ;;  %v19817_v11 = vor.u32 %v18423_v8, %v12276_v9  ;;  %v18422_v13 = vld [vmem:[%s28819_s26 + $0x24] sm:$0xf0]  ;;  %v18421_v14 = vld [vmem:[%s28819_s26 + $0x24] sm:$0xf]  ;;  %v12268_v15 = vld [vmem:[%s28819_s26 + $0x28] sm:$0xf0] }
   0xd   :  { %312 = vmatpush.bf16.msra.mxu3 %v19804_v7  ;;  %172 = vmatpush.bf16.msra.mxu1 %v19804_v7  ;;  %v19833_v16 = vor.u32 %v18422_v13, %v12266_v12  ;;  %v12258_v17 = vld [vmem:[%s28819_s26 + $0x10] sm:$0xf]  ;;  %v19840_v18 = vor.u32 %v18421_v14, %v12268_v15  ;;  %v18420_v19 = vld [vmem:[%s28819_s26 + $0x14] sm:$0xf0] }
  0x10   :  { %290 = vmatpush.bf16.msra.mxu2 %v19813_v10  ;;  %150 = vmatpush.bf16.msra.mxu0 %v19813_v10 }
  0x11   :  { %313 = vmatpush.bf16.msra.mxu3 %v19817_v11  ;;  %173 = vmatpush.bf16.msra.mxu1 %v19817_v11 }
  0x12   :  { %22 = vsyncpa [#allocation3], 0  ;;  %v18419_v20 = vld [vmem:[%s28819_s26 + $0x14] sm:$0xf]  ;;  %v12260_v21 = vld [vmem:[%s28819_s26 + $0x18] sm:$0xf0]  ;;  %v19853_v22 = vor.u32 %v18420_v19, %v12258_v17 }
  0x13   :  { %v19857_v23 = vor.u32 %v18419_v20, %v12260_v21  ;;  %v12250_v24 = vld [vmem:[%s28819_s26] sm:$0xf]  ;;  %v18418_v25 = vld [vmem:[%s28819_s26 + $0x4] sm:$0xf0]  ;;  %v18417_v26 = vld [vmem:[%s28819_s26 + $0x4] sm:$0xf] }
  0x14   :  { %291 = vmatpush.bf16.msra.mxu2 %v19833_v16  ;;  %151 = vmatpush.bf16.msra.mxu0 %v19833_v16  ;;  %v12252_v27 = vld [vmem:[%s28819_s26 + $0x8] sm:$0xf0]  ;;  %v19873_v28 = vor.u32 %v18418_v25, %v12250_v24  ;;  %s28820_s24 = sld [smem:[#allocation53_spill]]  ;;  %vm136_vm0 = vcmask 654336   ;;  %v12515_v32 = vld [vmem:[%s28799_s2 + $0x2a8] sm:$0xf] }
  0x15   :  { %314 = vmatpush.bf16.msra.mxu3 %v19840_v18  ;;  %174 = vmatpush.bf16.msra.mxu1 %v19840_v18  ;;  %v19877_v29 = vor.u32 %v18417_v26, %v12252_v27  ;;  %v18518_v33 = vld [vmem:[%s28799_s2 + $0x2b8] sm:$0xf0]  ;;  %v18516_v34 = vld [vmem:[%s28799_s2 + $0x2ac] sm:$0xf]  ;;  %v12517_v35 = vld [vmem:[%s28799_s2 + $0x2bc] sm:$0xf0] }
  0x16   :  { %v12516_v36 = vor.u32 %v18518_v33, %v12515_v32  ;;  %v12520_v37 = vor.u32 %v18516_v34, %v12517_v35  ;;  %v12495_v38 = vld [vmem:[%s28799_s2 + $0x280] sm:$0xf]  ;;  %v18513_v39 = vld [vmem:[%s28799_s2 + $0x290] sm:$0xf0]  ;;  %v18511_v40 = vld [vmem:[%s28799_s2 + $0x284] sm:$0xf] }
  0x17   :  { %v12497_v41 = vld [vmem:[%s28799_s2 + $0x294] sm:$0xf0]  ;;  %v12496_v42 = vor.u32 %v18513_v39, %v12495_v38  ;;  %v18508_v45 = vld [vmem:[%s28799_s2 + $0x268] sm:$0xf0]  ;;  %v18506_v46 = vld [vmem:[%s28799_s2 + $0x25c] sm:$0xf] }
  0x18   :  { %292 = vmatpush.bf16.msra.mxu2 %v19853_v22  ;;  %152 = vmatpush.bf16.msra.mxu0 %v19853_v22  ;;  %v12500_v43 = vor.u32 %v18511_v40, %v12497_v41  ;;  %v12475_v44 = vld [vmem:[%s28799_s2 + $0x258] sm:$0xf]  ;;  %v12477_v47 = vld [vmem:[%s28799_s2 + $0x26c] sm:$0xf0]  ;;  %v18503_v51 = vld [vmem:[%s28799_s2 + $0x240] sm:$0xf0] }
  0x19   :  { %315 = vmatpush.bf16.msra.mxu3 %v19857_v23  ;;  %175 = vmatpush.bf16.msra.mxu1 %v19857_v23  ;;  %v12476_v48 = vor.u32 %v18508_v45, %v12475_v44  ;;  %v12480_v49 = vor.u32 %v18506_v46, %v12477_v47  ;;  %v12455_v50 = vld [vmem:[%s28799_s2 + $0x230] sm:$0xf]  ;;  %v18501_v52 = vld [vmem:[%s28799_s2 + $0x234] sm:$0xf]  ;;  %v12457_v53 = vld [vmem:[%s28799_s2 + $0x244] sm:$0xf0] }
  0x1a   :  { %v18479_v30 = vld [vmem:[%s28820_s24 + $0x14] sm:$0xff]  ;;  %v18427_v31 = vld [vmem:[%s28820_s24] sm:$0xff]  ;;  %v12456_v55 = vor.u32 %v18503_v51, %v12455_v50  ;;  %v12460_v56 = vor.u32 %v18501_v52, %v12457_v53  ;;  %v12435_v57 = vld [vmem:[%s28799_s2 + $0x208] sm:$0xf]  ;;  %vm659_vm1 = vcmask 261120   ;;  %vm3481_vm2 = vcmask 1041408  }
  0x1b   :  { %v18480_v54 = vld [vmem:[%s28820_s24 + $0x1c] sm:$0xff]  ;;  %v18428_v59 = vld [vmem:[%s28820_s24 + $0x8] sm:$0xff]  ;;  %v12298_v0 = vld [vmem:[%s28820_s24 + $0x24] sm:$0x3]  ;;  %vm3477_vm3 = vcmask 293888   ;;  %vm4667_vm4 = vcmask 523264  }
  0x1c   :  { %293 = vmatpush.bf16.msra.mxu2 %v19873_v28  ;;  %153 = vmatpush.bf16.msra.mxu0 %v19873_v28  ;;  %v18498_v58 = vld [vmem:[%s28799_s2 + $0x218] sm:$0xf0]  ;;  %v18496_v60 = vld [vmem:[%s28799_s2 + $0x20c] sm:$0xf]  ;;  %v12437_v61 = vld [vmem:[%s28799_s2 + $0x21c] sm:$0xf0]  ;;  %v273_v1 = vunpack.c.l.b16 %v12298_v0 }
  0x1d   :  { %316 = vmatpush.bf16.msra.mxu3 %v19877_v29  ;;  %176 = vmatpush.bf16.msra.mxu1 %v19877_v29  ;;  %v12436_v62 = vor.u32 %v18498_v58, %v12435_v57  ;;  %v12440_v63 = vor.u32 %v18496_v60, %v12437_v61  ;;  %v72_v2 = vld [vmem:[%s28820_s24 + $0x10] sm:$0x3]  ;;  %v12415_v8 = vld [vmem:[%s28799_s2 + $0x1e0] sm:$0xf]  ;;  %v18493_v9 = vld [vmem:[%s28799_s2 + $0x1f0] sm:$0xf0] }
  0x1e   :  { %v82_v4 = vunpack.c.l.b16 %v72_v2  ;;  %v276_v5 = vpack.c.b16 %v273_v1, %v273_v1  ;;  %v18491_v12 = vld [vmem:[%s28799_s2 + $0x1e4] sm:$0xf]  ;;  %v12416_v13 = vor.u32 %v18493_v9, %v12415_v8  ;;  %v12417_v14 = vld [vmem:[%s28799_s2 + $0x1f4] sm:$0xf0]  ;;  %v18488_v19 = vld [vmem:[%s28799_s2 + $0x1c8] sm:$0xf0] }
  0x1f   :  { %12307 = vmatmul.msk.bf16.vlgmr.msra.gmra.mxu2 %vm136_vm0, %v18479_v30  ;;  %12288 = vmatmul.msk.bf16.vlgmr.msra.gmra.mxu0 %vm136_vm0, %v18427_v31  ;;  %v12420_v15 = vor.u32 %v18491_v12, %v12417_v14  ;;  %v12395_v17 = vld [vmem:[%s28799_s2 + $0x1b8] sm:$0xf]  ;;  %v18528_v24 = vld [vmem:[%s28799_s2 + $0x308] sm:$0xf0]  ;;  %v18486_v25 = vld [vmem:[%s28799_s2 + $0x1bc] sm:$0xf] }
  0x20   :  { %12310 = vmatmul.msk.bf16.vlgmr.msra.gmra.mxu3 %vm136_vm0, %v18479_v30  ;;  %12291 = vmatmul.msk.bf16.vlgmr.msra.gmra.mxu1 %vm136_vm0, %v18427_v31  ;;  %v85_v6 = vpack.c.b16 %v82_v4, %v82_v4  ;;  %v12555_v20 = vld [vmem:[%s28799_s2 + $0x2f8] sm:$0xf]  ;;  %v12396_v21 = vor.u32 %v18488_v19, %v12395_v17  ;;  %v12397_v26 = vld [vmem:[%s28799_s2 + $0x1cc] sm:$0xf0]  ;;  %v18526_v31 = vld [vmem:[%s28799_s2 + $0x2fc] sm:$0xf] }
  0x21   :  { %669 = vmatpush.bf16.msrb.mxu0 %v12516_v36  ;;  %715 = vmatpush.bf16.msrb.mxu2 %v12520_v37  ;;  %v12556_v27 = vor.u32 %v18528_v24, %v12555_v20  ;;  %v12400_v30 = vor.u32 %v18486_v25, %v12397_v26  ;;  %v12557_v32 = vld [vmem:[%s28799_s2 + $0x30c] sm:$0xf0]  ;;  %v18483_v35 = vld [vmem:[%s28799_s2 + $0x1a0] sm:$0xf0]  ;;  %v18481_v39 = vld [vmem:[%s28799_s2 + $0x194] sm:$0xf] }
  0x22   :  { %v12560_v33 = vor.u32 %v18526_v31, %v12557_v32  ;;  %v12375_v34 = vld [vmem:[%s28799_s2 + $0x190] sm:$0xf]  ;;  %v18523_v38 = vld [vmem:[%s28799_s2 + $0x2e0] sm:$0xf0]  ;;  %v12377_v40 = vld [vmem:[%s28799_s2 + $0x1a4] sm:$0xf0] }
  0x23   :  { %698 = vmatpush.bf16.msrb.mxu1 %v12556_v27  ;;  %v12535_v36 = vld [vmem:[%s28799_s2 + $0x2d0] sm:$0xf]  ;;  %v12376_v37 = vor.u32 %v18483_v35, %v12375_v34  ;;  %v12537_v44 = vld [vmem:[%s28799_s2 + $0x2e4] sm:$0xf0]  ;;  %v18519_v47 = vld [vmem:[%s28799_s2 + $0x2c0] sm:$0xf0] }
  0x24   :  { %744 = vmatpush.bf16.msrb.mxu3 %v12560_v33  ;;  %v12536_v41 = vor.u32 %v18523_v38, %v12535_v36  ;;  %v12523_v46 = vld [vmem:[%s28799_s2 + $0x2b0] sm:$0xf]  ;;  %v12525_v50 = vld [vmem:[%s28799_s2 + $0x2c4] sm:$0xf0]  ;;  %v18514_v53 = vld [vmem:[%s28799_s2 + $0x298] sm:$0xf0] }
  0x25   :  { %670 = vmatpush.bf16.msrb.mxu0 %v12496_v42  ;;  %716 = vmatpush.bf16.msrb.mxu2 %v12500_v43  ;;  %v12380_v42 = vor.u32 %v18481_v39, %v12377_v40  ;;  %v18521_v43 = vld [vmem:[%s28799_s2 + $0x2d4] sm:$0xf]  ;;  %v12503_v52 = vld [vmem:[%s28799_s2 + $0x288] sm:$0xf]  ;;  %v12483_v60 = vld [vmem:[%s28799_s2 + $0x260] sm:$0xf] }
  0x26   :  { %v12540_v45 = vor.u32 %v18521_v43, %v12537_v44  ;;  %v18509_v61 = vld [vmem:[%s28799_s2 + $0x270] sm:$0xf0]  ;;  %v12485_v0 = vld [vmem:[%s28799_s2 + $0x274] sm:$0xf0]  ;;  %v18504_v4 = vld [vmem:[%s28799_s2 + $0x248] sm:$0xf0] }
  0x27   :  { %699 = vmatpush.bf16.msrb.mxu1 %v12536_v41  ;;  %v12463_v2 = vld [vmem:[%s28799_s2 + $0x238] sm:$0xf]  ;;  %v12465_v8 = vld [vmem:[%s28799_s2 + $0x24c] sm:$0xf0]  ;;  %v18499_v19 = vld [vmem:[%s28799_s2 + $0x220] sm:$0xf0] }
  0x28   :  { %745 = vmatpush.bf16.msrb.mxu3 %v12540_v45  ;;  %v12443_v17 = vld [vmem:[%s28799_s2 + $0x210] sm:$0xf]  ;;  %v18497_v20 = vld [vmem:[%s28799_s2 + $0x214] sm:$0xf]  ;;  %v12445_v24 = vld [vmem:[%s28799_s2 + $0x224] sm:$0xf0] }
  0x29   :  { %671 = vmatpush.bf16.msrb.mxu0 %v12476_v48  ;;  %717 = vmatpush.bf16.msrb.mxu2 %v12480_v49  ;;  %v18517_v48 = vld [vmem:[%s28799_s2 + $0x2b4] sm:$0xf]  ;;  %v12524_v49 = vor.u32 %v18519_v47, %v12523_v46  ;;  %v12448_v25 = vor.u32 %v18497_v20, %v12445_v24  ;;  %v12423_v26 = vld [vmem:[%s28799_s2 + $0x1e8] sm:$0xf]  ;;  %v18494_v27 = vld [vmem:[%s28799_s2 + $0x1f8] sm:$0xf0] }
  0x2a   :  { %v12528_v51 = vor.u32 %v18517_v48, %v12525_v50  ;;  %v12424_v31 = vor.u32 %v18494_v27, %v12423_v26  ;;  %v12425_v32 = vld [vmem:[%s28799_s2 + $0x1fc] sm:$0xf0]  ;;  %v18489_v34 = vld [vmem:[%s28799_s2 + $0x1d0] sm:$0xf0]  ;;  %v18487_v38 = vld [vmem:[%s28799_s2 + $0x1c4] sm:$0xf] }
  0x2b   :  { %v12403_v33 = vld [vmem:[%s28799_s2 + $0x1c0] sm:$0xf]  ;;  %v12405_v40 = vld [vmem:[%s28799_s2 + $0x1d4] sm:$0xf0]  ;;  %v18527_v41 = vld [vmem:[%s28799_s2 + $0x304] sm:$0xf] }
  0x2c   :  { %v12563_v36 = vld [vmem:[%s28799_s2 + $0x300] sm:$0xf]  ;;  %v12543_v45 = vld [vmem:[%s28799_s2 + $0x2d8] sm:$0xf]  ;;  %v12404_v47 = vor.u32 %v18489_v34, %v12403_v33  ;;  %v12408_v50 = vor.u32 %v18487_v38, %v12405_v40  ;;  %v12511_v24 = vld [vmem:[%s28799_s2 + $0x290] sm:$0xf] }
  0x2d   :  { %672 = vmatpush.bf16.msrb.mxu0 %v12456_v55  ;;  %718 = vmatpush.bf16.msrb.mxu2 %v12460_v56  ;;  %v12504_v55 = vor.u32 %v18514_v53, %v12503_v52  ;;  %v12505_v56 = vld [vmem:[%s28799_s2 + $0x29c] sm:$0xf0]  ;;  %v12383_v48 = vld [vmem:[%s28799_s2 + $0x198] sm:$0xf]  ;;  %v18522_v53 = vld [vmem:[%s28799_s2 + $0x2dc] sm:$0xf] }
  0x2e   :  { %v12710_v26 = vld [vmem:[%s28799_s2 + $0xf0] sm:$0xf]  ;;  %v18510_v33 = vld [vmem:[%s28799_s2 + $0x278] sm:$0xf0]  ;;  %v12690_v34 = vld [vmem:[%s28799_s2 + $0xc8] sm:$0xf] }
  0x2f   :  { %12308 = vmatmul.msk.bf16.gmra.mxu2 %vm136_vm0, %v18480_v54  ;;  %12289 = vmatmul.msk.bf16.gmra.mxu0 %vm136_vm0, %v18428_v59  ;;  %v12471_v38 = vld [vmem:[%s28799_s2 + $0x240] sm:$0xf]  ;;  %vm9715_vm5 = vcmask 1046528   ;;  %vm9711_vm6 = vcmask 113664   ;;  %vm11256_vm7 = vcmask 1042432   ;;  %vm11252_vm8 = vcmask 48128  }
  0x30   :  { %12311 = vmatmul.msk.bf16.gmra.mxu3 %vm136_vm0, %v18480_v54  ;;  %12292 = vmatmul.msk.bf16.gmra.mxu1 %vm136_vm0, %v18428_v59  ;;  %v18512_v54 = vld [vmem:[%s28799_s2 + $0x28c] sm:$0xf]  ;;  %v12670_v40 = vld [vmem:[%s28799_s2 + $0xa0] sm:$0xf]  ;;  %s19693_s1 = smov [#allocation2]  }
  0x31   :  { %673 = vmatpush.bf16.msrb.mxu0 %v12436_v62  ;;  %719 = vmatpush.bf16.msrb.mxu2 %v12440_v63  ;;  %v12508_v58 = vor.u32 %v18512_v54, %v12505_v56  ;;  %v18507_v62 = vld [vmem:[%s28799_s2 + $0x264] sm:$0xf]  ;;  %v12484_v63 = vor.u32 %v18509_v61, %v12483_v60  ;;  %v12545_v54 = vld [vmem:[%s28799_s2 + $0x2ec] sm:$0xf0]  ;;  %s12229_s20 = sshll.u32 %s19693_s1, 4  ;;  %s12230_s20 = int_to_ptr.vmem [resolvable:$true] %s12229_s20 }
  0x32   :  { %v12488_v1 = vor.u32 %v18507_v62, %v12485_v0  ;;  %v12385_v56 = vld [vmem:[%s28799_s2 + $0x1ac] sm:$0xf0] }
  0x35   :  { %674 = vmatpush.bf16.msrb.mxu0 %v12416_v13  ;;  %720 = vmatpush.bf16.msrb.mxu2 %v12420_v15 }
  0x39   :  { %675 = vmatpush.bf16.msrb.mxu0 %v12396_v21  ;;  %721 = vmatpush.bf16.msrb.mxu2 %v12400_v30  ;;  %v12444_v21 = vor.u32 %v18499_v19, %v12443_v17  ;;  %v18492_v30 = vld [vmem:[%s28799_s2 + $0x1ec] sm:$0xf] }
  0x3a   :  { %v12428_v35 = vor.u32 %v18492_v30, %v12425_v32  ;;  %v18466_v17 = vld [vmem:[%s28799_s2 + $0x128] sm:$0xf0]  ;;  %v18461_v30 = vld [vmem:[%s28799_s2 + $0x100] sm:$0xf0]  ;;  %v12491_v32 = vld [vmem:[%s28799_s2 + $0x268] sm:$0xf] }
  0x3d   :  { %676 = vmatpush.bf16.msrb.mxu0 %v12376_v37  ;;  %722 = vmatpush.bf16.msrb.mxu2 %v12380_v42  ;;  %v18529_v37 = vld [vmem:[%s28799_s2 + $0x310] sm:$0xf0]  ;;  %v12565_v42 = vld [vmem:[%s28799_s2 + $0x314] sm:$0xf0] }
  0x3e   :  { %v12564_v39 = vor.u32 %v18529_v37, %v12563_v36  ;;  %v12568_v44 = vor.u32 %v18527_v41, %v12565_v42  ;;  %v12492_v36 = vor.u32 %v18510_v33, %v12491_v32  ;;  %v18451_v41 = vld [vmem:[%s28799_s2 + $0xb0] sm:$0xf0]  ;;  %v12590_v33 = vld [vmem:[%s28799_s2] sm:$0xf] }
  0x3f   :  { %12309 = vmatmul.msk.bf16.gmra.mxu2 %vm136_vm0, %v276_v5  ;;  %12290 = vmatmul.msk.bf16.gmra.mxu0 %vm136_vm0, %v85_v6  ;;  %v18471_v32 = vld [vmem:[%s28799_s2 + $0x150] sm:$0xf0] }
  0x40   :  { %12312 = vmatmul.msk.bf16.gmra.mxu3 %vm136_vm0, %v276_v5  ;;  %12293 = vmatmul.msk.bf16.gmra.mxu1 %vm136_vm0, %v85_v6  ;;  %v18502_v5 = vld [vmem:[%s28799_s2 + $0x23c] sm:$0xf]  ;;  %v12464_v6 = vor.u32 %v18504_v4, %v12463_v2 }
  0x41   :  { %761 = vmatpush.bf16.msra.mxu0 %v12524_v49  ;;  %807 = vmatpush.bf16.msra.mxu2 %v12528_v51  ;;  %v12468_v12 = vor.u32 %v18502_v5, %v12465_v8  ;;  %v18524_v49 = vld [vmem:[%s28799_s2 + $0x2e8] sm:$0xf0]  ;;  %v12531_v8 = vld [vmem:[%s28799_s2 + $0x2b8] sm:$0xf] }
  0x42   :  { %790 = vmatpush.bf16.msra.mxu1 %v12564_v39  ;;  %836 = vmatpush.bf16.msra.mxu3 %v12568_v44  ;;  %v18484_v51 = vld [vmem:[%s28799_s2 + $0x1a8] sm:$0xf0]  ;;  %v12544_v52 = vor.u32 %v18524_v49, %v12543_v45  ;;  %v18505_v39 = vld [vmem:[%s28799_s2 + $0x250] sm:$0xf0]  ;;  %v12671_v45 = vor.u32 %v18451_v41, %v12670_v40 }
  0x43   :  { %v12472_v44 = vor.u32 %v18505_v39, %v12471_v38 }
  0x45   :  { %762 = vmatpush.bf16.msra.mxu0 %v12504_v55  ;;  %808 = vmatpush.bf16.msra.mxu2 %v12508_v58  ;;  %v18482_v55 = vld [vmem:[%s28799_s2 + $0x19c] sm:$0xf]  ;;  %v12384_v58 = vor.u32 %v18484_v51, %v12383_v48  ;;  %v12650_v48 = vld [vmem:[%s28799_s2 + $0x78] sm:$0xf] }
  0x46   :  { %791 = vmatpush.bf16.msra.mxu1 %v12544_v52 }
  0x49   :  { %763 = vmatpush.bf16.msra.mxu0 %v12484_v63  ;;  %809 = vmatpush.bf16.msra.mxu2 %v12488_v1 }
  0x4d   :  { %764 = vmatpush.bf16.msra.mxu0 %v12464_v6  ;;  %810 = vmatpush.bf16.msra.mxu2 %v12468_v12  ;;  %v12730_v12 = vld [vmem:[%s28799_s2 + $0x118] sm:$0xf] }
  0x4e   :  { %v12731_v19 = vor.u32 %v18466_v17, %v12730_v12  ;;  %v18476_v12 = vld [vmem:[%s28799_s2 + $0x178] sm:$0xf0]  ;;  %v12551_v17 = vld [vmem:[%s28799_s2 + $0x2e0] sm:$0xf] }
  0x51   :  { %765 = vmatpush.bf16.msra.mxu0 %v12444_v21  ;;  %811 = vmatpush.bf16.msra.mxu2 %v12448_v25  ;;  %v18515_v25 = vld [vmem:[%s28799_s2 + $0x2a0] sm:$0xf0] }
  0x52   :  { %v12512_v27 = vor.u32 %v18515_v25, %v12511_v24  ;;  %v12391_v24 = vld [vmem:[%s28799_s2 + $0x1a0] sm:$0xf]  ;;  %v18525_v25 = vld [vmem:[%s28799_s2 + $0x2f0] sm:$0xf0] }
  0x55   :  { %766 = vmatpush.bf16.msra.mxu0 %v12424_v31  ;;  %812 = vmatpush.bf16.msra.mxu2 %v12428_v35  ;;  %v12711_v31 = vor.u32 %v18461_v30, %v12710_v26  ;;  %v18456_v35 = vld [vmem:[%s28799_s2 + $0xd8] sm:$0xf0]  ;;  %v12552_v30 = vor.u32 %v18525_v25, %v12551_v17 }
  0x56   :  { %v12691_v37 = vor.u32 %v18456_v35, %v12690_v34  ;;  %v18431_v34 = vld [vmem:[%s28799_s2 + $0x10] sm:$0xf0]  ;;  %v18452_v17 = vld [vmem:[%s28799_s2 + $0xb8] sm:$0xf0] }
  0x57   :  { %v12591_v39 = vor.u32 %v18431_v34, %v12590_v33  ;;  %v18434_v34 = vld [vmem:[%s28799_s2 + $0x2c] sm:$0xf] }
  0x59   :  { %767 = vmatpush.bf16.msra.mxu0 %v12404_v47  ;;  %813 = vmatpush.bf16.msra.mxu2 %v12408_v50  ;;  %v18500_v47 = vld [vmem:[%s28799_s2 + $0x228] sm:$0xf0] }
  0x5a   :  { %v18446_v50 = vld [vmem:[%s28799_s2 + $0x88] sm:$0xf0] }
  0x5b   :  { %v12651_v51 = vor.u32 %v18446_v50, %v12650_v48  ;;  %v12738_v48 = vld [vmem:[%s28799_s2 + $0x120] sm:$0xf]  ;;  %v18467_v50 = vld [vmem:[%s28799_s2 + $0x130] sm:$0xf0] }
  0x5d   :  { %768 = vmatpush.bf16.msra.mxu0 %v12384_v58  ;;  %v18441_v58 = vld [vmem:[%s28799_s2 + $0x60] sm:$0xf0] }
  0x9c   :  { %v20196_v20 = vpop.f32.mrf.mxu0 }
  0x9d   :  { %v20198_v21 = vpop.f32.mrf.mxu1 }
  0xa2   :  { %v295_v57 = vpop.f32.mrf.mxu2 }
  0xa3   :  { %v318_v59 = vpop.f32.mrf.mxu3 }
  0xa4   :  { %v20236_v42 = vpop.f32.mrf.mxu0 }
  0xaa   :  { %v297_v9 = vpop.f32.mrf.mxu2 }
  0xab   :  { %v20082_v13 = vpack.c.bf16 %v297_v9, %v295_v57  ;;  %v320_v14 = vpop.f32.mrf.mxu3  ;;  %v12548_v57 = vor.u32 %v18522_v53, %v12545_v54  ;;  %v18520_v9 = vld [vmem:[%s28799_s2 + $0x2c8] sm:$0xf0]  ;;  %v12431_v54 = vld [vmem:[%s28799_s2 + $0x1f0] sm:$0xf] }
  0xac   :  { %v20084_v15 = vpack.c.bf16 %v320_v14, %v318_v59  ;;  %v12388_v59 = vor.u32 %v18482_v55, %v12385_v56  ;;  %v12532_v14 = vor.u32 %v18520_v9, %v12531_v8  ;;  %v20258_v52 = vpop.f32.mrf.mxu0  ;;  %v18495_v55 = vld [vmem:[%s28799_s2 + $0x200] sm:$0xf0]  ;;  %v12630_v56 = vld [vmem:[%s28799_s2 + $0x50] sm:$0xf]  ;;  %v18436_v8 = vld [vmem:[%s28799_s2 + $0x38] sm:$0xf0] }
  0xad   :  { %677 = vmatmul.bf16.vlgmr.msrb.gmra.mxu0 %v20082_v13  ;;  %723 = vmatmul.bf16.vlgmr.msrb.gmra.mxu2 %v20082_v13  ;;  %v12770_v9 = vld [vmem:[%s28799_s2 + $0x168] sm:$0xf] }
  0xae   :  { %12573 = vmatmul.msk.bf16.vlgmr.msrb.gmra.mxu1 %vm659_vm1, %v20084_v15  ;;  %12576 = vmatmul.msk.bf16.vlgmr.msrb.gmra.mxu3 %vm659_vm1, %v20084_v15 }
  0xaf   :  { %837 = vmatpush.bf16.msra.mxu3 %v12548_v57  ;;  %814 = vmatpush.bf16.msra.mxu2 %v12388_v59  ;;  %v12432_v57 = vor.u32 %v18495_v55, %v12431_v54  ;;  %v12411_v59 = vld [vmem:[%s28799_s2 + $0x1c8] sm:$0xf]  ;;  %v18459_v54 = vld [vmem:[%s28799_s2 + $0xf4] sm:$0xf] }
  0xb0   :  { %853 = vmatpush.bf16.msrb.mxu0 %v12532_v14  ;;  %v12771_v14 = vor.u32 %v18476_v12, %v12770_v9  ;;  %v12712_v55 = vld [vmem:[%s28799_s2 + $0x104] sm:$0xf0]  ;;  %v12672_v9 = vld [vmem:[%s28799_s2 + $0xb4] sm:$0xf0] }
  0xb1   :  { %v12678_v12 = vld [vmem:[%s28799_s2 + $0xa8] sm:$0xf] }
  0xb2   :  { %v300_v43 = vpop.f32.mrf.mxu2 }
  0xb3   :  { %v323_v46 = vpop.f32.mrf.mxu3  ;;  %1168 = vmatpush.bf16.msrb.mxu2 %v12731_v19  ;;  %1197 = vmatpush.bf16.msrb.mxu3 %v12771_v14 }
  0xb4   :  { %854 = vmatpush.bf16.msrb.mxu0 %v12512_v27  ;;  %v18485_v27 = vld [vmem:[%s28799_s2 + $0x1b0] sm:$0xf0] }
  0xb5   :  { %v12392_v38 = vor.u32 %v18485_v27, %v12391_v24  ;;  %v20392_v24 = vpack.c.bf16 %v20236_v42, %v20196_v20  ;;  %v12652_v27 = vld [vmem:[%s28799_s2 + $0x8c] sm:$0xf0] }
  0xb7   :  { %1169 = vmatpush.bf16.msrb.mxu2 %v12711_v31  ;;  %v12750_v31 = vld [vmem:[%s28799_s2 + $0x140] sm:$0xf] }
  0xb8   :  { %855 = vmatpush.bf16.msrb.mxu0 %v12492_v36  ;;  %v12751_v35 = vor.u32 %v18471_v32, %v12750_v31  ;;  %v20322_v36 = vpop.f32.mrf.mxu0  ;;  %v12638_v31 = vld [vmem:[%s28799_s2 + $0x58] sm:$0xf] }
  0xba   :  { %v302_v60 = vpop.f32.mrf.mxu2  ;;  %1198 = vmatpush.bf16.msrb.mxu3 %v12751_v35  ;;  %v12612_v35 = vld [vmem:[%s28799_s2 + $0x3c] sm:$0xf0] }
  0xbb   :  { %v20164_v61 = vpack.c.bf16 %v302_v60, %v300_v43  ;;  %v325_v62 = vpop.f32.mrf.mxu3  ;;  %v20238_v43 = vpop.f32.mrf.mxu1  ;;  %1170 = vmatpush.bf16.msrb.mxu2 %v12691_v37  ;;  %v18490_v60 = vld [vmem:[%s28799_s2 + $0x1d8] sm:$0xf0] }
  0xbc   :  { %v20166_v63 = vpack.c.bf16 %v325_v62, %v323_v46  ;;  %856 = vmatpush.bf16.msrb.mxu0 %v12472_v44  ;;  %v12451_v46 = vld [vmem:[%s28799_s2 + $0x218] sm:$0xf]  ;;  %v12631_v62 = vor.u32 %v18441_v58, %v12630_v56  ;;  %v12412_v19 = vor.u32 %v18490_v60, %v12411_v59  ;;  %v18462_v58 = vld [vmem:[%s28799_s2 + $0x108] sm:$0xf0]  ;;  %v20396_v25 = vpack.c.bf16 %v20238_v43, %v20198_v21  ;;  %v18447_v21 = vld [vmem:[%s28799_s2 + $0x90] sm:$0xf0] }
  0xbd   :  { %682 = vmatmul.bf16.gmra.mxu0 %v20164_v61  ;;  %728 = vmatmul.bf16.gmra.mxu2 %v20164_v61  ;;  %v12452_v49 = vor.u32 %v18500_v47, %v12451_v46  ;;  %v18464_v46 = vld [vmem:[%s28799_s2 + $0x11c] sm:$0xf]  ;;  %v12732_v47 = vld [vmem:[%s28799_s2 + $0x12c] sm:$0xf0]  ;;  %v12718_v56 = vld [vmem:[%s28799_s2 + $0xf8] sm:$0xf] }
  0xbe   :  { %12574 = vmatmul.msk.bf16.gmra.mxu1 %vm659_vm1, %v20166_v63  ;;  %12577 = vmatmul.msk.bf16.gmra.mxu3 %vm659_vm1, %v20166_v63  ;;  %v12719_v59 = vor.u32 %v18462_v58, %v12718_v56  ;;  %v18454_v60 = vld [vmem:[%s28799_s2 + $0xcc] sm:$0xf]  ;;  %v12632_v43 = vld [vmem:[%s28799_s2 + $0x64] sm:$0xf0]  ;;  %v18469_v56 = vld [vmem:[%s28799_s2 + $0x144] sm:$0xf] }
  0xbf   :  { %1171 = vmatpush.bf16.msrb.mxu2 %v12671_v45  ;;  %v12752_v58 = vld [vmem:[%s28799_s2 + $0x154] sm:$0xf0] }
  0xc0   :  { %857 = vmatpush.bf16.msrb.mxu0 %v12452_v49  ;;  %v20332_v40 = vpop.f32.mrf.mxu0  ;;  %v12735_v49 = vor.u32 %v18464_v46, %v12732_v47  ;;  %v18437_v46 = vld [vmem:[%s28799_s2 + $0x40] sm:$0xf0] }
  0xc2   :  { %v305_v0 = vpop.f32.mrf.mxu2 }
  0xc3   :  { %v328_v1 = vpop.f32.mrf.mxu3  ;;  %v20174_v2 = vpack.c.bf16 %v305_v0, %v305_v0  ;;  %v20260_v53 = vpop.f32.mrf.mxu1  ;;  %1172 = vmatpush.bf16.msrb.mxu2 %v12651_v51  ;;  %v12571_v0 = vld [vmem:[%s28799_s2 + $0x308] sm:$0xf]  ;;  %v12739_v51 = vor.u32 %v18467_v50, %v12738_v48  ;;  %v18477_v50 = vld [vmem:[%s28799_s2 + $0x180] sm:$0xf0] }
  0xc4   :  { %v20176_v4 = vpack.c.bf16 %v328_v1, %v328_v1  ;;  %v18530_v1 = vld [vmem:[%s28799_s2 + $0x318] sm:$0xf0]  ;;  %858 = vmatpush.bf16.msrb.mxu0 %v12432_v57  ;;  %v12715_v57 = vor.u32 %v18459_v54, %v12712_v55  ;;  %v18429_v54 = vld [vmem:[%s28799_s2 + $0x4] sm:$0xf]  ;;  %v12592_v55 = vld [vmem:[%s28799_s2 + $0x14] sm:$0xf0] }
  0xc7   :  { %1173 = vmatpush.bf16.msrb.mxu2 %v12631_v62  ;;  %v12692_v62 = vld [vmem:[%s28799_s2 + $0xdc] sm:$0xf0] }
  0xc8   :  { %859 = vmatpush.bf16.msrb.mxu0 %v12412_v19  ;;  %v167_v44 = vpop.f32.mrf.mxu0  ;;  %v12679_v19 = vor.u32 %v18452_v17, %v12678_v12  ;;  %v12740_v12 = vld [vmem:[%s28799_s2 + $0x134] sm:$0xf0] }
  0xc9   :  { %v12772_v44 = vld [vmem:[%s28799_s2 + $0x17c] sm:$0xf0] }
  0xca   :  { %v307_v5 = vpop.f32.mrf.mxu2 }
  0xcb   :  { %v330_v6 = vpop.f32.mrf.mxu3  ;;  %v12610_v5 = vld [vmem:[%s28799_s2 + $0x28] sm:$0xf]  ;;  %v20324_v37 = vpop.f32.mrf.mxu1 }
  0xcc   :  { %v12572_v6 = vor.u32 %v18530_v1, %v12571_v0  ;;  %v12611_v26 = vor.u32 %v18436_v8, %v12610_v5  ;;  %860 = vmatpush.bf16.msrb.mxu0 %v12392_v38  ;;  %v12698_v0 = vld [vmem:[%s28799_s2 + $0xd0] sm:$0xf]  ;;  %v18457_v1 = vld [vmem:[%s28799_s2 + $0xe0] sm:$0xf0]  ;;  %v12695_v5 = vor.u32 %v18454_v60, %v12692_v62  ;;  %v18474_v38 = vld [vmem:[%s28799_s2 + $0x16c] sm:$0xf]  ;;  %v12755_v62 = vor.u32 %v18469_v56, %v12752_v58 }
  0xcd   :  { %687 = vmatmul.bf16.gmra.mxu0 %v20174_v2  ;;  %733 = vmatmul.bf16.gmra.mxu2 %v20174_v2  ;;  %v18449_v8 = vld [vmem:[%s28799_s2 + $0xa4] sm:$0xf]  ;;  %v12775_v47 = vor.u32 %v18474_v38, %v12772_v44  ;;  %v18432_v60 = vld [vmem:[%s28799_s2 + $0x18] sm:$0xf0]  ;;  %v18450_v44 = vld [vmem:[%s28799_s2 + $0xac] sm:$0xf] }
  0xce   :  { %12575 = vmatmul.msk.bf16.gmra.mxu1 %vm659_vm1, %v20176_v4  ;;  %12578 = vmatmul.msk.bf16.gmra.mxu3 %vm659_vm1, %v20176_v4  ;;  %v12675_v14 = vor.u32 %v18449_v8, %v12672_v9  ;;  %v20482_v9 = vpack.c.bf16 %v20324_v37, %v20260_v53  ;;  %v12660_v58 = vld [vmem:[%s28799_s2 + $0x94] sm:$0xf0] }
  0xcf   :  { %882 = vmatpush.bf16.msrb.mxu1 %v12572_v6  ;;  %1174 = vmatpush.bf16.msrb.mxu2 %v12611_v26  ;;  %v12699_v6 = vor.u32 %v18457_v1, %v12698_v0  ;;  %v18444_v26 = vld [vmem:[%s28799_s2 + $0x7c] sm:$0xf]  ;;  %v12758_v1 = vld [vmem:[%s28799_s2 + $0x148] sm:$0xf] }
  0xd0   :  { %v12655_v20 = vor.u32 %v18444_v26, %v12652_v27  ;;  %v12720_v26 = vld [vmem:[%s28799_s2 + $0x10c] sm:$0xf0]  ;;  %v12726_v27 = vld [vmem:[%s28799_s2 + $0x100] sm:$0xf] }
  0xd3   :  { %883 = vmatpush.bf16.msrb.mxu1 %v12552_v30  ;;  %1175 = vmatpush.bf16.msrb.mxu2 %v12591_v39  ;;  %v20334_v41 = vpop.f32.mrf.mxu1  ;;  %v12658_v30 = vld [vmem:[%s28799_s2 + $0x80] sm:$0xf]  ;;  %v12615_v39 = vor.u32 %v18434_v34, %v12612_v35  ;;  %v18458_v35 = vld [vmem:[%s28799_s2 + $0xe8] sm:$0xf0] }
  0xd4   :  { %v12659_v42 = vor.u32 %v18447_v21, %v12658_v30  ;;  %v20496_v37 = vpack.c.bf16 %v20334_v41, %v20334_v41 }
  0xdb   :  { %v190_v45 = vpop.f32.mrf.mxu1 }
  0xdc   :  { %v12618_v45 = vld [vmem:[%s28799_s2 + $0x30] sm:$0xf] }
  0xdd   :  { %769 = vmatmul.bf16.vlgmr.msra.gmra.mxu0 %v20082_v13  ;;  %815 = vmatmul.bf16.vlgmr.msra.gmra.mxu2 %v20082_v13  ;;  %v12619_v48 = vor.u32 %v18437_v46, %v12618_v45  ;;  %v12680_v45 = vld [vmem:[%s28799_s2 + $0xbc] sm:$0xf0]  ;;  %v12686_v46 = vld [vmem:[%s28799_s2 + $0xb0] sm:$0xf] }
  0xde   :  { %12579 = vmatmul.msk.bf16.vlgmr.msra.gmra.mxu1 %vm659_vm1, %v20084_v15  ;;  %12582 = vmatmul.msk.bf16.vlgmr.msra.gmra.mxu3 %vm659_vm1, %v20084_v15 }
  0xdf   :  { %1214 = vmatpush.bf16.msra.mxu0 %v12735_v49  ;;  %1260 = vmatpush.bf16.msra.mxu2 %v12739_v51  ;;  %v12778_v49 = vld [vmem:[%s28799_s2 + $0x170] sm:$0xf] }
  0xe0   :  { %v12779_v51 = vor.u32 %v18477_v50, %v12778_v49  ;;  %1243 = vmatpush.bf16.msra.mxu1 %v12775_v47  ;;  %v18453_v49 = vld [vmem:[%s28799_s2 + $0xc0] sm:$0xf0] }
  0xe2   :  { %1289 = vmatpush.bf16.msra.mxu3 %v12779_v51 }
  0xe3   :  { %1215 = vmatpush.bf16.msra.mxu0 %v12715_v57  ;;  %1261 = vmatpush.bf16.msra.mxu2 %v12719_v59  ;;  %v12595_v57 = vor.u32 %v18429_v54, %v12592_v55  ;;  %v12598_v59 = vld [vmem:[%s28799_s2 + $0x8] sm:$0xf]  ;;  %v12687_v54 = vor.u32 %v18453_v49, %v12686_v46  ;;  %v12760_v46 = vld [vmem:[%s28799_s2 + $0x15c] sm:$0xf0] }
  0xe4   :  { %v12599_v0 = vor.u32 %v18432_v60, %v12598_v59  ;;  %1244 = vmatpush.bf16.msra.mxu1 %v12755_v62  ;;  %v12666_v59 = vld [vmem:[%s28799_s2 + $0x88] sm:$0xf]  ;;  %v18448_v62 = vld [vmem:[%s28799_s2 + $0x98] sm:$0xf0] }
  0xe7   :  { %1216 = vmatpush.bf16.msra.mxu0 %v12695_v5  ;;  %1262 = vmatpush.bf16.msra.mxu2 %v12699_v6  ;;  %v18472_v5 = vld [vmem:[%s28799_s2 + $0x158] sm:$0xf0]  ;;  %v20478_v6 = vpack.c.bf16 %v20322_v36, %v20258_v52  ;;  %v20492_v36 = vpack.c.bf16 %v20332_v40, %v20332_v40  ;;  %v12746_v40 = vld [vmem:[%s28799_s2 + $0x128] sm:$0xf] }
  0xe8   :  { %v12759_v8 = vor.u32 %v18472_v5, %v12758_v1  ;;  %v18440_v5 = vld [vmem:[%s28799_s2 + $0x5c] sm:$0xf] }
  0xea   :  { %1290 = vmatpush.bf16.msra.mxu3 %v12759_v8  ;;  %v12640_v8 = vld [vmem:[%s28799_s2 + $0x6c] sm:$0xf0] }
  0xeb   :  { %1217 = vmatpush.bf16.msra.mxu0 %v12675_v14  ;;  %1263 = vmatpush.bf16.msra.mxu2 %v12679_v19  ;;  %v18468_v14 = vld [vmem:[%s28799_s2 + $0x138] sm:$0xf0] }
  0xec   :  { %v12747_v17 = vor.u32 %v18468_v14, %v12746_v40 }
  0xed   :  { %774 = vmatmul.bf16.gmra.mxu0 %v20164_v61  ;;  %820 = vmatmul.bf16.gmra.mxu2 %v20164_v61 }
  0xee   :  { %12580 = vmatmul.msk.bf16.gmra.mxu1 %vm659_vm1, %v20166_v63  ;;  %12583 = vmatmul.msk.bf16.gmra.mxu3 %vm659_vm1, %v20166_v63 }
  0xef   :  { %1218 = vmatpush.bf16.msra.mxu0 %v12655_v20  ;;  %1264 = vmatpush.bf16.msra.mxu2 %v12659_v42  ;;  %v18463_v20 = vld [vmem:[%s28799_s2 + $0x110] sm:$0xf0] }
  0xfd   :  { %779 = vmatmul.bf16.gmra.mxu0 %v20174_v2  ;;  %825 = vmatmul.bf16.gmra.mxu2 %v20174_v2 }
  0xfe   :  { %12581 = vmatmul.msk.bf16.gmra.mxu1 %vm659_vm1, %v20176_v4  ;;  %12584 = vmatmul.msk.bf16.gmra.mxu3 %vm659_vm1, %v20176_v4 }
 0x10d   :  { %861 = vmatmul.bf16.vlgmr.msrb.gmra.mxu0 %v20082_v13  ;;  %1176 = vmatmul.bf16.vlgmr.msrb.gmra.mxu2 %v20392_v24  ;;  %v18439_v13 = vld [vmem:[%s28799_s2 + $0x54] sm:$0xf] }
 0x10e   :  { %12585 = vmatmul.msk.bf16.vlgmr.msrb.gmra.mxu1 %vm659_vm1, %v20084_v15  ;;  %12788 = vmatmul.msk.bf16.vlgmr.msrb.gmra.mxu3 %vm659_vm1, %v20396_v25  ;;  %v12635_v32 = vor.u32 %v18439_v13, %v12632_v43  ;;  %v18442_v15 = vld [vmem:[%s28799_s2 + $0x68] sm:$0xf0]  ;;  %v12727_v13 = vor.u32 %v18463_v20, %v12726_v27  ;;  %v18475_v27 = vld [vmem:[%s28799_s2 + $0x174] sm:$0xf]  ;;  %v12626_v20 = vld [vmem:[%s28799_s2 + $0x38] sm:$0xf] }
 0x10f   :  { %v12639_v33 = vor.u32 %v18442_v15, %v12638_v31  ;;  %v18455_v31 = vld [vmem:[%s28799_s2 + $0xd4] sm:$0xf]  ;;  %v12706_v15 = vld [vmem:[%s28799_s2 + $0xd8] sm:$0xf] }
 0x110   :  { %1219 = vmatpush.bf16.msra.mxu0 %v12635_v32  ;;  %v12700_v32 = vld [vmem:[%s28799_s2 + $0xe4] sm:$0xf0]  ;;  %v12707_v38 = vor.u32 %v18458_v35, %v12706_v15  ;;  %v18430_v35 = vld [vmem:[%s28799_s2 + $0xc] sm:$0xf] }
 0x111   :  { %1265 = vmatpush.bf16.msra.mxu2 %v12639_v33  ;;  %v12703_v34 = vor.u32 %v18455_v31, %v12700_v32  ;;  %v12786_v31 = vld [vmem:[%s28799_s2 + $0x178] sm:$0xf]  ;;  %v18478_v32 = vld [vmem:[%s28799_s2 + $0x188] sm:$0xf0] }
 0x112   :  { %v12787_v15 = vor.u32 %v18478_v32, %v12786_v31 }
 0x114   :  { %1220 = vmatpush.bf16.msra.mxu0 %v12615_v39  ;;  %1381 = vmatpush.bf16.msrb.mxu3 %v12787_v15 }
 0x115   :  { %1266 = vmatpush.bf16.msra.mxu2 %v12619_v48  ;;  %v12683_v48 = vor.u32 %v18450_v44, %v12680_v45 }
 0x118   :  { %1221 = vmatpush.bf16.msra.mxu0 %v12595_v57  ;;  %v18445_v57 = vld [vmem:[%s28799_s2 + $0x84] sm:$0xf] }
 0x119   :  { %1267 = vmatpush.bf16.msra.mxu2 %v12599_v0  ;;  %v12663_v60 = vor.u32 %v18445_v57, %v12660_v58  ;;  %v12667_v0 = vor.u32 %v18448_v62, %v12666_v59  ;;  %v12766_v57 = vld [vmem:[%s28799_s2 + $0x150] sm:$0xf]  ;;  %v18473_v58 = vld [vmem:[%s28799_s2 + $0x160] sm:$0xf0] }
 0x11d   :  { %866 = vmatmul.bf16.gmra.mxu0 %v20164_v61  ;;  %1181 = vmatmul.bf16.gmra.mxu2 %v20478_v6 }
 0x11e   :  { %12586 = vmatmul.msk.bf16.gmra.mxu1 %vm659_vm1, %v20166_v63  ;;  %12789 = vmatmul.msk.bf16.gmra.mxu3 %vm659_vm1, %v20482_v9  ;;  %v18465_v63 = vld [vmem:[%s28799_s2 + $0x124] sm:$0xf] }
 0x11f   :  { %v12743_v41 = vor.u32 %v18465_v63, %v12740_v12  ;;  %1352 = vmatpush.bf16.msrb.mxu2 %v12747_v17  ;;  %v12643_v63 = vor.u32 %v18440_v5, %v12640_v8  ;;  %v18443_v12 = vld [vmem:[%s28799_s2 + $0x70] sm:$0xf0] }
 0x121   :  { %1306 = vmatpush.bf16.msrb.mxu0 %v12743_v41 }
 0x123   :  { %1353 = vmatpush.bf16.msrb.mxu2 %v12727_v13 }
 0x127   :  { %1354 = vmatpush.bf16.msrb.mxu2 %v12707_v38  ;;  %v12600_v38 = vld [vmem:[%s28799_s2 + $0x1c] sm:$0xf0] }
 0x128   :  { %v12603_v45 = vor.u32 %v18430_v35, %v12600_v38 }
 0x12a   :  { %v678_v52 = vpop.f32.mrf.mxu0 }
 0x12b   :  { %v701_v53 = vpop.f32.mrf.mxu1  ;;  %1355 = vmatpush.bf16.msrb.mxu2 %v12687_v54 }
 0x12c   :  { %v20498_v61 = vadd.f32 %v701_v53, %v678_v52  ;;  %v12646_v52 = vld [vmem:[%s28799_s2 + $0x60] sm:$0xf] }
 0x12d   :  { %871 = vmatmul.bf16.gmra.mxu0 %v20174_v2  ;;  %1186 = vmatmul.bf16.gmra.mxu2 %v20492_v36  ;;  %v18460_v2 = vld [vmem:[%s28799_s2 + $0xfc] sm:$0xf]  ;;  %v12647_v14 = vor.u32 %v18443_v12, %v12646_v52 }
 0x12e   :  { %12587 = vmatmul.msk.bf16.gmra.mxu1 %vm659_vm1, %v20176_v4  ;;  %12790 = vmatmul.msk.bf16.gmra.mxu3 %vm659_vm1, %v20496_v37  ;;  %v12723_v30 = vor.u32 %v18460_v2, %v12720_v26  ;;  %v18435_v2 = vld [vmem:[%s28799_s2 + $0x34] sm:$0xf]  ;;  %v12620_v26 = vld [vmem:[%s28799_s2 + $0x44] sm:$0xf0] }
 0x12f   :  { %1356 = vmatpush.bf16.msrb.mxu2 %v12667_v0 }
 0x130   :  { %v724_v19 = vpop.f32.mrf.mxu2  ;;  %1307 = vmatpush.bf16.msrb.mxu0 %v12723_v30  ;;  %v12780_v30 = vld [vmem:[%s28799_s2 + $0x184] sm:$0xf0] }
 0x131   :  { %v747_v4 = vpop.f32.mrf.mxu3  ;;  %v12783_v13 = vor.u32 %v18475_v27, %v12780_v30 }
 0x132   :  { %v20530_v21 = vadd.f32 %v747_v4, %v724_v19  ;;  %v680_v42 = vpop.f32.mrf.mxu0  ;;  %v12623_v4 = vor.u32 %v18435_v2, %v12620_v26 }
 0x133   :  { %v703_v43 = vpop.f32.mrf.mxu1  ;;  %1357 = vmatpush.bf16.msrb.mxu2 %v12647_v14  ;;  %1335 = vmatpush.bf16.msrb.mxu1 %v12783_v13 }
 0x134   :  { %v20541_v33 = vadd.f32 %v703_v43, %v680_v42  ;;  %1308 = vmatpush.bf16.msrb.mxu0 %v12703_v34  ;;  %v18438_v42 = vld [vmem:[%s28799_s2 + $0x48] sm:$0xf0] }
 0x135   :  { %v12627_v43 = vor.u32 %v18438_v42, %v12626_v20 }
 0x137   :  { %1358 = vmatpush.bf16.msrb.mxu2 %v12627_v43 }
 0x138   :  { %v726_v39 = vpop.f32.mrf.mxu2  ;;  %1309 = vmatpush.bf16.msrb.mxu0 %v12683_v48  ;;  %v18433_v48 = vld [vmem:[%s28799_s2 + $0x20] sm:$0xf0] }
 0x139   :  { %v749_v47 = vpop.f32.mrf.mxu3 }
 0x13a   :  { %v20558_v50 = vadd.f32 %v749_v47, %v726_v39  ;;  %v683_v51 = vpop.f32.mrf.mxu0  ;;  %v18470_v39 = vld [vmem:[%s28799_s2 + $0x14c] sm:$0xf]  ;;  %v12606_v47 = vld [vmem:[%s28799_s2 + $0x10] sm:$0xf] }
 0x13b   :  { %v706_v55 = vpop.f32.mrf.mxu1  ;;  %v12763_v54 = vor.u32 %v18470_v39, %v12760_v46 }
 0x13c   :  { %v20560_v56 = vadd.f32 %v706_v55, %v683_v51  ;;  %1310 = vmatpush.bf16.msrb.mxu0 %v12663_v60  ;;  %v12607_v55 = vor.u32 %v18433_v48, %v12606_v47  ;;  %v12767_v60 = vor.u32 %v18473_v58, %v12766_v57 }
 0x13d   :  { %1222 = vmatmul.bf16.vlgmr.msra.gmra.mxu0 %v20392_v24  ;;  %1268 = vmatmul.bf16.vlgmr.msra.gmra.mxu2 %v20392_v24 }
 0x13e   :  { %12791 = vmatmul.msk.bf16.vlgmr.msra.gmra.mxu1 %vm659_vm1, %v20396_v25  ;;  %12794 = vmatmul.msk.bf16.vlgmr.msra.gmra.mxu3 %vm659_vm1, %v20396_v25 }
 0x13f   :  { %1336 = vmatpush.bf16.msrb.mxu1 %v12763_v54  ;;  %1359 = vmatpush.bf16.msrb.mxu2 %v12607_v55 }
 0x140   :  { %v729_v1 = vpop.f32.mrf.mxu2  ;;  %1311 = vmatpush.bf16.msrb.mxu0 %v12643_v63  ;;  %1382 = vmatpush.bf16.msrb.mxu3 %v12767_v60 }
 0x141   :  { %v752_v53 = vpop.f32.mrf.mxu3 }
 0x142   :  { %v20592_v40 = vadd.f32 %v752_v53, %v729_v1  ;;  %v685_v41 = vpop.f32.mrf.mxu0 }
 0x143   :  { %v708_v17 = vpop.f32.mrf.mxu1  ;;  %1452 = vmatpush.bf16.msra.mxu1 %v19804_v7 }
 0x144   :  { %v20594_v19 = vadd.f32 %v708_v17, %v685_v41  ;;  %1312 = vmatpush.bf16.msrb.mxu0 %v12623_v4 }
 0x147   :  { %1453 = vmatpush.bf16.msra.mxu1 %v19817_v11 }
 0x148   :  { %v731_v34 = vpop.f32.mrf.mxu2  ;;  %1313 = vmatpush.bf16.msrb.mxu0 %v12603_v45 }
 0x149   :  { %v754_v44 = vpop.f32.mrf.mxu3 }
 0x14a   :  { %v20638_v49 = vadd.f32 %v754_v44, %v731_v34  ;;  %v688_v51 = vpop.f32.mrf.mxu0 }
 0x14b   :  { %v711_v59 = vpop.f32.mrf.mxu1  ;;  %1454 = vmatpush.bf16.msra.mxu1 %v19840_v18 }
 0x14c   :  { %v20646_v62 = vadd.f32 %v711_v59, %v688_v51  ;;  %1429 = vmatpush.bf16.msra.mxu0 %v19793_v3 }
 0x14d   :  { %1227 = vmatmul.bf16.gmra.mxu0 %v20478_v6  ;;  %1273 = vmatmul.bf16.gmra.mxu2 %v20478_v6 }
 0x14e   :  { %12792 = vmatmul.msk.bf16.gmra.mxu1 %vm659_vm1, %v20482_v9  ;;  %12795 = vmatmul.msk.bf16.gmra.mxu3 %vm659_vm1, %v20482_v9 }
 0x14f   :  { %1455 = vmatpush.bf16.msra.mxu1 %v19857_v23 }
 0x150   :  { %v734_v0 = vpop.f32.mrf.mxu2  ;;  %1430 = vmatpush.bf16.msra.mxu0 %v19813_v10 }
 0x151   :  { %v757_v1 = vpop.f32.mrf.mxu3 }
 0x152   :  { %v20656_v5 = vadd.f32 %v757_v1, %v734_v0  ;;  %v690_v8 = vpop.f32.mrf.mxu0 }
 0x153   :  { %v713_v52 = vpop.f32.mrf.mxu1  ;;  %1456 = vmatpush.bf16.msra.mxu1 %v19877_v29 }
 0x154   :  { %1431 = vmatpush.bf16.msra.mxu0 %v19833_v16 }
 0x158   :  { %v736_v53 = vpop.f32.mrf.mxu2  ;;  %1432 = vmatpush.bf16.msra.mxu0 %v19853_v22 }
 0x159   :  { %v759_v63 = vpop.f32.mrf.mxu3 }
 0x15a   :  { %v770_v12 = vpop.f32.mrf.mxu0 }
 0x15b   :  { %v793_v41 = vpop.f32.mrf.mxu1 }
 0x15c   :  { %v20663_v14 = vadd.f32 %v793_v41, %v770_v12  ;;  %1433 = vmatpush.bf16.msra.mxu0 %v19873_v28 }
 0x15d   :  { %1232 = vmatmul.bf16.gmra.mxu0 %v20492_v36  ;;  %1278 = vmatmul.bf16.gmra.mxu2 %v20492_v36 }
 0x15e   :  { %12793 = vmatmul.msk.bf16.gmra.mxu1 %vm659_vm1, %v20496_v37  ;;  %12796 = vmatmul.msk.bf16.gmra.mxu3 %vm659_vm1, %v20496_v37 }
 0x160   :  { %v816_v17 = vpop.f32.mrf.mxu2 }
 0x161   :  { %v839_v2 = vpop.f32.mrf.mxu3 }
 0x162   :  { %v20674_v26 = vadd.f32 %v839_v2, %v816_v17  ;;  %v772_v27 = vpop.f32.mrf.mxu0 }
 0x163   :  { %v795_v4 = vpop.f32.mrf.mxu1 }
 0x164   :  { %v20676_v30 = vadd.f32 %v795_v4, %v772_v27 }
 0x166   :  { %28821 = vst [vmem:[#allocation5_spill] sm:$0xff] %v20676_v30 }
 0x168   :  { %v20678_v20 = vpop.f32.mrf.mxu2 }
 0x169   :  { %28822 = vst [vmem:[#allocation6_spill] sm:$0xff] %v20678_v20  ;;  %v20680_v42 = vpop.f32.mrf.mxu3 }
 0x16a   :  { %28823 = vst [vmem:[#allocation7_spill] sm:$0xff] %v20680_v42  ;;  %v775_v13 = vpop.f32.mrf.mxu0  ;;  %v18576_v42 = vld [vmem:[%s28799_s2 + $0x478] sm:$0xf0] }
 0x16b   :  { %v798_v43 = vpop.f32.mrf.mxu1 }
 0x16c   :  { %v20682_v31 = vadd.f32 %v798_v43, %v775_v13 }
 0x16d   :  { %1314 = vmatmul.bf16.vlgmr.msrb.gmra.mxu0 %v20392_v24  ;;  %1360 = vmatmul.bf16.vlgmr.msrb.gmra.mxu2 %v20392_v24 }
 0x16e   :  { %12797 = vmatmul.msk.bf16.vlgmr.msrb.gmra.mxu1 %vm659_vm1, %v20396_v25  ;;  %12800 = vmatmul.msk.bf16.vlgmr.msrb.gmra.mxu3 %vm659_vm1, %v20396_v25 }
 0x170   :  { %v821_v32 = vpop.f32.mrf.mxu2 }
 0x171   :  { %v844_v15 = vpop.f32.mrf.mxu3 }
 0x172   :  { %v20690_v34 = vadd.f32 %v844_v15, %v821_v32  ;;  %v777_v35 = vpop.f32.mrf.mxu0 }
 0x173   :  { %v800_v38 = vpop.f32.mrf.mxu1 }
 0x174   :  { %v20692_v39 = vadd.f32 %v800_v38, %v777_v35  ;;  %v18532_v35 = vld [vmem:[%s28820_s24 + $0x30] sm:$0xff] }
 0x176   :  { %28824 = vst [vmem:[#allocation8_spill] sm:$0xff] %v20692_v39 }
 0x178   :  { %v20694_v44 = vpop.f32.mrf.mxu2 }
 0x179   :  { %28825 = vst [vmem:[#allocation9_spill] sm:$0xff] %v20694_v44  ;;  %v20696_v45 = vpop.f32.mrf.mxu3 }
 0x17a   :  { %28826 = vst [vmem:[#allocation10_spill] sm:$0xff] %v20696_v45  ;;  %v780_v46 = vpop.f32.mrf.mxu0 }
 0x17b   :  { %v803_v24 = vpop.f32.mrf.mxu1 }
 0x17c   :  { %v20698_v47 = vadd.f32 %v803_v24, %v780_v46 }
 0x17d   :  { %1319 = vmatmul.bf16.gmra.mxu0 %v20478_v6  ;;  %1365 = vmatmul.bf16.gmra.mxu2 %v20478_v6 }
 0x17e   :  { %12798 = vmatmul.msk.bf16.gmra.mxu1 %vm659_vm1, %v20482_v9  ;;  %12801 = vmatmul.msk.bf16.gmra.mxu3 %vm659_vm1, %v20482_v9 }
 0x180   :  { %v826_v25 = vpop.f32.mrf.mxu2 }
 0x181   :  { %v849_v48 = vpop.f32.mrf.mxu3 }
 0x182   :  { %v20706_v51 = vadd.f32 %v849_v48, %v826_v25  ;;  %v782_v54 = vpop.f32.mrf.mxu0 }
 0x183   :  { %v805_v55 = vpop.f32.mrf.mxu1 }
 0x184   :  { %v12807_v55 = vld [vmem:[%s28820_s24 + $0x38] sm:$0x3] }
 0x188   :  { %v828_v57 = vpop.f32.mrf.mxu2 }
 0x189   :  { %v851_v58 = vpop.f32.mrf.mxu3 }
 0x18a   :  { %v862_v59 = vpop.f32.mrf.mxu0 }
 0x18b   :  { %v885_v60 = vpop.f32.mrf.mxu1 }
 0x18c   :  { %v20708_v0 = vadd.f32 %v885_v60, %v862_v59  ;;  %v1413_v59 = vunpack.c.l.b16 %v12807_v55 }
 0x18d   :  { %1324 = vmatmul.bf16.gmra.mxu0 %v20492_v36  ;;  %1370 = vmatmul.bf16.gmra.mxu2 %v20492_v36  ;;  %v18531_v36 = vld [vmem:[%s28820_s24 + $0x28] sm:$0xff] }
 0x18e   :  { %12799 = vmatmul.msk.bf16.gmra.mxu1 %vm659_vm1, %v20496_v37  ;;  %12802 = vmatmul.msk.bf16.gmra.mxu3 %vm659_vm1, %v20496_v37 }
 0x190   :  { %v1177_v6 = vpop.f32.mrf.mxu2 }
 0x191   :  { %v1178_v9 = vadd.f32 %v1177_v6, %v20498_v61  ;;  %v1200_v1 = vpop.f32.mrf.mxu3 }
 0x192   :  { %v20717_v8 = vpop.f32.mrf.mxu0 }
 0x193   :  { %28827 = vst [vmem:[#allocation11_spill] sm:$0xff] %v20717_v8  ;;  %v20719_v52 = vadd.f32 %v1200_v1, %v1178_v9  ;;  %v20721_v53 = vpop.f32.mrf.mxu1  ;;  %v1416_v9 = vpack.c.b16 %v1413_v59, %v1413_v59 }
 0x194   :  { %28828 = vst [vmem:[#allocation12_spill] sm:$0xff] %v20721_v53  ;;  %v18540_v53 = vld [vmem:[%s28799_s2 + $0x358] sm:$0xf0] }
 0x198   :  { %v20723_v63 = vpop.f32.mrf.mxu2 }
 0x199   :  { %v20725_v12 = vpop.f32.mrf.mxu3 }
 0x19a   :  { %v867_v41 = vpop.f32.mrf.mxu0 }
 0x19b   :  { %v890_v37 = vpop.f32.mrf.mxu1 }
 0x19c   :  { %v20730_v17 = vadd.f32 %v890_v37, %v867_v41 }
 0x19d   :  { %12816 = vmatmul.msk.bf16.vlgmr.msra.gmra.mxu0 %vm136_vm0, %v18531_v36 }
 0x19e   :  { %12819 = vmatmul.msk.bf16.vlgmr.msra.gmra.mxu1 %vm136_vm0, %v18531_v36 }
 0x1a0   :  { %v1182_v61 = vpop.f32.mrf.mxu2 }
 0x1a1   :  { %v1183_v2 = vadd.f32 %v1182_v61, %v20560_v56  ;;  %v1205_v27 = vpop.f32.mrf.mxu3 }
 0x1a2   :  { %v20735_v4 = vpop.f32.mrf.mxu0 }
 0x1a3   :  { %28829 = vst [vmem:[#allocation13_spill] sm:$0xff] %v20735_v4  ;;  %v20737_v13 = vadd.f32 %v1205_v27, %v1183_v2  ;;  %v20739_v43 = vpop.f32.mrf.mxu1 }
 0x1a4   :  { %28830 = vst [vmem:[#allocation14_spill] sm:$0xff] %v20739_v43 }
 0x1a8   :  { %v20741_v32 = vpop.f32.mrf.mxu2 }
 0x1a9   :  { %28831 = vst [vmem:[#allocation15_spill] sm:$0xff] %v20741_v32  ;;  %v20743_v15 = vpop.f32.mrf.mxu3 }
 0x1aa   :  { %28832 = vst [vmem:[#allocation16_spill] sm:$0xff] %v20743_v15  ;;  %v872_v38 = vpop.f32.mrf.mxu0 }
 0x1ab   :  { %v895_v46 = vpop.f32.mrf.mxu1 }
 0x1ac   :  { %v20748_v24 = vadd.f32 %v895_v46, %v872_v38 }
 0x1ad   :  { %12817 = vmatmul.msk.bf16.gmra.mxu0 %vm136_vm0, %v18532_v35 }
 0x1ae   :  { %12820 = vmatmul.msk.bf16.gmra.mxu1 %vm136_vm0, %v18532_v35 }
 0x1b0   :  { %v1187_v56 = vpop.f32.mrf.mxu2 }
 0x1b1   :  { %v1188_v25 = vadd.f32 %v1187_v56, %v20646_v62  ;;  %v1210_v48 = vpop.f32.mrf.mxu3 }
 0x1b2   :  { %v874_v54 = vpop.f32.mrf.mxu0 }
 0x1b3   :  { %v20756_v57 = vadd.f32 %v1210_v48, %v1188_v25  ;;  %v897_v58 = vpop.f32.mrf.mxu1 }
 0x1b8   :  { %v1189_v60 = vpop.f32.mrf.mxu2 }
 0x1b9   :  { %v1212_v6 = vpop.f32.mrf.mxu3 }
 0x1ba   :  { %v1223_v1 = vpop.f32.mrf.mxu0 }
 0x1bb   :  { %v1224_v36 = vadd.f32 %v1223_v1, %v20530_v21  ;;  %v1246_v41 = vpop.f32.mrf.mxu1 }
 0x1bd   :  { %v20759_v37 = vadd.f32 %v1246_v41, %v1224_v36  ;;  %12818 = vmatmul.msk.bf16.gmra.mxu0 %vm136_vm0, %v1416_v9 }
 0x1be   :  { %12821 = vmatmul.msk.bf16.gmra.mxu1 %vm136_vm0, %v1416_v9 }
 0x1c0   :  { %v1269_v62 = vpop.f32.mrf.mxu2 }
 0x1c1   :  { %v1270_v61 = vadd.f32 %v1269_v62, %v20663_v14  ;;  %v1292_v2 = vpop.f32.mrf.mxu3 }
 0x1c2   :  { %v20764_v27 = vpop.f32.mrf.mxu0 }
 0x1c3   :  { %v20766_v35 = vadd.f32 %v1292_v2, %v1270_v61  ;;  %v20768_v38 = vpop.f32.mrf.mxu1 }
 0x1c8   :  { %v20770_v46 = vpop.f32.mrf.mxu2 }
 0x1c9   :  { %28833 = vst [vmem:[#allocation17_spill] sm:$0xff] %v20770_v46  ;;  %v20772_v21 = vpop.f32.mrf.mxu3 }
 0x1ca   :  { %28834 = vst [vmem:[#allocation18_spill] sm:$0xff] %v20772_v21  ;;  %v1228_v56 = vpop.f32.mrf.mxu0 }
 0x1cb   :  { %v1229_v25 = vadd.f32 %v1228_v56, %v20592_v40  ;;  %v1251_v48 = vpop.f32.mrf.mxu1 }
 0x1cd   :  { %v20775_v54 = vadd.f32 %v1251_v48, %v1229_v25 }
 0x1d0   :  { %v1274_v55 = vpop.f32.mrf.mxu2 }
 0x1d1   :  { %v1275_v14 = vadd.f32 %v1274_v55, %v20682_v31  ;;  %v1297_v58 = vpop.f32.mrf.mxu3  ;;  %v13024_v55 = vld [vmem:[%s28799_s2 + $0x438] sm:$0xf] }
 0x1d2   :  { %v20778_v59 = vpop.f32.mrf.mxu0 }
 0x1d3   :  { %v20780_v60 = vadd.f32 %v1297_v58, %v1275_v14  ;;  %v20782_v6 = vpop.f32.mrf.mxu1  ;;  %v18570_v14 = vld [vmem:[%s28799_s2 + $0x448] sm:$0xf0] }
 0x1d4   :  { %v13025_v58 = vor.u32 %v18570_v14, %v13024_v55 }
 0x1d6   :  { %1808 = vmatpush.bf16.msra.mxu2 %v13025_v58 }
 0x1d8   :  { %v20784_v9 = vpop.f32.mrf.mxu2 }
 0x1d9   :  { %28835 = vst [vmem:[#allocation19_spill] sm:$0xff] %v20784_v9  ;;  %v20786_v1 = vpop.f32.mrf.mxu3  ;;  %v13238_v9 = vld [vmem:[%s28799_s2 + $0x528] sm:$0xf] }
 0x1da   :  { %28836 = vst [vmem:[#allocation20_spill] sm:$0xff] %v20786_v1  ;;  %v1233_v36 = vpop.f32.mrf.mxu0 }
 0x1db   :  { %v1234_v40 = vadd.f32 %v1233_v36, %v20656_v5  ;;  %v1256_v41 = vpop.f32.mrf.mxu1  ;;  %v18568_v5 = vld [vmem:[%s28799_s2 + $0x43c] sm:$0xf] }
 0x1dd   :  { %v20789_v62 = vadd.f32 %v1256_v41, %v1234_v40  ;;  %v13004_v41 = vld [vmem:[%s28799_s2 + $0x410] sm:$0xf] }
 0x1e0   :  { %v1279_v61 = vpop.f32.mrf.mxu2 }
 0x1e1   :  { %v1280_v31 = vadd.f32 %v1279_v61, %v20698_v47  ;;  %v1302_v2 = vpop.f32.mrf.mxu3  ;;  %v13026_v47 = vld [vmem:[%s28799_s2 + $0x44c] sm:$0xf0]  ;;  %v18565_v61 = vld [vmem:[%s28799_s2 + $0x420] sm:$0xf0] }
 0x1e2   :  { %v1235_v56 = vpop.f32.mrf.mxu0  ;;  %v13029_v36 = vor.u32 %v18568_v5, %v13026_v47  ;;  %v12984_v47 = vld [vmem:[%s28799_s2 + $0x3e8] sm:$0xf] }
 0x1e3   :  { %v20792_v25 = vadd.f32 %v1302_v2, %v1280_v31  ;;  %v1258_v48 = vpop.f32.mrf.mxu1  ;;  %v18563_v31 = vld [vmem:[%s28799_s2 + $0x414] sm:$0xf]  ;;  %v13005_v56 = vor.u32 %v18565_v61, %v13004_v41 }
 0x1e4   :  { %1854 = vmatpush.bf16.msrb.mxu0 %v13029_v36  ;;  %v13006_v48 = vld [vmem:[%s28799_s2 + $0x424] sm:$0xf0]  ;;  %v18560_v36 = vld [vmem:[%s28799_s2 + $0x3f8] sm:$0xf0] }
 0x1e5   :  { %v13009_v14 = vor.u32 %v18563_v31, %v13006_v48  ;;  %1809 = vmatpush.bf16.msra.mxu2 %v13005_v56  ;;  %v12985_v61 = vor.u32 %v18560_v36, %v12984_v47  ;;  %v12964_v56 = vld [vmem:[%s28799_s2 + $0x3c0] sm:$0xf]  ;;  %v18555_v48 = vld [vmem:[%s28799_s2 + $0x3d0] sm:$0xf0]  ;;  %v12966_v47 = vld [vmem:[%s28799_s2 + $0x3d4] sm:$0xf0] }
 0x1e8   :  { %v1281_v40 = vpop.f32.mrf.mxu2  ;;  %1855 = vmatpush.bf16.msrb.mxu0 %v13009_v14 }
 0x1e9   :  { %v1304_v2 = vpop.f32.mrf.mxu3  ;;  %v18558_v40 = vld [vmem:[%s28799_s2 + $0x3ec] sm:$0xf]  ;;  %1810 = vmatpush.bf16.msra.mxu2 %v12985_v61 }
 0x1ea   :  { %v1315_v55 = vpop.f32.mrf.mxu0 }
 0x1eb   :  { %v1316_v5 = vadd.f32 %v1315_v55, %v20674_v26  ;;  %v1338_v58 = vpop.f32.mrf.mxu1  ;;  %v12986_v26 = vld [vmem:[%s28799_s2 + $0x3fc] sm:$0xf0]  ;;  %v18553_v55 = vld [vmem:[%s28799_s2 + $0x3c4] sm:$0xf] }
 0x1ec   :  { %v12989_v31 = vor.u32 %v18558_v40, %v12986_v26  ;;  %v12969_v40 = vor.u32 %v18553_v55, %v12966_v47  ;;  %v18543_v47 = vld [vmem:[%s28799_s2 + $0x374] sm:$0xf] }
 0x1ed   :  { %v20828_v41 = vadd.f32 %v1338_v58, %v1316_v5  ;;  %v12965_v58 = vor.u32 %v18555_v48, %v12964_v56  ;;  %v12946_v48 = vld [vmem:[%s28799_s2 + $0x3ac] sm:$0xf0] }
 0x1ee   :  { %1856 = vmatpush.bf16.msrb.mxu0 %v12989_v31  ;;  %v12944_v31 = vld [vmem:[%s28799_s2 + $0x398] sm:$0xf] }
 0x1ef   :  { %1811 = vmatpush.bf16.msra.mxu2 %v12965_v58  ;;  %v18545_v58 = vld [vmem:[%s28799_s2 + $0x380] sm:$0xf0] }
 0x1f0   :  { %v1361_v2 = vpop.f32.mrf.mxu2 }
 0x1f1   :  { %v1362_v14 = vadd.f32 %v1361_v2, %v20708_v0  ;;  %v1384_v5 = vpop.f32.mrf.mxu3  ;;  %v18550_v0 = vld [vmem:[%s28799_s2 + $0x3a8] sm:$0xf0]  ;;  %v18548_v2 = vld [vmem:[%s28799_s2 + $0x39c] sm:$0xf] }
 0x1f2   :  { %v20846_v36 = vpop.f32.mrf.mxu0  ;;  %1857 = vmatpush.bf16.msrb.mxu0 %v12969_v40  ;;  %v12945_v56 = vor.u32 %v18550_v0, %v12944_v31  ;;  %v12949_v55 = vor.u32 %v18548_v2, %v12946_v48  ;;  %v12926_v0 = vld [vmem:[%s28799_s2 + $0x384] sm:$0xf0] }
 0x1f3   :  { %28837 = vst [vmem:[#allocation21_spill] sm:$0xff] %v20846_v36  ;;  %v20848_v61 = vadd.f32 %v1384_v5, %v1362_v14  ;;  %v20850_v26 = vpop.f32.mrf.mxu1  ;;  %v12924_v5 = vld [vmem:[%s28799_s2 + $0x370] sm:$0xf] }
 0x1f4   :  { %28838 = vst [vmem:[#allocation22_spill] sm:$0xff] %v20850_v26  ;;  %1812 = vmatpush.bf16.msra.mxu2 %v12945_v56  ;;  %v12925_v31 = vor.u32 %v18545_v58, %v12924_v5  ;;  %v12929_v56 = vor.u32 %v18543_v47, %v12926_v0  ;;  %v13064_v5 = vld [vmem:[%s28799_s2 + $0x488] sm:$0xf]  ;;  %v18538_v47 = vld [vmem:[%s28799_s2 + $0x34c] sm:$0xf] }
 0x1f6   :  { %1858 = vmatpush.bf16.msrb.mxu0 %v12949_v55 }
 0x1f8   :  { %v20864_v14 = vpop.f32.mrf.mxu2  ;;  %1813 = vmatpush.bf16.msra.mxu2 %v12925_v31  ;;  %v12906_v31 = vld [vmem:[%s28799_s2 + $0x35c] sm:$0xf0] }
 0x1f9   :  { %28839 = vst [vmem:[#allocation23_spill] sm:$0xff] %v20864_v14  ;;  %v20875_v40 = vpop.f32.mrf.mxu3  ;;  %v12904_v14 = vld [vmem:[%s28799_s2 + $0x348] sm:$0xf] }
 0x1fa   :  { %28840 = vst [vmem:[#allocation24_spill] sm:$0xff] %v20875_v40  ;;  %v1320_v2 = vpop.f32.mrf.mxu0  ;;  %1859 = vmatpush.bf16.msrb.mxu0 %v12929_v56  ;;  %v12905_v58 = vor.u32 %v18540_v53, %v12904_v14  ;;  %v12909_v40 = vor.u32 %v18538_v47, %v12906_v31  ;;  %v18578_v53 = vld [vmem:[%s28799_s2 + $0x48c] sm:$0xf]  ;;  %v13066_v14 = vld [vmem:[%s28799_s2 + $0x49c] sm:$0xf0] }
 0x1fb   :  { %v1321_v48 = vadd.f32 %v1320_v2, %v20690_v34  ;;  %v1343_v55 = vpop.f32.mrf.mxu1  ;;  %v18580_v34 = vld [vmem:[%s28799_s2 + $0x498] sm:$0xf0]  ;;  %v13069_v56 = vor.u32 %v18578_v53, %v13066_v14  ;;  %v18533_v31 = vld [vmem:[%s28799_s2 + $0x324] sm:$0xf] }
 0x1fc   :  { %v13065_v2 = vor.u32 %v18580_v34, %v13064_v5  ;;  %1814 = vmatpush.bf16.msra.mxu2 %v12905_v58  ;;  %v13044_v5 = vld [vmem:[%s28799_s2 + $0x460] sm:$0xf] }
 0x1fd   :  { %v20899_v0 = vadd.f32 %v1343_v55, %v1321_v48  ;;  %1883 = vmatpush.bf16.msrb.mxu1 %v13069_v56  ;;  %v12884_v48 = vld [vmem:[%s28799_s2 + $0x320] sm:$0xf]  ;;  %v18535_v55 = vld [vmem:[%s28799_s2 + $0x330] sm:$0xf0] }
 0x1fe   :  { %1837 = vmatpush.bf16.msra.mxu3 %v13065_v2  ;;  %1860 = vmatpush.bf16.msrb.mxu0 %v12909_v40  ;;  %v12885_v58 = vor.u32 %v18535_v55, %v12884_v48  ;;  %v18575_v40 = vld [vmem:[%s28799_s2 + $0x470] sm:$0xf0]  ;;  %v12886_v2 = vld [vmem:[%s28799_s2 + $0x334] sm:$0xf0] }
 0x1ff   :  { %v13045_v14 = vor.u32 %v18575_v40, %v13044_v5  ;;  %v12889_v56 = vor.u32 %v18533_v31, %v12886_v2 }
 0x200   :  { %v1366_v8 = vpop.f32.mrf.mxu2  ;;  %1815 = vmatpush.bf16.msra.mxu2 %v12885_v58 }
 0x201   :  { %v1367_v34 = vadd.f32 %v1366_v8, %v20730_v17  ;;  %v1389_v47 = vpop.f32.mrf.mxu3  ;;  %v18573_v8 = vld [vmem:[%s28799_s2 + $0x464] sm:$0xf]  ;;  %v13046_v17 = vld [vmem:[%s28799_s2 + $0x474] sm:$0xf0] }
 0x202   :  { %v20926_v53 = vpop.f32.mrf.mxu0  ;;  %v13049_v43 = vor.u32 %v18573_v8, %v13046_v17  ;;  %1838 = vmatpush.bf16.msra.mxu3 %v13045_v14  ;;  %1861 = vmatpush.bf16.msrb.mxu0 %v12889_v56  ;;  %v18571_v56 = vld [vmem:[%s28799_s2 + $0x450] sm:$0xf0] }
 0x203   :  { %28841 = vst [vmem:[#allocation25_spill] sm:$0xff] %v20926_v53  ;;  %v20934_v48 = vadd.f32 %v1389_v47, %v1367_v34  ;;  %v20936_v55 = vpop.f32.mrf.mxu1 }
 0x204   :  { %28842 = vst [vmem:[#allocation26_spill] sm:$0xff] %v20936_v55  ;;  %1884 = vmatpush.bf16.msrb.mxu1 %v13049_v43  ;;  %v13032_v43 = vld [vmem:[%s28799_s2 + $0x440] sm:$0xf] }
 0x205   :  { %v13033_v8 = vor.u32 %v18571_v56, %v13032_v43 }
 0x207   :  { %1900 = vmatpush.bf16.msrb.mxu2 %v13033_v8  ;;  %v18561_v8 = vld [vmem:[%s28799_s2 + $0x400] sm:$0xf0] }
 0x208   :  { %v20938_v4 = vpop.f32.mrf.mxu2 }
 0x209   :  { %28843 = vst [vmem:[#allocation27_spill] sm:$0xff] %v20938_v4  ;;  %v20940_v5 = vpop.f32.mrf.mxu3  ;;  %v13052_v4 = vld [vmem:[%s28799_s2 + $0x468] sm:$0xf] }
 0x20a   :  { %28844 = vst [vmem:[#allocation28_spill] sm:$0xff] %v20940_v5  ;;  %v1325_v40 = vpop.f32.mrf.mxu0 }
 0x20b   :  { %v1326_v31 = vadd.f32 %v1325_v40, %v20706_v51  ;;  %v1348_v2 = vpop.f32.mrf.mxu1  ;;  %v18569_v51 = vld [vmem:[%s28799_s2 + $0x444] sm:$0xf]  ;;  %v18566_v40 = vld [vmem:[%s28799_s2 + $0x428] sm:$0xf0] }
 0x20d   :  { %v20943_v26 = vadd.f32 %v1348_v2, %v1326_v31  ;;  %v18564_v31 = vld [vmem:[%s28799_s2 + $0x41c] sm:$0xf] }
 0x210   :  { %v1371_v36 = vpop.f32.mrf.mxu2 }
 0x211   :  { %v1372_v34 = vadd.f32 %v1371_v36, %v20748_v24  ;;  %v1394_v47 = vpop.f32.mrf.mxu3  ;;  %v13034_v24 = vld [vmem:[%s28799_s2 + $0x454] sm:$0xf0] }
 0x212   :  { %v1327_v55 = vpop.f32.mrf.mxu0  ;;  %v13037_v36 = vor.u32 %v18569_v51, %v13034_v24  ;;  %v12992_v51 = vld [vmem:[%s28799_s2 + $0x3f0] sm:$0xf]  ;;  %v18559_v24 = vld [vmem:[%s28799_s2 + $0x3f4] sm:$0xf] }
 0x213   :  { %v20946_v58 = vadd.f32 %v1394_v47, %v1372_v34  ;;  %v1350_v14 = vpop.f32.mrf.mxu1  ;;  %v13012_v55 = vld [vmem:[%s28799_s2 + $0x418] sm:$0xf]  ;;  %v13014_v47 = vld [vmem:[%s28799_s2 + $0x42c] sm:$0xf0] }
 0x214   :  { %1946 = vmatpush.bf16.msra.mxu0 %v13037_v36  ;;  %v13013_v34 = vor.u32 %v18566_v40, %v13012_v55  ;;  %v13017_v43 = vor.u32 %v18564_v31, %v13014_v47  ;;  %v12993_v36 = vor.u32 %v18561_v8, %v12992_v51  ;;  %v12972_v40 = vld [vmem:[%s28799_s2 + $0x3c8] sm:$0xf]  ;;  %v18556_v31 = vld [vmem:[%s28799_s2 + $0x3d8] sm:$0xf0]  ;;  %v12974_v47 = vld [vmem:[%s28799_s2 + $0x3dc] sm:$0xf0] }
 0x216   :  { %1901 = vmatpush.bf16.msrb.mxu2 %v13013_v34  ;;  %v12973_v34 = vor.u32 %v18556_v31, %v12972_v40  ;;  %v18549_v40 = vld [vmem:[%s28799_s2 + $0x3a4] sm:$0xf] }
 0x218   :  { %v1373_v17 = vpop.f32.mrf.mxu2  ;;  %1947 = vmatpush.bf16.msra.mxu0 %v13017_v43 }
 0x219   :  { %v1396_v2 = vpop.f32.mrf.mxu3  ;;  %v12994_v17 = vld [vmem:[%s28799_s2 + $0x404] sm:$0xf0] }
 0x21a   :  { %v1435_v14 = vpop.f32.mrf.mxu0  ;;  %v12997_v55 = vor.u32 %v18559_v24, %v12994_v17  ;;  %1902 = vmatpush.bf16.msrb.mxu2 %v12993_v36  ;;  %v18554_v2 = vld [vmem:[%s28799_s2 + $0x3cc] sm:$0xf]  ;;  %v12952_v17 = vld [vmem:[%s28799_s2 + $0x3a0] sm:$0xf] }
 0x21b   :  { %v1458_v56 = vpop.f32.mrf.mxu1  ;;  %v12977_v51 = vor.u32 %v18554_v2, %v12974_v47  ;;  %v12932_v2 = vld [vmem:[%s28799_s2 + $0x378] sm:$0xf]  ;;  %v18544_v47 = vld [vmem:[%s28799_s2 + $0x37c] sm:$0xf] }
 0x21c   :  { %1948 = vmatpush.bf16.msra.mxu0 %v12997_v55  ;;  %v18551_v55 = vld [vmem:[%s28799_s2 + $0x3b0] sm:$0xf0] }
 0x21e   :  { %1903 = vmatpush.bf16.msrb.mxu2 %v12973_v34  ;;  %v18546_v34 = vld [vmem:[%s28799_s2 + $0x388] sm:$0xf0] }
 0x220   :  { %1949 = vmatpush.bf16.msra.mxu0 %v12977_v51  ;;  %v12934_v51 = vld [vmem:[%s28799_s2 + $0x38c] sm:$0xf0] }
 0x222   :  { %v1437_v43 = vpop.f32.mrf.mxu0 }
 0x223   :  { %v20996_v8 = vpack.c.bf16 %v1437_v43, %v1435_v14  ;;  %v1460_v24 = vpop.f32.mrf.mxu1  ;;  %v12953_v14 = vor.u32 %v18551_v55, %v12952_v17  ;;  %v12933_v43 = vor.u32 %v18546_v34, %v12932_v2  ;;  %v18541_v17 = vld [vmem:[%s28799_s2 + $0x360] sm:$0xf0]  ;;  %v12937_v55 = vor.u32 %v18544_v47, %v12934_v51  ;;  %v12914_v34 = vld [vmem:[%s28799_s2 + $0x364] sm:$0xf0] }
 0x224   :  { %v20998_v36 = vpack.c.bf16 %v1460_v24, %v1458_v56  ;;  %v12954_v56 = vld [vmem:[%s28799_s2 + $0x3b4] sm:$0xf0]  ;;  %v12912_v24 = vld [vmem:[%s28799_s2 + $0x350] sm:$0xf]  ;;  %v13074_v47 = vld [vmem:[%s28799_s2 + $0x4a4] sm:$0xf0] }
 0x225   :  { %1816 = vmatmul.bf16.vlgmr.msra.gmra.mxu2 %v20996_v8  ;;  %1862 = vmatmul.bf16.vlgmr.msrb.gmra.mxu0 %v20996_v8  ;;  %v12957_v31 = vor.u32 %v18549_v40, %v12954_v56  ;;  %v13072_v40 = vld [vmem:[%s28799_s2 + $0x490] sm:$0xf]  ;;  %v18539_v56 = vld [vmem:[%s28799_s2 + $0x354] sm:$0xf] }
 0x226   :  { %13082 = vmatmul.msk.bf16.vlgmr.msra.gmra.mxu3 %vm659_vm1, %v20998_v36  ;;  %13085 = vmatmul.msk.bf16.vlgmr.msrb.gmra.mxu1 %vm659_vm1, %v20998_v36  ;;  %v12917_v20 = vor.u32 %v18539_v56, %v12914_v34 }
 0x227   :  { %1904 = vmatpush.bf16.msrb.mxu2 %v12953_v14  ;;  %1950 = vmatpush.bf16.msra.mxu0 %v12957_v31  ;;  %v18581_v14 = vld [vmem:[%s28799_s2 + $0x4a0] sm:$0xf0]  ;;  %v18579_v31 = vld [vmem:[%s28799_s2 + $0x494] sm:$0xf] }
 0x228   :  { %v13073_v2 = vor.u32 %v18581_v14, %v13072_v40  ;;  %v13077_v5 = vor.u32 %v18579_v31, %v13074_v47  ;;  %v12913_v40 = vor.u32 %v18541_v17, %v12912_v24  ;;  %v12892_v14 = vld [vmem:[%s28799_s2 + $0x328] sm:$0xf]  ;;  %v18536_v31 = vld [vmem:[%s28799_s2 + $0x338] sm:$0xf0]  ;;  %v13053_v47 = vor.u32 %v18576_v42, %v13052_v4  ;;  %v13054_v24 = vld [vmem:[%s28799_s2 + $0x47c] sm:$0xf0] }
 0x229   :  { %v18534_v17 = vld [vmem:[%s28799_s2 + $0x32c] sm:$0xf]  ;;  %v12893_v56 = vor.u32 %v18536_v31, %v12892_v14 }
 0x22a   :  { %v1440_v51 = vpop.f32.mrf.mxu0  ;;  %1929 = vmatpush.bf16.msrb.mxu3 %v13073_v2  ;;  %1975 = vmatpush.bf16.msra.mxu1 %v13077_v5  ;;  %v12894_v5 = vld [vmem:[%s28799_s2 + $0x33c] sm:$0xf0] }
 0x22b   :  { %v1463_v1 = vpop.f32.mrf.mxu1  ;;  %1905 = vmatpush.bf16.msrb.mxu2 %v12933_v43  ;;  %1951 = vmatpush.bf16.msra.mxu0 %v12937_v55  ;;  %v18574_v43 = vld [vmem:[%s28799_s2 + $0x46c] sm:$0xf]  ;;  %v12897_v42 = vor.u32 %v18534_v17, %v12894_v5  ;;  %v13020_v17 = vld [vmem:[%s28799_s2 + $0x420] sm:$0xf]  ;;  %v18567_v5 = vld [vmem:[%s28799_s2 + $0x430] sm:$0xf0] }
 0x22c   :  { %v13057_v55 = vor.u32 %v18574_v43, %v13054_v24  ;;  %v18572_v43 = vld [vmem:[%s28799_s2 + $0x458] sm:$0xf0] }
 0x22e   :  { %1930 = vmatpush.bf16.msrb.mxu3 %v13053_v47  ;;  %1976 = vmatpush.bf16.msra.mxu1 %v13057_v55  ;;  %v13040_v47 = vld [vmem:[%s28799_s2 + $0x448] sm:$0xf]  ;;  %v13021_v55 = vor.u32 %v18567_v5, %v13020_v17  ;;  %v13080_v5 = vld [vmem:[%s28799_s2 + $0x498] sm:$0xf] }
 0x22f   :  { %1906 = vmatpush.bf16.msrb.mxu2 %v12913_v40  ;;  %1952 = vmatpush.bf16.msra.mxu0 %v12917_v20  ;;  %v13041_v24 = vor.u32 %v18572_v43, %v13040_v47  ;;  %v12940_v43 = vld [vmem:[%s28799_s2 + $0x380] sm:$0xf] }
 0x232   :  { %2117 = vmatpush.bf16.msrb.mxu1 %v19804_v7  ;;  %v1442_v4 = vpop.f32.mrf.mxu0 }
 0x233   :  { %v21079_v2 = vpack.c.bf16 %v1442_v4, %v1440_v51  ;;  %v1465_v34 = vpop.f32.mrf.mxu1  ;;  %1907 = vmatpush.bf16.msrb.mxu2 %v12893_v56  ;;  %1953 = vmatpush.bf16.msra.mxu0 %v12897_v42  ;;  %v13000_v56 = vld [vmem:[%s28799_s2 + $0x3f8] sm:$0xf]  ;;  %v18562_v42 = vld [vmem:[%s28799_s2 + $0x408] sm:$0xf0] }
 0x234   :  { %v21081_v53 = vpack.c.bf16 %v1465_v34, %v1463_v1  ;;  %v13001_v4 = vor.u32 %v18562_v42, %v13000_v56  ;;  %v12980_v34 = vld [vmem:[%s28799_s2 + $0x3d0] sm:$0xf]  ;;  %v12920_v56 = vld [vmem:[%s28799_s2 + $0x358] sm:$0xf]  ;;  %v18542_v42 = vld [vmem:[%s28799_s2 + $0x368] sm:$0xf0] }
 0x235   :  { %1821 = vmatmul.bf16.gmra.mxu2 %v21079_v2  ;;  %1867 = vmatmul.bf16.gmra.mxu0 %v21079_v2 }
 0x236   :  { %13083 = vmatmul.msk.bf16.gmra.mxu3 %vm659_vm1, %v21081_v53  ;;  %13086 = vmatmul.msk.bf16.gmra.mxu1 %vm659_vm1, %v21081_v53 }
 0x237   :  { %2094 = vmatpush.bf16.msrb.mxu0 %v19793_v3  ;;  %2118 = vmatpush.bf16.msrb.mxu1 %v19817_v11 }
 0x238   :  { %1992 = vmatpush.bf16.msra.mxu2 %v13041_v24  ;;  %v18547_v24 = vld [vmem:[%s28799_s2 + $0x390] sm:$0xf0] }
 0x239   :  { %v12941_v17 = vor.u32 %v18547_v24, %v12940_v43  ;;  %v18583_v24 = vld [vmem:[%s28820_s24 + $0x3c] sm:$0xff] }
 0x23a   :  { %v1445_v20 = vpop.f32.mrf.mxu0 }
 0x23b   :  { %v1468_v51 = vpop.f32.mrf.mxu1  ;;  %2095 = vmatpush.bf16.msrb.mxu0 %v19813_v10  ;;  %2119 = vmatpush.bf16.msrb.mxu1 %v19840_v18  ;;  %v21095_v1 = vpack.c.bf16 %v1445_v20, %v1445_v20  ;;  %v18557_v20 = vld [vmem:[%s28799_s2 + $0x3e0] sm:$0xf0] }
 0x23c   :  { %v21097_v40 = vpack.c.bf16 %v1468_v51, %v1468_v51  ;;  %1993 = vmatpush.bf16.msra.mxu2 %v13021_v55  ;;  %v12981_v51 = vor.u32 %v18557_v20, %v12980_v34  ;;  %v18582_v55 = vld [vmem:[%s28799_s2 + $0x4a8] sm:$0xf0]  ;;  %v13060_v34 = vld [vmem:[%s28799_s2 + $0x470] sm:$0xf]  ;;  %v18577_v20 = vld [vmem:[%s28799_s2 + $0x480] sm:$0xf0] }
 0x23f   :  { %2096 = vmatpush.bf16.msrb.mxu0 %v19833_v16  ;;  %2120 = vmatpush.bf16.msrb.mxu1 %v19857_v23 }
 0x240   :  { %1994 = vmatpush.bf16.msra.mxu2 %v13001_v4  ;;  %v13081_v4 = vor.u32 %v18582_v55, %v13080_v5 }
 0x242   :  { %v1447_v14 = vpop.f32.mrf.mxu0  ;;  %2021 = vmatpush.bf16.msra.mxu3 %v13081_v4 }
 0x243   :  { %v1470_v31 = vpop.f32.mrf.mxu1  ;;  %2097 = vmatpush.bf16.msrb.mxu0 %v19853_v22  ;;  %2121 = vmatpush.bf16.msrb.mxu1 %v19877_v29  ;;  %v12960_v14 = vld [vmem:[%s28799_s2 + $0x3a8] sm:$0xf] }
 0x244   :  { %1995 = vmatpush.bf16.msra.mxu2 %v12981_v51  ;;  %v18552_v31 = vld [vmem:[%s28799_s2 + $0x3b8] sm:$0xf0]  ;;  %v13061_v51 = vor.u32 %v18577_v20, %v13060_v34 }
 0x245   :  { %1826 = vmatmul.bf16.gmra.mxu2 %v21095_v1  ;;  %1872 = vmatmul.bf16.gmra.mxu0 %v21095_v1  ;;  %v12961_v47 = vor.u32 %v18552_v31, %v12960_v14  ;;  %v12921_v14 = vor.u32 %v18542_v42, %v12920_v56  ;;  %v12900_v31 = vld [vmem:[%s28799_s2 + $0x330] sm:$0xf] }
 0x246   :  { %13084 = vmatmul.msk.bf16.gmra.mxu3 %vm659_vm1, %v21097_v40  ;;  %13087 = vmatmul.msk.bf16.gmra.mxu1 %vm659_vm1, %v21097_v40 }
 0x247   :  { %2098 = vmatpush.bf16.msrb.mxu0 %v19873_v28  ;;  %2022 = vmatpush.bf16.msra.mxu3 %v13061_v51 }
 0x248   :  { %1996 = vmatpush.bf16.msra.mxu2 %v12961_v47  ;;  %v18537_v47 = vld [vmem:[%s28799_s2 + $0x340] sm:$0xf0] }
 0x249   :  { %v12901_v43 = vor.u32 %v18537_v47, %v12900_v31 }
 0x24c   :  { %1997 = vmatpush.bf16.msra.mxu2 %v12941_v17  ;;  %v18584_v17 = vld [vmem:[%s28820_s24 + $0x44] sm:$0xff] }
 0x250   :  { %1998 = vmatpush.bf16.msra.mxu2 %v12921_v14 }
 0x254   :  { %1999 = vmatpush.bf16.msra.mxu2 %v12901_v43 }
 0x255   :  { %1908 = vmatmul.bf16.vlgmr.msrb.gmra.mxu2 %v20996_v8  ;;  %1954 = vmatmul.bf16.vlgmr.msra.gmra.mxu0 %v20996_v8 }
 0x256   :  { %13088 = vmatmul.msk.bf16.vlgmr.msrb.gmra.mxu3 %vm659_vm1, %v20998_v36  ;;  %13091 = vmatmul.msk.bf16.vlgmr.msra.gmra.mxu1 %vm659_vm1, %v20998_v36 }
 0x265   :  { %1913 = vmatmul.bf16.gmra.mxu2 %v21079_v2  ;;  %1959 = vmatmul.bf16.gmra.mxu0 %v21079_v2 }
 0x266   :  { %13089 = vmatmul.msk.bf16.gmra.mxu3 %vm659_vm1, %v21081_v53  ;;  %13092 = vmatmul.msk.bf16.gmra.mxu1 %vm659_vm1, %v21081_v53 }
 0x275   :  { %1918 = vmatmul.bf16.gmra.mxu2 %v21095_v1  ;;  %1964 = vmatmul.bf16.gmra.mxu0 %v21095_v1 }
 0x276   :  { %13090 = vmatmul.msk.bf16.gmra.mxu3 %vm659_vm1, %v21097_v40  ;;  %13093 = vmatmul.msk.bf16.gmra.mxu1 %vm659_vm1, %v21097_v40 }
 0x285   :  { %2000 = vmatmul.bf16.vlgmr.msra.gmra.mxu2 %v20996_v8  ;;  %13110 = vmatmul.msk.bf16.vlgmr.msrb.gmra.mxu0 %vm136_vm0, %v18583_v24  ;;  %v13101_v8 = vld [vmem:[%s28820_s24 + $0x4c] sm:$0x3] }
 0x286   :  { %13094 = vmatmul.msk.bf16.vlgmr.msra.gmra.mxu3 %vm659_vm1, %v20998_v36  ;;  %13113 = vmatmul.msk.bf16.vlgmr.msrb.gmra.mxu1 %vm136_vm0, %v18583_v24  ;;  %v2078_v36 = vunpack.c.l.b16 %v13101_v8 }
 0x288   :  { %v2081_v5 = vpack.c.b16 %v2078_v36, %v2078_v36 }
 0x295   :  { %2005 = vmatmul.bf16.gmra.mxu2 %v21079_v2  ;;  %13111 = vmatmul.msk.bf16.gmra.mxu0 %vm136_vm0, %v18584_v17 }
 0x296   :  { %13095 = vmatmul.msk.bf16.gmra.mxu3 %vm659_vm1, %v21081_v53  ;;  %13114 = vmatmul.msk.bf16.gmra.mxu1 %vm136_vm0, %v18584_v17 }
 0x2a2   :  { %v1863_v55 = vpop.f32.mrf.mxu0 }
 0x2a3   :  { %v1886_v56 = vpop.f32.mrf.mxu1 }
 0x2a4   :  { %v1887_v42 = vadd.f32 %v1886_v56, %v1863_v55 }
 0x2a5   :  { %2010 = vmatmul.bf16.gmra.mxu2 %v21095_v1  ;;  %13112 = vmatmul.msk.bf16.gmra.mxu0 %vm136_vm0, %v2081_v5 }
 0x2a6   :  { %v21208_v2 = vadd.f32 %v1887_v42, %v20759_v37  ;;  %13096 = vmatmul.msk.bf16.gmra.mxu3 %vm659_vm1, %v21097_v40  ;;  %13115 = vmatmul.msk.bf16.gmra.mxu1 %vm136_vm0, %v2081_v5 }
 0x2a8   :  { %v1817_v53 = vpop.f32.mrf.mxu2 }
 0x2a9   :  { %v1840_v4 = vpop.f32.mrf.mxu3 }
 0x2aa   :  { %v1841_v34 = vadd.f32 %v1840_v4, %v1817_v53  ;;  %v21213_v20 = vpop.f32.mrf.mxu0 }
 0x2ab   :  { %v21215_v51 = vpop.f32.mrf.mxu1 }
 0x2ac   :  { %v21218_v14 = vadd.f32 %v1841_v34, %v20719_v52 }
 0x2b0   :  { %v21220_v1 = vpop.f32.mrf.mxu2 }
 0x2b1   :  { %v21222_v31 = vpop.f32.mrf.mxu3 }
 0x2b2   :  { %v1868_v37 = vpop.f32.mrf.mxu0 }
 0x2b3   :  { %v1891_v47 = vpop.f32.mrf.mxu1 }
 0x2b4   :  { %v1892_v43 = vadd.f32 %v1891_v47, %v1868_v37 }
 0x2b6   :  { %v21225_v40 = vadd.f32 %v1892_v43, %v20775_v54 }
 0x2b8   :  { %v1822_v24 = vpop.f32.mrf.mxu2 }
 0x2b9   :  { %v1845_v17 = vpop.f32.mrf.mxu3 }
 0x2ba   :  { %v1846_v8 = vadd.f32 %v1845_v17, %v1822_v24  ;;  %v21227_v36 = vpop.f32.mrf.mxu0 }
 0x2bb   :  { %v21229_v5 = vpop.f32.mrf.mxu1 }
 0x2bc   :  { %v21232_v52 = vadd.f32 %v1846_v8, %v20737_v13  ;;  %v13318_v13 = vld [vmem:[%s28799_s2 + $0x5c8] sm:$0xf]  ;;  %v18622_v8 = vld [vmem:[%s28799_s2 + $0x5d8] sm:$0xf0] }
 0x2c0   :  { %v21234_v55 = vpop.f32.mrf.mxu2 }
 0x2c1   :  { %28845 = vst [vmem:[#allocation29_spill] sm:$0xff] %v21234_v55  ;;  %v21236_v56 = vpop.f32.mrf.mxu3 }
 0x2c2   :  { %28846 = vst [vmem:[#allocation30_spill] sm:$0xff] %v21236_v56  ;;  %v1873_v42 = vpop.f32.mrf.mxu0 }
 0x2c3   :  { %v1896_v53 = vpop.f32.mrf.mxu1 }
 0x2c4   :  { %v1897_v4 = vadd.f32 %v1896_v53, %v1873_v42  ;;  %v13319_v42 = vor.u32 %v18622_v8, %v13318_v13  ;;  %v13320_v53 = vld [vmem:[%s28799_s2 + $0x5dc] sm:$0xf0]  ;;  %v13300_v13 = vld [vmem:[%s28799_s2 + $0x5b4] sm:$0xf0] }
 0x2c6   :  { %v21239_v54 = vadd.f32 %v1897_v4, %v20789_v62  ;;  %v18620_v62 = vld [vmem:[%s28799_s2 + $0x5cc] sm:$0xf]  ;;  %2473 = vmatpush.bf16.msrb.mxu2 %v13319_v42 }
 0x2c7   :  { %v13323_v4 = vor.u32 %v18620_v62, %v13320_v53 }
 0x2c8   :  { %v1827_v34 = vpop.f32.mrf.mxu2 }
 0x2c9   :  { %v1850_v37 = vpop.f32.mrf.mxu3  ;;  %2519 = vmatpush.bf16.msra.mxu0 %v13323_v4  ;;  %v13278_v4 = vld [vmem:[%s28799_s2 + $0x578] sm:$0xf] }
 0x2ca   :  { %v1851_v47 = vadd.f32 %v1850_v37, %v1827_v34  ;;  %v1875_v43 = vpop.f32.mrf.mxu0  ;;  %v13298_v34 = vld [vmem:[%s28799_s2 + $0x5a0] sm:$0xf]  ;;  %v18617_v37 = vld [vmem:[%s28799_s2 + $0x5b0] sm:$0xf0] }
 0x2cb   :  { %v1898_v24 = vpop.f32.mrf.mxu1 }
 0x2cc   :  { %v21242_v17 = vadd.f32 %v1851_v47, %v20756_v57  ;;  %v18615_v47 = vld [vmem:[%s28799_s2 + $0x5a4] sm:$0xf]  ;;  %v13299_v24 = vor.u32 %v18617_v37, %v13298_v34  ;;  %v18610_v34 = vld [vmem:[%s28799_s2 + $0x57c] sm:$0xf] }
 0x2cd   :  { %v13303_v62 = vor.u32 %v18615_v47, %v13300_v13  ;;  %v13280_v47 = vld [vmem:[%s28799_s2 + $0x58c] sm:$0xf0] }
 0x2ce   :  { %2474 = vmatpush.bf16.msrb.mxu2 %v13299_v24  ;;  %v13283_v24 = vor.u32 %v18610_v34, %v13280_v47 }
 0x2cf   :  { %2520 = vmatpush.bf16.msra.mxu0 %v13303_v62  ;;  %v18607_v62 = vld [vmem:[%s28799_s2 + $0x560] sm:$0xf0] }
 0x2d0   :  { %v1829_v57 = vpop.f32.mrf.mxu2 }
 0x2d1   :  { %v1852_v43 = vpop.f32.mrf.mxu3  ;;  %v18612_v57 = vld [vmem:[%s28799_s2 + $0x588] sm:$0xf0] }
 0x2d2   :  { %v1955_v8 = vpop.f32.mrf.mxu0  ;;  %v13279_v37 = vor.u32 %v18612_v57, %v13278_v4 }
 0x2d3   :  { %v1978_v42 = vpop.f32.mrf.mxu1  ;;  %2521 = vmatpush.bf16.msra.mxu0 %v13283_v24 }
 0x2d4   :  { %v1979_v53 = vadd.f32 %v1978_v42, %v1955_v8  ;;  %2475 = vmatpush.bf16.msrb.mxu2 %v13279_v37  ;;  %v13258_v8 = vld [vmem:[%s28799_s2 + $0x550] sm:$0xf]  ;;  %v18605_v42 = vld [vmem:[%s28799_s2 + $0x554] sm:$0xf] }
 0x2d5   :  { %v13259_v57 = vor.u32 %v18607_v62, %v13258_v8  ;;  %v18602_v8 = vld [vmem:[%s28799_s2 + $0x538] sm:$0xf0] }
 0x2d6   :  { %v21281_v43 = vadd.f32 %v1979_v53, %v20828_v41  ;;  %v13260_v41 = vld [vmem:[%s28799_s2 + $0x564] sm:$0xf0]  ;;  %v13239_v62 = vor.u32 %v18602_v8, %v13238_v9  ;;  %v18595_v9 = vld [vmem:[%s28799_s2 + $0x504] sm:$0xf]  ;;  %v13220_v8 = vld [vmem:[%s28799_s2 + $0x514] sm:$0xf0] }
 0x2d7   :  { %v13263_v37 = vor.u32 %v18605_v42, %v13260_v41  ;;  %v13240_v42 = vld [vmem:[%s28799_s2 + $0x53c] sm:$0xf0]  ;;  %v18597_v41 = vld [vmem:[%s28799_s2 + $0x510] sm:$0xf0] }
 0x2d8   :  { %v1909_v13 = vpop.f32.mrf.mxu2  ;;  %2476 = vmatpush.bf16.msrb.mxu2 %v13259_v57  ;;  %v13218_v57 = vld [vmem:[%s28799_s2 + $0x500] sm:$0xf] }
 0x2d9   :  { %v1932_v4 = vpop.f32.mrf.mxu3  ;;  %2522 = vmatpush.bf16.msra.mxu0 %v13263_v37  ;;  %v13219_v37 = vor.u32 %v18597_v41, %v13218_v57  ;;  %v13358_v57 = vld [vmem:[%s28799_s2 + $0x618] sm:$0xf] }
 0x2da   :  { %v1933_v53 = vadd.f32 %v1932_v4, %v1909_v13  ;;  %v21295_v34 = vpop.f32.mrf.mxu0  ;;  %v18600_v13 = vld [vmem:[%s28799_s2 + $0x52c] sm:$0xf] }
 0x2db   :  { %28847 = vst [vmem:[#allocation31_spill] sm:$0xff] %v21295_v34  ;;  %v21297_v47 = vpop.f32.mrf.mxu1 }
 0x2dc   :  { %28848 = vst [vmem:[#allocation32_spill] sm:$0xff] %v21297_v47  ;;  %v21300_v24 = vadd.f32 %v1933_v53, %v20766_v35  ;;  %v13243_v35 = vor.u32 %v18600_v13, %v13240_v42  ;;  %2477 = vmatpush.bf16.msrb.mxu2 %v13239_v62  ;;  %v13223_v62 = vor.u32 %v18595_v9, %v13220_v8  ;;  %v18592_v47 = vld [vmem:[%s28799_s2 + $0x4e8] sm:$0xf0]  ;;  %v13200_v8 = vld [vmem:[%s28799_s2 + $0x4ec] sm:$0xf0] }
 0x2dd   :  { %v18632_v9 = vld [vmem:[%s28799_s2 + $0x628] sm:$0xf0] }
 0x2de   :  { %2523 = vmatpush.bf16.msra.mxu0 %v13243_v35  ;;  %v13198_v35 = vld [vmem:[%s28799_s2 + $0x4d8] sm:$0xf]  ;;  %v13359_v39 = vor.u32 %v18632_v9, %v13358_v57  ;;  %v13178_v57 = vld [vmem:[%s28799_s2 + $0x4b0] sm:$0xf]  ;;  %v18587_v9 = vld [vmem:[%s28799_s2 + $0x4c0] sm:$0xf0] }
 0x2df   :  { %v13199_v34 = vor.u32 %v18592_v47, %v13198_v35  ;;  %v13360_v47 = vld [vmem:[%s28799_s2 + $0x62c] sm:$0xf0] }
 0x2e0   :  { %v21314_v4 = vpop.f32.mrf.mxu2  ;;  %2478 = vmatpush.bf16.msrb.mxu2 %v13219_v37  ;;  %v18590_v37 = vld [vmem:[%s28799_s2 + $0x4dc] sm:$0xf]  ;;  %2502 = vmatpush.bf16.msrb.mxu3 %v13359_v39  ;;  %v18627_v39 = vld [vmem:[%s28799_s2 + $0x600] sm:$0xf0] }
 0x2e1   :  { %28849 = vst [vmem:[#allocation33_spill] sm:$0xff] %v21314_v4  ;;  %v21325_v53 = vpop.f32.mrf.mxu3  ;;  %v13203_v45 = vor.u32 %v18590_v37, %v13200_v8  ;;  %v13338_v37 = vld [vmem:[%s28799_s2 + $0x5f0] sm:$0xf] }
 0x2e2   :  { %28850 = vst [vmem:[#allocation34_spill] sm:$0xff] %v21325_v53  ;;  %v1960_v13 = vpop.f32.mrf.mxu0  ;;  %2524 = vmatpush.bf16.msra.mxu0 %v13223_v62 }
 0x2e3   :  { %v1983_v42 = vpop.f32.mrf.mxu1 }
 0x2e4   :  { %v1984_v41 = vadd.f32 %v1983_v42, %v1960_v13  ;;  %v18630_v13 = vld [vmem:[%s28799_s2 + $0x61c] sm:$0xf]  ;;  %2479 = vmatpush.bf16.msrb.mxu2 %v13199_v34  ;;  %v13180_v34 = vld [vmem:[%s28799_s2 + $0x4c4] sm:$0xf0] }
 0x2e5   :  { %v13363_v42 = vor.u32 %v18630_v13, %v13360_v47  ;;  %v13339_v47 = vor.u32 %v18627_v39, %v13338_v37 }
 0x2e6   :  { %v21355_v62 = vadd.f32 %v1984_v41, %v20899_v0  ;;  %2525 = vmatpush.bf16.msra.mxu0 %v13203_v45  ;;  %v13179_v41 = vor.u32 %v18587_v9, %v13178_v57  ;;  %v18585_v45 = vld [vmem:[%s28799_s2 + $0x4b4] sm:$0xf]  ;;  %v13340_v9 = vld [vmem:[%s28799_s2 + $0x604] sm:$0xf0] }
 0x2e7   :  { %2548 = vmatpush.bf16.msra.mxu1 %v13363_v42  ;;  %v13183_v42 = vor.u32 %v18585_v45, %v13180_v34  ;;  %v18625_v57 = vld [vmem:[%s28799_s2 + $0x5f4] sm:$0xf]  ;;  %2503 = vmatpush.bf16.msrb.mxu3 %v13339_v47 }
 0x2e8   :  { %v1914_v35 = vpop.f32.mrf.mxu2  ;;  %2480 = vmatpush.bf16.msrb.mxu2 %v13179_v41  ;;  %v13343_v21 = vor.u32 %v18625_v57, %v13340_v9 }
 0x2e9   :  { %v1937_v0 = vpop.f32.mrf.mxu3 }
 0x2ea   :  { %v1938_v8 = vadd.f32 %v1937_v0, %v1914_v35  ;;  %v21375_v13 = vpop.f32.mrf.mxu0  ;;  %2526 = vmatpush.bf16.msra.mxu0 %v13183_v42  ;;  %v13306_v42 = vld [vmem:[%s28799_s2 + $0x5a8] sm:$0xf] }
 0x2eb   :  { %28851 = vst [vmem:[#allocation35_spill] sm:$0xff] %v21375_v13  ;;  %v21383_v44 = vpop.f32.mrf.mxu1  ;;  %2549 = vmatpush.bf16.msra.mxu1 %v13343_v21  ;;  %v13326_v21 = vld [vmem:[%s28799_s2 + $0x5d0] sm:$0xf] }
 0x2ec   :  { %28852 = vst [vmem:[#allocation36_spill] sm:$0xff] %v21383_v44  ;;  %v21386_v53 = vadd.f32 %v1938_v8, %v20780_v60  ;;  %v18623_v8 = vld [vmem:[%s28799_s2 + $0x5e0] sm:$0xf0] }
 0x2ed   :  { %v13327_v47 = vor.u32 %v18623_v8, %v13326_v21 }
 0x2ef   :  { %2565 = vmatpush.bf16.msra.mxu2 %v13327_v47  ;;  %v18613_v47 = vld [vmem:[%s28799_s2 + $0x590] sm:$0xf0] }
 0x2f0   :  { %v21388_v35 = vpop.f32.mrf.mxu2 }
 0x2f1   :  { %28853 = vst [vmem:[#allocation37_spill] sm:$0xff] %v21388_v35  ;;  %v21390_v37 = vpop.f32.mrf.mxu3 }
 0x2f2   :  { %28854 = vst [vmem:[#allocation38_spill] sm:$0xff] %v21390_v37  ;;  %v1965_v0 = vpop.f32.mrf.mxu0 }
 0x2f3   :  { %v1988_v39 = vpop.f32.mrf.mxu1 }
 0x2f4   :  { %v1989_v45 = vadd.f32 %v1988_v39, %v1965_v0  ;;  %v18618_v0 = vld [vmem:[%s28799_s2 + $0x5b8] sm:$0xf0]  ;;  %v18616_v39 = vld [vmem:[%s28799_s2 + $0x5ac] sm:$0xf] }
 0x2f6   :  { %v21393_v34 = vadd.f32 %v1989_v45, %v20943_v26  ;;  %v18621_v26 = vld [vmem:[%s28799_s2 + $0x5d4] sm:$0xf] }
 0x2f8   :  { %v1919_v13 = vpop.f32.mrf.mxu2 }
 0x2f9   :  { %v1942_v44 = vpop.f32.mrf.mxu3 }
 0x2fa   :  { %v1943_v41 = vadd.f32 %v1942_v44, %v1919_v13  ;;  %v1967_v57 = vpop.f32.mrf.mxu0  ;;  %v13328_v44 = vld [vmem:[%s28799_s2 + $0x5e4] sm:$0xf0] }
 0x2fb   :  { %v1990_v9 = vpop.f32.mrf.mxu1  ;;  %v13331_v13 = vor.u32 %v18621_v26, %v13328_v44  ;;  %v13308_v57 = vld [vmem:[%s28799_s2 + $0x5bc] sm:$0xf0]  ;;  %v18611_v44 = vld [vmem:[%s28799_s2 + $0x584] sm:$0xf] }
 0x2fc   :  { %v21396_v60 = vadd.f32 %v1943_v41, %v20792_v25  ;;  %v13307_v41 = vor.u32 %v18618_v0, %v13306_v42  ;;  %v13311_v21 = vor.u32 %v18616_v39, %v13308_v57  ;;  %v13286_v26 = vld [vmem:[%s28799_s2 + $0x580] sm:$0xf]  ;;  %v13266_v39 = vld [vmem:[%s28799_s2 + $0x558] sm:$0xf] }
 0x2fd   :  { %2611 = vmatpush.bf16.msrb.mxu0 %v13331_v13  ;;  %v13287_v13 = vor.u32 %v18613_v47, %v13286_v26  ;;  %v13268_v26 = vld [vmem:[%s28799_s2 + $0x56c] sm:$0xf0] }
 0x2fe   :  { %2566 = vmatpush.bf16.msra.mxu2 %v13307_v41  ;;  %v18606_v41 = vld [vmem:[%s28799_s2 + $0x55c] sm:$0xf] }
 0x300   :  { %v1921_v25 = vpop.f32.mrf.mxu2 }
 0x301   :  { %v1944_v45 = vpop.f32.mrf.mxu3  ;;  %2612 = vmatpush.bf16.msrb.mxu0 %v13311_v21  ;;  %v13288_v25 = vld [vmem:[%s28799_s2 + $0x594] sm:$0xf0] }
 0x302   :  { %v2100_v9 = vpop.f32.mrf.mxu0  ;;  %v13291_v42 = vor.u32 %v18611_v44, %v13288_v25  ;;  %2567 = vmatpush.bf16.msra.mxu2 %v13287_v13  ;;  %v18608_v45 = vld [vmem:[%s28799_s2 + $0x568] sm:$0xf0]  ;;  %v13271_v13 = vor.u32 %v18606_v41, %v13268_v26 }
 0x303   :  { %v2123_v8 = vpop.f32.mrf.mxu1  ;;  %v13267_v21 = vor.u32 %v18608_v45, %v13266_v39  ;;  %v13246_v39 = vld [vmem:[%s28799_s2 + $0x530] sm:$0xf]  ;;  %v18596_v26 = vld [vmem:[%s28799_s2 + $0x50c] sm:$0xf] }
 0x305   :  { %2613 = vmatpush.bf16.msrb.mxu0 %v13291_v42 }
 0x306   :  { %2568 = vmatpush.bf16.msra.mxu2 %v13267_v21  ;;  %v18598_v21 = vld [vmem:[%s28799_s2 + $0x518] sm:$0xf0] }
 0x308   :  { %v2001_v0 = vpop.f32.mrf.mxu2 }
 0x309   :  { %v2024_v57 = vpop.f32.mrf.mxu3  ;;  %2614 = vmatpush.bf16.msrb.mxu0 %v13271_v13  ;;  %v13228_v13 = vld [vmem:[%s28799_s2 + $0x51c] sm:$0xf0] }
 0x30a   :  { %v2025_v47 = vadd.f32 %v2024_v57, %v2001_v0  ;;  %v2102_v44 = vpop.f32.mrf.mxu0  ;;  %v18603_v0 = vld [vmem:[%s28799_s2 + $0x540] sm:$0xf0]  ;;  %v13226_v57 = vld [vmem:[%s28799_s2 + $0x508] sm:$0xf] }
 0x30b   :  { %v21446_v25 = vpack.c.bf16 %v2102_v44, %v2100_v9  ;;  %v2125_v42 = vpop.f32.mrf.mxu1  ;;  %v18601_v9 = vld [vmem:[%s28799_s2 + $0x534] sm:$0xf]  ;;  %v13227_v44 = vor.u32 %v18598_v21, %v13226_v57 }
 0x30c   :  { %v21449_v37 = vadd.f32 %v2025_v47, %v20848_v61  ;;  %v21451_v35 = vpack.c.bf16 %v2125_v42, %v2123_v8  ;;  %v13247_v61 = vor.u32 %v18603_v0, %v13246_v39  ;;  %v13248_v8 = vld [vmem:[%s28799_s2 + $0x544] sm:$0xf0]  ;;  %v13206_v42 = vld [vmem:[%s28799_s2 + $0x4e0] sm:$0xf]  ;;  %v18593_v39 = vld [vmem:[%s28799_s2 + $0x4f0] sm:$0xf0] }
 0x30d   :  { %2481 = vmatmul.bf16.vlgmr.msrb.gmra.mxu2 %v21446_v25  ;;  %2527 = vmatmul.bf16.vlgmr.msra.gmra.mxu0 %v21446_v25  ;;  %v13251_v45 = vor.u32 %v18601_v9, %v13248_v8  ;;  %v13231_v9 = vor.u32 %v18596_v26, %v13228_v13  ;;  %v18633_v8 = vld [vmem:[%s28799_s2 + $0x630] sm:$0xf0]  ;;  %v13207_v21 = vor.u32 %v18593_v39, %v13206_v42  ;;  %v13208_v26 = vld [vmem:[%s28799_s2 + $0x4f4] sm:$0xf0]  ;;  %v18631_v13 = vld [vmem:[%s28799_s2 + $0x624] sm:$0xf] }
 0x30e   :  { %13376 = vmatmul.msk.bf16.vlgmr.msrb.gmra.mxu3 %vm659_vm1, %v21451_v35  ;;  %13379 = vmatmul.msk.bf16.vlgmr.msra.gmra.mxu1 %vm659_vm1, %v21451_v35  ;;  %v18588_v42 = vld [vmem:[%s28799_s2 + $0x4c8] sm:$0xf0]  ;;  %v13346_v39 = vld [vmem:[%s28799_s2 + $0x5f8] sm:$0xf] }
 0x30f   :  { %2569 = vmatpush.bf16.msra.mxu2 %v13247_v61  ;;  %2615 = vmatpush.bf16.msrb.mxu0 %v13251_v45  ;;  %v13366_v61 = vld [vmem:[%s28799_s2 + $0x620] sm:$0xf]  ;;  %v18591_v45 = vld [vmem:[%s28799_s2 + $0x4e4] sm:$0xf] }
 0x310   :  { %v21471_v41 = vpop.f32.mrf.mxu2  ;;  %v13211_v4 = vor.u32 %v18591_v45, %v13208_v26  ;;  %v18626_v45 = vld [vmem:[%s28799_s2 + $0x5fc] sm:$0xf] }
 0x311   :  { %28855 = vst [vmem:[#allocation39_spill] sm:$0xff] %v21471_v41  ;;  %v21482_v47 = vpop.f32.mrf.mxu3  ;;  %v13368_v41 = vld [vmem:[%s28799_s2 + $0x634] sm:$0xf0] }
 0x312   :  { %28856 = vst [vmem:[#allocation40_spill] sm:$0xff] %v21482_v47  ;;  %v2105_v0 = vpop.f32.mrf.mxu0  ;;  %v13367_v47 = vor.u32 %v18633_v8, %v13366_v61  ;;  %v13371_v46 = vor.u32 %v18631_v13, %v13368_v41  ;;  %v18628_v61 = vld [vmem:[%s28799_s2 + $0x608] sm:$0xf0]  ;;  %v18586_v41 = vld [vmem:[%s28799_s2 + $0x4bc] sm:$0xf] }
 0x313   :  { %v2128_v57 = vpop.f32.mrf.mxu1  ;;  %2570 = vmatpush.bf16.msra.mxu2 %v13227_v44  ;;  %2616 = vmatpush.bf16.msrb.mxu0 %v13231_v9  ;;  %v13186_v44 = vld [vmem:[%s28799_s2 + $0x4b8] sm:$0xf]  ;;  %v13188_v9 = vld [vmem:[%s28799_s2 + $0x4cc] sm:$0xf0]  ;;  %v13347_v8 = vor.u32 %v18628_v61, %v13346_v39 }
 0x314   :  { %2594 = vmatpush.bf16.msra.mxu3 %v13367_v47  ;;  %2640 = vmatpush.bf16.msrb.mxu1 %v13371_v46  ;;  %v13348_v47 = vld [vmem:[%s28799_s2 + $0x60c] sm:$0xf0]  ;;  %v13187_v26 = vor.u32 %v18588_v42, %v13186_v44  ;;  %v13191_v15 = vor.u32 %v18586_v41, %v13188_v9  ;;  %v13294_v44 = vld [vmem:[%s28799_s2 + $0x588] sm:$0xf]  ;;  %v18614_v42 = vld [vmem:[%s28799_s2 + $0x598] sm:$0xf0] }
 0x315   :  { %v13351_v13 = vor.u32 %v18626_v45, %v13348_v47  ;;  %v13295_v9 = vor.u32 %v18614_v42, %v13294_v44  ;;  %v13254_v47 = vld [vmem:[%s28799_s2 + $0x538] sm:$0xf]  ;;  %v18635_v44 = vld [vmem:[%s28820_s24 + $0x50] sm:$0xff] }
 0x316   :  { %v18636_v42 = vld [vmem:[%s28820_s24 + $0x58] sm:$0xff] }
 0x317   :  { %2571 = vmatpush.bf16.msra.mxu2 %v13207_v21  ;;  %2617 = vmatpush.bf16.msrb.mxu0 %v13211_v4 }
 0x318   :  { %v2006_v30 = vpop.f32.mrf.mxu2  ;;  %2595 = vmatpush.bf16.msra.mxu3 %v13347_v8  ;;  %2641 = vmatpush.bf16.msrb.mxu1 %v13351_v13  ;;  %v13274_v8 = vld [vmem:[%s28799_s2 + $0x560] sm:$0xf] }
 0x319   :  { %v2029_v56 = vpop.f32.mrf.mxu3 }
 0x31a   :  { %v2030_v55 = vadd.f32 %v2029_v56, %v2006_v30  ;;  %v2107_v32 = vpop.f32.mrf.mxu0 }
 0x31b   :  { %v21535_v46 = vpack.c.bf16 %v2107_v32, %v2105_v0  ;;  %v2130_v39 = vpop.f32.mrf.mxu1  ;;  %2572 = vmatpush.bf16.msra.mxu2 %v13187_v26  ;;  %2618 = vmatpush.bf16.msrb.mxu0 %v13191_v15  ;;  %v18604_v26 = vld [vmem:[%s28799_s2 + $0x548] sm:$0xf0] }
 0x31c   :  { %2782 = vmatpush.bf16.msra.mxu1 %v19804_v7  ;;  %v21539_v61 = vadd.f32 %v2030_v55, %v20934_v48  ;;  %v21541_v21 = vpack.c.bf16 %v2130_v39, %v2128_v57  ;;  %v13255_v13 = vor.u32 %v18604_v26, %v13254_v47  ;;  %v13234_v39 = vld [vmem:[%s28799_s2 + $0x510] sm:$0xf] }
 0x31d   :  { %2486 = vmatmul.bf16.gmra.mxu2 %v21535_v46  ;;  %2532 = vmatmul.bf16.gmra.mxu0 %v21535_v46 }
 0x31e   :  { %13377 = vmatmul.msk.bf16.gmra.mxu3 %vm659_vm1, %v21541_v21  ;;  %13380 = vmatmul.msk.bf16.gmra.mxu1 %vm659_vm1, %v21541_v21 }
 0x31f   :  { %2759 = vmatpush.bf16.msra.mxu0 %v19793_v3 }
 0x320   :  { %2783 = vmatpush.bf16.msra.mxu1 %v19817_v11  ;;  %v21551_v7 = vpop.f32.mrf.mxu2 }
 0x321   :  { %28857 = vst [vmem:[#allocation41_spill] sm:$0xff] %v21551_v7  ;;  %v21553_v30 = vpop.f32.mrf.mxu3 }
 0x322   :  { %28858 = vst [vmem:[#allocation42_spill] sm:$0xff] %v21553_v30  ;;  %v2110_v32 = vpop.f32.mrf.mxu0 }
 0x323   :  { %v2133_v15 = vpop.f32.mrf.mxu1  ;;  %2760 = vmatpush.bf16.msra.mxu0 %v19813_v10  ;;  %v21559_v55 = vpack.c.bf16 %v2110_v32, %v2110_v32  ;;  %v18599_v32 = vld [vmem:[%s28799_s2 + $0x520] sm:$0xf0] }
 0x324   :  { %2784 = vmatpush.bf16.msra.mxu1 %v19840_v18  ;;  %v21561_v56 = vpack.c.bf16 %v2133_v15, %v2133_v15  ;;  %v18624_v18 = vld [vmem:[%s28799_s2 + $0x5e8] sm:$0xf0]  ;;  %v13235_v15 = vor.u32 %v18599_v32, %v13234_v39 }
 0x327   :  { %2761 = vmatpush.bf16.msra.mxu0 %v19833_v16  ;;  %v13334_v16 = vld [vmem:[%s28799_s2 + $0x5d8] sm:$0xf] }
 0x328   :  { %2785 = vmatpush.bf16.msra.mxu1 %v19857_v23  ;;  %v2011_v48 = vpop.f32.mrf.mxu2  ;;  %v13335_v23 = vor.u32 %v18624_v18, %v13334_v16  ;;  %v13354_v16 = vld [vmem:[%s28799_s2 + $0x600] sm:$0xf]  ;;  %v18629_v18 = vld [vmem:[%s28799_s2 + $0x610] sm:$0xf0] }
 0x329   :  { %v2034_v3 = vpop.f32.mrf.mxu3 }
 0x32a   :  { %v2035_v11 = vadd.f32 %v2034_v3, %v2011_v48  ;;  %v2112_v4 = vpop.f32.mrf.mxu0  ;;  %2657 = vmatpush.bf16.msrb.mxu2 %v13335_v23  ;;  %v13374_v48 = vld [vmem:[%s28799_s2 + $0x628] sm:$0xf]  ;;  %v18634_v3 = vld [vmem:[%s28799_s2 + $0x638] sm:$0xf0]  ;;  %v13355_v23 = vor.u32 %v18629_v18, %v13354_v16 }
 0x32b   :  { %v2135_v0 = vpop.f32.mrf.mxu1  ;;  %2762 = vmatpush.bf16.msra.mxu0 %v19853_v22  ;;  %v13314_v22 = vld [vmem:[%s28799_s2 + $0x5b0] sm:$0xf]  ;;  %v18594_v4 = vld [vmem:[%s28799_s2 + $0x4f8] sm:$0xf0] }
 0x32c   :  { %2786 = vmatpush.bf16.msra.mxu1 %v19877_v29  ;;  %v21566_v10 = vadd.f32 %v2035_v11, %v20946_v58  ;;  %v18619_v29 = vld [vmem:[%s28799_s2 + $0x5c0] sm:$0xf0]  ;;  %v13214_v11 = vld [vmem:[%s28799_s2 + $0x4e8] sm:$0xf]  ;;  %v13375_v0 = vor.u32 %v18634_v3, %v13374_v48 }
 0x32d   :  { %2491 = vmatmul.bf16.gmra.mxu2 %v21559_v55  ;;  %2537 = vmatmul.bf16.gmra.mxu0 %v21559_v55  ;;  %v13315_v58 = vor.u32 %v18619_v29, %v13314_v22  ;;  %v13215_v22 = vor.u32 %v18594_v4, %v13214_v11  ;;  %v13194_v29 = vld [vmem:[%s28799_s2 + $0x4c0] sm:$0xf] }
 0x32e   :  { %13378 = vmatmul.msk.bf16.gmra.mxu3 %vm659_vm1, %v21561_v56  ;;  %13381 = vmatmul.msk.bf16.gmra.mxu1 %vm659_vm1, %v21561_v56 }
 0x32f   :  { %2763 = vmatpush.bf16.msra.mxu0 %v19873_v28  ;;  %2658 = vmatpush.bf16.msrb.mxu2 %v13315_v58  ;;  %v18609_v28 = vld [vmem:[%s28799_s2 + $0x570] sm:$0xf0] }
 0x330   :  { %v2013_v57 = vpop.f32.mrf.mxu2  ;;  %v13275_v45 = vor.u32 %v18609_v28, %v13274_v8  ;;  %2686 = vmatpush.bf16.msrb.mxu3 %v13375_v0  ;;  %v18589_v58 = vld [vmem:[%s28799_s2 + $0x4d0] sm:$0xf0] }
 0x331   :  { %v2036_v41 = vpop.f32.mrf.mxu3  ;;  %v13195_v57 = vor.u32 %v18589_v58, %v13194_v29 }
 0x333   :  { %2659 = vmatpush.bf16.msrb.mxu2 %v13295_v9 }
 0x334   :  { %2687 = vmatpush.bf16.msrb.mxu3 %v13355_v23 }
 0x337   :  { %2660 = vmatpush.bf16.msrb.mxu2 %v13275_v45 }
 0x33b   :  { %2661 = vmatpush.bf16.msrb.mxu2 %v13255_v13 }
 0x33d   :  { %2573 = vmatmul.bf16.vlgmr.msra.gmra.mxu2 %v21446_v25  ;;  %2619 = vmatmul.bf16.vlgmr.msrb.gmra.mxu0 %v21446_v25 }
 0x33e   :  { %13382 = vmatmul.msk.bf16.vlgmr.msra.gmra.mxu3 %vm659_vm1, %v21451_v35  ;;  %13385 = vmatmul.msk.bf16.vlgmr.msrb.gmra.mxu1 %vm659_vm1, %v21451_v35 }
 0x33f   :  { %2662 = vmatpush.bf16.msrb.mxu2 %v13235_v15 }
 0x343   :  { %2663 = vmatpush.bf16.msrb.mxu2 %v13215_v22 }
 0x347   :  { %2664 = vmatpush.bf16.msrb.mxu2 %v13195_v57 }
 0x34d   :  { %2578 = vmatmul.bf16.gmra.mxu2 %v21535_v46  ;;  %2624 = vmatmul.bf16.gmra.mxu0 %v21535_v46 }
 0x34e   :  { %13383 = vmatmul.msk.bf16.gmra.mxu3 %vm659_vm1, %v21541_v21  ;;  %13386 = vmatmul.msk.bf16.gmra.mxu1 %vm659_vm1, %v21541_v21 }
 0x35d   :  { %2583 = vmatmul.bf16.gmra.mxu2 %v21559_v55  ;;  %2629 = vmatmul.bf16.gmra.mxu0 %v21559_v55 }
 0x35e   :  { %13384 = vmatmul.msk.bf16.gmra.mxu3 %vm659_vm1, %v21561_v56  ;;  %13387 = vmatmul.msk.bf16.gmra.mxu1 %vm659_vm1, %v21561_v56 }
 0x36d   :  { %2665 = vmatmul.bf16.vlgmr.msrb.gmra.mxu2 %v21446_v25  ;;  %13404 = vmatmul.msk.bf16.vlgmr.msra.gmra.mxu0 %vm136_vm0, %v18635_v44  ;;  %v13395_v25 = vld [vmem:[%s28820_s24 + $0x60] sm:$0x3] }
 0x36e   :  { %13388 = vmatmul.msk.bf16.vlgmr.msrb.gmra.mxu3 %vm659_vm1, %v21451_v35  ;;  %13407 = vmatmul.msk.bf16.vlgmr.msra.gmra.mxu1 %vm136_vm0, %v18635_v44  ;;  %v2743_v35 = vunpack.c.l.b16 %v13395_v25 }
 0x370   :  { %v2746_v41 = vpack.c.b16 %v2743_v35, %v2743_v35 }
 0x37d   :  { %2670 = vmatmul.bf16.gmra.mxu2 %v21535_v46  ;;  %13405 = vmatmul.msk.bf16.gmra.mxu0 %vm136_vm0, %v18636_v42 }
 0x37e   :  { %13389 = vmatmul.msk.bf16.gmra.mxu3 %vm659_vm1, %v21541_v21  ;;  %13408 = vmatmul.msk.bf16.gmra.mxu1 %vm136_vm0, %v18636_v42 }
 0x38a   :  { %v2528_v9 = vpop.f32.mrf.mxu0 }
 0x38b   :  { %v2551_v8 = vpop.f32.mrf.mxu1 }
 0x38c   :  { %v2552_v28 = vadd.f32 %v2551_v8, %v2528_v9  ;;  %v18674_v9 = vld [vmem:[%s28799_s2 + $0x768] sm:$0xf0] }
 0x38d   :  { %2675 = vmatmul.bf16.gmra.mxu2 %v21559_v55  ;;  %13406 = vmatmul.msk.bf16.gmra.mxu0 %vm136_vm0, %v2746_v41 }
 0x38e   :  { %v21675_v46 = vadd.f32 %v2552_v28, %v21208_v2  ;;  %13390 = vmatmul.msk.bf16.gmra.mxu3 %vm659_vm1, %v21561_v56  ;;  %13409 = vmatmul.msk.bf16.gmra.mxu1 %vm136_vm0, %v2746_v41  ;;  %v13614_v28 = vld [vmem:[%s28799_s2 + $0x76c] sm:$0xf0] }
 0x390   :  { %v2482_v21 = vpop.f32.mrf.mxu2 }
 0x391   :  { %v2505_v45 = vpop.f32.mrf.mxu3 }
 0x392   :  { %v2506_v47 = vadd.f32 %v2505_v45, %v2482_v21  ;;  %v21680_v26 = vpop.f32.mrf.mxu0  ;;  %v13592_v45 = vld [vmem:[%s28799_s2 + $0x730] sm:$0xf] }
 0x393   :  { %v21682_v13 = vpop.f32.mrf.mxu1 }
 0x394   :  { %v21685_v39 = vadd.f32 %v2506_v47, %v21218_v14  ;;  %v18669_v47 = vld [vmem:[%s28799_s2 + $0x740] sm:$0xf0] }
 0x398   :  { %v21687_v55 = vpop.f32.mrf.mxu2 }
 0x399   :  { %v21689_v32 = vpop.f32.mrf.mxu3 }
 0x39a   :  { %v2533_v2 = vpop.f32.mrf.mxu0 }
 0x39b   :  { %v2556_v15 = vpop.f32.mrf.mxu1 }
 0x39c   :  { %v2557_v48 = vadd.f32 %v2556_v15, %v2533_v2  ;;  %v18667_v2 = vld [vmem:[%s28799_s2 + $0x734] sm:$0xf] }
 0x39e   :  { %v21692_v56 = vadd.f32 %v2557_v48, %v21225_v40  ;;  %v13593_v48 = vor.u32 %v18669_v47, %v13592_v45 }
 0x3a0   :  { %v2487_v3 = vpop.f32.mrf.mxu2 }
 0x3a1   :  { %v2510_v11 = vpop.f32.mrf.mxu3 }
 0x3a2   :  { %v2511_v4 = vadd.f32 %v2510_v11, %v2487_v3  ;;  %v21694_v0 = vpop.f32.mrf.mxu0  ;;  %v13594_v3 = vld [vmem:[%s28799_s2 + $0x744] sm:$0xf0] }
 0x3a3   :  { %v21696_v16 = vpop.f32.mrf.mxu1 }
 0x3a4   :  { %v21699_v14 = vadd.f32 %v2511_v4, %v21232_v52  ;;  %v13612_v52 = vld [vmem:[%s28799_s2 + $0x758] sm:$0xf]  ;;  %v13597_v4 = vor.u32 %v18667_v2, %v13594_v3 }
 0x3a5   :  { %v13613_v8 = vor.u32 %v18674_v9, %v13612_v52  ;;  %v13532_v3 = vld [vmem:[%s28799_s2 + $0x6b8] sm:$0xf] }
 0x3a7   :  { %3138 = vmatpush.bf16.msra.mxu2 %v13613_v8  ;;  %v18659_v8 = vld [vmem:[%s28799_s2 + $0x6f0] sm:$0xf0] }
 0x3a8   :  { %v21701_v18 = vpop.f32.mrf.mxu2 }
 0x3a9   :  { %v21703_v23 = vpop.f32.mrf.mxu3 }
 0x3aa   :  { %v2538_v22 = vpop.f32.mrf.mxu0 }
 0x3ab   :  { %v2561_v29 = vpop.f32.mrf.mxu1  ;;  %3139 = vmatpush.bf16.msra.mxu2 %v13593_v48 }
 0x3ac   :  { %v2562_v58 = vadd.f32 %v2561_v29, %v2538_v22 }
 0x3ae   :  { %v21706_v40 = vadd.f32 %v2562_v58, %v21239_v54  ;;  %v18672_v54 = vld [vmem:[%s28799_s2 + $0x75c] sm:$0xf]  ;;  %v13572_v58 = vld [vmem:[%s28799_s2 + $0x708] sm:$0xf] }
 0x3af   :  { %v13617_v21 = vor.u32 %v18672_v54, %v13614_v28  ;;  %v13552_v54 = vld [vmem:[%s28799_s2 + $0x6e0] sm:$0xf]  ;;  %v18657_v28 = vld [vmem:[%s28799_s2 + $0x6e4] sm:$0xf] }
 0x3b0   :  { %v2492_v57 = vpop.f32.mrf.mxu2 }
 0x3b1   :  { %v2515_v44 = vpop.f32.mrf.mxu3  ;;  %3184 = vmatpush.bf16.msrb.mxu0 %v13617_v21 }
 0x3b2   :  { %v2516_v42 = vadd.f32 %v2515_v44, %v2492_v57  ;;  %v2540_v25 = vpop.f32.mrf.mxu0  ;;  %v18664_v57 = vld [vmem:[%s28799_s2 + $0x718] sm:$0xf0]  ;;  %v18662_v44 = vld [vmem:[%s28799_s2 + $0x70c] sm:$0xf] }
 0x3b3   :  { %v2563_v35 = vpop.f32.mrf.mxu1  ;;  %v13574_v25 = vld [vmem:[%s28799_s2 + $0x71c] sm:$0xf0] }
 0x3b4   :  { %v21709_v41 = vadd.f32 %v2516_v42, %v21242_v17  ;;  %v13573_v42 = vor.u32 %v18664_v57, %v13572_v58  ;;  %v13577_v52 = vor.u32 %v18662_v44, %v13574_v25  ;;  %v13512_v57 = vld [vmem:[%s28799_s2 + $0x690] sm:$0xf]  ;;  %v18649_v44 = vld [vmem:[%s28799_s2 + $0x6a0] sm:$0xf0] }
 0x3b5   :  { %3185 = vmatpush.bf16.msrb.mxu0 %v13597_v4  ;;  %v18652_v4 = vld [vmem:[%s28799_s2 + $0x6bc] sm:$0xf] }
 0x3b6   :  { %3140 = vmatpush.bf16.msra.mxu2 %v13573_v42  ;;  %v18647_v42 = vld [vmem:[%s28799_s2 + $0x694] sm:$0xf] }
 0x3b8   :  { %v2494_v17 = vpop.f32.mrf.mxu2 }
 0x3b9   :  { %v2517_v15 = vpop.f32.mrf.mxu3  ;;  %3186 = vmatpush.bf16.msrb.mxu0 %v13577_v52  ;;  %v13553_v17 = vor.u32 %v18659_v8, %v13552_v54  ;;  %v13513_v52 = vor.u32 %v18649_v44, %v13512_v57  ;;  %v13654_v57 = vld [vmem:[%s28799_s2 + $0x7bc] sm:$0xf0] }
 0x3ba   :  { %v2620_v11 = vpop.f32.mrf.mxu0 }
 0x3bb   :  { %v2643_v22 = vpop.f32.mrf.mxu1  ;;  %3141 = vmatpush.bf16.msra.mxu2 %v13553_v17  ;;  %v18644_v17 = vld [vmem:[%s28799_s2 + $0x678] sm:$0xf0] }
 0x3bc   :  { %v2644_v29 = vadd.f32 %v2643_v22, %v2620_v11  ;;  %v18654_v11 = vld [vmem:[%s28799_s2 + $0x6c8] sm:$0xf0] }
 0x3bd   :  { %v13533_v22 = vor.u32 %v18654_v11, %v13532_v3  ;;  %v18684_v3 = vld [vmem:[%s28799_s2 + $0x7b8] sm:$0xf0]  ;;  %v18642_v11 = vld [vmem:[%s28799_s2 + $0x66c] sm:$0xf] }
 0x3be   :  { %v21748_v35 = vadd.f32 %v2644_v29, %v21281_v43  ;;  %v13554_v43 = vld [vmem:[%s28799_s2 + $0x6f4] sm:$0xf0]  ;;  %v13534_v29 = vld [vmem:[%s28799_s2 + $0x6cc] sm:$0xf0] }
 0x3bf   :  { %v13557_v2 = vor.u32 %v18657_v28, %v13554_v43  ;;  %3142 = vmatpush.bf16.msra.mxu2 %v13533_v22  ;;  %v13652_v43 = vld [vmem:[%s28799_s2 + $0x7a8] sm:$0xf] }
 0x3c0   :  { %28859 = vst [vmem:[#allocation43_spill] sm:$0xff] %v21748_v35  ;;  %v2574_v9 = vpop.f32.mrf.mxu2  ;;  %v13653_v22 = vor.u32 %v18684_v3, %v13652_v43  ;;  %v13474_v43 = vld [vmem:[%s28799_s2 + $0x654] sm:$0xf0] }
 0x3c1   :  { %v2597_v21 = vpop.f32.mrf.mxu3  ;;  %3187 = vmatpush.bf16.msrb.mxu0 %v13557_v2 }
 0x3c2   :  { %v2598_v45 = vadd.f32 %v2597_v21, %v2574_v9  ;;  %v21762_v47 = vpop.f32.mrf.mxu0  ;;  %v13514_v9 = vld [vmem:[%s28799_s2 + $0x6a4] sm:$0xf0]  ;;  %3167 = vmatpush.bf16.msra.mxu3 %v13653_v22  ;;  %v13634_v22 = vld [vmem:[%s28799_s2 + $0x794] sm:$0xf0] }
 0x3c3   :  { %28860 = vst [vmem:[#allocation44_spill] sm:$0xff] %v21762_v47  ;;  %v21764_v15 = vpop.f32.mrf.mxu1  ;;  %v13517_v8 = vor.u32 %v18647_v42, %v13514_v9  ;;  %3143 = vmatpush.bf16.msra.mxu2 %v13513_v52  ;;  %v13492_v21 = vld [vmem:[%s28799_s2 + $0x668] sm:$0xf]  ;;  %v13472_v9 = vld [vmem:[%s28799_s2 + $0x640] sm:$0xf] }
 0x3c4   :  { %28861 = vst [vmem:[#allocation45_spill] sm:$0xff] %v21764_v15  ;;  %v21767_v48 = vadd.f32 %v2598_v45, %v21300_v24  ;;  %v13537_v24 = vor.u32 %v18652_v4, %v13534_v29  ;;  %v13493_v2 = vor.u32 %v18644_v17, %v13492_v21  ;;  %v13494_v4 = vld [vmem:[%s28799_s2 + $0x67c] sm:$0xf0]  ;;  %v18679_v21 = vld [vmem:[%s28799_s2 + $0x790] sm:$0xf0] }
 0x3c5   :  { %v13497_v29 = vor.u32 %v18642_v11, %v13494_v4  ;;  %v18637_v17 = vld [vmem:[%s28799_s2 + $0x644] sm:$0xf] }
 0x3c6   :  { %3188 = vmatpush.bf16.msrb.mxu0 %v13537_v24  ;;  %v18682_v24 = vld [vmem:[%s28799_s2 + $0x7ac] sm:$0xf]  ;;  %v13477_v11 = vor.u32 %v18637_v17, %v13474_v43  ;;  %v18677_v4 = vld [vmem:[%s28799_s2 + $0x784] sm:$0xf] }
 0x3c7   :  { %v13657_v42 = vor.u32 %v18682_v24, %v13654_v57  ;;  %3144 = vmatpush.bf16.msra.mxu2 %v13493_v2  ;;  %v13637_v24 = vor.u32 %v18677_v4, %v13634_v22  ;;  %v13622_v22 = vld [vmem:[%s28799_s2 + $0x774] sm:$0xf0] }
 0x3c8   :  { %v21781_v58 = vpop.f32.mrf.mxu2 }
 0x3c9   :  { %v21792_v25 = vpop.f32.mrf.mxu3  ;;  %3213 = vmatpush.bf16.msrb.mxu1 %v13657_v42 }
 0x3ca   :  { %v2625_v54 = vpop.f32.mrf.mxu0  ;;  %3189 = vmatpush.bf16.msrb.mxu0 %v13517_v8  ;;  %v13632_v8 = vld [vmem:[%s28799_s2 + $0x780] sm:$0xf] }
 0x3cb   :  { %v2648_v28 = vpop.f32.mrf.mxu1  ;;  %v13633_v3 = vor.u32 %v18679_v21, %v13632_v8 }
 0x3cc   :  { %v2649_v45 = vadd.f32 %v2648_v28, %v2625_v54  ;;  %v18639_v54 = vld [vmem:[%s28799_s2 + $0x650] sm:$0xf0] }
 0x3cd   :  { %v13473_v28 = vor.u32 %v18639_v54, %v13472_v9  ;;  %3168 = vmatpush.bf16.msra.mxu3 %v13633_v3  ;;  %3214 = vmatpush.bf16.msrb.mxu1 %v13637_v24  ;;  %v18675_v3 = vld [vmem:[%s28799_s2 + $0x770] sm:$0xf0] }
 0x3ce   :  { %v21822_v44 = vadd.f32 %v2649_v45, %v21355_v62  ;;  %3190 = vmatpush.bf16.msrb.mxu0 %v13497_v29 }
 0x3cf   :  { %3145 = vmatpush.bf16.msra.mxu2 %v13473_v28 }
 0x3d0   :  { %28862 = vst [vmem:[#allocation46_spill] sm:$0xff] %v21822_v44  ;;  %v2579_v52 = vpop.f32.mrf.mxu2 }
 0x3d1   :  { %v2602_v62 = vpop.f32.mrf.mxu3 }
 0x3d2   :  { %v2603_v45 = vadd.f32 %v2602_v62, %v2579_v52  ;;  %v21842_v2 = vpop.f32.mrf.mxu0  ;;  %3191 = vmatpush.bf16.msrb.mxu0 %v13477_v11 }
 0x3d3   :  { %v21850_v29 = vpop.f32.mrf.mxu1 }
 0x3d4   :  { %v21853_v57 = vadd.f32 %v2603_v45, %v21386_v53  ;;  %v13620_v45 = vld [vmem:[%s28799_s2 + $0x760] sm:$0xf] }
 0x3d5   :  { %v13621_v11 = vor.u32 %v18675_v3, %v13620_v45  ;;  %v13580_v3 = vld [vmem:[%s28799_s2 + $0x710] sm:$0xf] }
 0x3d7   :  { %3230 = vmatpush.bf16.msrb.mxu2 %v13621_v11  ;;  %v18663_v11 = vld [vmem:[%s28799_s2 + $0x714] sm:$0xf] }
 0x3d8   :  { %v21855_v42 = vpop.f32.mrf.mxu2 }
 0x3d9   :  { %v21857_v52 = vpop.f32.mrf.mxu3 }
 0x3da   :  { %v2630_v9 = vpop.f32.mrf.mxu0 }
 0x3db   :  { %v2653_v54 = vpop.f32.mrf.mxu1 }
 0x3dc   :  { %v2654_v8 = vadd.f32 %v2653_v54, %v2630_v9  ;;  %v13600_v9 = vld [vmem:[%s28799_s2 + $0x738] sm:$0xf]  ;;  %v18670_v54 = vld [vmem:[%s28799_s2 + $0x748] sm:$0xf0] }
 0x3de   :  { %v21860_v62 = vadd.f32 %v2654_v8, %v21393_v34  ;;  %v18673_v34 = vld [vmem:[%s28799_s2 + $0x764] sm:$0xf]  ;;  %v18668_v8 = vld [vmem:[%s28799_s2 + $0x73c] sm:$0xf] }
 0x3df   :  { %v13625_v24 = vor.u32 %v18673_v34, %v13622_v22  ;;  %v18665_v34 = vld [vmem:[%s28799_s2 + $0x720] sm:$0xf0] }
 0x3e0   :  { %28863 = vst [vmem:[#allocation47_spill] sm:$0xff] %v21860_v62  ;;  %v2584_v21 = vpop.f32.mrf.mxu2  ;;  %v13581_v22 = vor.u32 %v18665_v34, %v13580_v3 }
 0x3e1   :  { %v2607_v17 = vpop.f32.mrf.mxu3  ;;  %3276 = vmatpush.bf16.msra.mxu0 %v13625_v24  ;;  %v13582_v24 = vld [vmem:[%s28799_s2 + $0x724] sm:$0xf0] }
 0x3e2   :  { %v2608_v28 = vadd.f32 %v2607_v17, %v2584_v21  ;;  %v2632_v43 = vpop.f32.mrf.mxu0  ;;  %v13601_v17 = vor.u32 %v18670_v54, %v13600_v9  ;;  %v13560_v54 = vld [vmem:[%s28799_s2 + $0x6e8] sm:$0xf] }
 0x3e3   :  { %v2655_v4 = vpop.f32.mrf.mxu1 }
 0x3e4   :  { %v21863_v53 = vadd.f32 %v2608_v28, %v21396_v60  ;;  %v13602_v28 = vld [vmem:[%s28799_s2 + $0x74c] sm:$0xf0]  ;;  %3231 = vmatpush.bf16.msrb.mxu2 %v13601_v17 }
 0x3e5   :  { %v13605_v4 = vor.u32 %v18668_v8, %v13602_v28  ;;  %v18660_v8 = vld [vmem:[%s28799_s2 + $0x6f8] sm:$0xf0] }
 0x3e6   :  { %28864 = vst [vmem:[#allocation48_spill] sm:$0xff] %v21863_v53  ;;  %v13561_v28 = vor.u32 %v18660_v8, %v13560_v54  ;;  %v13540_v54 = vld [vmem:[%s28799_s2 + $0x6c0] sm:$0xf] }
 0x3e7   :  { %3277 = vmatpush.bf16.msra.mxu0 %v13605_v4  ;;  %v13562_v4 = vld [vmem:[%s28799_s2 + $0x6fc] sm:$0xf0] }
 0x3e8   :  { %v2586_v60 = vpop.f32.mrf.mxu2  ;;  %3232 = vmatpush.bf16.msrb.mxu2 %v13581_v22 }
 0x3e9   :  { %v2609_v21 = vpop.f32.mrf.mxu3  ;;  %v13585_v60 = vor.u32 %v18663_v11, %v13582_v24 }
 0x3ea   :  { %v2765_v43 = vpop.f32.mrf.mxu0  ;;  %v18658_v21 = vld [vmem:[%s28799_s2 + $0x6ec] sm:$0xf] }
 0x3eb   :  { %v2788_v45 = vpop.f32.mrf.mxu1  ;;  %3278 = vmatpush.bf16.msra.mxu0 %v13585_v60  ;;  %v13565_v11 = vor.u32 %v18658_v21, %v13562_v4  ;;  %v18648_v4 = vld [vmem:[%s28799_s2 + $0x69c] sm:$0xf] }
 0x3ec   :  { %3233 = vmatpush.bf16.msrb.mxu2 %v13561_v28  ;;  %v18650_v28 = vld [vmem:[%s28799_s2 + $0x6a8] sm:$0xf0] }
 0x3ef   :  { %3279 = vmatpush.bf16.msra.mxu0 %v13565_v11  ;;  %v13522_v11 = vld [vmem:[%s28799_s2 + $0x6ac] sm:$0xf0] }
 0x3f0   :  { %v2666_v9 = vpop.f32.mrf.mxu2 }
 0x3f1   :  { %v2689_v17 = vpop.f32.mrf.mxu3 }
 0x3f2   :  { %v2690_v3 = vadd.f32 %v2689_v17, %v2666_v9  ;;  %v2767_v34 = vpop.f32.mrf.mxu0  ;;  %v18655_v9 = vld [vmem:[%s28799_s2 + $0x6d0] sm:$0xf0]  ;;  %v13520_v17 = vld [vmem:[%s28799_s2 + $0x698] sm:$0xf] }
 0x3f3   :  { %v21913_v22 = vpack.c.bf16 %v2767_v34, %v2765_v43  ;;  %v2790_v24 = vpop.f32.mrf.mxu1  ;;  %v18653_v43 = vld [vmem:[%s28799_s2 + $0x6c4] sm:$0xf]  ;;  %v13521_v34 = vor.u32 %v18650_v28, %v13520_v17 }
 0x3f4   :  { %v21916_v60 = vadd.f32 %v2690_v3, %v21449_v37  ;;  %v21918_v30 = vpack.c.bf16 %v2790_v24, %v2788_v45  ;;  %v13541_v37 = vor.u32 %v18655_v9, %v13540_v54  ;;  %v13542_v45 = vld [vmem:[%s28799_s2 + $0x6d4] sm:$0xf0]  ;;  %v13500_v24 = vld [vmem:[%s28799_s2 + $0x670] sm:$0xf]  ;;  %v18645_v54 = vld [vmem:[%s28799_s2 + $0x680] sm:$0xf0] }
 0x3f5   :  { %3146 = vmatmul.bf16.vlgmr.msra.gmra.mxu2 %v21913_v22  ;;  %3192 = vmatmul.bf16.vlgmr.msrb.gmra.mxu0 %v21913_v22  ;;  %v13545_v8 = vor.u32 %v18653_v43, %v13542_v45  ;;  %v13525_v43 = vor.u32 %v18648_v4, %v13522_v11  ;;  %v18685_v45 = vld [vmem:[%s28799_s2 + $0x7c0] sm:$0xf0]  ;;  %v13501_v28 = vor.u32 %v18645_v54, %v13500_v24  ;;  %v13502_v4 = vld [vmem:[%s28799_s2 + $0x684] sm:$0xf0]  ;;  %v18683_v11 = vld [vmem:[%s28799_s2 + $0x7b4] sm:$0xf] }
 0x3f6   :  { %28865 = vst [vmem:[#allocation49_spill] sm:$0xff] %v21916_v60  ;;  %13670 = vmatmul.msk.bf16.vlgmr.msra.gmra.mxu3 %vm659_vm1, %v21918_v30  ;;  %13673 = vmatmul.msk.bf16.vlgmr.msrb.gmra.mxu1 %vm659_vm1, %v21918_v30  ;;  %v18640_v24 = vld [vmem:[%s28799_s2 + $0x658] sm:$0xf0]  ;;  %v13640_v54 = vld [vmem:[%s28799_s2 + $0x788] sm:$0xf] }
 0x3f7   :  { %3234 = vmatpush.bf16.msrb.mxu2 %v13541_v37  ;;  %3280 = vmatpush.bf16.msra.mxu0 %v13545_v8  ;;  %v13660_v37 = vld [vmem:[%s28799_s2 + $0x7b0] sm:$0xf]  ;;  %v18643_v8 = vld [vmem:[%s28799_s2 + $0x674] sm:$0xf] }
 0x3f8   :  { %v21938_v21 = vpop.f32.mrf.mxu2  ;;  %v13661_v60 = vor.u32 %v18685_v45, %v13660_v37  ;;  %v18680_v37 = vld [vmem:[%s28799_s2 + $0x798] sm:$0xf0] }
 0x3f9   :  { %28866 = vst [vmem:[#allocation50_spill] sm:$0xff] %v21938_v21  ;;  %v21949_v3 = vpop.f32.mrf.mxu3  ;;  %v13505_v21 = vor.u32 %v18643_v8, %v13502_v4  ;;  %v13641_v45 = vor.u32 %v18680_v37, %v13640_v54  ;;  %v18678_v8 = vld [vmem:[%s28799_s2 + $0x78c] sm:$0xf] }
 0x3fa   :  { %28867 = vst [vmem:[#allocation51_spill] sm:$0xff] %v21949_v3  ;;  %v2770_v9 = vpop.f32.mrf.mxu0  ;;  %v13662_v3 = vld [vmem:[%s28799_s2 + $0x7c4] sm:$0xf0]  ;;  %3259 = vmatpush.bf16.msrb.mxu3 %v13661_v60  ;;  %v13642_v60 = vld [vmem:[%s28799_s2 + $0x79c] sm:$0xf0] }
 0x3fb   :  { %v2793_v17 = vpop.f32.mrf.mxu1  ;;  %3235 = vmatpush.bf16.msrb.mxu2 %v13521_v34  ;;  %3281 = vmatpush.bf16.msra.mxu0 %v13525_v43  ;;  %v13665_v7 = vor.u32 %v18683_v11, %v13662_v3  ;;  %v13480_v34 = vld [vmem:[%s28799_s2 + $0x648] sm:$0xf]  ;;  %v18638_v3 = vld [vmem:[%s28799_s2 + $0x64c] sm:$0xf]  ;;  %v13482_v43 = vld [vmem:[%s28799_s2 + $0x65c] sm:$0xf0]  ;;  %v13645_v11 = vor.u32 %v18678_v8, %v13642_v60 }
 0x3fc   :  { %v13481_v4 = vor.u32 %v18640_v24, %v13480_v34  ;;  %v13485_v35 = vor.u32 %v18638_v3, %v13482_v43  ;;  %v13628_v3 = vld [vmem:[%s28799_s2 + $0x768] sm:$0xf]  ;;  %v18676_v43 = vld [vmem:[%s28799_s2 + $0x778] sm:$0xf0]  ;;  %v18671_v8 = vld [vmem:[%s28799_s2 + $0x750] sm:$0xf0] }
 0x3fd   :  { %3305 = vmatpush.bf16.msra.mxu1 %v13665_v7 }
 0x3fe   :  { %3260 = vmatpush.bf16.msrb.mxu3 %v13641_v45  ;;  %v13629_v45 = vor.u32 %v18676_v43, %v13628_v3  ;;  %v13528_v43 = vld [vmem:[%s28799_s2 + $0x6a0] sm:$0xf] }
 0x3ff   :  { %3236 = vmatpush.bf16.msrb.mxu2 %v13501_v28  ;;  %3282 = vmatpush.bf16.msra.mxu0 %v13505_v21 }
 0x400   :  { %v2671_v53 = vpop.f32.mrf.mxu2 }
 0x401   :  { %v2694_v44 = vpop.f32.mrf.mxu3  ;;  %3306 = vmatpush.bf16.msra.mxu1 %v13645_v11  ;;  %v13588_v11 = vld [vmem:[%s28799_s2 + $0x718] sm:$0xf] }
 0x402   :  { %v2695_v62 = vadd.f32 %v2694_v44, %v2671_v53  ;;  %v2772_v15 = vpop.f32.mrf.mxu0 }
 0x403   :  { %v22002_v7 = vpack.c.bf16 %v2772_v15, %v2770_v9  ;;  %v2795_v54 = vpop.f32.mrf.mxu1  ;;  %3237 = vmatpush.bf16.msrb.mxu2 %v13481_v4  ;;  %3283 = vmatpush.bf16.msra.mxu0 %v13485_v35 }
 0x404   :  { %v22005_v37 = vadd.f32 %v2695_v62, %v21539_v61  ;;  %v22007_v47 = vpack.c.bf16 %v2795_v54, %v2793_v17  ;;  %v18666_v54 = vld [vmem:[%s28799_s2 + $0x728] sm:$0xf0] }
 0x405   :  { %3151 = vmatmul.bf16.gmra.mxu2 %v22002_v7  ;;  %3197 = vmatmul.bf16.gmra.mxu0 %v22002_v7 }
 0x406   :  { %13671 = vmatmul.msk.bf16.gmra.mxu3 %vm659_vm1, %v22007_v47  ;;  %13674 = vmatmul.msk.bf16.gmra.mxu1 %vm659_vm1, %v22007_v47 }
 0x407   :  { %3322 = vmatpush.bf16.msra.mxu2 %v13629_v45  ;;  %v18651_v45 = vld [vmem:[%s28799_s2 + $0x6b0] sm:$0xf0] }
 0x408   :  { %v22015_v15 = vpop.f32.mrf.mxu2 }
 0x409   :  { %v22017_v44 = vpop.f32.mrf.mxu3 }
 0x40a   :  { %v2775_v53 = vpop.f32.mrf.mxu0 }
 0x40b   :  { %v2798_v61 = vpop.f32.mrf.mxu1  ;;  %v22019_v21 = vpack.c.bf16 %v2775_v53, %v2775_v53 }
 0x40c   :  { %v22021_v9 = vpack.c.bf16 %v2798_v61, %v2798_v61  ;;  %v13589_v61 = vor.u32 %v18666_v54, %v13588_v11  ;;  %v18646_v11 = vld [vmem:[%s28799_s2 + $0x688] sm:$0xf0] }
 0x410   :  { %v2676_v62 = vpop.f32.mrf.mxu2 }
 0x411   :  { %v2699_v35 = vpop.f32.mrf.mxu3 }
 0x412   :  { %v2700_v17 = vadd.f32 %v2699_v35, %v2676_v62  ;;  %v2777_v28 = vpop.f32.mrf.mxu0  ;;  %v13568_v62 = vld [vmem:[%s28799_s2 + $0x6f0] sm:$0xf]  ;;  %v18661_v35 = vld [vmem:[%s28799_s2 + $0x700] sm:$0xf0] }
 0x413   :  { %v2800_v34 = vpop.f32.mrf.mxu1  ;;  %v13548_v28 = vld [vmem:[%s28799_s2 + $0x6c8] sm:$0xf] }
 0x414   :  { %v22024_v24 = vadd.f32 %v2700_v17, %v21566_v10  ;;  %v13608_v10 = vld [vmem:[%s28799_s2 + $0x740] sm:$0xf]  ;;  %v13569_v17 = vor.u32 %v18661_v35, %v13568_v62  ;;  %v18656_v34 = vld [vmem:[%s28799_s2 + $0x6d8] sm:$0xf0] }
 0x415   :  { %3156 = vmatmul.bf16.gmra.mxu2 %v22019_v21  ;;  %3202 = vmatmul.bf16.gmra.mxu0 %v22019_v21  ;;  %v13609_v60 = vor.u32 %v18671_v8, %v13608_v10  ;;  %v13549_v3 = vor.u32 %v18656_v34, %v13548_v28  ;;  %v13529_v10 = vor.u32 %v18651_v45, %v13528_v43  ;;  %v13668_v8 = vld [vmem:[%s28799_s2 + $0x7b8] sm:$0xf]  ;;  %v18641_v28 = vld [vmem:[%s28799_s2 + $0x660] sm:$0xf0] }
 0x416   :  { %13672 = vmatmul.msk.bf16.gmra.mxu3 %vm659_vm1, %v22021_v9  ;;  %13675 = vmatmul.msk.bf16.gmra.mxu1 %vm659_vm1, %v22021_v9  ;;  %v1226_v45 = vadd.f32 %v20764_v27, %v20558_v50 }
 0x417   :  { %3323 = vmatpush.bf16.msra.mxu2 %v13609_v60  ;;  %v18686_v60 = vld [vmem:[%s28799_s2 + $0x7c8] sm:$0xf0] }
 0x418   :  { %v2678_v4 = vpop.f32.mrf.mxu2  ;;  %v13669_v54 = vor.u32 %v18686_v60, %v13668_v8 }
 0x419   :  { %v2701_v53 = vpop.f32.mrf.mxu3  ;;  %v13508_v4 = vld [vmem:[%s28799_s2 + $0x678] sm:$0xf] }
 0x41a   :  { %v13648_v53 = vld [vmem:[%s28799_s2 + $0x790] sm:$0xf]  ;;  %3351 = vmatpush.bf16.msra.mxu3 %v13669_v54  ;;  %v13509_v35 = vor.u32 %v18646_v11, %v13508_v4  ;;  %v1843_v4 = vadd.f32 %v21222_v31, %v21220_v1 }
 0x41b   :  { %3324 = vmatpush.bf16.msra.mxu2 %v13589_v61  ;;  %v18681_v61 = vld [vmem:[%s28799_s2 + $0x7a0] sm:$0xf0] }
 0x41c   :  { %v13649_v62 = vor.u32 %v18681_v61, %v13648_v53 }
 0x41e   :  { %3352 = vmatpush.bf16.msra.mxu3 %v13649_v62 }
 0x41f   :  { %3325 = vmatpush.bf16.msra.mxu2 %v13569_v17  ;;  %v13488_v17 = vld [vmem:[%s28799_s2 + $0x650] sm:$0xf] }
 0x420   :  { %v13489_v34 = vor.u32 %v18641_v28, %v13488_v17 }
 0x423   :  { %3326 = vmatpush.bf16.msra.mxu2 %v13549_v3 }
 0x425   :  { %3238 = vmatmul.bf16.vlgmr.msrb.gmra.mxu2 %v21913_v22  ;;  %3284 = vmatmul.bf16.vlgmr.msra.gmra.mxu0 %v21913_v22 }
 0x426   :  { %13676 = vmatmul.msk.bf16.vlgmr.msrb.gmra.mxu3 %vm659_vm1, %v21918_v30  ;;  %13679 = vmatmul.msk.bf16.vlgmr.msra.gmra.mxu1 %vm659_vm1, %v21918_v30 }
 0x427   :  { %3327 = vmatpush.bf16.msra.mxu2 %v13529_v10  ;;  %v1889_v10 = vadd.f32 %v21215_v51, %v21213_v20 }
 0x42b   :  { %3328 = vmatpush.bf16.msra.mxu2 %v13509_v35 }
 0x42f   :  { %3329 = vmatpush.bf16.msra.mxu2 %v13489_v34 }
 0x435   :  { %3243 = vmatmul.bf16.gmra.mxu2 %v22002_v7  ;;  %3289 = vmatmul.bf16.gmra.mxu0 %v22002_v7 }
 0x436   :  { %13677 = vmatmul.msk.bf16.gmra.mxu3 %vm659_vm1, %v22007_v47  ;;  %13680 = vmatmul.msk.bf16.gmra.mxu1 %vm659_vm1, %v22007_v47 }
 0x445   :  { %3248 = vmatmul.bf16.gmra.mxu2 %v22019_v21  ;;  %3294 = vmatmul.bf16.gmra.mxu0 %v22019_v21 }
 0x446   :  { %13678 = vmatmul.msk.bf16.gmra.mxu3 %vm659_vm1, %v22021_v9  ;;  %13681 = vmatmul.msk.bf16.gmra.mxu1 %vm659_vm1, %v22021_v9 }
 0x455   :  { %3330 = vmatmul.bf16.vlgmr.msra.gmra.mxu2 %v21913_v22  ;;  %v2554_v22 = vadd.f32 %v21682_v13, %v21680_v26  ;;  %v2508_v13 = vadd.f32 %v21689_v32, %v21687_v55  ;;  %v1231_v55 = vadd.f32 %v20778_v59, %v20638_v49  ;;  %v28868_v59 = vld [vmem:[#allocation15_spill] sm:$0xff] }
 0x456   :  { %13682 = vmatmul.msk.bf16.vlgmr.msra.gmra.mxu3 %vm659_vm1, %v21918_v30  ;;  %v22126_v30 = vld [vmem:[%s28800_s3] sm:$0x1f] }
 0x457   :  { %v22145_v61 = vperm.slane %v22126_v30, 0 }
 0x465   :  { %3335 = vmatmul.bf16.gmra.mxu2 %v22002_v7  ;;  %v1180_v7 = vadd.f32 %v20723_v63, %v20541_v33 }
 0x466   :  { %13683 = vmatmul.msk.bf16.gmra.mxu3 %vm659_vm1, %v22007_v47  ;;  %v1249_v47 = vadd.f32 %v20768_v38, %v1226_v45  ;;  %v1894_v45 = vadd.f32 %v21229_v5, %v21227_v36 }
 0x467   :  { %v1203_v26 = vadd.f32 %v20725_v12, %v1180_v7 }
 0x468   :  { %v2044_v20 = vadd.f32 %v1889_v10, %v1249_v47  ;;  %v1254_v47 = vadd.f32 %v20782_v6, %v1231_v55 }
 0x46a   :  { %v2709_v38 = vadd.f32 %v2554_v22, %v2044_v20  ;;  %v2559_v22 = vadd.f32 %v21696_v16, %v21694_v0  ;;  %v1185_v20 = vadd.f32 %v28868_v59, %v20594_v19  ;;  %v28871_v16 = vld [vmem:[#allocation16_spill] sm:$0xff] }
 0x472   :  { %v3193_v3 = vpop.f32.mrf.mxu0 }
 0x473   :  { %v3216_v43 = vpop.f32.mrf.mxu1 }
 0x474   :  { %v3217_v8 = vadd.f32 %v3216_v43, %v3193_v3 }
 0x475   :  { %3340 = vmatmul.bf16.gmra.mxu2 %v22019_v21  ;;  %v22135_v21 = vperm.slane %v22126_v30, 1 }
 0x476   :  { %13684 = vmatmul.msk.bf16.gmra.mxu3 %vm659_vm1, %v22021_v9  ;;  %v3369_v51 = vadd.f32 %v3217_v8, %v21675_v46  ;;  %v2043_v46 = vadd.f32 %v1843_v4, %v1203_v26  ;;  %v28869_v4 = vld [vmem:[#allocation29_spill] sm:$0xff]  ;;  %v1208_v26 = vadd.f32 %v28871_v16, %v1185_v20 }
 0x478   :  { %v3147_v50 = vpop.f32.mrf.mxu2  ;;  %v3406_v33 = vadd.f32 %v22135_v21, %v3369_v51  ;;  %v2708_v35 = vadd.f32 %v2508_v13, %v2043_v46  ;;  %v2054_v51 = vadd.f32 %v1894_v45, %v1254_v47  ;;  %v2513_v13 = vadd.f32 %v21703_v23, %v21701_v18 }
 0x479   :  { %v3170_v27 = vpop.f32.mrf.mxu3 }
 0x47a   :  { %v3195_v9 = vpop.f32.mrf.mxu0  ;;  %v3171_v11 = vadd.f32 %v3170_v27, %v3147_v50  ;;  %v3431_v17 = vmax.f32 %v3406_v33, 0.0 }
 0x47b   :  { %v3218_v60 = vpop.f32.mrf.mxu1 }
 0x47c   :  { %v3219_v54 = vadd.f32 %v3218_v60, %v3195_v9  ;;  %v3368_v53 = vadd.f32 %v3171_v11, %v21685_v39  ;;  %v2719_v11 = vadd.f32 %v2559_v22, %v2054_v51 }
 0x47e   :  { %v3374_v63 = vadd.f32 %v3219_v54, %v2709_v38  ;;  %v3405_v32 = vadd.f32 %v22145_v61, %v3368_v53  ;;  %v28870_v38 = vld [vmem:[#allocation30_spill] sm:$0xff] }
 0x47f   :  { %v1848_v6 = vadd.f32 %v28870_v38, %v28869_v4 }
 0x480   :  { %v3411_v62 = vadd.f32 %v22135_v21, %v3374_v63  ;;  %v3149_v1 = vpop.f32.mrf.mxu2  ;;  %v3430_v50 = vmax.f32 %v3405_v32, 0.0 }
 0x481   :  { %v3172_v31 = vpop.f32.mrf.mxu3  ;;  %v2053_v63 = vadd.f32 %v1848_v6, %v1208_v26  ;;  %v28872_v6 = vld [vmem:[#allocation5_spill] sm:$0xff] }
 0x482   :  { %v3436_v28 = vmax.f32 %v3411_v62, 0.0  ;;  %v3173_v12 = vadd.f32 %v3172_v31, %v3149_v1  ;;  %v3198_v34 = vpop.f32.mrf.mxu0  ;;  %v28874_v26 = vld [vmem:[#allocation33_spill] sm:$0xff] }
 0x483   :  { %v3221_v3 = vpop.f32.mrf.mxu1  ;;  %v2718_v1 = vadd.f32 %v2513_v13, %v2053_v63  ;;  %v28875_v13 = vld [vmem:[#allocation34_spill] sm:$0xff] }
 0x484   :  { %v22151_v43 = vpack.c.bf16 %v3436_v28, %v3431_v17  ;;  %v3373_v39 = vadd.f32 %v3173_v12, %v2708_v35  ;;  %v3222_v8 = vadd.f32 %v3221_v3, %v3198_v34  ;;  %v28876_v63 = vld [vmem:[#allocation18_spill] sm:$0xff] }
 0x486   :  { %v3410_v10 = vadd.f32 %v22145_v61, %v3373_v39  ;;  %v3379_v36 = vadd.f32 %v3222_v8, %v21692_v56 }
 0x488   :  { %v3435_v27 = vmax.f32 %v3410_v10, 0.0  ;;  %v3152_v7 = vpop.f32.mrf.mxu2  ;;  %v3416_v19 = vadd.f32 %v22135_v21, %v3379_v36 }
 0x489   :  { %v3175_v49 = vpop.f32.mrf.mxu3 }
 0x48a   :  { %v22161_v9 = vpack.c.bf16 %v3435_v27, %v3430_v50  ;;  %v3200_v5 = vpop.f32.mrf.mxu0  ;;  %v3176_v54 = vadd.f32 %v3175_v49, %v3152_v7  ;;  %v3441_v31 = vmax.f32 %v3416_v19, 0.0  ;;  %v1935_v19 = vadd.f32 %v28875_v13, %v28874_v26  ;;  %v28886_v26 = vld [vmem:[#allocation35_spill] sm:$0xff]  ;;  %v28887_v13 = vld [vmem:[#allocation36_spill] sm:$0xff] }
 0x48b   :  { %v3223_v60 = vpop.f32.mrf.mxu1 }
 0x48c   :  { %v3224_v0 = vadd.f32 %v3223_v60, %v3200_v5  ;;  %v3378_v46 = vadd.f32 %v3176_v54, %v21699_v14 }
 0x48e   :  { %v3384_v33 = vadd.f32 %v3224_v0, %v2719_v11  ;;  %v3415_v34 = vadd.f32 %v22145_v61, %v3378_v46  ;;  %v28873_v11 = vld [vmem:[#allocation17_spill] sm:$0xff] }
 0x48f   :  { %v1272_v54 = vadd.f32 %v28873_v11, %v28872_v6  ;;  %v28884_v6 = vld [vmem:[#allocation6_spill] sm:$0xff]  ;;  %v28885_v11 = vld [vmem:[#allocation7_spill] sm:$0xff] }
 0x490   :  { %v3421_v56 = vadd.f32 %v22135_v21, %v3384_v33  ;;  %v3154_v53 = vpop.f32.mrf.mxu2  ;;  %v3440_v32 = vmax.f32 %v3415_v34, 0.0 }
 0x491   :  { %v3177_v62 = vpop.f32.mrf.mxu3  ;;  %v1295_v46 = vadd.f32 %v28876_v63, %v1272_v54  ;;  %v842_v54 = vadd.f32 %v28885_v11, %v28884_v6  ;;  %v28896_v11 = vld [vmem:[#allocation47_spill] sm:$0xff] }
 0x492   :  { %v3446_v35 = vmax.f32 %v3421_v56, 0.0  ;;  %v3178_v17 = vadd.f32 %v3177_v62, %v3154_v53  ;;  %v3203_v28 = vpop.f32.mrf.mxu0  ;;  %v2600_v56 = vadd.f32 %v21792_v25, %v21781_v58 }
 0x493   :  { %v3226_v12 = vpop.f32.mrf.mxu1  ;;  %v2045_v53 = vadd.f32 %v1935_v19, %v1295_v46  ;;  %v1986_v19 = vadd.f32 %v28887_v13, %v28886_v26  ;;  %v2605_v46 = vadd.f32 %v21857_v52, %v21855_v42  ;;  %v28891_v42 = vld [vmem:[#allocation31_spill] sm:$0xff]  ;;  %v28892_v52 = vld [vmem:[#allocation32_spill] sm:$0xff]  ;;  %v28897_v26 = vld [vmem:[#allocation46_spill] sm:$0xff] }
 0x494   :  { %v22173_v3 = vpack.c.bf16 %v3446_v35, %v3441_v31  ;;  %v3383_v18 = vadd.f32 %v3178_v17, %v2718_v1  ;;  %v3227_v23 = vadd.f32 %v3226_v12, %v3203_v28  ;;  %v22213_v1 = vperm.slane %v22126_v30, 2  ;;  %v13687_v35 = vld [vmem:[%s28801_s4] sm:$0xf]  ;;  %v18687_v17 = vld [vmem:[%s28801_s4] sm:$0x70] }
 0x495   :  { %v22222_v12 = vor.u32 %v18687_v17, %v13687_v35  ;;  %v2710_v58 = vadd.f32 %v2600_v56, %v2045_v53  ;;  %v28889_v56 = vld [vmem:[#allocation21_spill] sm:$0xff]  ;;  %v2651_v35 = vadd.f32 %v21850_v29, %v21842_v2 }
 0x496   :  { %v3420_v55 = vadd.f32 %v22145_v61, %v3383_v18  ;;  %v3389_v14 = vadd.f32 %v3227_v23, %v21706_v40  ;;  %v1318_v53 = vadd.f32 %v28889_v56, %v842_v54 }
 0x498   :  { %v3445_v39 = vmax.f32 %v3420_v55, 0.0  ;;  %v3426_v45 = vadd.f32 %v22135_v21, %v3389_v14  ;;  %v3157_v10 = vpop.f32.mrf.mxu2 }
 0x499   :  { %v3180_v8 = vpop.f32.mrf.mxu3 }
 0x49a   :  { %v22178_v47 = vpack.c.bf16 %v3445_v39, %v3440_v32  ;;  %v3451_v22 = vmax.f32 %v3426_v45, 0.0  ;;  %v3181_v50 = vadd.f32 %v3180_v8, %v3157_v10  ;;  %v3205_v27 = vpop.f32.mrf.mxu0  ;;  %v28877_v45 = vld [vmem:[#allocation9_spill] sm:$0xff]  ;;  %v28878_v10 = vld [vmem:[#allocation10_spill] sm:$0xff] }
 0x49b   :  { %v3228_v7 = vpop.f32.mrf.mxu1  ;;  %v847_v8 = vadd.f32 %v28878_v10, %v28877_v45  ;;  %v28880_v27 = vld [vmem:[#allocation19_spill] sm:$0xff]  ;;  %v28893_v45 = vld [vmem:[#allocation22_spill] sm:$0xff] }
 0x49c   :  { %v3466_v49 = vpack.c.bf16 %v3451_v22, %v3451_v22  ;;  %v3388_v59 = vadd.f32 %v3181_v50, %v21709_v41  ;;  %v28879_v50 = vld [vmem:[#allocation8_spill] sm:$0xff]  ;;  %v1341_v10 = vadd.f32 %v28893_v45, %v1318_v53 }
 0x49d   :  { %v1277_v7 = vadd.f32 %v28880_v27, %v28879_v50 }
 0x49e   :  { %v3425_v20 = vadd.f32 %v22145_v61, %v3388_v59  ;;  %v22183_v40 = vsel %vm3481_vm2, %v3466_v49, 0 }
 0x49f   :  { %3516 = vmatpush.bf16.msrb.mxu1 %v22183_v40 }
 0x4a0   :  { %v3450_v21 = vmax.f32 %v3425_v20, 0.0  ;;  %v3159_v51 = vpop.f32.mrf.mxu2  ;;  %v28881_v20 = vld [vmem:[#allocation25_spill] sm:$0xff] }
 0x4a1   :  { %v3182_v36 = vpop.f32.mrf.mxu3 }
 0x4a2   :  { %v3465_v5 = vpack.c.bf16 %v3450_v21, %v3450_v21  ;;  %v22186_v60 = vpop.f32.mrf.mxu0  ;;  %v1323_v21 = vadd.f32 %v28881_v20, %v847_v8  ;;  %v28882_v36 = vld [vmem:[#allocation37_spill] sm:$0xff]  ;;  %v28894_v8 = vld [vmem:[#allocation44_spill] sm:$0xff] }
 0x4a3   :  { %v22188_v4 = vpop.f32.mrf.mxu1  ;;  %3517 = vmatpush.bf16.msrb.mxu1 %v22173_v3 }
 0x4a4   :  { %v22192_v38 = vsel %vm3481_vm2, %v3465_v5, 0  ;;  %v28883_v5 = vld [vmem:[#allocation38_spill] sm:$0xff] }
 0x4a5   :  { %3502 = vmatpush.bf16.msrb.mxu0 %v22192_v38 }
 0x4a7   :  { %3518 = vmatpush.bf16.msrb.mxu1 %v22151_v43 }
 0x4a8   :  { %v3239_v41 = vpop.f32.mrf.mxu2 }
 0x4a9   :  { %v3262_v61 = vpop.f32.mrf.mxu3  ;;  %3503 = vmatpush.bf16.msrb.mxu0 %v22178_v47 }
 0x4aa   :  { %v22200_v0 = vpop.f32.mrf.mxu0  ;;  %v3263_v33 = vadd.f32 %v3262_v61, %v3239_v41  ;;  %13690 = vmatmul.msk.bf16.vlgmr.msrb.gmra.mxu1 %vm3477_vm3, %v22222_v12  ;;  %v1940_v41 = vadd.f32 %v28883_v5, %v28882_v36 }
 0x4ab   :  { %3732 = vmatpush.bf16.msra.mxu1 %v22192_v38  ;;  %v22202_v16 = vpop.f32.mrf.mxu1 }
 0x4ac   :  { %v3370_v62 = vadd.f32 %v3263_v33, %v21767_v48  ;;  %v28888_v33 = vld [vmem:[#allocation20_spill] sm:$0xff]  ;;  %v3311_v5 = vadd.f32 %v22202_v16, %v22200_v0 }
 0x4ad   :  { %3504 = vmatpush.bf16.msrb.mxu0 %v22161_v9  ;;  %v1300_v63 = vadd.f32 %v28888_v33, %v1277_v7 }
 0x4ae   :  { %v3407_v18 = vadd.f32 %v22213_v1, %v3370_v62  ;;  %v28890_v62 = vld [vmem:[#allocation26_spill] sm:$0xff] }
 0x4af   :  { %3733 = vmatpush.bf16.msra.mxu1 %v22178_v47  ;;  %v2055_v17 = vadd.f32 %v1940_v41, %v1300_v63 }
 0x4b0   :  { %v3241_v31 = vpop.f32.mrf.mxu2  ;;  %13689 = vmatmul.msk.bf16.vlgmr.msrb.gmra.mxu0 %vm3477_vm3, %v22222_v12  ;;  %v3432_v14 = vmax.f32 %v3407_v18, 0.0  ;;  %v18832_v18 = vld [vmem:[%s28801_s4 + $0x8] sm:$0x70] }
 0x4b1   :  { %v3264_v28 = vpop.f32.mrf.mxu3  ;;  %v2720_v2 = vadd.f32 %v2605_v46, %v2055_v17  ;;  %v28898_v17 = vld [vmem:[#allocation43_spill] sm:$0xff] }
 0x4b2   :  { %v3265_v25 = vadd.f32 %v3264_v28, %v3241_v31  ;;  %v3290_v48 = vpop.f32.mrf.mxu0  ;;  %v1346_v31 = vadd.f32 %v28890_v62, %v1323_v21 }
 0x4b3   :  { %3734 = vmatpush.bf16.msra.mxu1 %v22161_v9  ;;  %v3313_v34 = vpop.f32.mrf.mxu1 }
 0x4b4   :  { %v3375_v23 = vadd.f32 %v3265_v25, %v2710_v58  ;;  %v13698_v25 = vld [vmem:[%s28801_s4 + $0x8] sm:$0xf]  ;;  %v3314_v7 = vadd.f32 %v3313_v34, %v3290_v48  ;;  %v3309_v34 = vadd.f32 %v22188_v4, %v22186_v60  ;;  %v28899_v60 = vld [vmem:[#allocation48_spill] sm:$0xff] }
 0x4b6   :  { %v3412_v55 = vadd.f32 %v22213_v1, %v3375_v23  ;;  %v1981_v23 = vadd.f32 %v28892_v52, %v28891_v42  ;;  %v3381_v13 = vadd.f32 %v3314_v7, %v28897_v26 }
 0x4b8   :  { %v3437_v32 = vmax.f32 %v3412_v55, 0.0  ;;  %v3244_v39 = vpop.f32.mrf.mxu2  ;;  %v2056_v55 = vadd.f32 %v1986_v19, %v1346_v31  ;;  %v2046_v36 = vadd.f32 %v1981_v23, %v1341_v10 }
 0x4b9   :  { %v3267_v22 = vpop.f32.mrf.mxu3 }
 0x4ba   :  { %v22234_v49 = vpack.c.bf16 %v3437_v32, %v3432_v14  ;;  %v3292_v59 = vpop.f32.mrf.mxu0  ;;  %v3268_v61 = vadd.f32 %v3267_v22, %v3244_v39  ;;  %v22259_v39 = vor.u32 %v18832_v18, %v13698_v25  ;;  %v28895_v22 = vld [vmem:[#allocation45_spill] sm:$0xff]  ;;  %v2721_v27 = vadd.f32 %v2651_v35, %v2056_v55 }
 0x4bb   :  { %v3315_v51 = vpop.f32.mrf.mxu1  ;;  %v2646_v50 = vadd.f32 %v28895_v22, %v28894_v8 }
 0x4bc   :  { %v3380_v28 = vadd.f32 %v3268_v61, %v21853_v57  ;;  %v3316_v14 = vadd.f32 %v3315_v51, %v3292_v59  ;;  %13700 = vmatmul.msk.bf16.vlgmr.msra.gmra.mxu1 %vm3477_vm3, %v22259_v39  ;;  %v3398_v61 = vperm.slane %v22126_v30, 3 }
 0x4bd   :  { %v2711_v48 = vadd.f32 %v2646_v50, %v2046_v36  ;;  %v28900_v36 = vld [vmem:[#allocation13_spill] sm:$0xff] }
 0x4be   :  { %v3417_v21 = vadd.f32 %v22213_v1, %v3380_v28  ;;  %v3386_v41 = vadd.f32 %v3316_v14, %v2721_v27  ;;  %v3371_v28 = vadd.f32 %v3309_v34, %v28898_v17  ;;  %v28904_v34 = vld [vmem:[#allocation12_spill] sm:$0xff] }
 0x4bf   :  { %v3376_v56 = vadd.f32 %v3311_v5, %v2711_v48  ;;  %v28901_v5 = vld [vmem:[#allocation14_spill] sm:$0xff]  ;;  %v28903_v48 = vld [vmem:[#allocation11_spill] sm:$0xff] }
 0x4c0   :  { %v3246_v58 = vpop.f32.mrf.mxu2  ;;  %v3442_v19 = vmax.f32 %v3417_v21, 0.0  ;;  %v3423_v53 = vadd.f32 %v3398_v61, %v3386_v41  ;;  %v3408_v14 = vadd.f32 %v3398_v61, %v3371_v28  ;;  %v893_v41 = vadd.f32 %v28901_v5, %v28900_v36 }
 0x4c1   :  { %v3269_v32 = vpop.f32.mrf.mxu3  ;;  %v3413_v42 = vadd.f32 %v3398_v61, %v3376_v56  ;;  %v888_v26 = vadd.f32 %v28904_v34, %v28903_v48  ;;  %v28908_v56 = vld [vmem:[#allocation28_spill] sm:$0xff]  ;;  %v18891_v34 = vld [vmem:[%s28802_s5 + $0x64c] sm:$0xf0] }
 0x4c2   :  { %v3270_v29 = vadd.f32 %v3269_v32, %v3246_v58  ;;  %v3295_v57 = vpop.f32.mrf.mxu0  ;;  %v3418_v58 = vadd.f32 %v3398_v61, %v3381_v13  ;;  %v3448_v52 = vmax.f32 %v3423_v53, 0.0  ;;  %v3433_v22 = vmax.f32 %v3408_v14, 0.0  ;;  %v28905_v13 = vld [vmem:[#allocation41_spill] sm:$0xff] }
 0x4c3   :  { %v3318_v20 = vpop.f32.mrf.mxu1 }
 0x4c4   :  { %v3385_v59 = vadd.f32 %v3270_v29, %v2720_v2  ;;  %v3319_v51 = vadd.f32 %v3318_v20, %v3295_v57  ;;  %v3443_v32 = vmax.f32 %v3418_v58, 0.0  ;;  %v3438_v57 = vmax.f32 %v3413_v42, 0.0 }
 0x4c6   :  { %v3422_v6 = vadd.f32 %v22213_v1, %v3385_v59  ;;  %v3391_v54 = vadd.f32 %v3319_v51, %v28896_v11  ;;  %v22284_v45 = vpack.c.bf16 %v3448_v52, %v3443_v32 }
 0x4c8   :  { %v3447_v33 = vmax.f32 %v3422_v6, 0.0  ;;  %v3428_v63 = vadd.f32 %v3398_v61, %v3391_v54  ;;  %v3249_v46 = vpop.f32.mrf.mxu2  ;;  %v28902_v6 = vld [vmem:[#allocation27_spill] sm:$0xff] }
 0x4c9   :  { %v3272_v0 = vpop.f32.mrf.mxu3  ;;  %v1369_v11 = vadd.f32 %v28902_v6, %v893_v41 }
 0x4ca   :  { %v22275_v16 = vpack.c.bf16 %v3447_v33, %v3442_v19  ;;  %v3453_v62 = vmax.f32 %v3428_v63, 0.0  ;;  %v3273_v31 = vadd.f32 %v3272_v0, %v3249_v46  ;;  %v3297_v35 = vpop.f32.mrf.mxu0  ;;  %v28906_v19 = vld [vmem:[#allocation42_spill] sm:$0xff]  ;;  %v28907_v63 = vld [vmem:[#allocation23_spill] sm:$0xff]  ;;  %v2697_v0 = vadd.f32 %v22017_v44, %v22015_v15 }
 0x4cb   :  { %v3320_v25 = vpop.f32.mrf.mxu1  ;;  %v2032_v33 = vadd.f32 %v28906_v19, %v28905_v13  ;;  %v1364_v46 = vadd.f32 %v28907_v63, %v888_v26  ;;  %v1392_v53 = vadd.f32 %v28908_v56, %v1369_v11  ;;  %v3399_v15 = vperm.slane %v22126_v30, 4  ;;  %v28914_v11 = vld [vmem:[#allocation49_spill] sm:$0xff] }
 0x4cc   :  { %v3468_v18 = vpack.c.bf16 %v3453_v62, %v3453_v62  ;;  %v3390_v4 = vadd.f32 %v3273_v31, %v28899_v60  ;;  %v28909_v62 = vld [vmem:[#allocation39_spill] sm:$0xff]  ;;  %v28910_v31 = vld [vmem:[#allocation40_spill] sm:$0xff]  ;;  %v28912_v60 = vld [vmem:[#allocation50_spill] sm:$0xff] }
 0x4cd   :  { %v2027_v35 = vadd.f32 %v28910_v31, %v28909_v62  ;;  %v2057_v17 = vadd.f32 %v2032_v33, %v1392_v53  ;;  %v28911_v25 = vld [vmem:[#allocation24_spill] sm:$0xff]  ;;  %v18863_v33 = vld [vmem:[%s28802_s5 + $0x56c] sm:$0xf0] }
 0x4ce   :  { %v3427_v23 = vadd.f32 %v22213_v1, %v3390_v4  ;;  %v22281_v55 = vsel %vm3481_vm2, %v3468_v18, 0  ;;  %v22290_v1 = vpack.c.bf16 %v3438_v57, %v3433_v22  ;;  %v1387_v18 = vadd.f32 %v28911_v25, %v1364_v46  ;;  %v28913_v4 = vld [vmem:[#allocation51_spill] sm:$0xff]  ;;  %v14091_v30 = vld [vmem:[%s28802_s5 + $0x660] sm:$0xf] }
 0x4cf   :  { %3544 = vmatpush.bf16.msrb.mxu3 %v22281_v55  ;;  %v2692_v42 = vadd.f32 %v28913_v4, %v28912_v60  ;;  %v2722_v52 = vadd.f32 %v2697_v0, %v2057_v17  ;;  %v13963_v26 = vld [vmem:[%s28802_s5 + $0x560] sm:$0xf]  ;;  %v18887_v62 = vld [vmem:[%s28802_s5 + $0x62c] sm:$0xf0] }
 0x4d0   :  { %v3452_v2 = vmax.f32 %v3427_v23, 0.0  ;;  %v3251_v29 = vpop.f32.mrf.mxu2  ;;  %v13964_v46 = vor.u32 %v18863_v33, %v13963_v26  ;;  %v14059_v0 = vld [vmem:[%s28802_s5 + $0x620] sm:$0xf]  ;;  %v18883_v4 = vld [vmem:[%s28802_s5 + $0x60c] sm:$0xf0] }
 0x4d1   :  { %v3274_v10 = vpop.f32.mrf.mxu3  ;;  %v13947_v25 = vld [vmem:[%s28802_s5 + $0x540] sm:$0xf]  ;;  %v18907_v26 = vld [vmem:[%s28802_s5 + $0x6cc] sm:$0xf0] }
 0x4d2   :  { %v3467_v8 = vpack.c.bf16 %v3452_v2, %v3452_v2  ;;  %v2047_v2 = vadd.f32 %v2027_v35, %v1387_v18  ;;  %v14060_v35 = vor.u32 %v18887_v62, %v14059_v0  ;;  %v18859_v18 = vld [vmem:[%s28802_s5 + $0x54c] sm:$0xf0]  ;;  %v14093_v0 = vld [vmem:[%s28802_s5 + $0x670] sm:$0xf0] }
 0x4d3   :  { %3545 = vmatpush.bf16.msrb.mxu3 %v22284_v45  ;;  %v13948_v60 = vor.u32 %v18859_v18, %v13947_v25  ;;  %v18871_v25 = vld [vmem:[%s28802_s5 + $0x5ac] sm:$0xf0]  ;;  %v18889_v18 = vld [vmem:[%s28802_s5 + $0x644] sm:$0xf] }
 0x4d4   :  { %v22288_v50 = vsel %vm3481_vm2, %v3467_v8, 0  ;;  %v2712_v10 = vadd.f32 %v2692_v42, %v2047_v2  ;;  %v14027_v2 = vld [vmem:[%s28802_s5 + $0x5e0] sm:$0xf] }
 0x4d5   :  { %3530 = vmatpush.bf16.msrb.mxu2 %v22288_v50 }
 0x4d7   :  { %3546 = vmatpush.bf16.msrb.mxu3 %v22290_v1 }
 0x4d8   :  { %v3331_v27 = vpop.f32.mrf.mxu2 }
 0x4d9   :  { %v3354_v7 = vpop.f32.mrf.mxu3  ;;  %3531 = vmatpush.bf16.msrb.mxu2 %v22275_v16 }
 0x4da   :  { %13692 = vmatmul.msk.bf16.vlgmr.msrb.gmra.mxu3 %vm3477_vm3, %v22222_v12  ;;  %v3355_v8 = vadd.f32 %v3354_v7, %v3331_v27 }
 0x4db   :  { %3760 = vmatpush.bf16.msra.mxu3 %v22288_v50 }
 0x4dd   :  { %3532 = vmatpush.bf16.msrb.mxu2 %v22234_v49 }
 0x4df   :  { %3761 = vmatpush.bf16.msra.mxu3 %v22275_v16 }
 0x4e0   :  { %13691 = vmatmul.msk.bf16.vlgmr.msrb.gmra.mxu2 %vm3477_vm3, %v22222_v12  ;;  %v3333_v20 = vpop.f32.mrf.mxu2 }
 0x4e1   :  { %3746 = vmatpush.bf16.msra.mxu2 %v22183_v40  ;;  %v3356_v21 = vpop.f32.mrf.mxu3 }
 0x4e2   :  { %v3357_v29 = vadd.f32 %v3356_v21, %v3333_v20  ;;  %v14075_v20 = vld [vmem:[%s28802_s5 + $0x640] sm:$0xf] }
 0x4e3   :  { %3762 = vmatpush.bf16.msra.mxu3 %v22234_v49  ;;  %v14076_v63 = vor.u32 %v18891_v34, %v14075_v20  ;;  %v14139_v34 = vld [vmem:[%s28802_s5 + $0x6c0] sm:$0xf] }
 0x4e4   :  { %v3377_v5 = vadd.f32 %v3357_v29, %v2712_v10  ;;  %v18879_v29 = vld [vmem:[%s28802_s5 + $0x5ec] sm:$0xf0] }
 0x4e5   :  { %3747 = vmatpush.bf16.msra.mxu2 %v22173_v3 }
 0x4e6   :  { %v3414_v27 = vadd.f32 %v3399_v15, %v3377_v5  ;;  %v18851_v5 = vld [vmem:[%s28802_s5 + $0x50c] sm:$0xf0] }
 0x4e8   :  { %v3336_v59 = vpop.f32.mrf.mxu2  ;;  %v3439_v56 = vmax.f32 %v3414_v27, 0.0 }
 0x4e9   :  { %3748 = vmatpush.bf16.msra.mxu2 %v22151_v43  ;;  %v3359_v51 = vpop.f32.mrf.mxu3 }
 0x4ea   :  { %13702 = vmatmul.msk.bf16.vlgmr.msra.gmra.mxu3 %vm3477_vm3, %v22259_v39  ;;  %v3360_v23 = vadd.f32 %v3359_v51, %v3336_v59  ;;  %v3372_v59 = vadd.f32 %v3355_v8, %v28914_v11  ;;  %v14187_v8 = vld [vmem:[%s28802_s5 + $0x720] sm:$0xf] }
 0x4ec   :  { %v3382_v22 = vadd.f32 %v3360_v23, %v22005_v37  ;;  %v3409_v13 = vadd.f32 %v3399_v15, %v3372_v59  ;;  %v18855_v23 = vld [vmem:[%s28802_s5 + $0x52c] sm:$0xf0] }
 0x4ed   :  { %4671 = vmatpush.bf16.msrb.mxu2 %v13964_v46  ;;  %v18899_v46 = vld [vmem:[%s28802_s5 + $0x68c] sm:$0xf0] }
 0x4ee   :  { %v3419_v51 = vadd.f32 %v3399_v15, %v3382_v22  ;;  %v3434_v31 = vmax.f32 %v3409_v13, 0.0  ;;  %v18919_v22 = vld [vmem:[%s28802_s5 + $0x72c] sm:$0xf0]  ;;  %v14123_v13 = vld [vmem:[%s28802_s5 + $0x6a0] sm:$0xf] }
 0x4ef   :  { %v14188_v11 = vor.u32 %v18919_v22, %v14187_v8 }
 0x4f0   :  { %13701 = vmatmul.msk.bf16.vlgmr.msra.gmra.mxu2 %vm3477_vm3, %v22259_v39  ;;  %v3338_v61 = vpop.f32.mrf.mxu2  ;;  %v3444_v19 = vmax.f32 %v3419_v51, 0.0  ;;  %v22363_v17 = vpack.c.bf16 %v3439_v56, %v3434_v31  ;;  %v13899_v51 = vld [vmem:[%s28802_s5 + $0x4e0] sm:$0xf]  ;;  %v18893_v56 = vld [vmem:[%s28802_s5 + $0x664] sm:$0xf] }
 0x4f1   :  { %v3361_v54 = vpop.f32.mrf.mxu3  ;;  %4672 = vmatpush.bf16.msrb.mxu2 %v13948_v60 }
 0x4f2   :  { %v3362_v28 = vadd.f32 %v3361_v54, %v3338_v61 }
 0x4f4   :  { %v3387_v57 = vadd.f32 %v3362_v28, %v2722_v52  ;;  %v14219_v28 = vld [vmem:[%s28802_s5 + $0x760] sm:$0xf] }
 0x4f5   :  { %v13931_v52 = vld [vmem:[%s28802_s5 + $0x520] sm:$0xf] }
 0x4f6   :  { %v3424_v41 = vadd.f32 %v3399_v15, %v3387_v57  ;;  %v14203_v57 = vld [vmem:[%s28802_s5 + $0x740] sm:$0xf] }
 0x4f8   :  { %v3341_v58 = vpop.f32.mrf.mxu2  ;;  %v3449_v37 = vmax.f32 %v3424_v41, 0.0 }
 0x4f9   :  { %v3364_v14 = vpop.f32.mrf.mxu3 }
 0x4fa   :  { %v3365_v32 = vadd.f32 %v3364_v14, %v3341_v58  ;;  %v22353_v53 = vpack.c.bf16 %v3449_v37, %v3444_v19  ;;  %v18927_v58 = vld [vmem:[%s28802_s5 + $0x76c] sm:$0xf0]  ;;  %v14155_v37 = vld [vmem:[%s28802_s5 + $0x6e0] sm:$0xf] }
 0x4fb   :  { %v14220_v14 = vor.u32 %v18927_v58, %v14219_v28  ;;  %v18903_v19 = vld [vmem:[%s28802_s5 + $0x6ac] sm:$0xf0]  ;;  %v13995_v58 = vld [vmem:[%s28802_s5 + $0x5a0] sm:$0xf] }
 0x4fc   :  { %v3392_v44 = vadd.f32 %v3365_v32, %v22024_v24  ;;  %v18895_v24 = vld [vmem:[%s28802_s5 + $0x66c] sm:$0xf0]  ;;  %v13932_v32 = vor.u32 %v18855_v23, %v13931_v52  ;;  %v14124_v33 = vor.u32 %v18903_v19, %v14123_v13  ;;  %v13996_v60 = vor.u32 %v18871_v25, %v13995_v58  ;;  %v14347_v19 = vld [vmem:[%s28802_s5 + $0x860] sm:$0xf]  ;;  %v18849_v25 = vld [vmem:[%s28802_s5 + $0x504] sm:$0xf] }
 0x4fd   :  { %v14092_v7 = vor.u32 %v18895_v24, %v14091_v30  ;;  %v18847_v30 = vld [vmem:[%s28802_s5 + $0x4ec] sm:$0xf0] }
 0x4fe   :  { %v3429_v36 = vadd.f32 %v3399_v15, %v3392_v44  ;;  %v18923_v15 = vld [vmem:[%s28802_s5 + $0x74c] sm:$0xf0]  ;;  %v14028_v44 = vor.u32 %v18879_v29, %v14027_v2  ;;  %4673 = vmatpush.bf16.msrb.mxu2 %v13932_v32  ;;  %v13900_v24 = vor.u32 %v18847_v30, %v13899_v51  ;;  %v13979_v32 = vld [vmem:[%s28802_s5 + $0x580] sm:$0xf]  ;;  %v18885_v29 = vld [vmem:[%s28802_s5 + $0x624] sm:$0xf] }
 0x4ff   :  { %4685 = vmatpush.bf16.msrb.mxu3 %v14092_v7  ;;  %v14204_v10 = vor.u32 %v18923_v15, %v14203_v57  ;;  %v18911_v7 = vld [vmem:[%s28802_s5 + $0x6ec] sm:$0xf0]  ;;  %v14061_v15 = vld [vmem:[%s28802_s5 + $0x630] sm:$0xf0] }
 0x500   :  { %v3454_v61 = vmax.f32 %v3429_v36, 0.0  ;;  %v3343_v6 = vpop.f32.mrf.mxu2  ;;  %v13915_v36 = vld [vmem:[%s28802_s5 + $0x500] sm:$0xf]  ;;  %v14156_v20 = vor.u32 %v18911_v7, %v14155_v37  ;;  %v18867_v2 = vld [vmem:[%s28802_s5 + $0x58c] sm:$0xf0]  ;;  %v14064_v8 = vor.u32 %v18885_v29, %v14061_v15 }
 0x501   :  { %v3366_v54 = vpop.f32.mrf.mxu3  ;;  %v13916_v41 = vor.u32 %v18851_v5, %v13915_v36  ;;  %v18875_v6 = vld [vmem:[%s28802_s5 + $0x5cc] sm:$0xf0]  ;;  %v13980_v57 = vor.u32 %v18867_v2, %v13979_v32  ;;  %v18861_v36 = vld [vmem:[%s28802_s5 + $0x564] sm:$0xf]  ;;  %v13965_v5 = vld [vmem:[%s28802_s5 + $0x570] sm:$0xf0] }
 0x502   :  { %v3469_v48 = vpack.c.bf16 %v3454_v61, %v3454_v61  ;;  %v14011_v61 = vld [vmem:[%s28802_s5 + $0x5c0] sm:$0xf]  ;;  %v18835_v51 = vld [vmem:[%s28802_s5 + $0x48c] sm:$0xf0]  ;;  %v13949_v30 = vld [vmem:[%s28802_s5 + $0x550] sm:$0xf0] }
 0x503   :  { %4686 = vmatpush.bf16.msrb.mxu3 %v14076_v63  ;;  %v14012_v59 = vor.u32 %v18875_v6, %v14011_v61  ;;  %v14171_v54 = vld [vmem:[%s28802_s5 + $0x700] sm:$0xf]  ;;  %4674 = vmatpush.bf16.msrb.mxu2 %v13916_v41  ;;  %v13968_v41 = vor.u32 %v18861_v36, %v13965_v5  ;;  %v18881_v61 = vld [vmem:[%s28802_s5 + $0x604] sm:$0xf]  ;;  %v14045_v6 = vld [vmem:[%s28802_s5 + $0x610] sm:$0xf0] }
 0x504   :  { %v22340_v21 = vsel %vm3481_vm2, %v3469_v48, 0  ;;  %v18915_v48 = vld [vmem:[%s28802_s5 + $0x70c] sm:$0xf0]  ;;  %v14107_v63 = vld [vmem:[%s28802_s5 + $0x680] sm:$0xf] }
 0x505   :  { %3558 = vmatpush.bf16.msra.mxu0 %v22340_v21  ;;  %3788 = vmatpush.bf16.msrb.mxu1 %v22340_v21  ;;  %v14172_v27 = vor.u32 %v18915_v48, %v14171_v54  ;;  %v14108_v62 = vor.u32 %v18899_v46, %v14107_v63  ;;  %v18857_v54 = vld [vmem:[%s28802_s5 + $0x544] sm:$0xf]  ;;  %v14029_v7 = vld [vmem:[%s28802_s5 + $0x5f0] sm:$0xf0]  ;;  %v14411_v63 = vld [vmem:[%s28802_s5 + $0x8e0] sm:$0xf] }
 0x506   :  { %v18877_v37 = vld [vmem:[%s28802_s5 + $0x5e4] sm:$0xf]  ;;  %v13997_v2 = vld [vmem:[%s28802_s5 + $0x5b0] sm:$0xf0]  ;;  %v18967_v5 = vld [vmem:[%s28802_s5 + $0x8ac] sm:$0xf0] }
 0x507   :  { %4687 = vmatpush.bf16.msrb.mxu3 %v14060_v35  ;;  %4675 = vmatpush.bf16.msrb.mxu2 %v13900_v24  ;;  %v14096_v35 = vor.u32 %v18893_v56, %v14093_v0  ;;  %v13952_v24 = vor.u32 %v18857_v54, %v13949_v30  ;;  %v18975_v56 = vld [vmem:[%s28802_s5 + $0x8ec] sm:$0xf0]  ;;  %v18873_v0 = vld [vmem:[%s28802_s5 + $0x5c4] sm:$0xf]  ;;  %v13901_v15 = vld [vmem:[%s28802_s5 + $0x4f0] sm:$0xf0] }
 0x508   :  { %v18869_v32 = vld [vmem:[%s28802_s5 + $0x5a4] sm:$0xf]  ;;  %v18947_v30 = vld [vmem:[%s28802_s5 + $0x80c] sm:$0xf0] }
 0x509   :  { %3559 = vmatpush.bf16.msra.mxu0 %v22353_v53  ;;  %3789 = vmatpush.bf16.msrb.mxu1 %v22353_v53  ;;  %v14000_v29 = vor.u32 %v18869_v32, %v13997_v2  ;;  %v14251_v2 = vld [vmem:[%s28802_s5 + $0x7a0] sm:$0xf] }
 0x50d   :  { %3560 = vmatpush.bf16.msra.mxu0 %v22363_v17  ;;  %3790 = vmatpush.bf16.msrb.mxu1 %v22363_v17 }
 0x510   :  { %13693 = vmatmul.msk.bf16.vlgmr.msra.gmra.mxu0 %vm3477_vm3, %v22222_v12  ;;  %13704 = vmatmul.msk.bf16.vlgmr.msrb.gmra.mxu1 %vm3477_vm3, %v22259_v39  ;;  %v14043_v12 = vld [vmem:[%s28802_s5 + $0x600] sm:$0xf] }
 0x511   :  { %3774 = vmatpush.bf16.msrb.mxu0 %v22281_v55  ;;  %v14044_v42 = vor.u32 %v18883_v4, %v14043_v12  ;;  %v14077_v12 = vld [vmem:[%s28802_s5 + $0x650] sm:$0xf0]  ;;  %v13883_v4 = vld [vmem:[%s28802_s5 + $0x4c0] sm:$0xf] }
 0x512   :  { %v14080_v52 = vor.u32 %v18889_v18, %v14077_v12  ;;  %v13917_v18 = vld [vmem:[%s28802_s5 + $0x510] sm:$0xf0] }
 0x513   :  { %4688 = vmatpush.bf16.msrb.mxu3 %v14044_v42  ;;  %v18843_v42 = vld [vmem:[%s28802_s5 + $0x4cc] sm:$0xf0]  ;;  %v13920_v12 = vor.u32 %v18849_v25, %v13917_v18  ;;  %v18833_v25 = vld [vmem:[%s28802_s5 + $0x484] sm:$0xf]  ;;  %v13853_v18 = vld [vmem:[%s28802_s5 + $0x490] sm:$0xf0] }
 0x514   :  { %v13884_v23 = vor.u32 %v18843_v42, %v13883_v4  ;;  %v18955_v4 = vld [vmem:[%s28802_s5 + $0x84c] sm:$0xf0]  ;;  %v14395_v42 = vld [vmem:[%s28802_s5 + $0x8c0] sm:$0xf] }
 0x515   :  { %3775 = vmatpush.bf16.msrb.mxu0 %v22284_v45 }
 0x516   :  { %4676 = vmatpush.bf16.msrb.mxu2 %v13884_v23 }
 0x517   :  { %4689 = vmatpush.bf16.msrb.mxu3 %v14028_v44  ;;  %v13867_v44 = vld [vmem:[%s28802_s5 + $0x4a0] sm:$0xf] }
 0x519   :  { %3776 = vmatpush.bf16.msrb.mxu0 %v22290_v1 }
 0x51b   :  { %4690 = vmatpush.bf16.msrb.mxu3 %v14012_v59  ;;  %v13851_v59 = vld [vmem:[%s28802_s5 + $0x480] sm:$0xf] }
 0x51c   :  { %v13852_v48 = vor.u32 %v18835_v51, %v13851_v59  ;;  %v18841_v59 = vld [vmem:[%s28802_s5 + $0x4c4] sm:$0xf]  ;;  %v13885_v51 = vld [vmem:[%s28802_s5 + $0x4d0] sm:$0xf0] }
 0x51d   :  { %4699 = vmatpush.bf16.msra.mxu0 %v14220_v14  ;;  %v13888_v54 = vor.u32 %v18841_v59, %v13885_v51  ;;  %v14285_v59 = vld [vmem:[%s28802_s5 + $0x7f0] sm:$0xf0] }
 0x51f   :  { %4691 = vmatpush.bf16.msrb.mxu3 %v13996_v60  ;;  %v14331_v60 = vld [vmem:[%s28802_s5 + $0x840] sm:$0xf] }
 0x520   :  { %13703 = vmatmul.msk.bf16.vlgmr.msrb.gmra.mxu0 %vm3477_vm3, %v22259_v39  ;;  %v14140_v39 = vor.u32 %v18907_v26, %v14139_v34  ;;  %v14032_v34 = vor.u32 %v18877_v37, %v14029_v7  ;;  %v18853_v26 = vld [vmem:[%s28802_s5 + $0x524] sm:$0xf]  ;;  %v14332_v23 = vor.u32 %v18955_v4, %v14331_v60  ;;  %v18963_v37 = vld [vmem:[%s28802_s5 + $0x88c] sm:$0xf0]  ;;  %v13856_v60 = vor.u32 %v18833_v25, %v13853_v18  ;;  %v14173_v18 = vld [vmem:[%s28802_s5 + $0x710] sm:$0xf0] }
 0x521   :  { %4700 = vmatpush.bf16.msra.mxu0 %v14204_v10  ;;  %v18839_v10 = vld [vmem:[%s28802_s5 + $0x4ac] sm:$0xf0]  ;;  %v18957_v7 = vld [vmem:[%s28802_s5 + $0x864] sm:$0xf] }
 0x522   :  { %v13868_v22 = vor.u32 %v18839_v10, %v13867_v44  ;;  %v14315_v10 = vld [vmem:[%s28802_s5 + $0x820] sm:$0xf]  ;;  %v18939_v4 = vld [vmem:[%s28802_s5 + $0x7cc] sm:$0xf0]  ;;  %v18913_v25 = vld [vmem:[%s28802_s5 + $0x704] sm:$0xf] }
 0x523   :  { %4692 = vmatpush.bf16.msrb.mxu3 %v13980_v57  ;;  %v18845_v57 = vld [vmem:[%s28802_s5 + $0x4e4] sm:$0xf] }
 0x524   :  { %4677 = vmatpush.bf16.msrb.mxu2 %v13868_v22  ;;  %v13904_v44 = vor.u32 %v18845_v57, %v13901_v15  ;;  %v14379_v22 = vld [vmem:[%s28802_s5 + $0x8a0] sm:$0xf] }
 0x525   :  { %4701 = vmatpush.bf16.msra.mxu0 %v14188_v11  ;;  %v14048_v11 = vor.u32 %v18881_v61, %v14045_v6  ;;  %v13981_v61 = vld [vmem:[%s28802_s5 + $0x590] sm:$0xf0]  ;;  %v14380_v6 = vor.u32 %v18967_v5, %v14379_v22  ;;  %v14235_v22 = vld [vmem:[%s28802_s5 + $0x780] sm:$0xf] }
 0x527   :  { %v22472_v31 = vpop.f32.mrf.mxu1  ;;  %4741 = vmatpush.bf16.msra.mxu3 %v13968_v41  ;;  %v18865_v41 = vld [vmem:[%s28802_s5 + $0x584] sm:$0xf] }
 0x528   :  { %4678 = vmatpush.bf16.msrb.mxu2 %v13852_v48  ;;  %v14299_v48 = vld [vmem:[%s28802_s5 + $0x800] sm:$0xf] }
 0x529   :  { %4702 = vmatpush.bf16.msra.mxu0 %v14172_v27 }
 0x52b   :  { %4742 = vmatpush.bf16.msra.mxu3 %v13952_v24  ;;  %v14363_v24 = vld [vmem:[%s28802_s5 + $0x880] sm:$0xf] }
 0x52d   :  { %4703 = vmatpush.bf16.msra.mxu0 %v14156_v20 }
 0x52f   :  { %v22474_v28 = vpop.f32.mrf.mxu1 }
 0x531   :  { %4704 = vmatpush.bf16.msra.mxu0 %v14140_v39  ;;  %v13933_v39 = vld [vmem:[%s28802_s5 + $0x530] sm:$0xf0] }
 0x532   :  { %v13936_v13 = vor.u32 %v18853_v26, %v13933_v39  ;;  %v14364_v26 = vor.u32 %v18963_v37, %v14363_v24  ;;  %v14205_v24 = vld [vmem:[%s28802_s5 + $0x750] sm:$0xf0] }
 0x534   :  { %4743 = vmatpush.bf16.msra.mxu3 %v13936_v13  ;;  %v18837_v13 = vld [vmem:[%s28802_s5 + $0x4a4] sm:$0xf] }
 0x535   :  { %4705 = vmatpush.bf16.msra.mxu0 %v14124_v33  ;;  %v18959_v33 = vld [vmem:[%s28802_s5 + $0x86c] sm:$0xf0] }
 0x536   :  { %v14348_v46 = vor.u32 %v18959_v33, %v14347_v19  ;;  %v13869_v19 = vld [vmem:[%s28802_s5 + $0x4b0] sm:$0xf0] }
 0x537   :  { %v13872_v33 = vor.u32 %v18837_v13, %v13869_v19  ;;  %v18933_v13 = vld [vmem:[%s28802_s5 + $0x7a4] sm:$0xf]  ;;  %v13971_v19 = vld [vmem:[%s28802_s5 + $0x568] sm:$0xf] }
 0x538   :  { %4713 = vmatpush.bf16.msra.mxu1 %v14348_v46  ;;  %4744 = vmatpush.bf16.msra.mxu3 %v13920_v12  ;;  %v18943_v46 = vld [vmem:[%s28802_s5 + $0x7ec] sm:$0xf0]  ;;  %v14267_v12 = vld [vmem:[%s28802_s5 + $0x7c0] sm:$0xf] }
 0x539   :  { %4706 = vmatpush.bf16.msra.mxu0 %v14108_v62  ;;  %v3736_v14 = vpop.f32.mrf.mxu1  ;;  %v14013_v62 = vld [vmem:[%s28802_s5 + $0x5d0] sm:$0xf0] }
 0x53a   :  { %v14016_v58 = vor.u32 %v18873_v0, %v14013_v62  ;;  %v18953_v62 = vld [vmem:[%s28802_s5 + $0x844] sm:$0xf] }
 0x53c   :  { %4714 = vmatpush.bf16.msra.mxu1 %v14332_v23  ;;  %4745 = vmatpush.bf16.msra.mxu3 %v13904_v44  ;;  %v14317_v23 = vld [vmem:[%s28802_s5 + $0x830] sm:$0xf0]  ;;  %v18945_v44 = vld [vmem:[%s28802_s5 + $0x804] sm:$0xf] }
 0x53d   :  { %4755 = vmatpush.bf16.msrb.mxu0 %v14096_v35  ;;  %v14412_v35 = vor.u32 %v18975_v56, %v14411_v63  ;;  %v14283_v63 = vld [vmem:[%s28802_s5 + $0x7e0] sm:$0xf] }
 0x53e   :  { %v14284_v0 = vor.u32 %v18943_v46, %v14283_v63  ;;  %v14253_v46 = vld [vmem:[%s28802_s5 + $0x7b0] sm:$0xf0] }
 0x53f   :  { %4731 = vmatpush.bf16.msra.mxu2 %v14412_v35  ;;  %v14333_v35 = vld [vmem:[%s28802_s5 + $0x850] sm:$0xf0] }
 0x540   :  { %4746 = vmatpush.bf16.msra.mxu3 %v13888_v54 }
 0x541   :  { %4756 = vmatpush.bf16.msrb.mxu0 %v14080_v52  ;;  %v3738_v27 = vpop.f32.mrf.mxu1  ;;  %v18971_v52 = vld [vmem:[%s28802_s5 + $0x8cc] sm:$0xf0] }
 0x542   :  { %v22542_v20 = vpack.c.bf16 %v3738_v27, %v3736_v14  ;;  %v14396_v14 = vor.u32 %v18971_v52, %v14395_v42  ;;  %v14300_v27 = vor.u32 %v18947_v30, %v14299_v48  ;;  %v14268_v42 = vor.u32 %v18939_v4, %v14267_v12  ;;  %v18949_v52 = vld [vmem:[%s28802_s5 + $0x824] sm:$0xf]  ;;  %v13955_v4 = vld [vmem:[%s28802_s5 + $0x548] sm:$0xf] }
 0x543   :  { %v18921_v30 = vld [vmem:[%s28802_s5 + $0x744] sm:$0xf] }
 0x544   :  { %4679 = vmatmul.bf16.vlgmr.msrb.gmra.mxu2 %v22542_v20  ;;  %4747 = vmatpush.bf16.msra.mxu3 %v13872_v33  ;;  %v14208_v37 = vor.u32 %v18921_v30, %v14205_v24  ;;  %v18864_v33 = vld [vmem:[%s28802_s5 + $0x574] sm:$0xf0]  ;;  %v14141_v30 = vld [vmem:[%s28802_s5 + $0x6d0] sm:$0xf0]  ;;  %v13923_v24 = vld [vmem:[%s28802_s5 + $0x508] sm:$0xf] }
 0x545   :  { %4757 = vmatpush.bf16.msrb.mxu0 %v14064_v8  ;;  %4732 = vmatpush.bf16.msra.mxu2 %v14396_v14  ;;  %v18951_v8 = vld [vmem:[%s28802_s5 + $0x82c] sm:$0xf0]  ;;  %v14320_v14 = vor.u32 %v18949_v52, %v14317_v23  ;;  %v14176_v52 = vor.u32 %v18913_v25, %v14173_v18  ;;  %v14237_v23 = vld [vmem:[%s28802_s5 + $0x790] sm:$0xf0]  ;;  %v18897_v18 = vld [vmem:[%s28802_s5 + $0x684] sm:$0xf] }
 0x546   :  { %v14316_v36 = vor.u32 %v18951_v8, %v14315_v10  ;;  %v14301_v10 = vld [vmem:[%s28802_s5 + $0x810] sm:$0xf0] }
 0x547   :  { %v14304_v8 = vor.u32 %v18945_v44, %v14301_v10  ;;  %v22772_v44 = vpop.f32.mrf.mxu0  ;;  %v18909_v10 = vld [vmem:[%s28802_s5 + $0x6e4] sm:$0xf] }
 0x548   :  { %4715 = vmatpush.bf16.msra.mxu1 %v14316_v36  ;;  %4748 = vmatpush.bf16.msra.mxu3 %v13856_v60  ;;  %v18931_v36 = vld [vmem:[%s28802_s5 + $0x78c] sm:$0xf0]  ;;  %v18929_v60 = vld [vmem:[%s28802_s5 + $0x784] sm:$0xf] }
 0x549   :  { %4758 = vmatpush.bf16.msrb.mxu0 %v14048_v11  ;;  %v13984_v11 = vor.u32 %v18865_v41, %v13981_v61  ;;  %4733 = vmatpush.bf16.msra.mxu2 %v14380_v6  ;;  %v14236_v5 = vor.u32 %v18931_v36, %v14235_v22  ;;  %v18925_v41 = vld [vmem:[%s28802_s5 + $0x764] sm:$0xf]  ;;  %v14221_v61 = vld [vmem:[%s28802_s5 + $0x770] sm:$0xf0]  ;;  %v13939_v22 = vld [vmem:[%s28802_s5 + $0x528] sm:$0xf] }
 0x54a   :  { %v18941_v6 = vld [vmem:[%s28802_s5 + $0x7e4] sm:$0xf]  ;;  %v18856_v36 = vld [vmem:[%s28802_s5 + $0x534] sm:$0xf0] }
 0x54b   :  { %v14288_v54 = vor.u32 %v18941_v6, %v14285_v59  ;;  %v14397_v59 = vld [vmem:[%s28802_s5 + $0x8d0] sm:$0xf0] }
 0x54c   :  { %4716 = vmatpush.bf16.msra.mxu1 %v14300_v27  ;;  %v18937_v27 = vld [vmem:[%s28802_s5 + $0x7c4] sm:$0xf] }
 0x54d   :  { %4759 = vmatpush.bf16.msrb.mxu0 %v14032_v34  ;;  %v14349_v34 = vld [vmem:[%s28802_s5 + $0x870] sm:$0xf0]  ;;  %4734 = vmatpush.bf16.msra.mxu2 %v14364_v26  ;;  %v18917_v26 = vld [vmem:[%s28802_s5 + $0x724] sm:$0xf] }
 0x54e   :  { %v14352_v39 = vor.u32 %v18957_v7, %v14349_v34  ;;  %v14269_v7 = vld [vmem:[%s28802_s5 + $0x7d0] sm:$0xf0] }
 0x54f   :  { %v14272_v34 = vor.u32 %v18937_v27, %v14269_v7  ;;  %v18852_v27 = vld [vmem:[%s28802_s5 + $0x514] sm:$0xf0] }
 0x550   :  { %4717 = vmatpush.bf16.msra.mxu1 %v14284_v0 }
 0x551   :  { %4760 = vmatpush.bf16.msrb.mxu0 %v14016_v58  ;;  %4783 = vmatpush.bf16.msrb.mxu2 %v14352_v39  ;;  %v14336_v58 = vor.u32 %v18953_v62, %v14333_v35  ;;  %v14189_v39 = vld [vmem:[%s28802_s5 + $0x730] sm:$0xf0]  ;;  %v14256_v62 = vor.u32 %v18933_v13, %v14253_v46  ;;  %v18901_v13 = vld [vmem:[%s28802_s5 + $0x6a4] sm:$0xf] }
 0x552   :  { %v14192_v63 = vor.u32 %v18917_v26, %v14189_v39  ;;  %v14381_v26 = vld [vmem:[%s28802_s5 + $0x8b0] sm:$0xf0]  ;;  %v13924_v39 = vor.u32 %v18852_v27, %v13923_v24  ;;  %v14323_v24 = vld [vmem:[%s28802_s5 + $0x828] sm:$0xf]  ;;  %v18952_v27 = vld [vmem:[%s28802_s5 + $0x834] sm:$0xf0] }
 0x554   :  { %4718 = vmatpush.bf16.msra.mxu1 %v14268_v42  ;;  %v18860_v42 = vld [vmem:[%s28802_s5 + $0x554] sm:$0xf0] }
 0x555   :  { %4761 = vmatpush.bf16.msrb.mxu0 %v14000_v29  ;;  %4784 = vmatpush.bf16.msrb.mxu2 %v14336_v58  ;;  %v18935_v29 = vld [vmem:[%s28802_s5 + $0x7ac] sm:$0xf0]  ;;  %v13972_v58 = vor.u32 %v18864_v33, %v13971_v19  ;;  %v14125_v19 = vld [vmem:[%s28802_s5 + $0x6b0] sm:$0xf0]  ;;  %v13907_v33 = vld [vmem:[%s28802_s5 + $0x4e8] sm:$0xf] }
 0x556   :  { %v14252_v15 = vor.u32 %v18935_v29, %v14251_v2  ;;  %v18973_v2 = vld [vmem:[%s28802_s5 + $0x8e4] sm:$0xf]  ;;  %v14413_v29 = vld [vmem:[%s28802_s5 + $0x8f0] sm:$0xf0]  ;;  %v14128_v46 = vor.u32 %v18901_v13, %v14125_v19  ;;  %v14403_v13 = vld [vmem:[%s28802_s5 + $0x8c8] sm:$0xf] }
 0x557   :  { %v18972_v19 = vld [vmem:[%s28802_s5 + $0x8d4] sm:$0xf0] }
 0x558   :  { %4719 = vmatpush.bf16.msra.mxu1 %v14252_v15  ;;  %v13956_v15 = vor.u32 %v18860_v42, %v13955_v4  ;;  %v13891_v4 = vld [vmem:[%s28802_s5 + $0x4c8] sm:$0xf]  ;;  %v18844_v42 = vld [vmem:[%s28802_s5 + $0x4d4] sm:$0xf0] }
 0x559   :  { %4762 = vmatpush.bf16.msrb.mxu0 %v13984_v11  ;;  %4785 = vmatpush.bf16.msrb.mxu2 %v14320_v14  ;;  %v14224_v11 = vor.u32 %v18925_v41, %v14221_v61  ;;  %v14240_v14 = vor.u32 %v18929_v60, %v14237_v23  ;;  %v14416_v61 = vor.u32 %v18973_v2, %v14413_v29  ;;  %v14109_v60 = vld [vmem:[%s28802_s5 + $0x690] sm:$0xf0]  ;;  %v18960_v2 = vld [vmem:[%s28802_s5 + $0x874] sm:$0xf0] }
 0x55a   :  { %v13892_v29 = vor.u32 %v18844_v42, %v13891_v4  ;;  %v14387_v42 = vld [vmem:[%s28802_s5 + $0x8a8] sm:$0xf] }
 0x55c   :  { %4720 = vmatpush.bf16.msra.mxu1 %v14236_v5 }
 0x55d   :  { %v22653_v56 = vpop.f32.mrf.mxu3  ;;  %4786 = vmatpush.bf16.msrb.mxu2 %v14304_v8  ;;  %v14157_v8 = vld [vmem:[%s28802_s5 + $0x6f0] sm:$0xf0] }
 0x55e   :  { %v14160_v5 = vor.u32 %v18909_v10, %v14157_v8  ;;  %v18840_v10 = vld [vmem:[%s28802_s5 + $0x4b4] sm:$0xf0] }
 0x560   :  { %4769 = vmatpush.bf16.msrb.mxu1 %v14224_v11  ;;  %v18969_v11 = vld [vmem:[%s28802_s5 + $0x8c4] sm:$0xf] }
 0x561   :  { %4787 = vmatpush.bf16.msrb.mxu2 %v14288_v54  ;;  %v13940_v54 = vor.u32 %v18856_v36, %v13939_v22  ;;  %v14400_v7 = vor.u32 %v18969_v11, %v14397_v59  ;;  %v14339_v22 = vld [vmem:[%s28802_s5 + $0x848] sm:$0xf]  ;;  %v18956_v36 = vld [vmem:[%s28802_s5 + $0x854] sm:$0xf0] }
 0x562   :  { %v13859_v11 = vld [vmem:[%s28802_s5 + $0x488] sm:$0xf]  ;;  %v18836_v59 = vld [vmem:[%s28802_s5 + $0x494] sm:$0xf0] }
 0x563   :  { %v22679_v32 = vpop.f32.mrf.mxu2 }
 0x564   :  { %4770 = vmatpush.bf16.msrb.mxu1 %v14208_v37 }
 0x565   :  { %v22687_v57 = vpop.f32.mrf.mxu3  ;;  %4788 = vmatpush.bf16.msrb.mxu2 %v14272_v34  ;;  %v18965_v34 = vld [vmem:[%s28802_s5 + $0x8a4] sm:$0xf] }
 0x568   :  { %4771 = vmatpush.bf16.msrb.mxu1 %v14192_v63  ;;  %v18848_v63 = vld [vmem:[%s28802_s5 + $0x4f4] sm:$0xf0] }
 0x569   :  { %4789 = vmatpush.bf16.msrb.mxu2 %v14256_v62  ;;  %v14384_v62 = vor.u32 %v18965_v34, %v14381_v26  ;;  %v13908_v25 = vor.u32 %v18848_v63, %v13907_v33  ;;  %v14227_v34 = vld [vmem:[%s28802_s5 + $0x768] sm:$0xf]  ;;  %v18928_v26 = vld [vmem:[%s28802_s5 + $0x774] sm:$0xf0] }
 0x56a   :  { %v14307_v33 = vld [vmem:[%s28802_s5 + $0x808] sm:$0xf]  ;;  %v18948_v63 = vld [vmem:[%s28802_s5 + $0x814] sm:$0xf0] }
 0x56b   :  { %v22713_v51 = vpop.f32.mrf.mxu2  ;;  %v14308_v4 = vor.u32 %v18948_v63, %v14307_v33  ;;  %v14099_v33 = vld [vmem:[%s28802_s5 + $0x668] sm:$0xf]  ;;  %v18896_v63 = vld [vmem:[%s28802_s5 + $0x674] sm:$0xf0] }
 0x56c   :  { %4772 = vmatpush.bf16.msrb.mxu1 %v14176_v52  ;;  %v14112_v52 = vor.u32 %v18897_v18, %v14109_v60  ;;  %v14211_v18 = vld [vmem:[%s28802_s5 + $0x748] sm:$0xf]  ;;  %v18924_v60 = vld [vmem:[%s28802_s5 + $0x754] sm:$0xf0] }
 0x56d   :  { %v3764_v48 = vpop.f32.mrf.mxu3  ;;  %4790 = vmatpush.bf16.msrb.mxu2 %v14240_v14  ;;  %v14355_v14 = vld [vmem:[%s28802_s5 + $0x868] sm:$0xf] }
 0x56e   :  { %v14356_v8 = vor.u32 %v18960_v2, %v14355_v14  ;;  %v18944_v14 = vld [vmem:[%s28802_s5 + $0x7f4] sm:$0xf0]  ;;  %v14212_v2 = vor.u32 %v18924_v60, %v14211_v18  ;;  %v14243_v60 = vld [vmem:[%s28802_s5 + $0x788] sm:$0xf] }
 0x570   :  { %4773 = vmatpush.bf16.msrb.mxu1 %v14160_v5 }
 0x573   :  { %v3750_v0 = vpop.f32.mrf.mxu2 }
 0x575   :  { %v3766_v35 = vpop.f32.mrf.mxu3 }
 0x576   :  { %v22754_v12 = vpack.c.bf16 %v3766_v35, %v3764_v48  ;;  %v18905_v48 = vld [vmem:[%s28802_s5 + $0x6c4] sm:$0xf] }
 0x577   :  { %v14144_v37 = vor.u32 %v18905_v48, %v14141_v30  ;;  %v18961_v35 = vld [vmem:[%s28802_s5 + $0x884] sm:$0xf]  ;;  %v14419_v48 = vld [vmem:[%s28802_s5 + $0x8e8] sm:$0xf]  ;;  %v18976_v30 = vld [vmem:[%s28802_s5 + $0x8f4] sm:$0xf0] }
 0x578   :  { %4707 = vmatmul.bf16.vlgmr.msra.gmra.mxu0 %v22754_v12 }
 0x579   :  { %4811 = vmatpush.bf16.msra.mxu0 %v13972_v58  ;;  %4774 = vmatpush.bf16.msrb.mxu1 %v14144_v37  ;;  %v14365_v58 = vld [vmem:[%s28802_s5 + $0x890] sm:$0xf0]  ;;  %v13860_v37 = vor.u32 %v18836_v59, %v13859_v11  ;;  %v18958_v11 = vld [vmem:[%s28802_s5 + $0x86c] sm:$0xf]  ;;  %v14357_v59 = vld [vmem:[%s28802_s5 + $0x878] sm:$0xf0] }
 0x57a   :  { %v14368_v23 = vor.u32 %v18961_v35, %v14365_v58  ;;  %v14228_v35 = vor.u32 %v18928_v26, %v14227_v34  ;;  %v14259_v34 = vld [vmem:[%s28802_s5 + $0x7a8] sm:$0xf]  ;;  %v18936_v26 = vld [vmem:[%s28802_s5 + $0x7b4] sm:$0xf0] }
 0x57b   :  { %v3752_v41 = vpop.f32.mrf.mxu2 }
 0x57c   :  { %v22786_v6 = vpack.c.bf16 %v3752_v41, %v3750_v0  ;;  %v22825_v0 = vpop.f32.mrf.mxu0 }
 0x57d   :  { %4812 = vmatpush.bf16.msra.mxu0 %v13956_v15  ;;  %4775 = vmatpush.bf16.msrb.mxu1 %v14128_v46  ;;  %v13875_v15 = vld [vmem:[%s28802_s5 + $0x4a8] sm:$0xf] }
 0x57e   :  { %4693 = vmatmul.bf16.vlgmr.msrb.gmra.mxu3 %v22786_v6 }
 0x57f   :  { %4801 = vmatpush.bf16.msrb.mxu3 %v14416_v61  ;;  %v13876_v61 = vor.u32 %v18840_v10, %v13875_v15  ;;  %v14195_v15 = vld [vmem:[%s28802_s5 + $0x728] sm:$0xf]  ;;  %v18920_v10 = vld [vmem:[%s28802_s5 + $0x734] sm:$0xf0] }
 0x581   :  { %4813 = vmatpush.bf16.msra.mxu0 %v13940_v54  ;;  %4776 = vmatpush.bf16.msrb.mxu1 %v14112_v52  ;;  %v14340_v54 = vor.u32 %v18956_v36, %v14339_v22  ;;  %v18968_v52 = vld [vmem:[%s28802_s5 + $0x8b4] sm:$0xf0]  ;;  %v14371_v22 = vld [vmem:[%s28802_s5 + $0x888] sm:$0xf] }
 0x582   :  { %v18964_v36 = vld [vmem:[%s28802_s5 + $0x894] sm:$0xf0] }
 0x583   :  { %4802 = vmatpush.bf16.msrb.mxu3 %v14400_v7  ;;  %v14420_v7 = vor.u32 %v18976_v30, %v14419_v48  ;;  %v14196_v48 = vor.u32 %v18920_v10, %v14195_v15  ;;  %v14372_v30 = vor.u32 %v18964_v36, %v14371_v22  ;;  %v14229_v15 = vld [vmem:[%s28802_s5 + $0x778] sm:$0xf0]  ;;  %v14083_v10 = vld [vmem:[%s28802_s5 + $0x648] sm:$0xf]  ;;  %v18892_v22 = vld [vmem:[%s28802_s5 + $0x654] sm:$0xf0] }
 0x584   :  { %v14147_v36 = vld [vmem:[%s28802_s5 + $0x6c8] sm:$0xf] }
 0x585   :  { %4814 = vmatpush.bf16.msra.mxu0 %v13924_v39  ;;  %v14324_v39 = vor.u32 %v18952_v27, %v14323_v24  ;;  %v14179_v24 = vld [vmem:[%s28802_s5 + $0x708] sm:$0xf]  ;;  %v18916_v27 = vld [vmem:[%s28802_s5 + $0x714] sm:$0xf0] }
 0x587   :  { %4803 = vmatpush.bf16.msrb.mxu3 %v14384_v62 }
 0x588   :  { %4763 = vmatmul.bf16.vlgmr.msrb.gmra.mxu0 %v22786_v6 }
 0x589   :  { %4815 = vmatpush.bf16.msra.mxu0 %v13908_v25  ;;  %v14404_v25 = vor.u32 %v18972_v19, %v14403_v13  ;;  %v14341_v13 = vld [vmem:[%s28802_s5 + $0x858] sm:$0xf0]  ;;  %v14180_v19 = vor.u32 %v18916_v27, %v14179_v24  ;;  %v18922_v27 = vld [vmem:[%s28802_s5 + $0x74c] sm:$0xf] }
 0x58b   :  { %4804 = vmatpush.bf16.msrb.mxu3 %v14368_v23  ;;  %v14291_v23 = vld [vmem:[%s28802_s5 + $0x7e8] sm:$0xf] }
 0x58d   :  { %4816 = vmatpush.bf16.msra.mxu0 %v13892_v29  ;;  %v22864_v5 = vpop.f32.mrf.mxu0  ;;  %v3792_v41 = vpop.f32.mrf.mxu1  ;;  %v14388_v29 = vor.u32 %v18968_v52, %v14387_v42  ;;  %v18950_v42 = vld [vmem:[%s28802_s5 + $0x82c] sm:$0xf]  ;;  %v14325_v52 = vld [vmem:[%s28802_s5 + $0x838] sm:$0xf0] }
 0x58e   :  { %4749 = vmatmul.bf16.vlgmr.msra.gmra.mxu3 %v22542_v20 }
 0x58f   :  { %4853 = vmatpush.bf16.msra.mxu3 %v14356_v8  ;;  %v14292_v8 = vor.u32 %v18944_v14, %v14291_v23  ;;  %v14100_v14 = vor.u32 %v18896_v63, %v14099_v33  ;;  %v18942_v33 = vld [vmem:[%s28802_s5 + $0x7ec] sm:$0xf]  ;;  %v14293_v63 = vld [vmem:[%s28802_s5 + $0x7f8] sm:$0xf0] }
 0x591   :  { %4817 = vmatpush.bf16.msra.mxu0 %v13876_v61  ;;  %v18940_v61 = vld [vmem:[%s28802_s5 + $0x7d4] sm:$0xf0] }
 0x593   :  { %4854 = vmatpush.bf16.msra.mxu3 %v14340_v54 }
 0x595   :  { %4818 = vmatpush.bf16.msra.mxu0 %v13860_v37  ;;  %v22903_v46 = vpop.f32.mrf.mxu0  ;;  %v3794_v62 = vpop.f32.mrf.mxu1 }
 0x596   :  { %v22905_v58 = vpack.c.bf16 %v3794_v62, %v3792_v41  ;;  %v14275_v41 = vld [vmem:[%s28802_s5 + $0x7c8] sm:$0xf] }
 0x597   :  { %4855 = vmatpush.bf16.msra.mxu3 %v14324_v39  ;;  %v14276_v37 = vor.u32 %v18940_v61, %v14275_v41  ;;  %v18954_v39 = vld [vmem:[%s28802_s5 + $0x84c] sm:$0xf]  ;;  %v14163_v62 = vld [vmem:[%s28802_s5 + $0x6e8] sm:$0xf]  ;;  %v18908_v41 = vld [vmem:[%s28802_s5 + $0x6d4] sm:$0xf0] }
 0x598   :  { %14425 = vmatmul.msk.bf16.vlgmr.msra.gmra.mxu2 %vm4667_vm4, %v22905_v58  ;;  %4819 = vmatmul.bf16.vlgmr.msra.gmra.mxu0 %v22542_v20  ;;  %v14344_v18 = vor.u32 %v18954_v39, %v14341_v13  ;;  %v14148_v24 = vor.u32 %v18908_v41, %v14147_v36  ;;  %v18904_v39 = vld [vmem:[%s28802_s5 + $0x6b4] sm:$0xf0]  ;;  %v18914_v41 = vld [vmem:[%s28802_s5 + $0x70c] sm:$0xf] }
 0x599   :  { %4871 = vmatpush.bf16.msrb.mxu0 %v14420_v7  ;;  %4839 = vmatpush.bf16.msra.mxu2 %v14228_v35  ;;  %v14360_v7 = vor.u32 %v18958_v11, %v14357_v59  ;;  %v18912_v35 = vld [vmem:[%s28802_s5 + $0x6f4] sm:$0xf0]  ;;  %v14328_v11 = vor.u32 %v18950_v42, %v14325_v52  ;;  %v14115_v42 = vld [vmem:[%s28802_s5 + $0x688] sm:$0xf] }
 0x59a   :  { %v18900_v52 = vld [vmem:[%s28802_s5 + $0x694] sm:$0xf0] }
 0x59b   :  { %4856 = vmatpush.bf16.msra.mxu3 %v14308_v4  ;;  %v18932_v4 = vld [vmem:[%s28802_s5 + $0x794] sm:$0xf0]  ;;  %v14116_v36 = vor.u32 %v18900_v52, %v14115_v42  ;;  %v14149_v52 = vld [vmem:[%s28802_s5 + $0x6d8] sm:$0xf0] }
 0x59c   :  { %v14244_v61 = vor.u32 %v18932_v4, %v14243_v60  ;;  %v14051_v60 = vld [vmem:[%s28802_s5 + $0x608] sm:$0xf]  ;;  %v18884_v4 = vld [vmem:[%s28802_s5 + $0x614] sm:$0xf0] }
 0x59d   :  { %4872 = vmatpush.bf16.msrb.mxu0 %v14404_v25  ;;  %4840 = vmatpush.bf16.msra.mxu2 %v14212_v2  ;;  %v3778_v54 = vpop.f32.mrf.mxu0  ;;  %v14260_v25 = vor.u32 %v18936_v26, %v14259_v34  ;;  %v14164_v2 = vor.u32 %v18912_v35, %v14163_v62  ;;  %v18888_v34 = vld [vmem:[%s28802_s5 + $0x634] sm:$0xf0]  ;;  %v14131_v26 = vld [vmem:[%s28802_s5 + $0x6a8] sm:$0xf] }
 0x59e   :  { %14426 = vmatmul.msk.bf16.vlgmr.msrb.gmra.mxu3 %vm4667_vm4, %v22905_v58  ;;  %v14132_v35 = vor.u32 %v18904_v39, %v14131_v26  ;;  %v18910_v26 = vld [vmem:[%s28802_s5 + $0x6ec] sm:$0xf]  ;;  %v14165_v39 = vld [vmem:[%s28802_s5 + $0x6f8] sm:$0xf0] }
 0x59f   :  { %4857 = vmatpush.bf16.msra.mxu3 %v14292_v8 }
 0x5a1   :  { %4873 = vmatpush.bf16.msrb.mxu0 %v14388_v29  ;;  %4841 = vmatpush.bf16.msra.mxu2 %v14196_v48  ;;  %v18926_v29 = vld [vmem:[%s28802_s5 + $0x76c] sm:$0xf]  ;;  %v14309_v48 = vld [vmem:[%s28802_s5 + $0x818] sm:$0xf0] }
 0x5a2   :  { %v14232_v59 = vor.u32 %v18926_v29, %v14229_v15  ;;  %v18938_v15 = vld [vmem:[%s28802_s5 + $0x7cc] sm:$0xf] }
 0x5a3   :  { %4858 = vmatpush.bf16.msra.mxu3 %v14276_v37  ;;  %v14213_v37 = vld [vmem:[%s28802_s5 + $0x758] sm:$0xf0] }
 0x5a5   :  { %4874 = vmatpush.bf16.msrb.mxu0 %v14372_v30  ;;  %4842 = vmatpush.bf16.msra.mxu2 %v14180_v19  ;;  %v3780_v23 = vpop.f32.mrf.mxu0  ;;  %v14084_v30 = vor.u32 %v18892_v22, %v14083_v10  ;;  %v14216_v19 = vor.u32 %v18922_v27, %v14213_v37  ;;  %v14277_v10 = vld [vmem:[%s28802_s5 + $0x7d8] sm:$0xf0]  ;;  %v14052_v22 = vor.u32 %v18884_v4, %v14051_v60  ;;  %v18934_v37 = vld [vmem:[%s28802_s5 + $0x7ac] sm:$0xf] }
 0x5a6   :  { %v23005_v8 = vpack.c.bf16 %v3780_v23, %v3778_v54  ;;  %v18946_v54 = vld [vmem:[%s28802_s5 + $0x80c] sm:$0xf]  ;;  %v14296_v23 = vor.u32 %v18942_v33, %v14293_v63  ;;  %v18876_v33 = vld [vmem:[%s28802_s5 + $0x5d4] sm:$0xf0]  ;;  %v14245_v60 = vld [vmem:[%s28802_s5 + $0x798] sm:$0xf0] }
 0x5a7   :  { %4859 = vmatpush.bf16.msra.mxu3 %v14260_v25  ;;  %v14312_v13 = vor.u32 %v18946_v54, %v14309_v48  ;;  %v18918_v25 = vld [vmem:[%s28802_s5 + $0x72c] sm:$0xf]  ;;  %v18880_v54 = vld [vmem:[%s28802_s5 + $0x5f4] sm:$0xf0]  ;;  %v14280_v48 = vor.u32 %v18938_v15, %v14277_v10 }
 0x5a8   :  { %4721 = vmatmul.bf16.vlgmr.msra.gmra.mxu1 %v23005_v8  ;;  %4791 = vmatmul.bf16.vlgmr.msrb.gmra.mxu2 %v23005_v8  ;;  %v18906_v4 = vld [vmem:[%s28802_s5 + $0x6cc] sm:$0xf]  ;;  %v18872_v15 = vld [vmem:[%s28802_s5 + $0x5b4] sm:$0xf0] }
 0x5a9   :  { %4923 = vmatpush.bf16.msra.mxu0 %v14360_v7  ;;  %4825 = vmatpush.bf16.msra.mxu1 %v14100_v14  ;;  %v14067_v7 = vld [vmem:[%s28802_s5 + $0x628] sm:$0xf]  ;;  %v18894_v14 = vld [vmem:[%s28802_s5 + $0x66c] sm:$0xf] }
 0x5aa   :  { %4843 = vmatpush.bf16.msra.mxu2 %v14164_v2  ;;  %14427 = vmatmul.msk.bf16.vlgmr.msrb.gmra.mxu0 %vm4667_vm4, %v22905_v58  ;;  %v14068_v62 = vor.u32 %v18888_v34, %v14067_v7  ;;  %v14101_v2 = vld [vmem:[%s28802_s5 + $0x678] sm:$0xf0] }
 0x5ab   :  { %4860 = vmatpush.bf16.msra.mxu3 %v14244_v61  ;;  %v14181_v61 = vld [vmem:[%s28802_s5 + $0x718] sm:$0xf0] }
 0x5ac   :  { %v14184_v27 = vor.u32 %v18914_v41, %v14181_v61  ;;  %v14261_v7 = vld [vmem:[%s28802_s5 + $0x7b8] sm:$0xf0]  ;;  %v14152_v41 = vor.u32 %v18906_v4, %v14149_v52  ;;  %v14671_v4 = vld [vmem:[%s28802_s5 + $0x1e0] sm:$0xf]  ;;  %v18858_v52 = vld [vmem:[%s28802_s5 + $0x54c] sm:$0xf] }
 0x5ad   :  { %4924 = vmatpush.bf16.msra.mxu0 %v14344_v18  ;;  %4826 = vmatpush.bf16.msra.mxu1 %v14084_v30  ;;  %v14197_v18 = vld [vmem:[%s28802_s5 + $0x738] sm:$0xf0]  ;;  %v18890_v30 = vld [vmem:[%s28802_s5 + $0x64c] sm:$0xf]  ;;  %v14264_v63 = vor.u32 %v18934_v37, %v14261_v7  ;;  %v18868_v37 = vld [vmem:[%s28802_s5 + $0x594] sm:$0xf0] }
 0x5ae   :  { %4844 = vmatpush.bf16.msra.mxu2 %v14148_v24  ;;  %4861 = vmatmul.bf16.vlgmr.msra.gmra.mxu3 %v23005_v8  ;;  %v14200_v29 = vor.u32 %v18918_v25, %v14197_v18  ;;  %v14085_v24 = vld [vmem:[%s28802_s5 + $0x658] sm:$0xf0]  ;;  %v14168_v25 = vor.u32 %v18910_v26, %v14165_v39  ;;  %v18930_v18 = vld [vmem:[%s28802_s5 + $0x78c] sm:$0xf] }
 0x5af   :  { %4909 = vmatpush.bf16.msrb.mxu3 %v14232_v59  ;;  %v14035_v59 = vld [vmem:[%s28802_s5 + $0x5e8] sm:$0xf]  ;;  %v14248_v10 = vor.u32 %v18930_v18, %v14245_v60  ;;  %v18862_v7 = vld [vmem:[%s28802_s5 + $0x56c] sm:$0xf]  ;;  %v14037_v39 = vld [vmem:[%s28802_s5 + $0x5f8] sm:$0xf0] }
 0x5b0   :  { %v14036_v34 = vor.u32 %v18880_v54, %v14035_v59  ;;  %v14133_v54 = vld [vmem:[%s28802_s5 + $0x6b8] sm:$0xf0]  ;;  %v18878_v26 = vld [vmem:[%s28802_s5 + $0x5ec] sm:$0xf] }
 0x5b1   :  { %4925 = vmatpush.bf16.msra.mxu0 %v14328_v11  ;;  %4827 = vmatpush.bf16.msra.mxu1 %v14068_v62  ;;  %v14104_v11 = vor.u32 %v18894_v14, %v14101_v2  ;;  %v18886_v62 = vld [vmem:[%s28802_s5 + $0x62c] sm:$0xf]  ;;  %v18782_v14 = vld [vmem:[%s28802_s5 + $0x2ec] sm:$0xf0]  ;;  %v14040_v60 = vor.u32 %v18878_v26, %v14037_v39  ;;  %v14639_v39 = vld [vmem:[%s28802_s5 + $0x1a0] sm:$0xf] }
 0x5b2   :  { %4845 = vmatpush.bf16.msra.mxu2 %v14132_v35  ;;  %v14069_v35 = vld [vmem:[%s28802_s5 + $0x638] sm:$0xf0] }
 0x5b3   :  { %4910 = vmatpush.bf16.msrb.mxu3 %v14216_v19  ;;  %v14019_v19 = vld [vmem:[%s28802_s5 + $0x5c8] sm:$0xf]  ;;  %v14072_v2 = vor.u32 %v18886_v62, %v14069_v35  ;;  %v14117_v62 = vld [vmem:[%s28802_s5 + $0x698] sm:$0xf0]  ;;  %v14767_v35 = vld [vmem:[%s28802_s5 + $0x2a0] sm:$0xf] }
 0x5b4   :  { %v14020_v42 = vor.u32 %v18876_v33, %v14019_v19  ;;  %v18898_v33 = vld [vmem:[%s28802_s5 + $0x68c] sm:$0xf] }
 0x5b5   :  { %4926 = vmatpush.bf16.msra.mxu0 %v14312_v13  ;;  %4828 = vmatpush.bf16.msra.mxu1 %v14052_v22  ;;  %v14088_v13 = vor.u32 %v18890_v30, %v14085_v24  ;;  %v18882_v22 = vld [vmem:[%s28802_s5 + $0x60c] sm:$0xf]  ;;  %v18778_v30 = vld [vmem:[%s28802_s5 + $0x2cc] sm:$0xf0] }
 0x5b6   :  { %4846 = vmatpush.bf16.msra.mxu2 %v14116_v36  ;;  %v14053_v36 = vld [vmem:[%s28802_s5 + $0x618] sm:$0xf0] }
 0x5b7   :  { %4911 = vmatpush.bf16.msrb.mxu3 %v14200_v29  ;;  %v14003_v29 = vld [vmem:[%s28802_s5 + $0x5a8] sm:$0xf]  ;;  %v14056_v24 = vor.u32 %v18882_v22, %v14053_v36  ;;  %v18770_v22 = vld [vmem:[%s28802_s5 + $0x28c] sm:$0xf0] }
 0x5b8   :  { %4777 = vmatmul.bf16.vlgmr.msrb.gmra.mxu1 %v22754_v12  ;;  %v14004_v59 = vor.u32 %v18872_v15, %v14003_v29 }
 0x5b9   :  { %4927 = vmatpush.bf16.msra.mxu0 %v14296_v23  ;;  %4829 = vmatpush.bf16.msra.mxu1 %v14036_v34  ;;  %v14799_v23 = vld [vmem:[%s28802_s5 + $0x2e0] sm:$0xf]  ;;  %v13973_v34 = vld [vmem:[%s28802_s5 + $0x578] sm:$0xf0] }
 0x5ba   :  { %4895 = vmatpush.bf16.msrb.mxu2 %v14104_v11  ;;  %v14800_v61 = vor.u32 %v18782_v14, %v14799_v23  ;;  %v18902_v11 = vld [vmem:[%s28802_s5 + $0x6ac] sm:$0xf]  ;;  %v13976_v18 = vor.u32 %v18862_v7, %v13973_v34  ;;  %v13957_v23 = vld [vmem:[%s28802_s5 + $0x558] sm:$0xf0]  ;;  %v18766_v7 = vld [vmem:[%s28802_s5 + $0x26c] sm:$0xf0] }
 0x5bb   :  { %4912 = vmatpush.bf16.msrb.mxu3 %v14184_v27  ;;  %4847 = vmatmul.bf16.vlgmr.msra.gmra.mxu2 %v22754_v12  ;;  %v13987_v27 = vld [vmem:[%s28802_s5 + $0x588] sm:$0xf]  ;;  %v14021_v14 = vld [vmem:[%s28802_s5 + $0x5d8] sm:$0xf0]  ;;  %v13960_v36 = vor.u32 %v18858_v52, %v13957_v23  ;;  %v14623_v23 = vld [vmem:[%s28802_s5 + $0x180] sm:$0xf] }
 0x5bd   :  { %4928 = vmatpush.bf16.msra.mxu0 %v14280_v48  ;;  %4830 = vmatpush.bf16.msra.mxu1 %v14020_v42  ;;  %v14783_v48 = vld [vmem:[%s28802_s5 + $0x2c0] sm:$0xf]  ;;  %v18750_v42 = vld [vmem:[%s28802_s5 + $0x1ec] sm:$0xf0] }
 0x5be   :  { %4896 = vmatpush.bf16.msrb.mxu2 %v14088_v13  ;;  %v14136_v13 = vor.u32 %v18902_v11, %v14133_v54  ;;  %v14784_v19 = vor.u32 %v18778_v30, %v14783_v48  ;;  %v14672_v15 = vor.u32 %v18750_v42, %v14671_v4  ;;  %v18746_v11 = vld [vmem:[%s28802_s5 + $0x1cc] sm:$0xf0]  ;;  %v13941_v54 = vld [vmem:[%s28802_s5 + $0x538] sm:$0xf0]  ;;  %v18870_v48 = vld [vmem:[%s28802_s5 + $0x5ac] sm:$0xf] }
 0x5bf   :  { %4913 = vmatpush.bf16.msrb.mxu3 %v14168_v25  ;;  %v18774_v25 = vld [vmem:[%s28802_s5 + $0x2ac] sm:$0xf0]  ;;  %v14005_v30 = vld [vmem:[%s28802_s5 + $0x5b8] sm:$0xf0] }
 0x5c0   :  { %v14768_v29 = vor.u32 %v18774_v25, %v14767_v35  ;;  %v14008_v26 = vor.u32 %v18870_v48, %v14005_v30  ;;  %v14543_v25 = vld [vmem:[%s28802_s5 + $0xe0] sm:$0xf]  ;;  %v18762_v4 = vld [vmem:[%s28802_s5 + $0x24c] sm:$0xf0]  ;;  %v18842_v30 = vld [vmem:[%s28802_s5 + $0x4cc] sm:$0xf] }
 0x5c1   :  { %4929 = vmatpush.bf16.msra.mxu0 %v14264_v63  ;;  %4831 = vmatpush.bf16.msra.mxu1 %v14004_v59  ;;  %v13988_v63 = vor.u32 %v18868_v37, %v13987_v27  ;;  %v18854_v59 = vld [vmem:[%s28802_s5 + $0x52c] sm:$0xf]  ;;  %v14735_v37 = vld [vmem:[%s28802_s5 + $0x260] sm:$0xf] }
 0x5c2   :  { %4897 = vmatpush.bf16.msrb.mxu2 %v14072_v2  ;;  %v14120_v2 = vor.u32 %v18898_v33, %v14117_v62  ;;  %v13944_v34 = vor.u32 %v18854_v59, %v13941_v54  ;;  %v13925_v33 = vld [vmem:[%s28802_s5 + $0x518] sm:$0xf0]  ;;  %v14736_v35 = vor.u32 %v18766_v7, %v14735_v37  ;;  %v14607_v59 = vld [vmem:[%s28802_s5 + $0x160] sm:$0xf]  ;;  %v18734_v54 = vld [vmem:[%s28802_s5 + $0x16c] sm:$0xf0] }
 0x5c3   :  { %4914 = vmatpush.bf16.msrb.mxu3 %v14152_v41  ;;  %v13989_v62 = vld [vmem:[%s28802_s5 + $0x598] sm:$0xf0]  ;;  %v14511_v37 = vld [vmem:[%s28802_s5 + $0xa0] sm:$0xf]  ;;  %v18710_v7 = vld [vmem:[%s28802_s5 + $0xac] sm:$0xf0] }
 0x5c5   :  { %4930 = vmatpush.bf16.msra.mxu0 %v14248_v10  ;;  %4832 = vmatpush.bf16.msra.mxu1 %v13988_v63  ;;  %v14751_v10 = vld [vmem:[%s28802_s5 + $0x280] sm:$0xf]  ;;  %v18866_v63 = vld [vmem:[%s28802_s5 + $0x58c] sm:$0xf] }
 0x5c6   :  { %4898 = vmatpush.bf16.msrb.mxu2 %v14056_v24  ;;  %v14752_v24 = vor.u32 %v18770_v22, %v14751_v10  ;;  %v13992_v52 = vor.u32 %v18866_v63, %v13989_v62  ;;  %v14527_v10 = vld [vmem:[%s28802_s5 + $0xc0] sm:$0xf]  ;;  %v18714_v22 = vld [vmem:[%s28802_s5 + $0xcc] sm:$0xf0]  ;;  %v14673_v63 = vld [vmem:[%s28802_s5 + $0x1f0] sm:$0xf0]  ;;  %v14512_v62 = vor.u32 %v18710_v7, %v14511_v37 }
 0x5c7   :  { %4915 = vmatpush.bf16.msrb.mxu3 %v14136_v13  ;;  %v18742_v13 = vld [vmem:[%s28802_s5 + $0x1ac] sm:$0xf0]  ;;  %v14528_v48 = vor.u32 %v18714_v22, %v14527_v10  ;;  %v13861_v10 = vld [vmem:[%s28802_s5 + $0x498] sm:$0xf0]  ;;  %v18974_v22 = vld [vmem:[%s28802_s5 + $0x8ec] sm:$0xf] }
 0x5c8   :  { %4931 = vmatmul.bf16.vlgmr.msra.gmra.mxu0 %v23005_v8  ;;  %v18874_v8 = vld [vmem:[%s28802_s5 + $0x5cc] sm:$0xf]  ;;  %4833 = vmatmul.bf16.vlgmr.msra.gmra.mxu1 %v22786_v6  ;;  %v18716_v7 = vld [vmem:[%s28802_s5 + $0xe4] sm:$0xf] }
 0x5c9   :  { %5702 = vmatpush.bf16.msrb.mxu0 %v14800_v61  ;;  %4881 = vmatpush.bf16.msrb.mxu1 %v13976_v18  ;;  %v14024_v41 = vor.u32 %v18874_v8, %v14021_v14  ;;  %v14655_v61 = vld [vmem:[%s28802_s5 + $0x1c0] sm:$0xf]  ;;  %v14640_v18 = vor.u32 %v18742_v13, %v14639_v39  ;;  %v18738_v8 = vld [vmem:[%s28802_s5 + $0x18c] sm:$0xf0] }
 0x5ca   :  { %4899 = vmatpush.bf16.msrb.mxu2 %v14040_v60  ;;  %v14656_v27 = vor.u32 %v18746_v11, %v14655_v61  ;;  %v14719_v60 = vld [vmem:[%s28802_s5 + $0x240] sm:$0xf]  ;;  %v18758_v61 = vld [vmem:[%s28802_s5 + $0x22c] sm:$0xf0] }
 0x5cb   :  { %4916 = vmatpush.bf16.msrb.mxu3 %v14120_v2  ;;  %v18846_v2 = vld [vmem:[%s28802_s5 + $0x4ec] sm:$0xf]  ;;  %v18754_v39 = vld [vmem:[%s28802_s5 + $0x20c] sm:$0xf0]  ;;  %v14591_v13 = vld [vmem:[%s28802_s5 + $0x140] sm:$0xf] }
 0x5cd   :  { %5703 = vmatpush.bf16.msrb.mxu0 %v14784_v19  ;;  %4882 = vmatpush.bf16.msrb.mxu1 %v13960_v36  ;;  %v18850_v19 = vld [vmem:[%s28802_s5 + $0x50c] sm:$0xf]  ;;  %v14624_v36 = vor.u32 %v18738_v8, %v14623_v23  ;;  %v18726_v8 = vld [vmem:[%s28802_s5 + $0x12c] sm:$0xf0] }
 0x5ce   :  { %4900 = vmatpush.bf16.msrb.mxu2 %v14024_v41  ;;  %4917 = vmatmul.bf16.vlgmr.msrb.gmra.mxu3 %v22754_v12  ;;  %v18718_v12 = vld [vmem:[%s28802_s5 + $0xec] sm:$0xf0]  ;;  %v13928_v42 = vor.u32 %v18850_v19, %v13925_v33  ;;  %v14703_v41 = vld [vmem:[%s28802_s5 + $0x220] sm:$0xf]  ;;  %v18748_v33 = vld [vmem:[%s28802_s5 + $0x1e4] sm:$0xf] }
 0x5cf   :  { %5688 = vmatpush.bf16.msra.mxu3 %v14672_v15  ;;  %v14544_v14 = vor.u32 %v18718_v12, %v14543_v25  ;;  %v14720_v15 = vor.u32 %v18762_v4, %v14719_v60  ;;  %v13877_v25 = vld [vmem:[%s28802_s5 + $0x4b8] sm:$0xf0]  ;;  %v18706_v60 = vld [vmem:[%s28802_s5 + $0x8c] sm:$0xf0] }
 0x5d1   :  { %5704 = vmatpush.bf16.msrb.mxu0 %v14768_v29  ;;  %4883 = vmatpush.bf16.msrb.mxu1 %v13944_v34  ;;  %v13909_v29 = vld [vmem:[%s28802_s5 + $0x4f8] sm:$0xf0]  ;;  %v14608_v34 = vor.u32 %v18734_v54, %v14607_v59 }
 0x5d2   :  { %4901 = vmatpush.bf16.msrb.mxu2 %v14008_v26  ;;  %v13912_v11 = vor.u32 %v18846_v2, %v13909_v29  ;;  %v14687_v26 = vld [vmem:[%s28802_s5 + $0x200] sm:$0xf]  ;;  %v14657_v2 = vld [vmem:[%s28802_s5 + $0x1d0] sm:$0xf0] }
 0x5d3   :  { %5689 = vmatpush.bf16.msra.mxu3 %v14656_v27  ;;  %v14704_v27 = vor.u32 %v18758_v61, %v14703_v41  ;;  %v14688_v12 = vor.u32 %v18754_v39, %v14687_v26  ;;  %v14479_v41 = vld [vmem:[%s28802_s5 + $0x60] sm:$0xf]  ;;  %v18702_v61 = vld [vmem:[%s28802_s5 + $0x6c] sm:$0xf0]  ;;  %v18970_v26 = vld [vmem:[%s28802_s5 + $0x8cc] sm:$0xf] }
 0x5d4   :  { %v14480_v37 = vor.u32 %v18702_v61, %v14479_v41  ;;  %v14405_v39 = vld [vmem:[%s28802_s5 + $0x8d8] sm:$0xf0]  ;;  %v14431_v41 = vld [vmem:[%s28802_s5] sm:$0xf]  ;;  %v18690_v61 = vld [vmem:[%s28802_s5 + $0xc] sm:$0xf0] }
 0x5d5   :  { %5705 = vmatpush.bf16.msrb.mxu0 %v14752_v24  ;;  %4884 = vmatpush.bf16.msrb.mxu1 %v13928_v42  ;;  %v13893_v24 = vld [vmem:[%s28802_s5 + $0x4d8] sm:$0xf0]  ;;  %v14676_v42 = vor.u32 %v18748_v33, %v14673_v63 }
 0x5d6   :  { %4902 = vmatpush.bf16.msrb.mxu2 %v13992_v52  ;;  %v13896_v19 = vor.u32 %v18842_v30, %v13893_v24  ;;  %v14575_v52 = vld [vmem:[%s28802_s5 + $0x120] sm:$0xf]  ;;  %v18722_v24 = vld [vmem:[%s28802_s5 + $0x10c] sm:$0xf0] }
 0x5d7   :  { %5690 = vmatpush.bf16.msra.mxu3 %v14640_v18  ;;  %v14495_v18 = vld [vmem:[%s28802_s5 + $0x80] sm:$0xf]  ;;  %v14576_v59 = vor.u32 %v18726_v8, %v14575_v52  ;;  %v23443_v8 = vpack.c.bf16 %v22474_v28, %v22472_v31 }
 0x5d8   :  { %v14496_v29 = vor.u32 %v18706_v60, %v14495_v18  ;;  %v18712_v18 = vld [vmem:[%s28802_s5 + $0xc4] sm:$0xf]  ;;  %v14529_v60 = vld [vmem:[%s28802_s5 + $0xd0] sm:$0xf0]  ;;  %v14447_v52 = vld [vmem:[%s28802_s5 + $0x20] sm:$0xf] }
 0x5d9   :  { %5706 = vmatpush.bf16.msrb.mxu0 %v14736_v35  ;;  %4903 = vmatmul.bf16.vlgmr.msrb.gmra.mxu2 %v22786_v6  ;;  %v18730_v6 = vld [vmem:[%s28802_s5 + $0x14c] sm:$0xf0]  ;;  %v18838_v35 = vld [vmem:[%s28802_s5 + $0x4ac] sm:$0xf] }
 0x5da   :  { %5674 = vmatpush.bf16.msra.mxu2 %v14544_v14  ;;  %4885 = vmatpush.bf16.msrb.mxu1 %v13912_v11  ;;  %v14592_v4 = vor.u32 %v18730_v6, %v14591_v13  ;;  %v13880_v23 = vor.u32 %v18838_v35, %v13877_v25  ;;  %v18744_v14 = vld [vmem:[%s28802_s5 + $0x1c4] sm:$0xf]  ;;  %v23383_v11 = vpack.c.bf16 %v22713_v51, %v22679_v32  ;;  %v14641_v32 = vld [vmem:[%s28802_s5 + $0x1b0] sm:$0xf0]  ;;  %v14463_v13 = vld [vmem:[%s28802_s5 + $0x40] sm:$0xf] }
 0x5db   :  { %5691 = vmatpush.bf16.msra.mxu3 %v14624_v36  ;;  %v14421_v36 = vld [vmem:[%s28802_s5 + $0x8f8] sm:$0xf0]  ;;  %v14660_v54 = vor.u32 %v18744_v14, %v14657_v2  ;;  %v14625_v35 = vld [vmem:[%s28802_s5 + $0x190] sm:$0xf0]  ;;  %v14408_v25 = vor.u32 %v18970_v26, %v14405_v39  ;;  %v14532_v2 = vor.u32 %v18712_v18, %v14529_v60  ;;  %v18704_v39 = vld [vmem:[%s28802_s5 + $0x84] sm:$0xf]  ;;  %v23514_v18 = vpack.c.bf16 %v22825_v0, %v22772_v44 }
 0x5dc   :  { %v14424_v51 = vor.u32 %v18974_v22, %v14421_v36  ;;  %v18962_v22 = vld [vmem:[%s28802_s5 + $0x88c] sm:$0xf]  ;;  %v14373_v36 = vld [vmem:[%s28802_s5 + $0x898] sm:$0xf0]  ;;  %v18806_v44 = vld [vmem:[%s28802_s5 + $0x3ac] sm:$0xf0] }
 0x5dd   :  { %5707 = vmatpush.bf16.msrb.mxu0 %v14720_v15  ;;  %v18834_v15 = vld [vmem:[%s28802_s5 + $0x48c] sm:$0xf]  ;;  %v14959_v0 = vld [vmem:[%s28802_s5 + $0x420] sm:$0xf] }
 0x5de   :  { %5675 = vmatpush.bf16.msra.mxu2 %v14528_v48  ;;  %4886 = vmatpush.bf16.msrb.mxu1 %v13896_v19  ;;  %v14559_v48 = vld [vmem:[%s28802_s5 + $0x100] sm:$0xf]  ;;  %v13864_v30 = vor.u32 %v18834_v15, %v13861_v10  ;;  %v18698_v19 = vld [vmem:[%s28802_s5 + $0x4c] sm:$0xf0]  ;;  %v14609_v15 = vld [vmem:[%s28802_s5 + $0x170] sm:$0xf0] }
 0x5df   :  { %5692 = vmatpush.bf16.msra.mxu3 %v14608_v34  ;;  %v14545_v34 = vld [vmem:[%s28802_s5 + $0xf0] sm:$0xf0]  ;;  %v14560_v6 = vor.u32 %v18722_v24, %v14559_v48  ;;  %v14991_v48 = vld [vmem:[%s28802_s5 + $0x460] sm:$0xf] }
 0x5e0   :  { %v14548_v63 = vor.u32 %v18716_v7, %v14545_v34  ;;  %v14513_v10 = vld [vmem:[%s28802_s5 + $0xb0] sm:$0xf0] }
 0x5e1   :  { %5708 = vmatpush.bf16.msrb.mxu0 %v14704_v27  ;;  %v18740_v27 = vld [vmem:[%s28802_s5 + $0x1a4] sm:$0xf]  ;;  %v14593_v7 = vld [vmem:[%s28802_s5 + $0x150] sm:$0xf0] }
 0x5e2   :  { %5676 = vmatpush.bf16.msra.mxu2 %v14512_v62  ;;  %4887 = vmatpush.bf16.msrb.mxu1 %v13880_v23  ;;  %v14644_v33 = vor.u32 %v18740_v27, %v14641_v32  ;;  %v18736_v62 = vld [vmem:[%s28802_s5 + $0x184] sm:$0xf]  ;;  %v18694_v23 = vld [vmem:[%s28802_s5 + $0x2c] sm:$0xf0]  ;;  %v14376_v32 = vor.u32 %v18962_v22, %v14373_v36  ;;  %v14551_v36 = vld [vmem:[%s28802_s5 + $0xe8] sm:$0xf] }
 0x5e3   :  { %5693 = vmatpush.bf16.msra.mxu3 %v14592_v4  ;;  %v18966_v4 = vld [vmem:[%s28802_s5 + $0x8ac] sm:$0xf]  ;;  %v14628_v14 = vor.u32 %v18736_v62, %v14625_v35  ;;  %v14448_v28 = vor.u32 %v18694_v23, %v14447_v52  ;;  %v14481_v52 = vld [vmem:[%s28802_s5 + $0x70] sm:$0xf0]  ;;  %v14895_v23 = vld [vmem:[%s28802_s5 + $0x3a0] sm:$0xf] }
 0x5e5   :  { %5709 = vmatpush.bf16.msrb.mxu0 %v14688_v12  ;;  %v14464_v12 = vor.u32 %v18698_v19, %v14463_v13  ;;  %v14497_v13 = vld [vmem:[%s28802_s5 + $0x90] sm:$0xf0]  ;;  %v14911_v19 = vld [vmem:[%s28802_s5 + $0x3c0] sm:$0xf] }
 0x5e6   :  { %5677 = vmatpush.bf16.msra.mxu2 %v14496_v29  ;;  %4888 = vmatpush.bf16.msrb.mxu1 %v13864_v30  ;;  %v18732_v29 = vld [vmem:[%s28802_s5 + $0x164] sm:$0xf]  ;;  %v18830_v30 = vld [vmem:[%s28802_s5 + $0x46c] sm:$0xf0]  ;;  %v14500_v35 = vor.u32 %v18704_v39, %v14497_v13  ;;  %v18715_v39 = vld [vmem:[%s28802_s5 + $0xd4] sm:$0xf0] }
 0x5e7   :  { %5694 = vmatpush.bf16.msra.mxu3 %v14576_v59  ;;  %v14927_v59 = vld [vmem:[%s28802_s5 + $0x3e0] sm:$0xf]  ;;  %v14612_v24 = vor.u32 %v18732_v29, %v14609_v15  ;;  %v14992_v26 = vor.u32 %v18830_v30, %v14991_v48  ;;  %v18720_v29 = vld [vmem:[%s28802_s5 + $0x104] sm:$0xf]  ;;  %v18818_v48 = vld [vmem:[%s28802_s5 + $0x40c] sm:$0xf0] }
 0x5e8   :  { %5710 = vmatmul.bf16.vlgmr.msrb.gmra.mxu0 %v23383_v11 }
 0x5e9   :  { %5758 = vmatpush.bf16.msra.mxu0 %v14676_v42  ;;  %v14389_v42 = vld [vmem:[%s28802_s5 + $0x8b8] sm:$0xf0]  ;;  %4889 = vmatmul.bf16.vlgmr.msrb.gmra.mxu1 %v22542_v20  ;;  %v18708_v20 = vld [vmem:[%s28802_s5 + $0xa4] sm:$0xf] }
 0x5ea   :  { %4941 = vmatpush.bf16.msra.mxu1 %v14424_v51  ;;  %5678 = vmatpush.bf16.msra.mxu2 %v14480_v37  ;;  %v14392_v31 = vor.u32 %v18966_v4, %v14389_v42  ;;  %v14516_v27 = vor.u32 %v18708_v20, %v14513_v10  ;;  %v14432_v51 = vor.u32 %v18690_v61, %v14431_v41  ;;  %v18728_v37 = vld [vmem:[%s28802_s5 + $0x144] sm:$0xf]  ;;  %v14561_v20 = vld [vmem:[%s28802_s5 + $0x110] sm:$0xf0]  ;;  %v18719_v41 = vld [vmem:[%s28802_s5 + $0xf4] sm:$0xf0] }
 0x5eb   :  { %5695 = vmatpush.bf16.msra.mxu3 %v14560_v6  ;;  %v18810_v6 = vld [vmem:[%s28802_s5 + $0x3cc] sm:$0xf0]  ;;  %v14596_v62 = vor.u32 %v18728_v37, %v14593_v7  ;;  %v18700_v42 = vld [vmem:[%s28802_s5 + $0x64] sm:$0xf]  ;;  %v14896_v10 = vor.u32 %v18806_v44, %v14895_v23  ;;  %v14879_v61 = vld [vmem:[%s28802_s5 + $0x380] sm:$0xf]  ;;  %v14564_v30 = vor.u32 %v18720_v29, %v14561_v20 }
 0x5ec   :  { %v14912_v60 = vor.u32 %v18810_v6, %v14911_v19  ;;  %v14484_v15 = vor.u32 %v18700_v42, %v14481_v52  ;;  %v14863_v19 = vld [vmem:[%s28802_s5 + $0x360] sm:$0xf]  ;;  %v18798_v6 = vld [vmem:[%s28802_s5 + $0x36c] sm:$0xf0]  ;;  %v18711_v42 = vld [vmem:[%s28802_s5 + $0xb4] sm:$0xf0] }
 0x5ed   :  { %5759 = vmatpush.bf16.msra.mxu0 %v14660_v54  ;;  %v18814_v54 = vld [vmem:[%s28802_s5 + $0x3ec] sm:$0xf0]  ;;  %v18828_v52 = vld [vmem:[%s28802_s5 + $0x464] sm:$0xf] }
 0x5ee   :  { %4942 = vmatpush.bf16.msra.mxu1 %v14408_v25  ;;  %5679 = vmatpush.bf16.msra.mxu2 %v14464_v12  ;;  %v14928_v34 = vor.u32 %v18814_v54, %v14927_v59  ;;  %v18724_v25 = vld [vmem:[%s28802_s5 + $0x124] sm:$0xf]  ;;  %v14577_v12 = vld [vmem:[%s28802_s5 + $0x130] sm:$0xf0]  ;;  %v18802_v59 = vld [vmem:[%s28802_s5 + $0x38c] sm:$0xf0] }
 0x5ef   :  { %5744 = vmatpush.bf16.msrb.mxu3 %v14548_v63  ;;  %v18826_v63 = vld [vmem:[%s28802_s5 + $0x44c] sm:$0xf0]  ;;  %v14943_v54 = vld [vmem:[%s28802_s5 + $0x400] sm:$0xf]  ;;  %v14880_v37 = vor.u32 %v18802_v59, %v14879_v61  ;;  %v18804_v29 = vld [vmem:[%s28802_s5 + $0x3a4] sm:$0xf]  ;;  %v4680_v59 = vpop.f32.mrf.mxu2 }
 0x5f0   :  { %5696 = vmatmul.bf16.vlgmr.msra.gmra.mxu3 %v23443_v8  ;;  %v14944_v7 = vor.u32 %v18818_v48, %v14943_v54  ;;  %v18824_v61 = vld [vmem:[%s28802_s5 + $0x444] sm:$0xf]  ;;  %v14831_v48 = vld [vmem:[%s28802_s5 + $0x320] sm:$0xf] }
 0x5f1   :  { %5760 = vmatpush.bf16.msra.mxu0 %v14644_v33  ;;  %v14975_v33 = vld [vmem:[%s28802_s5 + $0x440] sm:$0xf] }
 0x5f2   :  { %4943 = vmatpush.bf16.msra.mxu1 %v14392_v31  ;;  %5680 = vmatpush.bf16.msra.mxu2 %v14448_v28  ;;  %v14976_v4 = vor.u32 %v18826_v63, %v14975_v33  ;;  %v18696_v31 = vld [vmem:[%s28802_s5 + $0x44] sm:$0xf]  ;;  %v14465_v28 = vld [vmem:[%s28802_s5 + $0x50] sm:$0xf0] }
 0x5f3   :  { %5745 = vmatpush.bf16.msrb.mxu3 %v14532_v2  ;;  %v14580_v2 = vor.u32 %v18724_v25, %v14577_v12  ;;  %v18808_v33 = vld [vmem:[%s28802_s5 + $0x3c4] sm:$0xf]  ;;  %v14913_v63 = vld [vmem:[%s28802_s5 + $0x3d0] sm:$0xf0] }
 0x5f4   :  { %v18688_v25 = vld [vmem:[%s28802_s5 + $0x4] sm:$0xf]  ;;  %v14433_v12 = vld [vmem:[%s28802_s5 + $0x10] sm:$0xf0]  ;;  %v14916_v44 = vor.u32 %v18808_v33, %v14913_v63  ;;  %v18786_v33 = vld [vmem:[%s28802_s5 + $0x30c] sm:$0xf0] }
 0x5f5   :  { %5761 = vmatpush.bf16.msra.mxu0 %v14628_v14  ;;  %v18822_v14 = vld [vmem:[%s28802_s5 + $0x42c] sm:$0xf0]  ;;  %v4708_v23 = vpop.f32.mrf.mxu0  ;;  %v14436_v20 = vor.u32 %v18688_v25, %v14433_v12  ;;  %v18780_v63 = vld [vmem:[%s28802_s5 + $0x2e4] sm:$0xf]  ;;  %v14865_v25 = vld [vmem:[%s28802_s5 + $0x370] sm:$0xf0] }
 0x5f6   :  { %4944 = vmatpush.bf16.msra.mxu1 %v14376_v32  ;;  %5681 = vmatpush.bf16.msra.mxu2 %v14432_v51  ;;  %v14960_v22 = vor.u32 %v18822_v14, %v14959_v0  ;;  %v14552_v32 = vor.u32 %v18719_v41, %v14551_v36  ;;  %v18692_v51 = vld [vmem:[%s28802_s5 + $0x24] sm:$0xf]  ;;  %v14993_v0 = vld [vmem:[%s28802_s5 + $0x470] sm:$0xf0]  ;;  %v14847_v14 = vld [vmem:[%s28802_s5 + $0x340] sm:$0xf] }
 0x5f7   :  { %5746 = vmatpush.bf16.msrb.mxu3 %v14516_v27  ;;  %v14468_v27 = vor.u32 %v18696_v31, %v14465_v28  ;;  %v23630_v28 = vpack.c.bf16 %v22903_v46, %v22864_v5  ;;  %v14503_v36 = vld [vmem:[%s28802_s5 + $0x88] sm:$0xf]  ;;  %v18707_v41 = vld [vmem:[%s28802_s5 + $0x94] sm:$0xf0]  ;;  %v14977_v46 = vld [vmem:[%s28802_s5 + $0x450] sm:$0xf0] }
 0x5f9   :  { %5762 = vmatpush.bf16.msra.mxu0 %v14612_v24  ;;  %5682 = vmatmul.bf16.vlgmr.msra.gmra.mxu2 %v23514_v18  ;;  %v18812_v24 = vld [vmem:[%s28802_s5 + $0x3e4] sm:$0xf] }
 0x5fa   :  { %5716 = vmatpush.bf16.msrb.mxu1 %v14928_v34  ;;  %5734 = vmatpush.bf16.msrb.mxu2 %v14992_v26  ;;  %v14449_v34 = vld [vmem:[%s28802_s5 + $0x30] sm:$0xf0]  ;;  %v14535_v26 = vld [vmem:[%s28802_s5 + $0xc8] sm:$0xf] }
 0x5fb   :  { %5747 = vmatpush.bf16.msrb.mxu3 %v14500_v35  ;;  %14428 = vmatmul.msk.bf16.vlgmr.msra.gmra.mxu1 %vm4667_vm4, %v22905_v58  ;;  %v14929_v58 = vld [vmem:[%s28802_s5 + $0x3f0] sm:$0xf0]  ;;  %v14536_v35 = vor.u32 %v18715_v39, %v14535_v26  ;;  %v18820_v26 = vld [vmem:[%s28802_s5 + $0x424] sm:$0xf] }
 0x5fc   :  { %v14932_v13 = vor.u32 %v18812_v24, %v14929_v58  ;;  %v18800_v58 = vld [vmem:[%s28802_s5 + $0x384] sm:$0xf]  ;;  %v14961_v39 = vld [vmem:[%s28802_s5 + $0x430] sm:$0xf0] }
 0x5fd   :  { %5763 = vmatpush.bf16.msra.mxu0 %v14596_v62  ;;  %v14452_v62 = vor.u32 %v18692_v51, %v14449_v34  ;;  %v14487_v51 = vld [vmem:[%s28802_s5 + $0x68] sm:$0xf]  ;;  %v18703_v34 = vld [vmem:[%s28802_s5 + $0x74] sm:$0xf0]  ;;  %v23691_v12 = vpop.f32.mrf.mxu0 }
 0x5fe   :  { %5717 = vmatpush.bf16.msrb.mxu1 %v14912_v60  ;;  %5735 = vmatpush.bf16.msrb.mxu2 %v14976_v4  ;;  %v14864_v60 = vor.u32 %v18798_v6, %v14863_v19  ;;  %v14519_v4 = vld [vmem:[%s28802_s5 + $0xa8] sm:$0xf]  ;;  %v14815_v6 = vld [vmem:[%s28802_s5 + $0x300] sm:$0xf] }
 0x5ff   :  { %5748 = vmatpush.bf16.msrb.mxu3 %v14484_v15  ;;  %v14897_v15 = vld [vmem:[%s28802_s5 + $0x3b0] sm:$0xf0]  ;;  %v14520_v31 = vor.u32 %v18711_v42, %v14519_v4  ;;  %v14964_v4 = vor.u32 %v18820_v26, %v14961_v39  ;;  %v14816_v42 = vor.u32 %v18786_v33, %v14815_v6  ;;  %v14999_v6 = vld [vmem:[%s28802_s5 + $0x468] sm:$0xf]  ;;  %v18831_v33 = vld [vmem:[%s28802_s5 + $0x474] sm:$0xf0] }
 0x600   :  { %v14900_v5 = vor.u32 %v18804_v29, %v14897_v15  ;;  %v14945_v29 = vld [vmem:[%s28802_s5 + $0x410] sm:$0xf0]  ;;  %v14935_v15 = vld [vmem:[%s28802_s5 + $0x3e8] sm:$0xf] }
 0x601   :  { %5764 = vmatpush.bf16.msra.mxu0 %v14580_v2  ;;  %v18794_v2 = vld [vmem:[%s28802_s5 + $0x34c] sm:$0xf0]  ;;  %v4694_v54 = vpop.f32.mrf.mxu3 }
 0x602   :  { %5718 = vmatpush.bf16.msrb.mxu1 %v14896_v10  ;;  %5736 = vmatpush.bf16.msrb.mxu2 %v14960_v22  ;;  %v14996_v10 = vor.u32 %v18828_v52, %v14993_v0  ;;  %v14848_v22 = vor.u32 %v18794_v2, %v14847_v14  ;;  %v4695_v24 = vadd.f32 %v4694_v54, %v4680_v59  ;;  %v14471_v52 = vld [vmem:[%s28802_s5 + $0x48] sm:$0xf]  ;;  %v18816_v2 = vld [vmem:[%s28802_s5 + $0x404] sm:$0xf]  ;;  %v18695_v54 = vld [vmem:[%s28802_s5 + $0x34] sm:$0xf0] }
 0x603   :  { %5749 = vmatpush.bf16.msrb.mxu3 %v14468_v27  ;;  %v14881_v27 = vld [vmem:[%s28802_s5 + $0x390] sm:$0xf0]  ;;  %v14455_v59 = vld [vmem:[%s28802_s5 + $0x28] sm:$0xf] }
 0x604   :  { %v14884_v19 = vor.u32 %v18800_v58, %v14881_v27  ;;  %v18811_v58 = vld [vmem:[%s28802_s5 + $0x3d4] sm:$0xf0]  ;;  %v18772_v27 = vld [vmem:[%s28802_s5 + $0x2a4] sm:$0xf] }
 0x605   :  { %5765 = vmatpush.bf16.msra.mxu0 %v14564_v30  ;;  %v18790_v30 = vld [vmem:[%s28802_s5 + $0x32c] sm:$0xf0] }
 0x606   :  { %5719 = vmatpush.bf16.msrb.mxu1 %v14880_v37  ;;  %5737 = vmatpush.bf16.msrb.mxu2 %v14944_v7  ;;  %v14980_v37 = vor.u32 %v18824_v61, %v14977_v46  ;;  %v14832_v7 = vor.u32 %v18790_v30, %v14831_v48  ;;  %v14948_v61 = vor.u32 %v18816_v2, %v14945_v29  ;;  %v14919_v30 = vld [vmem:[%s28802_s5 + $0x3c8] sm:$0xf]  ;;  %v18783_v2 = vld [vmem:[%s28802_s5 + $0x2f4] sm:$0xf0] }
 0x607   :  { %5750 = vmatpush.bf16.msrb.mxu3 %v14452_v62  ;;  %v14801_v62 = vld [vmem:[%s28802_s5 + $0x2f0] sm:$0xf0]  ;;  %v14920_v39 = vor.u32 %v18811_v58, %v14919_v30  ;;  %v18779_v30 = vld [vmem:[%s28802_s5 + $0x2d4] sm:$0xf0]  ;;  %v14967_v58 = vld [vmem:[%s28802_s5 + $0x428] sm:$0xf] }
 0x608   :  { %5766 = vmatmul.bf16.vlgmr.msra.gmra.mxu0 %v23443_v8  ;;  %v14804_v0 = vor.u32 %v18780_v63, %v14801_v62  ;;  %v14903_v63 = vld [vmem:[%s28802_s5 + $0x3a8] sm:$0xf] }
 0x609   :  { %5814 = vmatpush.bf16.msrb.mxu0 %v14552_v32  ;;  %15005 = vmatmul.msk.bf16.vlgmr.msrb.gmra.mxu2 %vm4667_vm4, %v23630_v28  ;;  %v14504_v32 = vor.u32 %v18707_v41, %v14503_v36  ;;  %v18792_v36 = vld [vmem:[%s28802_s5 + $0x344] sm:$0xf]  ;;  %v14849_v41 = vld [vmem:[%s28802_s5 + $0x350] sm:$0xf0] }
 0x60a   :  { %5786 = vmatpush.bf16.msra.mxu2 %v14932_v13  ;;  %5720 = vmatpush.bf16.msrb.mxu1 %v14864_v60  ;;  %v23670_v13 = vadd.f32 %v4708_v23, %v4695_v24  ;;  %v14488_v60 = vor.u32 %v18703_v34, %v14487_v51  ;;  %v18699_v23 = vld [vmem:[%s28802_s5 + $0x54] sm:$0xf0]  ;;  %v14852_v24 = vor.u32 %v18792_v36, %v14849_v41  ;;  %v14833_v51 = vld [vmem:[%s28802_s5 + $0x330] sm:$0xf0]  ;;  %v4764_v34 = vpop.f32.mrf.mxu0 }
 0x60b   :  { %5751 = vmatpush.bf16.msrb.mxu3 %v14436_v20  ;;  %v18815_v20 = vld [vmem:[%s28802_s5 + $0x3f4] sm:$0xf0] }
 0x60c   :  { %v14936_v46 = vor.u32 %v18815_v20, %v14935_v15  ;;  %v14983_v20 = vld [vmem:[%s28802_s5 + $0x448] sm:$0xf]  ;;  %v18803_v36 = vld [vmem:[%s28802_s5 + $0x394] sm:$0xf0] }
 0x60d   :  { %5815 = vmatpush.bf16.msrb.mxu0 %v14536_v35  ;;  %v18796_v35 = vld [vmem:[%s28802_s5 + $0x364] sm:$0xf] }
 0x60e   :  { %5787 = vmatpush.bf16.msra.mxu2 %v14916_v44  ;;  %5721 = vmatpush.bf16.msrb.mxu1 %v14848_v22  ;;  %v23699_v44 = vpop.f32.mrf.mxu3  ;;  %v14868_v14 = vor.u32 %v18796_v35, %v14865_v25  ;;  %v14472_v22 = vor.u32 %v18699_v23, %v14471_v52  ;;  %v18807_v25 = vld [vmem:[%s28802_s5 + $0x3b4] sm:$0xf0]  ;;  %v18784_v52 = vld [vmem:[%s28802_s5 + $0x304] sm:$0xf]  ;;  %v14817_v23 = vld [vmem:[%s28802_s5 + $0x310] sm:$0xf0] }
 0x60f   :  { %5804 = vmatpush.bf16.msra.mxu3 %v14996_v10  ;;  %v14785_v10 = vld [vmem:[%s28802_s5 + $0x2d0] sm:$0xf0]  ;;  %v14904_v29 = vor.u32 %v18807_v25, %v14903_v63  ;;  %v14855_v63 = vld [vmem:[%s28802_s5 + $0x348] sm:$0xf]  ;;  %v18795_v25 = vld [vmem:[%s28802_s5 + $0x354] sm:$0xf0] }
 0x610   :  { %5752 = vmatmul.bf16.vlgmr.msrb.gmra.mxu3 %v23514_v18 }
 0x611   :  { %5816 = vmatpush.bf16.msrb.mxu0 %v14520_v31  ;;  %v18776_v31 = vld [vmem:[%s28802_s5 + $0x2c4] sm:$0xf] }
 0x612   :  { %5788 = vmatpush.bf16.msra.mxu2 %v14900_v5  ;;  %5722 = vmatpush.bf16.msrb.mxu1 %v14832_v7  ;;  %v23733_v5 = vpack.c.bf16 %v22687_v57, %v22653_v56  ;;  %v14788_v48 = vor.u32 %v18776_v31, %v14785_v10  ;;  %v14769_v56 = vld [vmem:[%s28802_s5 + $0x2b0] sm:$0xf0]  ;;  %v14456_v57 = vor.u32 %v18695_v54, %v14455_v59  ;;  %v18691_v7 = vld [vmem:[%s28802_s5 + $0x14] sm:$0xf0]  ;;  %v23812_v54 = vpop.f32.mrf.mxu2 }
 0x613   :  { %5805 = vmatpush.bf16.msra.mxu3 %v14980_v37  ;;  %v14439_v37 = vld [vmem:[%s28802_s5 + $0x8] sm:$0xf]  ;;  %v18827_v31 = vld [vmem:[%s28802_s5 + $0x454] sm:$0xf0]  ;;  %v14820_v10 = vor.u32 %v18784_v52, %v14817_v23  ;;  %v14737_v59 = vld [vmem:[%s28802_s5 + $0x270] sm:$0xf0] }
 0x614   :  { %v18756_v52 = vld [vmem:[%s28802_s5 + $0x224] sm:$0xf]  ;;  %v14705_v23 = vld [vmem:[%s28802_s5 + $0x230] sm:$0xf0] }
 0x615   :  { %5817 = vmatpush.bf16.msrb.mxu0 %v14504_v32  ;;  %v18788_v32 = vld [vmem:[%s28802_s5 + $0x324] sm:$0xf] }
 0x616   :  { %5789 = vmatpush.bf16.msra.mxu2 %v14884_v19  ;;  %5723 = vmatpush.bf16.msrb.mxu1 %v14816_v42  ;;  %v4750_v26 = vpop.f32.mrf.mxu3  ;;  %v14772_v19 = vor.u32 %v18772_v27, %v14769_v56  ;;  %v14836_v35 = vor.u32 %v18788_v32, %v14833_v51  ;;  %v14440_v42 = vor.u32 %v18691_v7, %v14439_v37  ;;  %v18823_v27 = vld [vmem:[%s28802_s5 + $0x434] sm:$0xf0]  ;;  %v18760_v37 = vld [vmem:[%s28802_s5 + $0x244] sm:$0xf]  ;;  %v14721_v7 = vld [vmem:[%s28802_s5 + $0x250] sm:$0xf0] }
 0x617   :  { %5806 = vmatpush.bf16.msra.mxu3 %v14964_v4  ;;  %v23769_v62 = vadd.f32 %v4764_v34, %v4750_v26  ;;  %v14753_v4 = vld [vmem:[%s28802_s5 + $0x290] sm:$0xf0]  ;;  %v18799_v32 = vld [vmem:[%s28802_s5 + $0x374] sm:$0xf0]  ;;  %v14968_v34 = vor.u32 %v18823_v27, %v14967_v58  ;;  %v14775_v26 = vld [vmem:[%s28802_s5 + $0x2a8] sm:$0xf] }
 0x618   :  { %v18767_v58 = vld [vmem:[%s28802_s5 + $0x274] sm:$0xf0] }
 0x619   :  { %5818 = vmatpush.bf16.msrb.mxu0 %v14488_v60  ;;  %5724 = vmatmul.bf16.vlgmr.msrb.gmra.mxu1 %v23733_v5  ;;  %v18768_v60 = vld [vmem:[%s28802_s5 + $0x284] sm:$0xf] }
 0x61a   :  { %5772 = vmatpush.bf16.msra.mxu1 %v14804_v0  ;;  %5790 = vmatpush.bf16.msra.mxu2 %v14868_v14  ;;  %v15000_v0 = vor.u32 %v18831_v33, %v14999_v6  ;;  %v14807_v14 = vld [vmem:[%s28802_s5 + $0x2e8] sm:$0xf]  ;;  %v14756_v15 = vor.u32 %v18768_v60, %v14753_v4  ;;  %v18819_v33 = vld [vmem:[%s28802_s5 + $0x414] sm:$0xf0]  ;;  %v18813_v60 = vld [vmem:[%s28802_s5 + $0x3ec] sm:$0xf] }
 0x61b   :  { %5807 = vmatpush.bf16.msra.mxu3 %v14948_v61  ;;  %v14808_v41 = vor.u32 %v18783_v2, %v14807_v14  ;;  %v18764_v61 = vld [vmem:[%s28802_s5 + $0x264] sm:$0xf]  ;;  %v14951_v6 = vld [vmem:[%s28802_s5 + $0x408] sm:$0xf]  ;;  %v14937_v4 = vld [vmem:[%s28802_s5 + $0x3f8] sm:$0xf0] }
 0x61c   :  { %v14740_v56 = vor.u32 %v18764_v61, %v14737_v59  ;;  %v14952_v14 = vor.u32 %v18819_v33, %v14951_v6  ;;  %v14759_v2 = vld [vmem:[%s28802_s5 + $0x288] sm:$0xf]  ;;  %v18752_v59 = vld [vmem:[%s28802_s5 + $0x204] sm:$0xf]  ;;  %v14809_v6 = vld [vmem:[%s28802_s5 + $0x2f8] sm:$0xf0] }
 0x61d   :  { %5819 = vmatpush.bf16.msrb.mxu0 %v14472_v22  ;;  %v14887_v22 = vld [vmem:[%s28802_s5 + $0x388] sm:$0xf] }
 0x61e   :  { %5773 = vmatpush.bf16.msra.mxu1 %v14788_v48  ;;  %5791 = vmatpush.bf16.msra.mxu2 %v14852_v24  ;;  %v14791_v48 = vld [vmem:[%s28802_s5 + $0x2c8] sm:$0xf]  ;;  %v14888_v24 = vor.u32 %v18803_v36, %v14887_v22  ;;  %v18791_v22 = vld [vmem:[%s28802_s5 + $0x334] sm:$0xf0]  ;;  %v18809_v36 = vld [vmem:[%s28802_s5 + $0x3cc] sm:$0xf] }
 0x61f   :  { %5856 = vmatpush.bf16.msrb.mxu3 %v14936_v46  ;;  %v14984_v46 = vor.u32 %v18827_v31, %v14983_v20  ;;  %v14792_v51 = vor.u32 %v18779_v30, %v14791_v48  ;;  %v14940_v20 = vor.u32 %v18813_v60, %v14937_v4  ;;  %v14839_v31 = vld [vmem:[%s28802_s5 + $0x328] sm:$0xf]  ;;  %v18751_v30 = vld [vmem:[%s28802_s5 + $0x1f4] sm:$0xf0] }
 0x620   :  { %15006 = vmatmul.msk.bf16.vlgmr.msra.gmra.mxu3 %vm4667_vm4, %v23630_v28  ;;  %v14679_v48 = vld [vmem:[%s28802_s5 + $0x1e8] sm:$0xf] }
 0x621   :  { %5820 = vmatpush.bf16.msrb.mxu0 %v14456_v57  ;;  %v14871_v57 = vld [vmem:[%s28802_s5 + $0x368] sm:$0xf] }
 0x622   :  { %5774 = vmatpush.bf16.msra.mxu1 %v14772_v19  ;;  %5792 = vmatpush.bf16.msra.mxu2 %v14836_v35  ;;  %v14872_v19 = vor.u32 %v18799_v32, %v14871_v57  ;;  %v14724_v35 = vor.u32 %v18760_v37, %v14721_v7  ;;  %v14823_v32 = vld [vmem:[%s28802_s5 + $0x308] sm:$0xf]  ;;  %v18787_v7 = vld [vmem:[%s28802_s5 + $0x314] sm:$0xf0] }
 0x623   :  { %5857 = vmatpush.bf16.msrb.mxu3 %v14920_v39  ;;  %v18775_v39 = vld [vmem:[%s28802_s5 + $0x2b4] sm:$0xf0]  ;;  %v14663_v33 = vld [vmem:[%s28802_s5 + $0x1c8] sm:$0xf]  ;;  %v14824_v4 = vor.u32 %v18787_v7, %v14823_v32 }
 0x624   :  { %v14631_v32 = vld [vmem:[%s28802_s5 + $0x188] sm:$0xf]  ;;  %v18755_v7 = vld [vmem:[%s28802_s5 + $0x214] sm:$0xf0] }
 0x625   :  { %5821 = vmatpush.bf16.msrb.mxu0 %v14440_v42  ;;  %v14776_v42 = vor.u32 %v18775_v39, %v14775_v26  ;;  %v4722_v27 = vpop.f32.mrf.mxu1  ;;  %v14905_v26 = vld [vmem:[%s28802_s5 + $0x3b8] sm:$0xf0]  ;;  %v14680_v39 = vor.u32 %v18751_v30, %v14679_v48  ;;  %v18797_v30 = vld [vmem:[%s28802_s5 + $0x36c] sm:$0xf] }
 0x626   :  { %5775 = vmatpush.bf16.msra.mxu1 %v14756_v15  ;;  %5793 = vmatpush.bf16.msra.mxu2 %v14820_v10  ;;  %v14856_v15 = vor.u32 %v18795_v25, %v14855_v63  ;;  %v14708_v10 = vor.u32 %v18756_v52, %v14705_v23  ;;  %v18747_v63 = vld [vmem:[%s28802_s5 + $0x1d4] sm:$0xf0] }
 0x627   :  { %5858 = vmatpush.bf16.msrb.mxu3 %v14904_v29  ;;  %v18771_v29 = vld [vmem:[%s28802_s5 + $0x294] sm:$0xf0] }
 0x628   :  { %5822 = vmatmul.bf16.vlgmr.msrb.gmra.mxu0 %v23514_v18  ;;  %v14760_v61 = vor.u32 %v18771_v29, %v14759_v2  ;;  %v18763_v25 = vld [vmem:[%s28802_s5 + $0x254] sm:$0xf0]  ;;  %v14664_v2 = vor.u32 %v18747_v63, %v14663_v33  ;;  %v18793_v33 = vld [vmem:[%s28802_s5 + $0x34c] sm:$0xf]  ;;  %v14857_v63 = vld [vmem:[%s28802_s5 + $0x358] sm:$0xf0] }
 0x629   :  { %5874 = vmatpush.bf16.msra.mxu0 %v15000_v0  ;;  %5794 = vmatmul.bf16.vlgmr.msra.gmra.mxu2 %v23733_v5  ;;  %v4736_v0 = vpop.f32.mrf.mxu2 }
 0x62a   :  { %5842 = vmatpush.bf16.msrb.mxu2 %v14808_v41  ;;  %5776 = vmatpush.bf16.msra.mxu1 %v14740_v56  ;;  %v14921_v41 = vld [vmem:[%s28802_s5 + $0x3d8] sm:$0xf0]  ;;  %v14840_v56 = vor.u32 %v18791_v22, %v14839_v31  ;;  %v14647_v31 = vld [vmem:[%s28802_s5 + $0x1a8] sm:$0xf]  ;;  %v18743_v22 = vld [vmem:[%s28802_s5 + $0x1b4] sm:$0xf0] }
 0x62b   :  { %5859 = vmatpush.bf16.msrb.mxu3 %v14888_v24  ;;  %v14743_v24 = vld [vmem:[%s28802_s5 + $0x268] sm:$0xf]  ;;  %v14924_v57 = vor.u32 %v18809_v36, %v14921_v41  ;;  %v18759_v41 = vld [vmem:[%s28802_s5 + $0x234] sm:$0xf0] }
 0x62c   :  { %v14711_v36 = vld [vmem:[%s28802_s5 + $0x228] sm:$0xf] }
 0x62d   :  { %5875 = vmatpush.bf16.msra.mxu0 %v14984_v46  ;;  %v14689_v46 = vld [vmem:[%s28802_s5 + $0x210] sm:$0xf0] }
 0x62e   :  { %5843 = vmatpush.bf16.msrb.mxu2 %v14792_v51  ;;  %5777 = vmatpush.bf16.msra.mxu1 %v14724_v35  ;;  %v4723_v51 = vadd.f32 %v4722_v27, %v23670_v13  ;;  %v14692_v37 = vor.u32 %v18752_v59, %v14689_v46  ;;  %v18781_v13 = vld [vmem:[%s28802_s5 + $0x2ec] sm:$0xf]  ;;  %v14727_v35 = vld [vmem:[%s28802_s5 + $0x248] sm:$0xf]  ;;  %v23972_v59 = vpop.f32.mrf.mxu0  ;;  %v14712_v27 = vor.u32 %v18759_v41, %v14711_v36 }
 0x62f   :  { %5860 = vmatpush.bf16.msrb.mxu3 %v14872_v19  ;;  %v14744_v19 = vor.u32 %v18767_v58, %v14743_v24  ;;  %v14812_v23 = vor.u32 %v18781_v13, %v14809_v6  ;;  %v14728_v29 = vor.u32 %v18763_v25, %v14727_v35  ;;  %v14873_v24 = vld [vmem:[%s28802_s5 + $0x378] sm:$0xf0]  ;;  %v14648_v58 = vor.u32 %v18743_v22, %v14647_v31  ;;  %v18769_v35 = vld [vmem:[%s28802_s5 + $0x28c] sm:$0xf] }
 0x630   :  { %v23937_v60 = vadd.f32 %v4736_v0, %v4723_v51  ;;  %v14889_v0 = vld [vmem:[%s28802_s5 + $0x398] sm:$0xf0]  ;;  %v18739_v51 = vld [vmem:[%s28802_s5 + $0x194] sm:$0xf0]  ;;  %v14860_v31 = vor.u32 %v18793_v33, %v14857_v63  ;;  %v18789_v41 = vld [vmem:[%s28802_s5 + $0x32c] sm:$0xf] }
 0x631   :  { %5876 = vmatpush.bf16.msra.mxu0 %v14968_v34  ;;  %v18805_v34 = vld [vmem:[%s28802_s5 + $0x3ac] sm:$0xf]  ;;  %v14632_v13 = vor.u32 %v18739_v51, %v14631_v32  ;;  %v14649_v32 = vld [vmem:[%s28802_s5 + $0x1b8] sm:$0xf0]  ;;  %v14583_v33 = vld [vmem:[%s28802_s5 + $0x128] sm:$0xf] }
 0x632   :  { %5844 = vmatpush.bf16.msrb.mxu2 %v14776_v42  ;;  %5778 = vmatpush.bf16.msra.mxu1 %v14708_v10  ;;  %v23939_v42 = vpop.f32.mrf.mxu2  ;;  %v14908_v52 = vor.u32 %v18805_v34, %v14905_v26  ;;  %v23958_v10 = vpop.f32.mrf.mxu3  ;;  %v18749_v34 = vld [vmem:[%s28802_s5 + $0x1ec] sm:$0xf]  ;;  %v14681_v26 = vld [vmem:[%s28802_s5 + $0x1f8] sm:$0xf0] }
 0x633   :  { %5861 = vmatpush.bf16.msrb.mxu3 %v14856_v15  ;;  %v18777_v15 = vld [vmem:[%s28802_s5 + $0x2cc] sm:$0xf] }
 0x635   :  { %5877 = vmatpush.bf16.msra.mxu0 %v14952_v14  ;;  %v18801_v14 = vld [vmem:[%s28802_s5 + $0x38c] sm:$0xf] }
 0x636   :  { %5845 = vmatpush.bf16.msrb.mxu2 %v14760_v61  ;;  %5779 = vmatpush.bf16.msra.mxu1 %v14692_v37  ;;  %v23970_v61 = vpop.f32.mrf.mxu1  ;;  %v14892_v46 = vor.u32 %v18801_v14, %v14889_v0  ;;  %v14695_v37 = vld [vmem:[%s28802_s5 + $0x208] sm:$0xf]  ;;  %v18735_v14 = vld [vmem:[%s28802_s5 + $0x174] sm:$0xf0] }
 0x637   :  { %5862 = vmatpush.bf16.msrb.mxu3 %v14840_v56  ;;  %v18773_v56 = vld [vmem:[%s28802_s5 + $0x2ac] sm:$0xf]  ;;  %v14696_v6 = vor.u32 %v18755_v7, %v14695_v37 }
 0x638   :  { %15007 = vmatmul.msk.bf16.vlgmr.msra.gmra.mxu0 %vm4667_vm4, %v23630_v28 }
 0x639   :  { %5926 = vmatpush.bf16.msrb.mxu0 %v14940_v20  ;;  %v14793_v20 = vld [vmem:[%s28802_s5 + $0x2d8] sm:$0xf0]  ;;  %5780 = vmatmul.bf16.vlgmr.msra.gmra.mxu1 %v23383_v11 }
 0x63a   :  { %5828 = vmatpush.bf16.msrb.mxu1 %v14680_v39  ;;  %5846 = vmatpush.bf16.msrb.mxu2 %v14744_v19  ;;  %v14796_v48 = vor.u32 %v18777_v15, %v14793_v20  ;;  %v14876_v39 = vor.u32 %v18797_v30, %v14873_v24  ;;  %v4792_v25 = vpop.f32.mrf.mxu2  ;;  %v4806_v15 = vpop.f32.mrf.mxu3 }
 0x63b   :  { %5863 = vmatpush.bf16.msrb.mxu3 %v14824_v4  ;;  %v14684_v4 = vor.u32 %v18749_v34, %v14681_v26  ;;  %v24039_v30 = vpop.f32.mrf.mxu0  ;;  %v18785_v26 = vld [vmem:[%s28802_s5 + $0x30c] sm:$0xf] }
 0x63d   :  { %5927 = vmatpush.bf16.msrb.mxu0 %v14924_v57  ;;  %v14777_v57 = vld [vmem:[%s28802_s5 + $0x2b8] sm:$0xf0] }
 0x63e   :  { %5829 = vmatpush.bf16.msrb.mxu1 %v14664_v2  ;;  %5847 = vmatpush.bf16.msrb.mxu2 %v14728_v29  ;;  %v14780_v19 = vor.u32 %v18773_v56, %v14777_v57  ;;  %v4778_v0 = vpop.f32.mrf.mxu1  ;;  %v18745_v2 = vld [vmem:[%s28802_s5 + $0x1cc] sm:$0xf]  ;;  %v14665_v29 = vld [vmem:[%s28802_s5 + $0x1d8] sm:$0xf0]  ;;  %v18731_v56 = vld [vmem:[%s28802_s5 + $0x154] sm:$0xf0] }
 0x63f   :  { %5912 = vmatpush.bf16.msra.mxu3 %v14812_v23  ;;  %v14615_v23 = vld [vmem:[%s28802_s5 + $0x168] sm:$0xf]  ;;  %v4779_v20 = vadd.f32 %v4778_v0, %v23769_v62  ;;  %v14668_v24 = vor.u32 %v18745_v2, %v14665_v29  ;;  %v18741_v57 = vld [vmem:[%s28802_s5 + $0x1ac] sm:$0xf] }
 0x640   :  { %5864 = vmatmul.bf16.vlgmr.msrb.gmra.mxu3 %v23733_v5  ;;  %v14616_v36 = vor.u32 %v18735_v14, %v14615_v23 }
 0x641   :  { %5928 = vmatpush.bf16.msrb.mxu0 %v14908_v52  ;;  %v14761_v52 = vld [vmem:[%s28802_s5 + $0x298] sm:$0xf0]  ;;  %v4793_v62 = vadd.f32 %v4792_v25, %v4779_v20  ;;  %v18737_v25 = vld [vmem:[%s28802_s5 + $0x18c] sm:$0xf] }
 0x642   :  { %5830 = vmatpush.bf16.msrb.mxu1 %v14648_v58  ;;  %5848 = vmatpush.bf16.msrb.mxu2 %v14712_v27  ;;  %v14764_v22 = vor.u32 %v18769_v35, %v14761_v52  ;;  %v14745_v58 = vld [vmem:[%s28802_s5 + $0x278] sm:$0xf0]  ;;  %v14599_v27 = vld [vmem:[%s28802_s5 + $0x148] sm:$0xf]  ;;  %v18727_v35 = vld [vmem:[%s28802_s5 + $0x134] sm:$0xf0]  ;;  %v24085_v52 = vpop.f32.mrf.mxu2  ;;  %v24087_v0 = vpop.f32.mrf.mxu3 }
 0x643   :  { %5913 = vmatpush.bf16.msra.mxu3 %v14796_v48  ;;  %v18765_v48 = vld [vmem:[%s28802_s5 + $0x26c] sm:$0xf]  ;;  %v24057_v37 = vadd.f32 %v4806_v15, %v4793_v62  ;;  %v14600_v34 = vor.u32 %v18731_v56, %v14599_v27  ;;  %28915 = vst [vmem:[#allocation15_spill] sm:$0xff] %v24087_v0  ;;  %v14584_v2 = vor.u32 %v18727_v35, %v14583_v33  ;;  %v14713_v20 = vld [vmem:[%s28802_s5 + $0x238] sm:$0xf0] }
 0x644   :  { %v14748_v7 = vor.u32 %v18765_v48, %v14745_v58  ;;  %v18757_v15 = vld [vmem:[%s28802_s5 + $0x22c] sm:$0xf]  ;;  %v14553_v62 = vld [vmem:[%s28802_s5 + $0xf8] sm:$0xf0] }
 0x645   :  { %5929 = vmatpush.bf16.msrb.mxu0 %v14892_v46  ;;  %v14841_v46 = vld [vmem:[%s28802_s5 + $0x338] sm:$0xf0]  ;;  %v18717_v48 = vld [vmem:[%s28802_s5 + $0xec] sm:$0xf] }
 0x646   :  { %5831 = vmatpush.bf16.msrb.mxu1 %v14632_v13  ;;  %5849 = vmatpush.bf16.msrb.mxu2 %v14696_v6  ;;  %v14844_v51 = vor.u32 %v18789_v41, %v14841_v46  ;;  %v18761_v13 = vld [vmem:[%s28802_s5 + $0x24c] sm:$0xf]  ;;  %v14729_v6 = vld [vmem:[%s28802_s5 + $0x258] sm:$0xf0]  ;;  %v24074_v63 = vpop.f32.mrf.mxu1  ;;  %v24107_v46 = vpop.f32.mrf.mxu0 }
 0x647   :  { %5914 = vmatpush.bf16.msra.mxu3 %v14780_v19  ;;  %v14652_v19 = vor.u32 %v18741_v57, %v14649_v32  ;;  %v14732_v14 = vor.u32 %v18761_v13, %v14729_v6  ;;  %v14617_v41 = vld [vmem:[%s28802_s5 + $0x178] sm:$0xf0]  ;;  %28916 = vst [vmem:[#allocation29_spill] sm:$0xff] %v24107_v46  ;;  %v18753_v56 = vld [vmem:[%s28802_s5 + $0x20c] sm:$0xf]  ;;  %v14556_v32 = vor.u32 %v18717_v48, %v14553_v62 }
 0x648   :  { %v14697_v57 = vld [vmem:[%s28802_s5 + $0x218] sm:$0xf0]  ;;  %v15013_v62 = vld [vmem:[%s28801_s4 + $0x10] sm:$0xf] }
 0x649   :  { %5930 = vmatpush.bf16.msrb.mxu0 %v14876_v39  ;;  %5850 = vmatmul.bf16.vlgmr.msrb.gmra.mxu2 %v23383_v11  ;;  %v14825_v39 = vld [vmem:[%s28802_s5 + $0x318] sm:$0xf0] }
 0x64a   :  { %5898 = vmatpush.bf16.msra.mxu2 %v14684_v4  ;;  %5832 = vmatpush.bf16.msrb.mxu1 %v14616_v36  ;;  %v14633_v4 = vld [vmem:[%s28802_s5 + $0x198] sm:$0xf0]  ;;  %v14828_v23 = vor.u32 %v18785_v26, %v14825_v39  ;;  %v18733_v36 = vld [vmem:[%s28802_s5 + $0x16c] sm:$0xf]  ;;  %v4848_v13 = vpop.f32.mrf.mxu2 }
 0x64b   :  { %5915 = vmatpush.bf16.msra.mxu3 %v14764_v22  ;;  %v14636_v29 = vor.u32 %v18737_v25, %v14633_v4  ;;  %v18723_v22 = vld [vmem:[%s28802_s5 + $0x114] sm:$0xf0]  ;;  %v14620_v27 = vor.u32 %v18733_v36, %v14617_v41  ;;  %v18729_v26 = vld [vmem:[%s28802_s5 + $0x14c] sm:$0xf]  ;;  %v14601_v39 = vld [vmem:[%s28802_s5 + $0x158] sm:$0xf0]  ;;  %v4862_v4 = vpop.f32.mrf.mxu3 }
 0x64c   :  { %v14604_v35 = vor.u32 %v18729_v26, %v14601_v39  ;;  %v18709_v25 = vld [vmem:[%s28802_s5 + $0xac] sm:$0xf]  ;;  %v14505_v36 = vld [vmem:[%s28802_s5 + $0x98] sm:$0xf0] }
 0x64d   :  { %5931 = vmatpush.bf16.msrb.mxu0 %v14860_v31  ;;  %v14567_v31 = vld [vmem:[%s28802_s5 + $0x108] sm:$0xf]  ;;  %v18721_v41 = vld [vmem:[%s28802_s5 + $0x10c] sm:$0xf]  ;;  %v14569_v48 = vld [vmem:[%s28802_s5 + $0x118] sm:$0xf0] }
 0x64e   :  { %5899 = vmatpush.bf16.msra.mxu2 %v14668_v24  ;;  %5833 = vmatpush.bf16.msrb.mxu1 %v14600_v34  ;;  %v14716_v24 = vor.u32 %v18757_v15, %v14713_v20  ;;  %v14568_v58 = vor.u32 %v18723_v22, %v14567_v31  ;;  %v14537_v34 = vld [vmem:[%s28802_s5 + $0xd8] sm:$0xf0]  ;;  %v18705_v31 = vld [vmem:[%s28802_s5 + $0x8c] sm:$0xf] }
 0x64f   :  { %5916 = vmatpush.bf16.msra.mxu3 %v14748_v7  ;;  %v4834_v7 = vpop.f32.mrf.mxu1 }
 0x651   :  { %5932 = vmatpush.bf16.msrb.mxu0 %v14844_v51  ;;  %v18713_v51 = vld [vmem:[%s28802_s5 + $0xcc] sm:$0xf] }
 0x652   :  { %5900 = vmatpush.bf16.msra.mxu2 %v14652_v19  ;;  %5834 = vmatpush.bf16.msrb.mxu1 %v14584_v2  ;;  %v14700_v19 = vor.u32 %v18753_v56, %v14697_v57  ;;  %v14540_v33 = vor.u32 %v18713_v51, %v14537_v34  ;;  %v18701_v56 = vld [vmem:[%s28802_s5 + $0x6c] sm:$0xf]  ;;  %v14489_v57 = vld [vmem:[%s28802_s5 + $0x78] sm:$0xf0]  ;;  %v24195_v39 = vpop.f32.mrf.mxu2 }
 0x653   :  { %5917 = vmatpush.bf16.msra.mxu3 %v14732_v14  ;;  %v14585_v14 = vld [vmem:[%s28802_s5 + $0x138] sm:$0xf0]  ;;  %v18697_v51 = vld [vmem:[%s28802_s5 + $0x4c] sm:$0xf]  ;;  %28918 = vst [vmem:[#allocation16_spill] sm:$0xff] %v24195_v39 }
 0x655   :  { %5933 = vmatpush.bf16.msrb.mxu0 %v14828_v23  ;;  %v14521_v23 = vld [vmem:[%s28802_s5 + $0xb8] sm:$0xf0] }
 0x656   :  { %5901 = vmatpush.bf16.msra.mxu2 %v14636_v29  ;;  %5835 = vmatpush.bf16.msrb.mxu1 %v14568_v58  ;;  %v4876_v29 = vpop.f32.mrf.mxu0  ;;  %v14524_v15 = vor.u32 %v18709_v25, %v14521_v23  ;;  %v14572_v58 = vor.u32 %v18721_v41, %v14569_v48  ;;  %v18829_v25 = vld [vmem:[%s28802_s5 + $0x46c] sm:$0xf] }
 0x657   :  { %5918 = vmatpush.bf16.msra.mxu3 %v14716_v24  ;;  %v14508_v24 = vor.u32 %v18705_v31, %v14505_v36  ;;  %v14985_v31 = vld [vmem:[%s28802_s5 + $0x458] sm:$0xf0] }
 0x658   :  { %5934 = vmatmul.bf16.vlgmr.msrb.gmra.mxu0 %v23733_v5  ;;  %v4835_v5 = vadd.f32 %v4834_v7, %v24039_v30  ;;  %v18725_v30 = vld [vmem:[%s28802_s5 + $0x12c] sm:$0xf]  ;;  %v14473_v7 = vld [vmem:[%s28802_s5 + $0x58] sm:$0xf0] }
 0x659   :  { %5998 = vmatpush.bf16.msra.mxu0 %v22288_v50  ;;  %5836 = vmatmul.bf16.vlgmr.msrb.gmra.mxu1 %v23443_v8  ;;  %v14588_v20 = vor.u32 %v18725_v30, %v14585_v14  ;;  %v14476_v26 = vor.u32 %v18697_v51, %v14473_v7  ;;  %v14953_v51 = vld [vmem:[%s28802_s5 + $0x418] sm:$0xf0] }
 0x65a   :  { %5902 = vmatpush.bf16.msra.mxu2 %v14620_v27  ;;  %v4849_v6 = vadd.f32 %v4848_v13, %v4835_v5  ;;  %5884 = vmatpush.bf16.msra.mxu1 %v14556_v32  ;;  %v14492_v32 = vor.u32 %v18701_v56, %v14489_v57  ;;  %v24197_v5 = vpop.f32.mrf.mxu1  ;;  %v14457_v13 = vld [vmem:[%s28802_s5 + $0x38] sm:$0xf0] }
 0x65b   :  { %5919 = vmatpush.bf16.msra.mxu3 %v14700_v19  ;;  %28919 = vst [vmem:[#allocation5_spill] sm:$0xff] %v24197_v5  ;;  %v18693_v19 = vld [vmem:[%s28802_s5 + $0x2c] sm:$0xf] }
 0x65c   :  { %v4863_v2 = vadd.f32 %v4862_v4, %v4849_v6  ;;  %v24206_v6 = vpop.f32.mrf.mxu3  ;;  %v15001_v4 = vld [vmem:[%s28802_s5 + $0x478] sm:$0xf0]  ;;  %v4904_v14 = vpop.f32.mrf.mxu2 }
 0x65d   :  { %5999 = vmatpush.bf16.msra.mxu0 %v22275_v16  ;;  %28920 = vst [vmem:[#allocation17_spill] sm:$0xff] %v24206_v6 }
 0x65e   :  { %5885 = vmatpush.bf16.msra.mxu1 %v14540_v33  ;;  %5903 = vmatpush.bf16.msra.mxu2 %v14604_v35  ;;  %v24155_v22 = vadd.f32 %v4876_v29, %v4863_v2  ;;  %v24193_v34 = vpop.f32.mrf.mxu0  ;;  %v18689_v33 = vld [vmem:[%s28802_s5 + $0xc] sm:$0xf]  ;;  %v14441_v35 = vld [vmem:[%s28802_s5 + $0x18] sm:$0xf0]  ;;  %v15004_v29 = vor.u32 %v18829_v25, %v15001_v4 }
 0x65f   :  { %5984 = vmatpush.bf16.msrb.mxu3 %v22183_v40  ;;  %28917 = vst [vmem:[#allocation30_spill] sm:$0xff] %v24193_v34  ;;  %v14444_v30 = vor.u32 %v18689_v33, %v14441_v35 }
 0x660   :  { %5920 = vmatmul.bf16.vlgmr.msra.gmra.mxu3 %v23383_v11  ;;  %v18977_v11 = vld [vmem:[%s28801_s4 + $0x10] sm:$0x70] }
 0x661   :  { %6000 = vmatpush.bf16.msra.mxu0 %v22234_v49  ;;  %v24174_v27 = vor.u32 %v18977_v11, %v15013_v62  ;;  %v18821_v62 = vld [vmem:[%s28802_s5 + $0x42c] sm:$0xf]  ;;  %v14969_v11 = vld [vmem:[%s28802_s5 + $0x438] sm:$0xf0] }
 0x662   :  { %5886 = vmatpush.bf16.msra.mxu1 %v14524_v15  ;;  %5904 = vmatpush.bf16.msra.mxu2 %v14588_v20  ;;  %v18825_v20 = vld [vmem:[%s28802_s5 + $0x44c] sm:$0xf]  ;;  %v14972_v56 = vor.u32 %v18821_v62, %v14969_v11  ;;  %v15502_v62 = vld [vmem:[%s28802_s5 + $0xba0] sm:$0xf]  ;;  %v19064_v11 = vld [vmem:[%s28802_s5 + $0xbac] sm:$0xf0] }
 0x663   :  { %5985 = vmatpush.bf16.msrb.mxu3 %v22173_v3  ;;  %v14988_v48 = vor.u32 %v18825_v20, %v14985_v31 }
 0x664   :  { %v4918_v36 = vpop.f32.mrf.mxu3  ;;  %v24251_v7 = vpop.f32.mrf.mxu2 }
 0x665   :  { %28923 = vst [vmem:[#allocation18_spill] sm:$0xff] %v24251_v7  ;;  %v18982_v7 = vld [vmem:[%s28802_s5 + $0x924] sm:$0xf] }
 0x666   :  { %5887 = vmatpush.bf16.msra.mxu1 %v14508_v24  ;;  %5905 = vmatpush.bf16.msra.mxu2 %v14572_v58  ;;  %v4932_v23 = vpop.f32.mrf.mxu0  ;;  %v4890_v2 = vpop.f32.mrf.mxu1 }
 0x667   :  { %5986 = vmatpush.bf16.msrb.mxu3 %v22151_v43  ;;  %v4905_v15 = vadd.f32 %v4904_v14, %v4890_v2  ;;  %v19072_v2 = vld [vmem:[%s28802_s5 + $0xbec] sm:$0xf0] }
 0x668   :  { %15017 = vmatmul.msk.bf16.vlgmr.msra.gmra.mxu0 %vm3477_vm3, %v24174_v27 }
 0x669   :  { %5906 = vmatmul.bf16.vlgmr.msra.gmra.mxu2 %v23443_v8  ;;  %v14460_v8 = vor.u32 %v18693_v19, %v14457_v13  ;;  %v4919_v41 = vadd.f32 %v4918_v36, %v4905_v15  ;;  %v19068_v15 = vld [vmem:[%s28802_s5 + $0xbcc] sm:$0xf0] }
 0x66a   :  { %5970 = vmatpush.bf16.msrb.mxu2 %v22192_v38  ;;  %5888 = vmatpush.bf16.msra.mxu1 %v14492_v32  ;;  %v18817_v32 = vld [vmem:[%s28802_s5 + $0x40c] sm:$0xf] }
 0x66b   :  { %v4933_v24 = vadd.f32 %v4932_v23, %v4919_v41 }
 0x66e   :  { %5971 = vmatpush.bf16.msrb.mxu2 %v22178_v47  ;;  %5889 = vmatpush.bf16.msra.mxu1 %v14476_v26  ;;  %v24241_v58 = vpop.f32.mrf.mxu1  ;;  %v24243_v57 = vpop.f32.mrf.mxu0 }
 0x66f   :  { %28921 = vst [vmem:[#allocation33_spill] sm:$0xff] %v24241_v58  ;;  %v24253_v26 = vpop.f32.mrf.mxu3  ;;  %v19054_v58 = vld [vmem:[%s28802_s5 + $0xb64] sm:$0xf] }
 0x670   :  { %15016 = vmatmul.msk.bf16.vlgmr.msrb.gmra.mxu3 %vm3477_vm3, %v24174_v27  ;;  %28922 = vst [vmem:[#allocation34_spill] sm:$0xff] %v24243_v57 }
 0x671   :  { %28924 = vst [vmem:[#allocation9_spill] sm:$0xff] %v24253_v26 }
 0x672   :  { %5972 = vmatpush.bf16.msrb.mxu2 %v22161_v9  ;;  %5890 = vmatpush.bf16.msra.mxu1 %v14460_v8 }
 0x676   :  { %6026 = vmatpush.bf16.msra.mxu2 %v22340_v21  ;;  %5891 = vmatpush.bf16.msra.mxu1 %v14444_v30  ;;  %v5711_v13 = vpop.f32.mrf.mxu0 }
 0x677   :  { %v5697_v25 = vpop.f32.mrf.mxu3 }
 0x678   :  { %v4946_v19 = vpop.f32.mrf.mxu1 }
 0x679   :  { %5892 = vmatmul.bf16.vlgmr.msra.gmra.mxu1 %v23514_v18  ;;  %15015 = vmatmul.msk.bf16.vlgmr.msrb.gmra.mxu2 %vm3477_vm3, %v24174_v27  ;;  %v14956_v18 = vor.u32 %v18817_v32, %v14953_v51  ;;  %v24256_v8 = vadd.f32 %v4946_v19, %v4933_v24  ;;  %v19060_v19 = vld [vmem:[%s28802_s5 + $0xb8c] sm:$0xf0] }
 0x67a   :  { %6027 = vmatpush.bf16.msra.mxu2 %v22353_v53  ;;  %5944 = vmatpush.bf16.msrb.mxu1 %v15004_v29 }
 0x67c   :  { %v5683_v33 = vpop.f32.mrf.mxu2 }
 0x67d   :  { %v5684_v35 = vadd.f32 %v5683_v33, %v23937_v60  ;;  %v15534_v60 = vld [vmem:[%s28802_s5 + $0xbe0] sm:$0xf] }
 0x67e   :  { %6028 = vmatpush.bf16.msra.mxu2 %v22363_v17  ;;  %5945 = vmatpush.bf16.msrb.mxu1 %v14988_v48  ;;  %v24265_v30 = vpop.f32.mrf.mxu0  ;;  %v15535_v29 = vor.u32 %v19072_v2, %v15534_v60  ;;  %v15406_v60 = vld [vmem:[%s28802_s5 + $0xae0] sm:$0xf]  ;;  %v19040_v2 = vld [vmem:[%s28802_s5 + $0xaec] sm:$0xf0] }
 0x67f   :  { %v5698_v4 = vadd.f32 %v5697_v25, %v5684_v35  ;;  %v24267_v14 = vpop.f32.mrf.mxu3 }
 0x680   :  { %v24281_v20 = vpop.f32.mrf.mxu1 }
 0x681   :  { %v5712_v23 = vadd.f32 %v5711_v13, %v5698_v4  ;;  %28925 = vst [vmem:[#allocation10_spill] sm:$0xff] %v24281_v20  ;;  %v19056_v4 = vld [vmem:[%s28802_s5 + $0xb6c] sm:$0xf0] }
 0x682   :  { %5946 = vmatpush.bf16.msrb.mxu1 %v14972_v56  ;;  %v15503_v56 = vor.u32 %v19064_v11, %v15502_v62  ;;  %v19036_v62 = vld [vmem:[%s28802_s5 + $0xacc] sm:$0xf0]  ;;  %v15438_v11 = vld [vmem:[%s28802_s5 + $0xb20] sm:$0xf] }
 0x684   :  { %v24283_v31 = vpop.f32.mrf.mxu2 }
 0x686   :  { %5947 = vmatpush.bf16.msrb.mxu1 %v14956_v18  ;;  %v5767_v36 = vpop.f32.mrf.mxu0 }
 0x689   :  { %15008 = vmatmul.msk.bf16.vlgmr.msrb.gmra.mxu1 %vm4667_vm4, %v23630_v28  ;;  %15019 = vmatmul.msk.bf16.vlgmr.msra.gmra.mxu2 %vm3477_vm3, %v24174_v27  ;;  %v15518_v28 = vld [vmem:[%s28802_s5 + $0xbc0] sm:$0xf] }
 0x68a   :  { %6012 = vmatpush.bf16.msra.mxu1 %v22281_v55  ;;  %v15519_v41 = vor.u32 %v19068_v15, %v15518_v28  ;;  %v15454_v28 = vld [vmem:[%s28802_s5 + $0xb40] sm:$0xf]  ;;  %v19052_v15 = vld [vmem:[%s28802_s5 + $0xb4c] sm:$0xf0] }
 0x68c   :  { %v5739_v13 = vpop.f32.mrf.mxu2 }
 0x68e   :  { %6013 = vmatpush.bf16.msra.mxu1 %v22284_v45  ;;  %v24302_v35 = vpop.f32.mrf.mxu0 }
 0x68f   :  { %28926 = vst [vmem:[#allocation8_spill] sm:$0xff] %v24302_v35  ;;  %v16335_v35 = vld [vmem:[%s28802_s5 + $0x10f0] sm:$0xf0] }
 0x692   :  { %6014 = vmatpush.bf16.msra.mxu1 %v22290_v1 }
 0x693   :  { %v5753_v48 = vpop.f32.mrf.mxu3 }
 0x694   :  { %v5754_v24 = vadd.f32 %v5753_v48, %v24057_v37  ;;  %v15470_v37 = vld [vmem:[%s28802_s5 + $0xb60] sm:$0xf] }
 0x695   :  { %v15390_v48 = vld [vmem:[%s28802_s5 + $0xac0] sm:$0xf] }
 0x696   :  { %6936 = vmatpush.bf16.msrb.mxu1 %v15535_v29  ;;  %v5725_v32 = vpop.f32.mrf.mxu1  ;;  %v24294_v51 = vadd.f32 %v5767_v36, %v5754_v24  ;;  %v15407_v29 = vor.u32 %v19040_v2, %v15406_v60  ;;  %v15455_v36 = vor.u32 %v19052_v15, %v15454_v28  ;;  %v15358_v60 = vld [vmem:[%s28802_s5 + $0xa80] sm:$0xf]  ;;  %v19028_v2 = vld [vmem:[%s28802_s5 + $0xa8c] sm:$0xf0] }
 0x697   :  { %v5726_v18 = vadd.f32 %v5725_v32, %v5712_v23  ;;  %v15471_v23 = vor.u32 %v19056_v4, %v15470_v37  ;;  %v19048_v32 = vld [vmem:[%s28802_s5 + $0xb2c] sm:$0xf0]  ;;  %v19038_v37 = vld [vmem:[%s28802_s5 + $0xae4] sm:$0xf]  ;;  %v15359_v28 = vor.u32 %v19028_v2, %v15358_v60  ;;  %v15278_v60 = vld [vmem:[%s28802_s5 + $0x9e0] sm:$0xf] }
 0x698   :  { %6922 = vmatpush.bf16.msrb.mxu0 %v15407_v29  ;;  %v19008_v2 = vld [vmem:[%s28802_s5 + $0x9ec] sm:$0xf0] }
 0x699   :  { %15018 = vmatmul.msk.bf16.vlgmr.msra.gmra.mxu1 %vm3477_vm3, %v24174_v27  ;;  %v15486_v27 = vld [vmem:[%s28802_s5 + $0xb80] sm:$0xf]  ;;  %v24304_v25 = vadd.f32 %v5739_v13, %v5726_v18  ;;  %v15439_v18 = vor.u32 %v19048_v32, %v15438_v11  ;;  %v24379_v32 = vpop.f32.mrf.mxu2 }
 0x69a   :  { %6937 = vmatpush.bf16.msrb.mxu1 %v15519_v41  ;;  %v15487_v33 = vor.u32 %v19060_v19, %v15486_v27  ;;  %v15374_v27 = vld [vmem:[%s28802_s5 + $0xaa0] sm:$0xf]  ;;  %v19032_v19 = vld [vmem:[%s28802_s5 + $0xaac] sm:$0xf0]  ;;  %28928 = vst [vmem:[#allocation25_spill] sm:$0xff] %v24379_v32 }
 0x69b   :  { %v15375_v13 = vor.u32 %v19032_v19, %v15374_v27  ;;  %v19030_v19 = vld [vmem:[%s28802_s5 + $0xaa4] sm:$0xf]  ;;  %v16261_v32 = vld [vmem:[%s28802_s5 + $0x1048] sm:$0xf] }
 0x69e   :  { %6938 = vmatpush.bf16.msrb.mxu1 %v15503_v56  ;;  %v15391_v56 = vor.u32 %v19036_v62, %v15390_v48  ;;  %v24363_v15 = vpop.f32.mrf.mxu1  ;;  %v15342_v48 = vld [vmem:[%s28802_s5 + $0xa60] sm:$0xf]  ;;  %v24374_v62 = vpop.f32.mrf.mxu3 }
 0x69f   :  { %28927 = vst [vmem:[#allocation19_spill] sm:$0xff] %v24374_v62 }
 0x6a0   :  { %6923 = vmatpush.bf16.msrb.mxu0 %v15391_v56  ;;  %v19024_v56 = vld [vmem:[%s28802_s5 + $0xa6c] sm:$0xf0] }
 0x6a2   :  { %6939 = vmatpush.bf16.msrb.mxu1 %v15487_v33  ;;  %v19044_v33 = vld [vmem:[%s28802_s5 + $0xb0c] sm:$0xf0] }
 0x6a4   :  { %6924 = vmatpush.bf16.msrb.mxu0 %v15375_v13  ;;  %v15376_v13 = vld [vmem:[%s28802_s5 + $0xab0] sm:$0xf0] }
 0x6a5   :  { %v5823_v41 = vpop.f32.mrf.mxu0 }
 0x6a6   :  { %6940 = vmatpush.bf16.msrb.mxu1 %v15471_v23  ;;  %v24334_v24 = vadd.f32 %v5823_v41, %v24155_v22  ;;  %v15422_v22 = vld [vmem:[%s28802_s5 + $0xb00] sm:$0xf]  ;;  %v15408_v23 = vld [vmem:[%s28802_s5 + $0xaf0] sm:$0xf0] }
 0x6a7   :  { %v15423_v4 = vor.u32 %v19044_v33, %v15422_v22  ;;  %v15411_v29 = vor.u32 %v19038_v37, %v15408_v23  ;;  %v15392_v41 = vld [vmem:[%s28802_s5 + $0xad0] sm:$0xf0]  ;;  %v15379_v22 = vor.u32 %v19030_v19, %v15376_v13  ;;  %v15326_v33 = vld [vmem:[%s28802_s5 + $0xa40] sm:$0xf]  ;;  %v19020_v37 = vld [vmem:[%s28802_s5 + $0xa4c] sm:$0xf0]  ;;  %v5809_v13 = vpop.f32.mrf.mxu3 }
 0x6a8   :  { %6925 = vmatpush.bf16.msrb.mxu0 %v15359_v28 }
 0x6aa   :  { %6941 = vmatpush.bf16.msrb.mxu1 %v15455_v36  ;;  %v19034_v36 = vld [vmem:[%s28802_s5 + $0xac4] sm:$0xf] }
 0x6ab   :  { %v15395_v11 = vor.u32 %v19034_v36, %v15392_v41  ;;  %v15279_v36 = vor.u32 %v19008_v2, %v15278_v60  ;;  %v15360_v41 = vld [vmem:[%s28802_s5 + $0xa90] sm:$0xf0]  ;;  %v15294_v2 = vld [vmem:[%s28802_s5 + $0xa00] sm:$0xf] }
 0x6ac   :  { %v15344_v60 = vld [vmem:[%s28802_s5 + $0xa70] sm:$0xf0] }
 0x6ad   :  { %v24381_v27 = vpop.f32.mrf.mxu0  ;;  %6908 = vmatpush.bf16.msra.mxu3 %v15279_v36 }
 0x6ae   :  { %6942 = vmatpush.bf16.msrb.mxu1 %v15439_v18  ;;  %v15343_v18 = vor.u32 %v19024_v56, %v15342_v48  ;;  %28929 = vst [vmem:[#allocation37_spill] sm:$0xff] %v24381_v27  ;;  %v15310_v48 = vld [vmem:[%s28802_s5 + $0xa20] sm:$0xf]  ;;  %v5795_v56 = vpop.f32.mrf.mxu2  ;;  %v19114_v27 = vld [vmem:[%s28802_s5 + $0xd44] sm:$0xf] }
 0x6b0   :  { %6926 = vmatpush.bf16.msrb.mxu0 %v15343_v18 }
 0x6b2   :  { %6943 = vmatpush.bf16.msrb.mxu1 %v15423_v4  ;;  %v15327_v4 = vor.u32 %v19020_v37, %v15326_v33  ;;  %v19004_v33 = vld [vmem:[%s28802_s5 + $0x9cc] sm:$0xf0]  ;;  %v19022_v37 = vld [vmem:[%s28802_s5 + $0xa64] sm:$0xf] }
 0x6b3   :  { %v15347_v36 = vor.u32 %v19022_v37, %v15344_v60  ;;  %v15662_v37 = vld [vmem:[%s28802_s5 + $0xce0] sm:$0xf]  ;;  %v19002_v60 = vld [vmem:[%s28802_s5 + $0x9c4] sm:$0xf] }
 0x6b4   :  { %6927 = vmatpush.bf16.msrb.mxu0 %v15327_v4 }
 0x6b6   :  { %6992 = vmatpush.bf16.msra.mxu1 %v15411_v29  ;;  %v5781_v23 = vpop.f32.mrf.mxu1  ;;  %v19026_v29 = vld [vmem:[%s28802_s5 + $0xa84] sm:$0xf] }
 0x6b7   :  { %v5782_v28 = vadd.f32 %v5781_v23, %v24294_v51  ;;  %v15363_v18 = vor.u32 %v19026_v29, %v15360_v41  ;;  %v15262_v51 = vld [vmem:[%s28802_s5 + $0x9c0] sm:$0xf]  ;;  %v19012_v29 = vld [vmem:[%s28802_s5 + $0xa0c] sm:$0xf0] }
 0x6b8   :  { %v15263_v23 = vor.u32 %v19004_v33, %v15262_v51  ;;  %v15295_v41 = vor.u32 %v19012_v29, %v15294_v2  ;;  %v15328_v51 = vld [vmem:[%s28802_s5 + $0xa50] sm:$0xf0] }
 0x6b9   :  { %v15264_v29 = vld [vmem:[%s28802_s5 + $0x9d0] sm:$0xf0] }
 0x6ba   :  { %6993 = vmatpush.bf16.msra.mxu1 %v15395_v11  ;;  %v19016_v11 = vld [vmem:[%s28802_s5 + $0xa2c] sm:$0xf0]  ;;  %6909 = vmatpush.bf16.msra.mxu3 %v15263_v23 }
 0x6bb   :  { %v15311_v19 = vor.u32 %v19016_v11, %v15310_v48  ;;  %v19006_v48 = vld [vmem:[%s28802_s5 + $0x9e4] sm:$0xf]  ;;  %v15280_v11 = vld [vmem:[%s28802_s5 + $0x9f0] sm:$0xf0]  ;;  %v19104_v23 = vld [vmem:[%s28802_s5 + $0xcec] sm:$0xf0] }
 0x6bc   :  { %v15663_v2 = vor.u32 %v19104_v23, %v15662_v37  ;;  %v15248_v23 = vld [vmem:[%s28802_s5 + $0x9b0] sm:$0xf0] }
 0x6bd   :  { %6928 = vmatpush.bf16.msrb.mxu0 %v15311_v19  ;;  %v19000_v19 = vld [vmem:[%s28802_s5 + $0x9ac] sm:$0xf0] }
 0x6be   :  { %6994 = vmatpush.bf16.msra.mxu1 %v15379_v22  ;;  %v5796_v22 = vadd.f32 %v5795_v56, %v5782_v28  ;;  %v24434_v28 = vpop.f32.mrf.mxu0  ;;  %v15283_v56 = vor.u32 %v19006_v48, %v15280_v11  ;;  %v18996_v48 = vld [vmem:[%s28802_s5 + $0x98c] sm:$0xf0]  ;;  %v19014_v11 = vld [vmem:[%s28802_s5 + $0xa24] sm:$0xf]  ;;  %6950 = vmatpush.bf16.msrb.mxu2 %v15663_v2 }
 0x6c0   :  { %v24423_v4 = vadd.f32 %v5809_v13, %v5796_v22  ;;  %v19018_v13 = vld [vmem:[%s28802_s5 + $0xa44] sm:$0xf] }
 0x6c1   :  { %6929 = vmatpush.bf16.msrb.mxu0 %v15295_v41  ;;  %v15331_v33 = vor.u32 %v19018_v13, %v15328_v51  ;;  %v15230_v41 = vld [vmem:[%s28802_s5 + $0x980] sm:$0xf]  ;;  %v19100_v51 = vld [vmem:[%s28802_s5 + $0xccc] sm:$0xf0] }
 0x6c2   :  { %6995 = vmatpush.bf16.msra.mxu1 %v15363_v18  ;;  %v15246_v18 = vld [vmem:[%s28802_s5 + $0x9a0] sm:$0xf] }
 0x6c3   :  { %v15247_v22 = vor.u32 %v19000_v19, %v15246_v18  ;;  %v15231_v18 = vor.u32 %v18996_v48, %v15230_v41  ;;  %v15312_v19 = vld [vmem:[%s28802_s5 + $0xa30] sm:$0xf0]  ;;  %v19010_v41 = vld [vmem:[%s28802_s5 + $0xa04] sm:$0xf] }
 0x6c4   :  { %v15315_v13 = vor.u32 %v19014_v11, %v15312_v19  ;;  %v15296_v11 = vld [vmem:[%s28802_s5 + $0xa10] sm:$0xf0]  ;;  %v15630_v19 = vld [vmem:[%s28802_s5 + $0xca0] sm:$0xf] }
 0x6c5   :  { %6978 = vmatpush.bf16.msra.mxu0 %v15283_v56  ;;  %6910 = vmatpush.bf16.msra.mxu3 %v15247_v22  ;;  %v24475_v56 = vpop.f32.mrf.mxu3  ;;  %v15646_v22 = vld [vmem:[%s28802_s5 + $0xcc0] sm:$0xf] }
 0x6c6   :  { %6996 = vmatpush.bf16.msra.mxu1 %v15347_v36  ;;  %v15267_v36 = vor.u32 %v19002_v60, %v15264_v29  ;;  %28930 = vst [vmem:[#allocation38_spill] sm:$0xff] %v24475_v56  ;;  %v15647_v37 = vor.u32 %v19100_v51, %v15646_v22  ;;  %v24492_v60 = vpop.f32.mrf.mxu0  ;;  %v15214_v29 = vld [vmem:[%s28802_s5 + $0x960] sm:$0xf]  ;;  %v18994_v22 = vld [vmem:[%s28802_s5 + $0x984] sm:$0xf] }
 0x6c7   :  { %28931 = vst [vmem:[#allocation6_spill] sm:$0xff] %v24492_v60  ;;  %v16381_v56 = vld [vmem:[%s28802_s5 + $0x1140] sm:$0xf] }
 0x6c8   :  { %6951 = vmatpush.bf16.msrb.mxu2 %v15647_v37 }
 0x6c9   :  { %6979 = vmatpush.bf16.msra.mxu0 %v15267_v36  ;;  %6911 = vmatpush.bf16.msra.mxu3 %v15231_v18  ;;  %v18992_v36 = vld [vmem:[%s28802_s5 + $0x96c] sm:$0xf0]  ;;  %v15299_v18 = vor.u32 %v19010_v41, %v15296_v11  ;;  %v15614_v11 = vld [vmem:[%s28802_s5 + $0xc80] sm:$0xf] }
 0x6ca   :  { %6997 = vmatpush.bf16.msra.mxu1 %v15331_v33  ;;  %v18998_v33 = vld [vmem:[%s28802_s5 + $0x9a4] sm:$0xf]  ;;  %v15215_v48 = vor.u32 %v18992_v36, %v15214_v29  ;;  %v18988_v29 = vld [vmem:[%s28802_s5 + $0x94c] sm:$0xf0]  ;;  %v24524_v36 = vpop.f32.mrf.mxu1 }
 0x6cb   :  { %v15251_v2 = vor.u32 %v18998_v33, %v15248_v23  ;;  %v15232_v33 = vld [vmem:[%s28802_s5 + $0x990] sm:$0xf0]  ;;  %28932 = vst [vmem:[#allocation7_spill] sm:$0xff] %v24524_v36  ;;  %v19195_v36 = vld [vmem:[%s28802_s5 + $0xfc4] sm:$0xf] }
 0x6cc   :  { %v15235_v23 = vor.u32 %v18994_v22, %v15232_v33 }
 0x6cd   :  { %6980 = vmatpush.bf16.msra.mxu0 %v15251_v2  ;;  %6912 = vmatpush.bf16.msra.mxu3 %v15215_v48  ;;  %v5865_v37 = vpop.f32.mrf.mxu3  ;;  %v15198_v2 = vld [vmem:[%s28802_s5 + $0x940] sm:$0xf]  ;;  %v24526_v48 = vpop.f32.mrf.mxu2 }
 0x6ce   :  { %6998 = vmatpush.bf16.msra.mxu1 %v15315_v13  ;;  %v19096_v13 = vld [vmem:[%s28802_s5 + $0xcac] sm:$0xf0]  ;;  %v15199_v41 = vor.u32 %v18988_v29, %v15198_v2  ;;  %28933 = vst [vmem:[#allocation35_spill] sm:$0xff] %v24526_v48 }
 0x6cf   :  { %v15631_v51 = vor.u32 %v19096_v13, %v15630_v19  ;;  %v18990_v19 = vld [vmem:[%s28802_s5 + $0x964] sm:$0xf]  ;;  %v18984_v2 = vld [vmem:[%s28802_s5 + $0x92c] sm:$0xf0] }
 0x6d1   :  { %6952 = vmatpush.bf16.msrb.mxu2 %v15631_v51  ;;  %6981 = vmatpush.bf16.msra.mxu0 %v15235_v23  ;;  %v15216_v51 = vld [vmem:[%s28802_s5 + $0x970] sm:$0xf0]  ;;  %v15182_v23 = vld [vmem:[%s28802_s5 + $0x920] sm:$0xf] }
 0x6d2   :  { %6999 = vmatpush.bf16.msra.mxu1 %v15299_v18  ;;  %v19092_v18 = vld [vmem:[%s28802_s5 + $0xc8c] sm:$0xf0]  ;;  %6913 = vmatpush.bf16.msra.mxu3 %v15199_v41  ;;  %v15219_v33 = vor.u32 %v18990_v19, %v15216_v51  ;;  %v15183_v29 = vor.u32 %v18984_v2, %v15182_v23  ;;  %v15598_v41 = vld [vmem:[%s28802_s5 + $0xc60] sm:$0xf] }
 0x6d3   :  { %v15615_v22 = vor.u32 %v19092_v18, %v15614_v11  ;;  %v19088_v11 = vld [vmem:[%s28802_s5 + $0xc6c] sm:$0xf0]  ;;  %v18986_v18 = vld [vmem:[%s28802_s5 + $0x944] sm:$0xf] }
 0x6d4   :  { %v15599_v19 = vor.u32 %v19088_v11, %v15598_v41  ;;  %v18980_v23 = vld [vmem:[%s28802_s5 + $0x90c] sm:$0xf0] }
 0x6d5   :  { %v24537_v13 = vpop.f32.mrf.mxu0  ;;  %6953 = vmatpush.bf16.msrb.mxu2 %v15615_v22  ;;  %6982 = vmatpush.bf16.msra.mxu0 %v15219_v33  ;;  %v15200_v22 = vld [vmem:[%s28802_s5 + $0x950] sm:$0xf0]  ;;  %v15166_v33 = vld [vmem:[%s28802_s5 + $0x900] sm:$0xf]  ;;  %v19120_v41 = vld [vmem:[%s28802_s5 + $0xd6c] sm:$0xf0]  ;;  %v24572_v11 = vpop.f32.mrf.mxu3 }
 0x6d6   :  { %6914 = vmatpush.bf16.msra.mxu3 %v15183_v29  ;;  %v15203_v51 = vor.u32 %v18986_v18, %v15200_v22  ;;  %v5837_v2 = vpop.f32.mrf.mxu1  ;;  %v15167_v20 = vor.u32 %v18980_v23, %v15166_v33  ;;  %v15726_v29 = vld [vmem:[%s28802_s5 + $0xd60] sm:$0xf]  ;;  %28934 = vst [vmem:[#allocation36_spill] sm:$0xff] %v24572_v11  ;;  %v5851_v18 = vpop.f32.mrf.mxu2  ;;  %v19084_v33 = vld [vmem:[%s28802_s5 + $0xc4c] sm:$0xf0] }
 0x6d7   :  { %v5838_v22 = vadd.f32 %v5837_v2, %v24334_v24  ;;  %v15727_v57 = vor.u32 %v19120_v41, %v15726_v29  ;;  %v15184_v24 = vld [vmem:[%s28802_s5 + $0x930] sm:$0xf0]  ;;  %v15710_v29 = vld [vmem:[%s28802_s5 + $0xd40] sm:$0xf]  ;;  %v19118_v11 = vld [vmem:[%s28802_s5 + $0xd64] sm:$0xf] }
 0x6d8   :  { %v15187_v2 = vor.u32 %v18982_v7, %v15184_v24  ;;  %v15694_v24 = vld [vmem:[%s28802_s5 + $0xd20] sm:$0xf] }
 0x6d9   :  { %6954 = vmatpush.bf16.msrb.mxu2 %v15599_v19  ;;  %6983 = vmatpush.bf16.msra.mxu0 %v15203_v51  ;;  %v15582_v19 = vld [vmem:[%s28802_s5 + $0xc40] sm:$0xf]  ;;  %v5852_v51 = vadd.f32 %v5851_v18, %v5838_v22  ;;  %v15168_v18 = vld [vmem:[%s28802_s5 + $0x910] sm:$0xf0] }
 0x6da   :  { %6915 = vmatpush.bf16.msra.mxu3 %v15167_v20  ;;  %v15583_v26 = vor.u32 %v19084_v33, %v15582_v19  ;;  %v19116_v20 = vld [vmem:[%s28802_s5 + $0xd4c] sm:$0xf0]  ;;  %v15566_v33 = vld [vmem:[%s28802_s5 + $0xc20] sm:$0xf] }
 0x6db   :  { %v5866_v41 = vadd.f32 %v5865_v37, %v5852_v51  ;;  %v15711_v19 = vor.u32 %v19116_v20, %v15710_v29  ;;  %v19112_v51 = vld [vmem:[%s28802_s5 + $0xd2c] sm:$0xf0] }
 0x6dc   :  { %v15695_v29 = vor.u32 %v19112_v51, %v15694_v24  ;;  %v19076_v20 = vld [vmem:[%s28802_s5 + $0xc0c] sm:$0xf0]  ;;  %v19066_v51 = vld [vmem:[%s28802_s5 + $0xbc4] sm:$0xf] }
 0x6dd   :  { %v24581_v23 = vpop.f32.mrf.mxu0  ;;  %6955 = vmatpush.bf16.msrb.mxu2 %v15583_v26  ;;  %6984 = vmatpush.bf16.msra.mxu0 %v15187_v2  ;;  %v18978_v26 = vld [vmem:[%s28802_s5 + $0x904] sm:$0xf]  ;;  %v24608_v37 = vadd.f32 %v24434_v28, %v5866_v41  ;;  %v15550_v28 = vld [vmem:[%s28802_s5 + $0xc00] sm:$0xf] }
 0x6de   :  { %28935 = vst [vmem:[#allocation20_spill] sm:$0xff] %v24581_v23  ;;  %6968 = vmatpush.bf16.msrb.mxu3 %v15727_v57  ;;  %v19080_v57 = vld [vmem:[%s28802_s5 + $0xc2c] sm:$0xf0]  ;;  %v15171_v22 = vor.u32 %v18978_v26, %v15168_v18  ;;  %v15551_v41 = vor.u32 %v19076_v20, %v15550_v28  ;;  %v15678_v18 = vld [vmem:[%s28802_s5 + $0xd00] sm:$0xf] }
 0x6df   :  { %v15567_v7 = vor.u32 %v19080_v57, %v15566_v33  ;;  %v15536_v33 = vld [vmem:[%s28802_s5 + $0xbf0] sm:$0xf0]  ;;  %v24630_v57 = vpop.f32.mrf.mxu2  ;;  %v15286_v20 = vld [vmem:[%s28802_s5 + $0x9e8] sm:$0xf] }
 0x6e0   :  { %28936 = vst [vmem:[#allocation21_spill] sm:$0xff] %v24630_v57  ;;  %v15270_v23 = vld [vmem:[%s28802_s5 + $0x9c8] sm:$0xf] }
 0x6e1   :  { %6956 = vmatpush.bf16.msrb.mxu2 %v15567_v7  ;;  %6985 = vmatpush.bf16.msra.mxu0 %v15171_v22  ;;  %v19108_v22 = vld [vmem:[%s28802_s5 + $0xd0c] sm:$0xf0] }
 0x6e2   :  { %6969 = vmatpush.bf16.msrb.mxu3 %v15711_v19  ;;  %v19070_v19 = vld [vmem:[%s28802_s5 + $0xbe4] sm:$0xf]  ;;  %v15679_v24 = vor.u32 %v19108_v22, %v15678_v18 }
 0x6e3   :  { %v24616_v2 = vpop.f32.mrf.mxu3  ;;  %v15539_v26 = vor.u32 %v19070_v19, %v15536_v33  ;;  %v19062_v33 = vld [vmem:[%s28802_s5 + $0xba4] sm:$0xf] }
 0x6e5   :  { %v6002_v7 = vpop.f32.mrf.mxu0  ;;  %6957 = vmatpush.bf16.msrb.mxu2 %v15551_v41  ;;  %v19009_v41 = vld [vmem:[%s28802_s5 + $0x9f4] sm:$0xf0] }
 0x6e6   :  { %6970 = vmatpush.bf16.msrb.mxu3 %v15695_v29  ;;  %v15520_v29 = vld [vmem:[%s28802_s5 + $0xbd0] sm:$0xf0] }
 0x6e7   :  { %v15523_v28 = vor.u32 %v19066_v51, %v15520_v29 }
 0x6e9   :  { %7006 = vmatpush.bf16.msra.mxu2 %v15539_v26  ;;  %v15504_v26 = vld [vmem:[%s28802_s5 + $0xbb0] sm:$0xf0] }
 0x6ea   :  { %6971 = vmatpush.bf16.msrb.mxu3 %v15679_v24  ;;  %v15287_v24 = vor.u32 %v19009_v41, %v15286_v20  ;;  %v15507_v51 = vor.u32 %v19062_v33, %v15504_v26  ;;  %v19058_v20 = vld [vmem:[%s28802_s5 + $0xb84] sm:$0xf]  ;;  %v15254_v26 = vld [vmem:[%s28802_s5 + $0x9a8] sm:$0xf] }
 0x6eb   :  { %v24650_v19 = vpop.f32.mrf.mxu3 }
 0x6ec   :  { %28937 = vst [vmem:[#allocation26_spill] sm:$0xff] %v24650_v19  ;;  %v5907_v22 = vpop.f32.mrf.mxu2  ;;  %v24666_v19 = vpop.f32.mrf.mxu1 }
 0x6ed   :  { %7007 = vmatpush.bf16.msra.mxu2 %v15523_v28  ;;  %v6004_v18 = vpop.f32.mrf.mxu0  ;;  %v19005_v28 = vld [vmem:[%s28802_s5 + $0x9d4] sm:$0xf0]  ;;  %28938 = vst [vmem:[#allocation31_spill] sm:$0xff] %v24666_v19 }
 0x6ee   :  { %v24658_v29 = vpack.c.bf16 %v6004_v18, %v6002_v7  ;;  %v15488_v7 = vld [vmem:[%s28802_s5 + $0xb90] sm:$0xf0]  ;;  %v15271_v41 = vor.u32 %v19005_v28, %v15270_v23  ;;  %v19001_v18 = vld [vmem:[%s28802_s5 + $0x9b4] sm:$0xf0] }
 0x6ef   :  { %v15491_v33 = vor.u32 %v19058_v20, %v15488_v7  ;;  %v15255_v28 = vor.u32 %v19001_v18, %v15254_v26  ;;  %v15238_v7 = vld [vmem:[%s28802_s5 + $0x988] sm:$0xf]  ;;  %v19050_v26 = vld [vmem:[%s28802_s5 + $0xb44] sm:$0xf]  ;;  %v15456_v18 = vld [vmem:[%s28802_s5 + $0xb50] sm:$0xf0] }
 0x6f0   :  { %6944 = vmatmul.bf16.vlgmr.msrb.gmra.mxu1 %v24658_v29 }
 0x6f1   :  { %7008 = vmatpush.bf16.msra.mxu2 %v15507_v51  ;;  %7048 = vmatpush.bf16.msrb.mxu1 %v15287_v24  ;;  %v15472_v24 = vld [vmem:[%s28802_s5 + $0xb70] sm:$0xf0] }
 0x6f2   :  { %v15475_v20 = vor.u32 %v19054_v58, %v15472_v24  ;;  %v15728_v58 = vld [vmem:[%s28802_s5 + $0xd70] sm:$0xf0] }
 0x6f3   :  { %v5988_v51 = vpop.f32.mrf.mxu3  ;;  %v15731_v19 = vor.u32 %v19118_v11, %v15728_v58  ;;  %v15440_v11 = vld [vmem:[%s28802_s5 + $0xb30] sm:$0xf0] }
 0x6f4   :  { %v24687_v23 = vpop.f32.mrf.mxu2 }
 0x6f5   :  { %7009 = vmatpush.bf16.msra.mxu2 %v15491_v33  ;;  %7049 = vmatpush.bf16.msrb.mxu1 %v15271_v41  ;;  %28939 = vst [vmem:[#allocation32_spill] sm:$0xff] %v24687_v23  ;;  %v18997_v33 = vld [vmem:[%s28802_s5 + $0x994] sm:$0xf0]  ;;  %v15459_v23 = vor.u32 %v19050_v26, %v15456_v18  ;;  %v19110_v18 = vld [vmem:[%s28802_s5 + $0xd24] sm:$0xf] }
 0x6f6   :  { %v5893_v60 = vpop.f32.mrf.mxu1  ;;  %v15239_v24 = vor.u32 %v18997_v33, %v15238_v7  ;;  %v19046_v7 = vld [vmem:[%s28802_s5 + $0xb24] sm:$0xf] }
 0x6f7   :  { %v5894_v41 = vadd.f32 %v5893_v60, %v24256_v8  ;;  %v15222_v8 = vld [vmem:[%s28802_s5 + $0x968] sm:$0xf]  ;;  %v18993_v60 = vld [vmem:[%s28802_s5 + $0x974] sm:$0xf0] }
 0x6f9   :  { %7010 = vmatpush.bf16.msra.mxu2 %v15475_v20  ;;  %7050 = vmatpush.bf16.msrb.mxu1 %v15255_v28  ;;  %v5908_v57 = vadd.f32 %v5907_v22, %v5894_v41  ;;  %v15712_v22 = vld [vmem:[%s28802_s5 + $0xd50] sm:$0xf0]  ;;  %v15223_v41 = vor.u32 %v18993_v60, %v15222_v8  ;;  %v19042_v8 = vld [vmem:[%s28802_s5 + $0xb04] sm:$0xf] }
 0x6fa   :  { %v15715_v26 = vor.u32 %v19114_v27, %v15712_v22  ;;  %v19102_v22 = vld [vmem:[%s28802_s5 + $0xce4] sm:$0xf] }
 0x6fb   :  { %v5990_v20 = vpop.f32.mrf.mxu3  ;;  %v5922_v28 = vadd.f32 %v24616_v2, %v5908_v57  ;;  %v18989_v2 = vld [vmem:[%s28802_s5 + $0x954] sm:$0xf0] }
 0x6fc   :  { %v24717_v34 = vpack.c.bf16 %v5990_v20, %v5988_v51  ;;  %v5974_v33 = vpop.f32.mrf.mxu2  ;;  %v15206_v51 = vld [vmem:[%s28802_s5 + $0x948] sm:$0xf]  ;;  %v18985_v20 = vld [vmem:[%s28802_s5 + $0x934] sm:$0xf0] }
 0x6fd   :  { %7011 = vmatpush.bf16.msra.mxu2 %v15459_v23  ;;  %7051 = vmatpush.bf16.msrb.mxu1 %v15239_v24  ;;  %v15443_v23 = vor.u32 %v19046_v7, %v15440_v11  ;;  %v5936_v57 = vadd.f32 %v24537_v13, %v5922_v28  ;;  %v15696_v24 = vld [vmem:[%s28802_s5 + $0xd30] sm:$0xf0]  ;;  %v15207_v27 = vor.u32 %v18989_v2, %v15206_v51  ;;  %v19106_v11 = vld [vmem:[%s28802_s5 + $0xd04] sm:$0xf] }
 0x6fe   :  { %6930 = vmatmul.bf16.vlgmr.msrb.gmra.mxu0 %v24717_v34  ;;  %v24737_v58 = vpop.f32.mrf.mxu1  ;;  %v15424_v13 = vld [vmem:[%s28802_s5 + $0xb10] sm:$0xf0]  ;;  %v15699_v7 = vor.u32 %v19110_v18, %v15696_v24  ;;  %v19098_v18 = vld [vmem:[%s28802_s5 + $0xcc4] sm:$0xf] }
 0x6ff   :  { %28940 = vst [vmem:[#allocation22_spill] sm:$0xff] %v24737_v58  ;;  %7038 = vmatpush.bf16.msrb.mxu0 %v15731_v19  ;;  %v15190_v19 = vld [vmem:[%s28802_s5 + $0x928] sm:$0xf]  ;;  %v15427_v60 = vor.u32 %v19042_v8, %v15424_v13  ;;  %v15664_v28 = vld [vmem:[%s28802_s5 + $0xcf0] sm:$0xf0] }
 0x700   :  { %7000 = vmatmul.bf16.vlgmr.msra.gmra.mxu1 %v24717_v34  ;;  %v15191_v51 = vor.u32 %v18985_v20, %v15190_v19  ;;  %v15667_v2 = vor.u32 %v19102_v22, %v15664_v28  ;;  %v15174_v8 = vld [vmem:[%s28802_s5 + $0x908] sm:$0xf]  ;;  %v15648_v24 = vld [vmem:[%s28802_s5 + $0xcd0] sm:$0xf0]  ;;  %v19105_v28 = vld [vmem:[%s28802_s5 + $0xcf4] sm:$0xf0] }
 0x701   :  { %7012 = vmatpush.bf16.msra.mxu2 %v15443_v23  ;;  %7052 = vmatpush.bf16.msrb.mxu1 %v15223_v41  ;;  %v15680_v41 = vld [vmem:[%s28802_s5 + $0xd10] sm:$0xf0]  ;;  %v15734_v19 = vld [vmem:[%s28802_s5 + $0xd68] sm:$0xf] }
 0x702   :  { %v15670_v22 = vld [vmem:[%s28802_s5 + $0xce8] sm:$0xf] }
 0x703   :  { %7039 = vmatpush.bf16.msrb.mxu0 %v15715_v26  ;;  %v18981_v26 = vld [vmem:[%s28802_s5 + $0x914] sm:$0xf0] }
 0x704   :  { %v5976_v23 = vpop.f32.mrf.mxu2 }
 0x705   :  { %7013 = vmatpush.bf16.msra.mxu2 %v15427_v60  ;;  %7053 = vmatpush.bf16.msrb.mxu1 %v15207_v27  ;;  %v24773_v13 = vpack.c.bf16 %v5976_v23, %v5974_v33  ;;  %v19121_v33 = vld [vmem:[%s28802_s5 + $0xd74] sm:$0xf0]  ;;  %v15683_v60 = vor.u32 %v19106_v11, %v15680_v41  ;;  %v15651_v23 = vor.u32 %v19098_v18, %v15648_v24  ;;  %v15632_v11 = vld [vmem:[%s28802_s5 + $0xcb0] sm:$0xf0] }
 0x706   :  { %v5949_v27 = vpop.f32.mrf.mxu1  ;;  %v15735_v58 = vor.u32 %v19121_v33, %v15734_v19  ;;  %v15671_v41 = vor.u32 %v19105_v28, %v15670_v22  ;;  %v19090_v19 = vld [vmem:[%s28802_s5 + $0xc84] sm:$0xf]  ;;  %v15616_v33 = vld [vmem:[%s28802_s5 + $0xc90] sm:$0xf0]  ;;  %v15702_v28 = vld [vmem:[%s28802_s5 + $0xd28] sm:$0xf] }
 0x707   :  { %7040 = vmatpush.bf16.msrb.mxu0 %v15699_v7  ;;  %v24790_v20 = vadd.f32 %v5949_v27, %v5936_v57  ;;  %6916 = vmatmul.bf16.vlgmr.msra.gmra.mxu3 %v24773_v13  ;;  %v15175_v7 = vor.u32 %v18981_v26, %v15174_v8  ;;  %v19094_v57 = vld [vmem:[%s28802_s5 + $0xca4] sm:$0xf]  ;;  %v15718_v27 = vld [vmem:[%s28802_s5 + $0xd48] sm:$0xf]  ;;  %v19101_v8 = vld [vmem:[%s28802_s5 + $0xcd4] sm:$0xf0] }
 0x708   :  { %7020 = vmatpush.bf16.msra.mxu3 %v15667_v2  ;;  %v15654_v2 = vld [vmem:[%s28802_s5 + $0xcc8] sm:$0xf]  ;;  %v15635_v18 = vor.u32 %v19094_v57, %v15632_v11  ;;  %v15619_v57 = vor.u32 %v19090_v19, %v15616_v33  ;;  %v19093_v33 = vld [vmem:[%s28802_s5 + $0xc94] sm:$0xf0] }
 0x709   :  { %7054 = vmatpush.bf16.msrb.mxu1 %v15191_v51  ;;  %v19117_v51 = vld [vmem:[%s28802_s5 + $0xd54] sm:$0xf0]  ;;  %v15655_v22 = vor.u32 %v19101_v8, %v15654_v2  ;;  %v15686_v2 = vld [vmem:[%s28802_s5 + $0xd08] sm:$0xf] }
 0x70a   :  { %v15719_v24 = vor.u32 %v19117_v51, %v15718_v27  ;;  %v15600_v27 = vld [vmem:[%s28802_s5 + $0xc70] sm:$0xf0]  ;;  %v19109_v8 = vld [vmem:[%s28802_s5 + $0xd14] sm:$0xf0]  ;;  %v15622_v19 = vld [vmem:[%s28802_s5 + $0xc88] sm:$0xf] }
 0x70b   :  { %7041 = vmatpush.bf16.msrb.mxu0 %v15683_v60  ;;  %v15623_v5 = vor.u32 %v19093_v33, %v15622_v19  ;;  %v15414_v19 = vld [vmem:[%s28802_s5 + $0xae8] sm:$0xf]  ;;  %v19041_v33 = vld [vmem:[%s28802_s5 + $0xaf4] sm:$0xf0] }
 0x70c   :  { %7021 = vmatpush.bf16.msra.mxu3 %v15651_v23  ;;  %v6030_v26 = vpop.f32.mrf.mxu2  ;;  %v19097_v23 = vld [vmem:[%s28802_s5 + $0xcb4] sm:$0xf0] }
 0x70d   :  { %7055 = vmatpush.bf16.msrb.mxu1 %v15175_v7  ;;  %v15638_v7 = vld [vmem:[%s28802_s5 + $0xca8] sm:$0xf] }
 0x70e   :  { %6986 = vmatmul.bf16.vlgmr.msra.gmra.mxu0 %v24773_v13  ;;  %v24824_v60 = vpop.f32.mrf.mxu1  ;;  %v15639_v51 = vor.u32 %v19097_v23, %v15638_v7  ;;  %v15687_v7 = vor.u32 %v19109_v8, %v15686_v2  ;;  %v19082_v23 = vld [vmem:[%s28802_s5 + $0xc44] sm:$0xf]  ;;  %v15568_v2 = vld [vmem:[%s28802_s5 + $0xc30] sm:$0xf0] }
 0x70f   :  { %7090 = vmatpush.bf16.msra.mxu0 %v15671_v41  ;;  %28941 = vst [vmem:[#allocation44_spill] sm:$0xff] %v24824_v60  ;;  %v19086_v41 = vld [vmem:[%s28802_s5 + $0xc64] sm:$0xf]  ;;  %v15584_v60 = vld [vmem:[%s28802_s5 + $0xc50] sm:$0xf0] }
 0x710   :  { %7056 = vmatmul.bf16.vlgmr.msrb.gmra.mxu1 %v24773_v13  ;;  %7022 = vmatpush.bf16.msra.mxu3 %v15635_v18  ;;  %v19103_v18 = vld [vmem:[%s28802_s5 + $0xcec] sm:$0xf] }
 0x711   :  { %7108 = vmatpush.bf16.msra.mxu1 %v15735_v58  ;;  %v19113_v58 = vld [vmem:[%s28802_s5 + $0xd34] sm:$0xf0] }
 0x712   :  { %v15703_v11 = vor.u32 %v19113_v58, %v15702_v28  ;;  %v15603_v28 = vor.u32 %v19086_v41, %v15600_v27  ;;  %v19089_v41 = vld [vmem:[%s28802_s5 + $0xc74] sm:$0xf0]  ;;  %v15587_v27 = vor.u32 %v19082_v23, %v15584_v60  ;;  %v15640_v60 = vld [vmem:[%s28802_s5 + $0xcb8] sm:$0xf0] }
 0x713   :  { %7091 = vmatpush.bf16.msra.mxu0 %v15655_v22 }
 0x714   :  { %7023 = vmatpush.bf16.msra.mxu3 %v15619_v57  ;;  %v6032_v22 = vpop.f32.mrf.mxu2  ;;  %v19099_v57 = vld [vmem:[%s28802_s5 + $0xccc] sm:$0xf] }
 0x715   :  { %7109 = vmatpush.bf16.msra.mxu1 %v15719_v24  ;;  %v15672_v24 = vld [vmem:[%s28802_s5 + $0xcf8] sm:$0xf0]  ;;  %v24863_v58 = vpack.c.bf16 %v6032_v22, %v6030_v26  ;;  %v19085_v22 = vld [vmem:[%s28802_s5 + $0xc54] sm:$0xf0] }
 0x716   :  { %v6016_v6 = vpop.f32.mrf.mxu1  ;;  %v15675_v39 = vor.u32 %v19103_v18, %v15672_v24  ;;  %v15656_v26 = vld [vmem:[%s28802_s5 + $0xcd8] sm:$0xf0]  ;;  %v19095_v24 = vld [vmem:[%s28802_s5 + $0xcac] sm:$0xf] }
 0x717   :  { %7092 = vmatpush.bf16.msra.mxu0 %v15639_v51  ;;  %15740 = vmatmul.msk.bf16.vlgmr.msrb.gmra.mxu3 %vm4667_vm4, %v24863_v58  ;;  %v19078_v51 = vld [vmem:[%s28802_s5 + $0xc24] sm:$0xf]  ;;  %v15659_v8 = vor.u32 %v19099_v57, %v15656_v26  ;;  %v15643_v57 = vor.u32 %v19095_v24, %v15640_v60  ;;  %v15415_v26 = vor.u32 %v19041_v33, %v15414_v19  ;;  %v19037_v24 = vld [vmem:[%s28802_s5 + $0xad4] sm:$0xf0] }
 0x718   :  { %7024 = vmatpush.bf16.msra.mxu3 %v15603_v28  ;;  %v19074_v28 = vld [vmem:[%s28802_s5 + $0xc04] sm:$0xf]  ;;  %v19081_v19 = vld [vmem:[%s28802_s5 + $0xc34] sm:$0xf0] }
 0x719   :  { %7110 = vmatpush.bf16.msra.mxu1 %v15703_v11  ;;  %v15606_v11 = vld [vmem:[%s28802_s5 + $0xc68] sm:$0xf] }
 0x71a   :  { %v15607_v18 = vor.u32 %v19089_v41, %v15606_v11  ;;  %v15542_v11 = vld [vmem:[%s28802_s5 + $0xbe8] sm:$0xf]  ;;  %v19073_v41 = vld [vmem:[%s28802_s5 + $0xbf4] sm:$0xf0] }
 0x71b   :  { %7093 = vmatpush.bf16.msra.mxu0 %v15623_v5  ;;  %v15590_v5 = vld [vmem:[%s28802_s5 + $0xc48] sm:$0xf]  ;;  %v15543_v33 = vor.u32 %v19073_v41, %v15542_v11  ;;  %v19033_v11 = vld [vmem:[%s28802_s5 + $0xab4] sm:$0xf0] }
 0x71c   :  { %7025 = vmatpush.bf16.msra.mxu3 %v15587_v27  ;;  %v19091_v27 = vld [vmem:[%s28802_s5 + $0xc8c] sm:$0xf]  ;;  %v15558_v41 = vld [vmem:[%s28802_s5 + $0xc08] sm:$0xf] }
 0x71d   :  { %7111 = vmatpush.bf16.msra.mxu1 %v15687_v7  ;;  %v15552_v7 = vld [vmem:[%s28802_s5 + $0xc10] sm:$0xf0] }
 0x71e   :  { %15741 = vmatmul.msk.bf16.vlgmr.msrb.gmra.mxu0 %vm4667_vm4, %v24863_v58  ;;  %v6018_v23 = vpop.f32.mrf.mxu1  ;;  %v15555_v60 = vor.u32 %v19074_v28, %v15552_v7  ;;  %v19069_v28 = vld [vmem:[%s28802_s5 + $0xbd4] sm:$0xf0]  ;;  %v19087_v7 = vld [vmem:[%s28802_s5 + $0xc6c] sm:$0xf] }
 0x71f   :  { %7094 = vmatpush.bf16.msra.mxu0 %v15607_v18  ;;  %v15398_v18 = vld [vmem:[%s28802_s5 + $0xac8] sm:$0xf] }
 0x720   :  { %15742 = vmatmul.msk.bf16.vlgmr.msra.gmra.mxu1 %vm4667_vm4, %v24863_v58 }
 0x721   :  { %7160 = vmatpush.bf16.msrb.mxu1 %v15675_v39  ;;  %v15571_v39 = vor.u32 %v19078_v51, %v15568_v2  ;;  %v24926_v51 = vpack.c.bf16 %v6018_v23, %v6016_v6  ;;  %v15591_v2 = vor.u32 %v19085_v22, %v15590_v5  ;;  %v15574_v6 = vld [vmem:[%s28802_s5 + $0xc28] sm:$0xf]  ;;  %v15399_v22 = vor.u32 %v19037_v24, %v15398_v18  ;;  %v15544_v18 = vld [vmem:[%s28802_s5 + $0xbf8] sm:$0xf0] }
 0x722   :  { %v15575_v23 = vor.u32 %v19081_v19, %v15574_v6  ;;  %v15510_v6 = vld [vmem:[%s28802_s5 + $0xba8] sm:$0xf]  ;;  %v19065_v19 = vld [vmem:[%s28802_s5 + $0xbb4] sm:$0xf0] }
 0x723   :  { %7026 = vmatpush.bf16.msra.mxu3 %v15571_v39  ;;  %6958 = vmatmul.bf16.vlgmr.msrb.gmra.mxu2 %v24926_v51  ;;  %v15526_v39 = vld [vmem:[%s28802_s5 + $0xbc8] sm:$0xf] }
 0x724   :  { %7062 = vmatpush.bf16.msrb.mxu2 %v15415_v26  ;;  %7095 = vmatpush.bf16.msra.mxu0 %v15591_v2  ;;  %v15382_v26 = vld [vmem:[%s28802_s5 + $0xaa8] sm:$0xf]  ;;  %v15527_v2 = vor.u32 %v19069_v28, %v15526_v39  ;;  %v19029_v28 = vld [vmem:[%s28802_s5 + $0xa94] sm:$0xf0] }
 0x725   :  { %7161 = vmatpush.bf16.msrb.mxu1 %v15659_v8  ;;  %v15624_v8 = vld [vmem:[%s28802_s5 + $0xc98] sm:$0xf0] }
 0x726   :  { %v15627_v5 = vor.u32 %v19091_v27, %v15624_v8  ;;  %v19077_v27 = vld [vmem:[%s28802_s5 + $0xc14] sm:$0xf0]  ;;  %v19071_v8 = vld [vmem:[%s28802_s5 + $0xbec] sm:$0xf] }
 0x727   :  { %7027 = vmatpush.bf16.msra.mxu3 %v15555_v60  ;;  %v15383_v60 = vor.u32 %v19033_v11, %v15382_v26  ;;  %v15559_v39 = vor.u32 %v19077_v27, %v15558_v41  ;;  %v15528_v26 = vld [vmem:[%s28802_s5 + $0xbd8] sm:$0xf0]  ;;  %v15494_v27 = vld [vmem:[%s28802_s5 + $0xb88] sm:$0xf] }
 0x728   :  { %7063 = vmatpush.bf16.msrb.mxu2 %v15399_v22  ;;  %7096 = vmatpush.bf16.msra.mxu0 %v15575_v23  ;;  %v15366_v22 = vld [vmem:[%s28802_s5 + $0xa88] sm:$0xf]  ;;  %v19067_v23 = vld [vmem:[%s28802_s5 + $0xbcc] sm:$0xf] }
 0x729   :  { %7162 = vmatpush.bf16.msrb.mxu1 %v15643_v57  ;;  %v15608_v57 = vld [vmem:[%s28802_s5 + $0xc78] sm:$0xf0]  ;;  %v15367_v41 = vor.u32 %v19029_v28, %v15366_v22  ;;  %v15478_v28 = vld [vmem:[%s28802_s5 + $0xb68] sm:$0xf] }
 0x72a   :  { %v15611_v24 = vor.u32 %v19087_v7, %v15608_v57  ;;  %7028 = vmatmul.bf16.vlgmr.msra.gmra.mxu3 %v24926_v51  ;;  %v15547_v7 = vor.u32 %v19071_v8, %v15544_v18  ;;  %v15511_v57 = vor.u32 %v19065_v19, %v15510_v6  ;;  %v19079_v8 = vld [vmem:[%s28802_s5 + $0xc2c] sm:$0xf]  ;;  %v15576_v18 = vld [vmem:[%s28802_s5 + $0xc38] sm:$0xf0]  ;;  %v15531_v6 = vor.u32 %v19067_v23, %v15528_v26  ;;  %v15334_v26 = vld [vmem:[%s28802_s5 + $0xa48] sm:$0xf] }
 0x72b   :  { %7076 = vmatpush.bf16.msrb.mxu3 %v15543_v33  ;;  %v19083_v33 = vld [vmem:[%s28802_s5 + $0xc4c] sm:$0xf]  ;;  %v15560_v23 = vld [vmem:[%s28802_s5 + $0xc18] sm:$0xf0] }
 0x72c   :  { %7064 = vmatpush.bf16.msrb.mxu2 %v15383_v60  ;;  %7097 = vmatpush.bf16.msra.mxu0 %v15559_v39  ;;  %v19025_v60 = vld [vmem:[%s28802_s5 + $0xa74] sm:$0xf0]  ;;  %v15512_v39 = vld [vmem:[%s28802_s5 + $0xbb8] sm:$0xf0] }
 0x72d   :  { %7163 = vmatpush.bf16.msrb.mxu1 %v15627_v5  ;;  %v15592_v5 = vld [vmem:[%s28802_s5 + $0xc58] sm:$0xf0] }
 0x72e   :  { %v15595_v11 = vor.u32 %v19083_v33, %v15592_v5  ;;  %v19063_v33 = vld [vmem:[%s28802_s5 + $0xbac] sm:$0xf]  ;;  %v15579_v5 = vor.u32 %v19079_v8, %v15576_v18  ;;  %v15496_v8 = vld [vmem:[%s28802_s5 + $0xb98] sm:$0xf0] }
 0x72f   :  { %7077 = vmatpush.bf16.msrb.mxu3 %v15527_v2  ;;  %v19061_v2 = vld [vmem:[%s28802_s5 + $0xb94] sm:$0xf0]  ;;  %7098 = vmatmul.bf16.vlgmr.msra.gmra.mxu0 %v24926_v51 }
 0x730   :  { %7146 = vmatpush.bf16.msrb.mxu0 %v15547_v7  ;;  %v15495_v19 = vor.u32 %v19061_v2, %v15494_v27  ;;  %7065 = vmatpush.bf16.msrb.mxu2 %v15367_v41  ;;  %v19057_v7 = vld [vmem:[%s28802_s5 + $0xb74] sm:$0xf0]  ;;  %v15515_v41 = vor.u32 %v19063_v33, %v15512_v39  ;;  %v19059_v2 = vld [vmem:[%s28802_s5 + $0xb8c] sm:$0xf] }
 0x731   :  { %7164 = vmatpush.bf16.msrb.mxu1 %v15611_v24  ;;  %v15350_v24 = vld [vmem:[%s28802_s5 + $0xa68] sm:$0xf]  ;;  %v15479_v27 = vor.u32 %v19057_v7, %v15478_v28  ;;  %v19017_v33 = vld [vmem:[%s28802_s5 + $0xa34] sm:$0xf0]  ;;  %v15499_v39 = vor.u32 %v19059_v2, %v15496_v8  ;;  %v15480_v28 = vld [vmem:[%s28802_s5 + $0xb78] sm:$0xf0] }
 0x732   :  { %v15351_v22 = vor.u32 %v19025_v60, %v15350_v24  ;;  %v15462_v60 = vld [vmem:[%s28802_s5 + $0xb48] sm:$0xf]  ;;  %v15288_v2 = vld [vmem:[%s28802_s5 + $0x9f8] sm:$0xf0] }
 0x733   :  { %7078 = vmatpush.bf16.msrb.mxu3 %v15511_v57  ;;  %v19075_v57 = vld [vmem:[%s28802_s5 + $0xc0c] sm:$0xf]  ;;  %7014 = vmatmul.bf16.vlgmr.msra.gmra.mxu2 %v24658_v29 }
 0x734   :  { %7147 = vmatpush.bf16.msrb.mxu0 %v15531_v6  ;;  %7066 = vmatpush.bf16.msrb.mxu2 %v15351_v22  ;;  %v15563_v18 = vor.u32 %v19075_v57, %v15560_v23  ;;  %v19053_v6 = vld [vmem:[%s28802_s5 + $0xb54] sm:$0xf0]  ;;  %v19055_v22 = vld [vmem:[%s28802_s5 + $0xb6c] sm:$0xf]  ;;  %v15446_v57 = vld [vmem:[%s28802_s5 + $0xb28] sm:$0xf] }
 0x735   :  { %7165 = vmatpush.bf16.msrb.mxu1 %v15595_v11  ;;  %v19021_v11 = vld [vmem:[%s28802_s5 + $0xa54] sm:$0xf0] }
 0x736   :  { %v15335_v24 = vor.u32 %v19021_v11, %v15334_v26  ;;  %v19049_v23 = vld [vmem:[%s28802_s5 + $0xb34] sm:$0xf0]  ;;  %v15302_v26 = vld [vmem:[%s28802_s5 + $0xa08] sm:$0xf] }
 0x737   :  { %7079 = vmatpush.bf16.msrb.mxu3 %v15495_v19  ;;  %v15318_v19 = vld [vmem:[%s28802_s5 + $0xa28] sm:$0xf]  ;;  %v19013_v11 = vld [vmem:[%s28802_s5 + $0xa14] sm:$0xf0]  ;;  %v15447_v8 = vor.u32 %v19049_v23, %v15446_v57  ;;  %v19047_v57 = vld [vmem:[%s28802_s5 + $0xb2c] sm:$0xf] }
 0x738   :  { %7148 = vmatpush.bf16.msrb.mxu0 %v15515_v41  ;;  %7067 = vmatpush.bf16.msrb.mxu2 %v15335_v24  ;;  %v15319_v7 = vor.u32 %v19017_v33, %v15318_v19  ;;  %v15483_v41 = vor.u32 %v19055_v22, %v15480_v28  ;;  %v15464_v24 = vld [vmem:[%s28802_s5 + $0xb58] sm:$0xf0]  ;;  %v19039_v33 = vld [vmem:[%s28802_s5 + $0xaec] sm:$0xf] }
 0x739   :  { %7166 = vmatpush.bf16.msrb.mxu1 %v15579_v5  ;;  %v15463_v5 = vor.u32 %v19053_v6, %v15462_v60  ;;  %v15303_v60 = vor.u32 %v19013_v11, %v15302_v26  ;;  %v15430_v6 = vld [vmem:[%s28802_s5 + $0xb08] sm:$0xf]  ;;  %v19003_v22 = vld [vmem:[%s28802_s5 + $0x9cc] sm:$0xf]  ;;  %v15272_v28 = vld [vmem:[%s28802_s5 + $0x9d8] sm:$0xf0] }
 0x73a   :  { %v15448_v23 = vld [vmem:[%s28802_s5 + $0xb38] sm:$0xf0]  ;;  %v15275_v11 = vor.u32 %v19003_v22, %v15272_v28  ;;  %v18995_v28 = vld [vmem:[%s28802_s5 + $0x98c] sm:$0xf] }
 0x73b   :  { %7080 = vmatpush.bf16.msrb.mxu3 %v15479_v27  ;;  %v19007_v27 = vld [vmem:[%s28802_s5 + $0x9ec] sm:$0xf] }
 0x73c   :  { %7149 = vmatpush.bf16.msrb.mxu0 %v15499_v39  ;;  %7068 = vmatpush.bf16.msrb.mxu2 %v15319_v7  ;;  %v15291_v19 = vor.u32 %v19007_v27, %v15288_v2  ;;  %v15416_v39 = vld [vmem:[%s28802_s5 + $0xaf8] sm:$0xf0]  ;;  %v15451_v2 = vor.u32 %v19047_v57, %v15448_v23 }
 0x73d   :  { %7167 = vmatpush.bf16.msrb.mxu1 %v15563_v18  ;;  %v19051_v18 = vld [vmem:[%s28802_s5 + $0xb4c] sm:$0xf]  ;;  %v15419_v26 = vor.u32 %v19039_v33, %v15416_v39  ;;  %v15400_v27 = vld [vmem:[%s28802_s5 + $0xad8] sm:$0xf0] }
 0x73e   :  { %v19031_v39 = vld [vmem:[%s28802_s5 + $0xaac] sm:$0xf] }
 0x73f   :  { %7081 = vmatpush.bf16.msrb.mxu3 %v15463_v5  ;;  %v15467_v5 = vor.u32 %v19051_v18, %v15464_v24  ;;  %v15256_v18 = vld [vmem:[%s28802_s5 + $0x9b8] sm:$0xf0]  ;;  %v19043_v24 = vld [vmem:[%s28802_s5 + $0xb0c] sm:$0xf] }
 0x740   :  { %7168 = vmatmul.bf16.vlgmr.msrb.gmra.mxu1 %v24926_v51  ;;  %v19045_v51 = vld [vmem:[%s28802_s5 + $0xb14] sm:$0xf0]  ;;  %7150 = vmatpush.bf16.msrb.mxu0 %v15483_v41  ;;  %v19035_v41 = vld [vmem:[%s28802_s5 + $0xacc] sm:$0xf] }
 0x741   :  { %7240 = vmatpush.bf16.msra.mxu1 %v22288_v50  ;;  %v15431_v7 = vor.u32 %v19045_v51, %v15430_v6  ;;  %7069 = vmatpush.bf16.msrb.mxu2 %v15303_v60  ;;  %v15432_v60 = vld [vmem:[%s28802_s5 + $0xb18] sm:$0xf0]  ;;  %v15403_v6 = vor.u32 %v19035_v41, %v15400_v27  ;;  %v15748_v51 = vld [vmem:[%s28801_s4 + $0x18] sm:$0xf]  ;;  %v18991_v27 = vld [vmem:[%s28802_s5 + $0x96c] sm:$0xf] }
 0x742   :  { %v15435_v22 = vor.u32 %v19043_v24, %v15432_v60  ;;  %v15368_v41 = vld [vmem:[%s28802_s5 + $0xa98] sm:$0xf0]  ;;  %v19023_v24 = vld [vmem:[%s28802_s5 + $0xa6c] sm:$0xf] }
 0x743   :  { %7082 = vmatpush.bf16.msrb.mxu3 %v15447_v8  ;;  %v18999_v8 = vld [vmem:[%s28802_s5 + $0x9ac] sm:$0xf]  ;;  %v15352_v60 = vld [vmem:[%s28802_s5 + $0xa78] sm:$0xf0] }
 0x744   :  { %7151 = vmatpush.bf16.msrb.mxu0 %v15467_v5  ;;  %7070 = vmatmul.bf16.vlgmr.msrb.gmra.mxu2 %v24717_v34  ;;  %v15259_v33 = vor.u32 %v18999_v8, %v15256_v18  ;;  %v15384_v5 = vld [vmem:[%s28802_s5 + $0xab8] sm:$0xf0] }
 0x745   :  { %7241 = vmatpush.bf16.msra.mxu1 %v22275_v16  ;;  %7118 = vmatpush.bf16.msra.mxu2 %v15291_v19  ;;  %v19122_v19 = vld [vmem:[%s28801_s4 + $0x18] sm:$0x70]  ;;  %v15387_v23 = vor.u32 %v19031_v39, %v15384_v5  ;;  %v18983_v5 = vld [vmem:[%s28802_s5 + $0x92c] sm:$0xf] }
 0x746   :  { %v25159_v57 = vor.u32 %v19122_v19, %v15748_v51  ;;  %v15208_v51 = vld [vmem:[%s28802_s5 + $0x958] sm:$0xf0] }
 0x747   :  { %7083 = vmatpush.bf16.msrb.mxu3 %v15431_v7  ;;  %v15240_v7 = vld [vmem:[%s28802_s5 + $0x998] sm:$0xf0] }
 0x748   :  { %7152 = vmatpush.bf16.msrb.mxu0 %v15451_v2  ;;  %v15224_v2 = vld [vmem:[%s28802_s5 + $0x978] sm:$0xf0] }
 0x749   :  { %7242 = vmatpush.bf16.msra.mxu1 %v22234_v49  ;;  %7119 = vmatpush.bf16.msra.mxu2 %v15275_v11  ;;  %v19027_v11 = vld [vmem:[%s28802_s5 + $0xa8c] sm:$0xf]  ;;  %v15227_v18 = vor.u32 %v18991_v27, %v15224_v2  ;;  %v15336_v39 = vld [vmem:[%s28802_s5 + $0xa58] sm:$0xf0] }
 0x74a   :  { %7084 = vmatmul.bf16.vlgmr.msrb.gmra.mxu3 %v24658_v29  ;;  %v15371_v8 = vor.u32 %v19027_v11, %v15368_v41  ;;  %v18979_v11 = vld [vmem:[%s28802_s5 + $0x90c] sm:$0xf]  ;;  %v15176_v41 = vld [vmem:[%s28802_s5 + $0x918] sm:$0xf0] }
 0x74b   :  { %7132 = vmatpush.bf16.msra.mxu3 %v15419_v26  ;;  %v15243_v26 = vor.u32 %v18995_v28, %v15240_v7  ;;  %v19119_v27 = vld [vmem:[%s28802_s5 + $0xd6c] sm:$0xf]  ;;  %v15736_v2 = vld [vmem:[%s28802_s5 + $0xd78] sm:$0xf0] }
 0x74c   :  { %7153 = vmatpush.bf16.msrb.mxu0 %v15435_v22  ;;  %v15192_v22 = vld [vmem:[%s28802_s5 + $0x938] sm:$0xf0] }
 0x74d   :  { %7120 = vmatpush.bf16.msra.mxu2 %v15259_v33  ;;  %v19019_v33 = vld [vmem:[%s28802_s5 + $0xa4c] sm:$0xf]  ;;  %v15195_v7 = vor.u32 %v18983_v5, %v15192_v22  ;;  %v15704_v5 = vld [vmem:[%s28802_s5 + $0xd38] sm:$0xf0] }
 0x74e   :  { %v15339_v28 = vor.u32 %v19019_v33, %v15336_v39  ;;  %v19111_v39 = vld [vmem:[%s28802_s5 + $0xd2c] sm:$0xf] }
 0x74f   :  { %7133 = vmatpush.bf16.msra.mxu3 %v15403_v6  ;;  %7154 = vmatmul.bf16.vlgmr.msrb.gmra.mxu0 %v24658_v29  ;;  %v18987_v6 = vld [vmem:[%s28802_s5 + $0x94c] sm:$0xf]  ;;  %v15355_v29 = vor.u32 %v19023_v24, %v15352_v60  ;;  %v15304_v60 = vld [vmem:[%s28802_s5 + $0xa18] sm:$0xf0]  ;;  %v15707_v22 = vor.u32 %v19111_v39, %v15704_v5  ;;  %v16205_v39 = vld [vmem:[%s28802_s5 + $0xfe0] sm:$0xf] }
 0x750   :  { %7226 = vmatpush.bf16.msra.mxu0 %v22183_v40  ;;  %15752 = vmatmul.msk.bf16.vlgmr.msra.gmra.mxu1 %vm3477_vm3, %v25159_v57  ;;  %v15211_v19 = vor.u32 %v18987_v6, %v15208_v51  ;;  %v19011_v24 = vld [vmem:[%s28802_s5 + $0xa0c] sm:$0xf]  ;;  %v15739_v6 = vor.u32 %v19119_v27, %v15736_v2  ;;  %v16253_v2 = vld [vmem:[%s28802_s5 + $0x1040] sm:$0xf]  ;;  %v19201_v5 = vld [vmem:[%s28802_s5 + $0xfec] sm:$0xf0] }
 0x751   :  { %7121 = vmatpush.bf16.msra.mxu2 %v15243_v26  ;;  %v15320_v26 = vld [vmem:[%s28802_s5 + $0xa38] sm:$0xf0]  ;;  %v19115_v51 = vld [vmem:[%s28802_s5 + $0xd4c] sm:$0xf] }
 0x753   :  { %7134 = vmatpush.bf16.msra.mxu3 %v15387_v23  ;;  %v19015_v23 = vld [vmem:[%s28802_s5 + $0xa2c] sm:$0xf] }
 0x754   :  { %7227 = vmatpush.bf16.msra.mxu0 %v22173_v3 }
 0x755   :  { %7122 = vmatpush.bf16.msra.mxu2 %v15227_v18  ;;  %v15179_v18 = vor.u32 %v18979_v11, %v15176_v41  ;;  %v19217_v11 = vld [vmem:[%s28802_s5 + $0x106c] sm:$0xf0] }
 0x757   :  { %7135 = vmatpush.bf16.msra.mxu3 %v15371_v8  ;;  %v15323_v8 = vor.u32 %v19015_v23, %v15320_v26  ;;  %v16269_v26 = vld [vmem:[%s28802_s5 + $0x1060] sm:$0xf] }
 0x758   :  { %7228 = vmatpush.bf16.msra.mxu0 %v22151_v43  ;;  %v16270_v27 = vor.u32 %v19217_v11, %v16269_v26 }
 0x759   :  { %7123 = vmatpush.bf16.msra.mxu2 %v15211_v19  ;;  %v15307_v19 = vor.u32 %v19011_v24, %v15304_v60  ;;  %v16237_v24 = vld [vmem:[%s28802_s5 + $0x1020] sm:$0xf]  ;;  %v19209_v60 = vld [vmem:[%s28802_s5 + $0x102c] sm:$0xf0] }
 0x75b   :  { %7136 = vmatpush.bf16.msra.mxu3 %v15355_v29  ;;  %v15720_v29 = vld [vmem:[%s28802_s5 + $0xd58] sm:$0xf0] }
 0x75c   :  { %v15723_v33 = vor.u32 %v19115_v51, %v15720_v29  ;;  %v16238_v51 = vor.u32 %v19209_v60, %v16237_v24  ;;  %v16221_v29 = vld [vmem:[%s28802_s5 + $0x1000] sm:$0xf]  ;;  %v19189_v60 = vld [vmem:[%s28802_s5 + $0xf8c] sm:$0xf0] }
 0x75d   :  { %7124 = vmatpush.bf16.msra.mxu2 %v15195_v7  ;;  %v15688_v7 = vld [vmem:[%s28802_s5 + $0xd18] sm:$0xf0]  ;;  %v16157_v24 = vld [vmem:[%s28802_s5 + $0xf80] sm:$0xf] }
 0x75f   :  { %7137 = vmatpush.bf16.msra.mxu3 %v15339_v28  ;;  %15751 = vmatmul.msk.bf16.vlgmr.msra.gmra.mxu0 %vm3477_vm3, %v25159_v57  ;;  %v19107_v28 = vld [vmem:[%s28802_s5 + $0xd0c] sm:$0xf] }
 0x760   :  { %v15691_v23 = vor.u32 %v19107_v28, %v15688_v7  ;;  %v16206_v7 = vor.u32 %v19201_v5, %v16205_v39 }
 0x761   :  { %7125 = vmatpush.bf16.msra.mxu2 %v15179_v18 }
 0x763   :  { %7138 = vmatpush.bf16.msra.mxu3 %v15323_v8  ;;  %v19213_v8 = vld [vmem:[%s28802_s5 + $0x104c] sm:$0xf0] }
 0x764   :  { %7126 = vmatmul.bf16.vlgmr.msra.gmra.mxu2 %v24773_v13  ;;  %v16254_v18 = vor.u32 %v19213_v8, %v16253_v2  ;;  %v19197_v2 = vld [vmem:[%s28802_s5 + $0xfcc] sm:$0xf0] }
 0x765   :  { %7178 = vmatpush.bf16.msrb.mxu2 %v15739_v6 }
 0x767   :  { %7139 = vmatpush.bf16.msra.mxu3 %v15307_v19 }
 0x769   :  { %7179 = vmatpush.bf16.msrb.mxu2 %v15723_v33 }
 0x76a   :  { %7140 = vmatmul.bf16.vlgmr.msra.gmra.mxu3 %v24717_v34 }
 0x76b   :  { %7212 = vmatpush.bf16.msrb.mxu3 %v22192_v38 }
 0x76d   :  { %7180 = vmatpush.bf16.msrb.mxu2 %v15707_v22  ;;  %v6945_v34 = vpop.f32.mrf.mxu1 }
 0x76f   :  { %7213 = vmatpush.bf16.msrb.mxu3 %v22178_v47 }
 0x771   :  { %7181 = vmatpush.bf16.msrb.mxu2 %v15691_v23 }
 0x773   :  { %7214 = vmatpush.bf16.msrb.mxu3 %v22161_v9 }
 0x774   :  { %15743 = vmatmul.msk.bf16.vlgmr.msrb.gmra.mxu2 %vm4667_vm4, %v24863_v58 }
 0x775   :  { %7254 = vmatpush.bf16.msra.mxu2 %v22281_v55  ;;  %v25262_v13 = vpop.f32.mrf.mxu1 }
 0x777   :  { %7268 = vmatpush.bf16.msra.mxu3 %v22340_v21 }
 0x779   :  { %7255 = vmatpush.bf16.msra.mxu2 %v22284_v45 }
 0x77a   :  { %15750 = vmatmul.msk.bf16.vlgmr.msrb.gmra.mxu3 %vm3477_vm3, %v25159_v57 }
 0x77b   :  { %7269 = vmatpush.bf16.msra.mxu3 %v22353_v53  ;;  %v6931_v41 = vpop.f32.mrf.mxu0 }
 0x77d   :  { %7256 = vmatpush.bf16.msra.mxu2 %v22290_v1  ;;  %v7001_v58 = vpop.f32.mrf.mxu1 }
 0x77f   :  { %7270 = vmatpush.bf16.msra.mxu3 %v22363_v17 }
 0x781   :  { %8178 = vmatpush.bf16.msrb.mxu2 %v16270_v27  ;;  %v16189_v27 = vld [vmem:[%s28802_s5 + $0xfc0] sm:$0xf] }
 0x782   :  { %v16190_v8 = vor.u32 %v19197_v2, %v16189_v27  ;;  %v16125_v27 = vld [vmem:[%s28802_s5 + $0xf40] sm:$0xf]  ;;  %v19181_v2 = vld [vmem:[%s28802_s5 + $0xf4c] sm:$0xf0] }
 0x783   :  { %v25286_v6 = vpop.f32.mrf.mxu0 }
 0x784   :  { %15753 = vmatmul.msk.bf16.vlgmr.msra.gmra.mxu2 %vm3477_vm3, %v25159_v57 }
 0x785   :  { %8179 = vmatpush.bf16.msrb.mxu2 %v16254_v18  ;;  %v25294_v19 = vpop.f32.mrf.mxu1 }
 0x786   :  { %28942 = vst [vmem:[#allocation45_spill] sm:$0xff] %v25294_v19  ;;  %v16341_v19 = vld [vmem:[%s28802_s5 + $0x10e8] sm:$0xf] }
 0x789   :  { %8180 = vmatpush.bf16.msrb.mxu2 %v16238_v51  ;;  %v16158_v51 = vor.u32 %v19189_v60, %v16157_v24  ;;  %v16109_v24 = vld [vmem:[%s28802_s5 + $0xf20] sm:$0xf]  ;;  %v19177_v60 = vld [vmem:[%s28802_s5 + $0xf2c] sm:$0xf0] }
 0x78a   :  { %15754 = vmatmul.msk.bf16.vlgmr.msra.gmra.mxu3 %vm3477_vm3, %v25159_v57  ;;  %v19205_v57 = vld [vmem:[%s28802_s5 + $0x100c] sm:$0xf0]  ;;  %v6917_v22 = vpop.f32.mrf.mxu3 }
 0x78b   :  { %v16222_v33 = vor.u32 %v19205_v57, %v16221_v29  ;;  %v6987_v28 = vpop.f32.mrf.mxu0  ;;  %v6932_v23 = vadd.f32 %v6931_v41, %v6917_v22  ;;  %v16173_v41 = vld [vmem:[%s28802_s5 + $0xfa0] sm:$0xf]  ;;  %v19185_v57 = vld [vmem:[%s28802_s5 + $0xf6c] sm:$0xf0]  ;;  %v16143_v22 = vld [vmem:[%s28802_s5 + $0xf70] sm:$0xf0] }
 0x78c   :  { %v25302_v26 = vadd.f32 %v7001_v58, %v6987_v28  ;;  %v16141_v29 = vld [vmem:[%s28802_s5 + $0xf60] sm:$0xf] }
 0x78d   :  { %8181 = vmatpush.bf16.msrb.mxu2 %v16222_v33  ;;  %v6946_v11 = vadd.f32 %v6945_v34, %v6932_v23  ;;  %v25310_v18 = vpop.f32.mrf.mxu1  ;;  %v19193_v34 = vld [vmem:[%s28802_s5 + $0xfac] sm:$0xf0]  ;;  %v19183_v33 = vld [vmem:[%s28802_s5 + $0xf64] sm:$0xf]  ;;  %v16142_v5 = vor.u32 %v19185_v57, %v16141_v29  ;;  %v16110_v29 = vor.u32 %v19177_v60, %v16109_v24  ;;  %v16111_v57 = vld [vmem:[%s28802_s5 + $0xf30] sm:$0xf0] }
 0x78e   :  { %v16174_v58 = vor.u32 %v19193_v34, %v16173_v41  ;;  %v16126_v41 = vor.u32 %v19181_v2, %v16125_v27  ;;  %v16127_v34 = vld [vmem:[%s28802_s5 + $0xf50] sm:$0xf0]  ;;  %v19173_v27 = vld [vmem:[%s28802_s5 + $0xf0c] sm:$0xf0]  ;;  %v19171_v2 = vld [vmem:[%s28802_s5 + $0xf04] sm:$0xf] }
 0x78f   :  { %8164 = vmatpush.bf16.msrb.mxu1 %v16142_v5 }
 0x791   :  { %8182 = vmatpush.bf16.msrb.mxu2 %v16206_v7  ;;  %v16146_v7 = vor.u32 %v19183_v33, %v16143_v22 }
 0x792   :  { %v25333_v39 = vpop.f32.mrf.mxu3 }
 0x793   :  { %v25338_v28 = vpop.f32.mrf.mxu0  ;;  %8165 = vmatpush.bf16.msrb.mxu1 %v16126_v41  ;;  %v16095_v41 = vld [vmem:[%s28802_s5 + $0xf10] sm:$0xf0] }
 0x794   :  { %28943 = vst [vmem:[#allocation47_spill] sm:$0xff] %v25338_v28  ;;  %v16098_v24 = vor.u32 %v19171_v2, %v16095_v41  ;;  %v19165_v41 = vld [vmem:[%s28802_s5 + $0xecc] sm:$0xf0] }
 0x795   :  { %8183 = vmatpush.bf16.msrb.mxu2 %v16190_v8  ;;  %v25340_v23 = vpop.f32.mrf.mxu1  ;;  %v19179_v8 = vld [vmem:[%s28802_s5 + $0xf44] sm:$0xf] }
 0x796   :  { %28944 = vst [vmem:[#allocation46_spill] sm:$0xff] %v25340_v23 }
 0x797   :  { %8166 = vmatpush.bf16.msrb.mxu1 %v16110_v29  ;;  %v19169_v29 = vld [vmem:[%s28802_s5 + $0xeec] sm:$0xf0] }
 0x799   :  { %8184 = vmatpush.bf16.msrb.mxu2 %v16174_v58  ;;  %v16130_v58 = vor.u32 %v19179_v8, %v16127_v34 }
 0x79a   :  { %v6973_v5 = vpop.f32.mrf.mxu3 }
 0x79b   :  { %v25366_v22 = vpop.f32.mrf.mxu0 }
 0x79d   :  { %8185 = vmatpush.bf16.msrb.mxu2 %v16158_v51  ;;  %v19175_v51 = vld [vmem:[%s28802_s5 + $0xf24] sm:$0xf]  ;;  %v25380_v34 = vpop.f32.mrf.mxu1 }
 0x79e   :  { %v16114_v33 = vor.u32 %v19175_v51, %v16111_v57  ;;  %v16077_v51 = vld [vmem:[%s28802_s5 + $0xee0] sm:$0xf]  ;;  %v19167_v57 = vld [vmem:[%s28802_s5 + $0xee4] sm:$0xf] }
 0x7a1   :  { %8234 = vmatpush.bf16.msra.mxu2 %v16146_v7  ;;  %v16093_v7 = vld [vmem:[%s28802_s5 + $0xf00] sm:$0xf] }
 0x7a2   :  { %v16094_v8 = vor.u32 %v19173_v27, %v16093_v7  ;;  %v16078_v7 = vor.u32 %v19169_v29, %v16077_v51 }
 0x7a4   :  { %8167 = vmatpush.bf16.msrb.mxu1 %v16094_v8  ;;  %v16061_v8 = vld [vmem:[%s28802_s5 + $0xec0] sm:$0xf] }
 0x7a5   :  { %8235 = vmatpush.bf16.msra.mxu2 %v16130_v58 }
 0x7a6   :  { %v6959_v58 = vpop.f32.mrf.mxu2 }
 0x7a7   :  { %v6960_v60 = vadd.f32 %v6959_v58, %v6946_v11  ;;  %v16079_v11 = vld [vmem:[%s28802_s5 + $0xef0] sm:$0xf0]  ;;  %v25406_v58 = vpop.f32.mrf.mxu3 }
 0x7a8   :  { %v16082_v27 = vor.u32 %v19167_v57, %v16079_v11  ;;  %8168 = vmatpush.bf16.msrb.mxu1 %v16078_v7  ;;  %v25415_v57 = vpop.f32.mrf.mxu1  ;;  %v19161_v7 = vld [vmem:[%s28802_s5 + $0xeac] sm:$0xf0]  ;;  %v19159_v11 = vld [vmem:[%s28802_s5 + $0xea4] sm:$0xf] }
 0x7a9   :  { %8236 = vmatpush.bf16.msra.mxu2 %v16114_v33  ;;  %v6974_v33 = vadd.f32 %v6973_v5, %v6960_v60  ;;  %v19163_v5 = vld [vmem:[%s28802_s5 + $0xec4] sm:$0xf]  ;;  %v25411_v60 = vpop.f32.mrf.mxu0  ;;  %28946 = vst [vmem:[#allocation48_spill] sm:$0xff] %v25415_v57 }
 0x7aa   :  { %28945 = vst [vmem:[#allocation43_spill] sm:$0xff] %v25411_v60 }
 0x7ab   :  { %v25395_v2 = vadd.f32 %v6974_v33, %v24304_v25  ;;  %v16063_v25 = vld [vmem:[%s28802_s5 + $0xed0] sm:$0xf0]  ;;  %v16045_v33 = vld [vmem:[%s28802_s5 + $0xea0] sm:$0xf] }
 0x7ac   :  { %v16066_v29 = vor.u32 %v19163_v5, %v16063_v25  ;;  %v16397_v5 = vld [vmem:[%s28802_s5 + $0x1160] sm:$0xf] }
 0x7ad   :  { %8237 = vmatpush.bf16.msra.mxu2 %v16098_v24  ;;  %v16062_v24 = vor.u32 %v19165_v41, %v16061_v8  ;;  %v16047_v8 = vld [vmem:[%s28802_s5 + $0xeb0] sm:$0xf0] }
 0x7ae   :  { %v25413_v51 = vpop.f32.mrf.mxu2  ;;  %v16050_v41 = vor.u32 %v19159_v11, %v16047_v8  ;;  %v16013_v8 = vld [vmem:[%s28802_s5 + $0xe60] sm:$0xf] }
 0x7af   :  { %8169 = vmatpush.bf16.msrb.mxu1 %v16062_v24  ;;  %v19249_v24 = vld [vmem:[%s28802_s5 + $0x116c] sm:$0xf0] }
 0x7b0   :  { %v16398_v25 = vor.u32 %v19249_v24, %v16397_v5 }
 0x7b1   :  { %8238 = vmatpush.bf16.msra.mxu2 %v16082_v27  ;;  %v16046_v27 = vor.u32 %v19161_v7, %v16045_v33  ;;  %v19157_v33 = vld [vmem:[%s28802_s5 + $0xe8c] sm:$0xf0]  ;;  %v19155_v7 = vld [vmem:[%s28802_s5 + $0xe84] sm:$0xf] }
 0x7b2   :  { %8192 = vmatpush.bf16.msrb.mxu3 %v16398_v25  ;;  %v19151_v25 = vld [vmem:[%s28802_s5 + $0xe64] sm:$0xf] }
 0x7b3   :  { %8170 = vmatpush.bf16.msrb.mxu1 %v16046_v27  ;;  %v16031_v27 = vld [vmem:[%s28802_s5 + $0xe90] sm:$0xf0] }
 0x7b4   :  { %v16034_v24 = vor.u32 %v19155_v7, %v16031_v27  ;;  %v19245_v7 = vld [vmem:[%s28802_s5 + $0x114c] sm:$0xf0]  ;;  %v25466_v27 = vpop.f32.mrf.mxu0 }
 0x7b5   :  { %8239 = vmatpush.bf16.msra.mxu2 %v16066_v29  ;;  %v16029_v29 = vld [vmem:[%s28802_s5 + $0xe80] sm:$0xf] }
 0x7b6   :  { %v16030_v11 = vor.u32 %v19157_v33, %v16029_v29  ;;  %v7015_v5 = vpop.f32.mrf.mxu2  ;;  %v16015_v29 = vld [vmem:[%s28802_s5 + $0xe70] sm:$0xf0]  ;;  %v7029_v33 = vpop.f32.mrf.mxu3 }
 0x7b7   :  { %v7016_v23 = vadd.f32 %v7015_v5, %v25302_v26  ;;  %v16018_v46 = vor.u32 %v19151_v25, %v16015_v29  ;;  %v15997_v26 = vld [vmem:[%s28802_s5 + $0xe40] sm:$0xf]  ;;  %v19147_v5 = vld [vmem:[%s28802_s5 + $0xe44] sm:$0xf] }
 0x7b8   :  { %8171 = vmatpush.bf16.msrb.mxu1 %v16030_v11  ;;  %v19149_v11 = vld [vmem:[%s28802_s5 + $0xe4c] sm:$0xf0] }
 0x7b9   :  { %8240 = vmatpush.bf16.msra.mxu2 %v16050_v41  ;;  %v19153_v41 = vld [vmem:[%s28802_s5 + $0xe6c] sm:$0xf0]  ;;  %v7030_v25 = vadd.f32 %v7029_v33, %v7016_v23  ;;  %v15998_v29 = vor.u32 %v19149_v11, %v15997_v26  ;;  %v15981_v23 = vld [vmem:[%s28802_s5 + $0xe20] sm:$0xf]  ;;  %v19143_v26 = vld [vmem:[%s28802_s5 + $0xe24] sm:$0xf] }
 0x7ba   :  { %v16014_v57 = vor.u32 %v19153_v41, %v16013_v8  ;;  %v16382_v41 = vor.u32 %v19245_v7, %v16381_v56  ;;  %v19241_v7 = vld [vmem:[%s28802_s5 + $0x112c] sm:$0xf0]  ;;  %v15983_v11 = vld [vmem:[%s28802_s5 + $0xe30] sm:$0xf0] }
 0x7bc   :  { %8150 = vmatpush.bf16.msrb.mxu0 %v16014_v57  ;;  %8220 = vmatpush.bf16.msra.mxu1 %v16018_v46  ;;  %v15999_v57 = vld [vmem:[%s28802_s5 + $0xe50] sm:$0xf0]  ;;  %v7044_v46 = vadd.f32 %v25366_v22, %v7030_v25  ;;  %v15986_v25 = vor.u32 %v19143_v26, %v15983_v11  ;;  %v16333_v11 = vld [vmem:[%s28802_s5 + $0x10e0] sm:$0xf] }
 0x7bd   :  { %v25468_v8 = vpop.f32.mrf.mxu1  ;;  %8241 = vmatpush.bf16.msra.mxu2 %v16034_v24  ;;  %8193 = vmatpush.bf16.msrb.mxu3 %v16382_v41  ;;  %v16002_v56 = vor.u32 %v19147_v5, %v15999_v57  ;;  %v16365_v24 = vld [vmem:[%s28802_s5 + $0x1120] sm:$0xf]  ;;  %v19145_v41 = vld [vmem:[%s28802_s5 + $0xe2c] sm:$0xf0] }
 0x7be   :  { %v16366_v33 = vor.u32 %v19241_v7, %v16365_v24  ;;  %v15982_v5 = vor.u32 %v19145_v41, %v15981_v23  ;;  %v16349_v57 = vld [vmem:[%s28802_s5 + $0x1100] sm:$0xf]  ;;  %v25505_v22 = vadd.f32 %v7044_v46, %v24423_v4  ;;  %v19237_v24 = vld [vmem:[%s28802_s5 + $0x110c] sm:$0xf0]  ;;  %v25510_v7 = vpop.f32.mrf.mxu2  ;;  %v19139_v23 = vld [vmem:[%s28802_s5 + $0xe04] sm:$0xf]  ;;  %v25525_v46 = vpop.f32.mrf.mxu0 }
 0x7bf   :  { %28947 = vst [vmem:[#allocation13_spill] sm:$0xff] %v25510_v7  ;;  %v16350_v60 = vor.u32 %v19237_v24, %v16349_v57  ;;  %v15965_v4 = vld [vmem:[%s28802_s5 + $0xe00] sm:$0xf]  ;;  %v15967_v41 = vld [vmem:[%s28802_s5 + $0xe10] sm:$0xf0] }
 0x7c0   :  { %8151 = vmatpush.bf16.msrb.mxu0 %v15998_v29  ;;  %8221 = vmatpush.bf16.msra.mxu1 %v16002_v56  ;;  %v25514_v29 = vpop.f32.mrf.mxu3  ;;  %v19141_v56 = vld [vmem:[%s28802_s5 + $0xe0c] sm:$0xf0]  ;;  %28950 = vst [vmem:[#allocation11_spill] sm:$0xff] %v25525_v46  ;;  %v15970_v26 = vor.u32 %v19139_v23, %v15967_v41  ;;  %v19135_v24 = vld [vmem:[%s28802_s5 + $0xde4] sm:$0xf] }
 0x7c1   :  { %8194 = vmatpush.bf16.msrb.mxu3 %v16366_v33  ;;  %28949 = vst [vmem:[#allocation27_spill] sm:$0xff] %v25514_v29  ;;  %v15966_v33 = vor.u32 %v19141_v56, %v15965_v4  ;;  %v15951_v23 = vld [vmem:[%s28802_s5 + $0xdf0] sm:$0xf0]  ;;  %v19231_v7 = vld [vmem:[%s28802_s5 + $0x10e4] sm:$0xf] }
 0x7c2   :  { %v15954_v41 = vor.u32 %v19135_v24, %v15951_v23  ;;  %v15935_v23 = vld [vmem:[%s28802_s5 + $0xdd0] sm:$0xf0] }
 0x7c4   :  { %8152 = vmatpush.bf16.msrb.mxu0 %v15982_v5  ;;  %8222 = vmatpush.bf16.msra.mxu1 %v15986_v25  ;;  %v19233_v5 = vld [vmem:[%s28802_s5 + $0x10ec] sm:$0xf0] }
 0x7c5   :  { %v25512_v48 = vpop.f32.mrf.mxu1  ;;  %8195 = vmatpush.bf16.msrb.mxu3 %v16350_v60  ;;  %v16334_v57 = vor.u32 %v19233_v5, %v16333_v11  ;;  %v15949_v60 = vld [vmem:[%s28802_s5 + $0xde0] sm:$0xf]  ;;  %v19137_v25 = vld [vmem:[%s28802_s5 + $0xdec] sm:$0xf0] }
 0x7c6   :  { %28948 = vst [vmem:[#allocation14_spill] sm:$0xff] %v25512_v48  ;;  %v15950_v56 = vor.u32 %v19137_v25, %v15949_v60  ;;  %v19229_v11 = vld [vmem:[%s28802_s5 + $0x10cc] sm:$0xf0]  ;;  %v15933_v60 = vld [vmem:[%s28802_s5 + $0xdc0] sm:$0xf] }
 0x7c7   :  { %v7071_v4 = vpop.f32.mrf.mxu2  ;;  %v19131_v25 = vld [vmem:[%s28802_s5 + $0xdc4] sm:$0xf] }
 0x7c8   :  { %8153 = vmatpush.bf16.msrb.mxu0 %v15966_v33  ;;  %8223 = vmatpush.bf16.msra.mxu1 %v15970_v26  ;;  %v7072_v33 = vadd.f32 %v7071_v4, %v25310_v18  ;;  %v16317_v26 = vld [vmem:[%s28802_s5 + $0x10c0] sm:$0xf]  ;;  %v19133_v18 = vld [vmem:[%s28802_s5 + $0xdcc] sm:$0xf0] }
 0x7c9   :  { %8196 = vmatpush.bf16.msrb.mxu3 %v16334_v57  ;;  %v16318_v48 = vor.u32 %v19229_v11, %v16317_v26  ;;  %v16301_v26 = vld [vmem:[%s28802_s5 + $0x10a0] sm:$0xf]  ;;  %v19225_v11 = vld [vmem:[%s28802_s5 + $0x10ac] sm:$0xf0] }
 0x7cc   :  { %8154 = vmatpush.bf16.msrb.mxu0 %v15950_v56  ;;  %8224 = vmatpush.bf16.msra.mxu1 %v15954_v41  ;;  %v25564_v4 = vpop.f32.mrf.mxu0  ;;  %v15934_v56 = vor.u32 %v19133_v18, %v15933_v60  ;;  %v15938_v41 = vor.u32 %v19131_v25, %v15935_v23  ;;  %v15917_v60 = vld [vmem:[%s28802_s5 + $0xda0] sm:$0xf]  ;;  %v19129_v18 = vld [vmem:[%s28802_s5 + $0xdac] sm:$0xf0] }
 0x7cd   :  { %v7244_v5 = vpop.f32.mrf.mxu1  ;;  %v7085_v57 = vpop.f32.mrf.mxu3  ;;  %8197 = vmatpush.bf16.msrb.mxu3 %v16318_v48  ;;  %v16021_v48 = vld [vmem:[%s28802_s5 + $0xe68] sm:$0xf] }
 0x7ce   :  { %v7086_v24 = vadd.f32 %v7085_v57, %v7072_v33  ;;  %v19154_v33 = vld [vmem:[%s28802_s5 + $0xe74] sm:$0xf0]  ;;  %v16302_v57 = vor.u32 %v19225_v11, %v16301_v26  ;;  %v19221_v26 = vld [vmem:[%s28802_s5 + $0x108c] sm:$0xf0]  ;;  %v19215_v11 = vld [vmem:[%s28802_s5 + $0x1064] sm:$0xf] }
 0x7d0   :  { %v7100_v46 = vadd.f32 %v25466_v27, %v7086_v24  ;;  %8155 = vmatpush.bf16.msrb.mxu0 %v15934_v56  ;;  %8225 = vmatpush.bf16.msra.mxu1 %v15938_v41  ;;  %v19127_v27 = vld [vmem:[%s28802_s5 + $0xda4] sm:$0xf]  ;;  %v15918_v24 = vor.u32 %v19129_v18, %v15917_v60  ;;  %v15919_v56 = vld [vmem:[%s28802_s5 + $0xdb0] sm:$0xf0]  ;;  %v16285_v41 = vld [vmem:[%s28802_s5 + $0x1080] sm:$0xf] }
 0x7d1   :  { %8198 = vmatpush.bf16.msrb.mxu3 %v16302_v57  ;;  %v15922_v23 = vor.u32 %v19127_v27, %v15919_v56  ;;  %v16022_v57 = vor.u32 %v19154_v33, %v16021_v48  ;;  %v16005_v60 = vld [vmem:[%s28802_s5 + $0xe48] sm:$0xf]  ;;  %v19150_v18 = vld [vmem:[%s28802_s5 + $0xe54] sm:$0xf0]  ;;  %v16286_v27 = vor.u32 %v19221_v26, %v16285_v41  ;;  %v16271_v56 = vld [vmem:[%s28802_s5 + $0x1070] sm:$0xf0] }
 0x7d2   :  { %v7114_v25 = vadd.f32 %v25380_v34, %v7100_v46  ;;  %v15901_v48 = vld [vmem:[%s28802_s5 + $0xd80] sm:$0xf]  ;;  %v19125_v33 = vld [vmem:[%s28802_s5 + $0xd8c] sm:$0xf0] }
 0x7d3   :  { %v15902_v41 = vor.u32 %v19125_v33, %v15901_v48  ;;  %v16461_v26 = vld [vmem:[%s28802_s5 + $0x11e0] sm:$0xf]  ;;  %v19211_v48 = vld [vmem:[%s28802_s5 + $0x1044] sm:$0xf]  ;;  %v19261_v33 = vld [vmem:[%s28802_s5 + $0x11cc] sm:$0xf0] }
 0x7d4   :  { %v25605_v34 = vadd.f32 %v7114_v25, %v24608_v37  ;;  %8156 = vmatpush.bf16.msrb.mxu0 %v15918_v24  ;;  %8226 = vmatpush.bf16.msra.mxu1 %v15922_v23  ;;  %v16274_v37 = vor.u32 %v19215_v11, %v16271_v56  ;;  %v19123_v25 = vld [vmem:[%s28802_s5 + $0xd84] sm:$0xf]  ;;  %v25627_v24 = vpop.f32.mrf.mxu0  ;;  %v19265_v11 = vld [vmem:[%s28802_s5 + $0x11ec] sm:$0xf0] }
 0x7d5   :  { %v7246_v46 = vpop.f32.mrf.mxu1  ;;  %28951 = vst [vmem:[#allocation12_spill] sm:$0xff] %v25627_v24  ;;  %8199 = vmatpush.bf16.msrb.mxu3 %v16286_v27  ;;  %v15989_v27 = vld [vmem:[%s28802_s5 + $0xe28] sm:$0xf]  ;;  %v16462_v56 = vor.u32 %v19265_v11, %v16461_v26  ;;  %v19142_v11 = vld [vmem:[%s28802_s5 + $0xe14] sm:$0xf0] }
 0x7d6   :  { %v25616_v29 = vpack.c.bf16 %v7246_v46, %v7244_v5  ;;  %v15903_v5 = vld [vmem:[%s28802_s5 + $0xd90] sm:$0xf0]  ;;  %v16006_v46 = vor.u32 %v19150_v18, %v16005_v60  ;;  %v16445_v18 = vld [vmem:[%s28802_s5 + $0x11c0] sm:$0xf]  ;;  %v15973_v26 = vld [vmem:[%s28802_s5 + $0xe08] sm:$0xf] }
 0x7d7   :  { %v15906_v23 = vor.u32 %v19123_v25, %v15903_v5  ;;  %v16446_v25 = vor.u32 %v19261_v33, %v16445_v18  ;;  %v19207_v5 = vld [vmem:[%s28802_s5 + $0x1024] sm:$0xf]  ;;  %v16223_v33 = vld [vmem:[%s28802_s5 + $0x1010] sm:$0xf0]  ;;  %v15941_v24 = vld [vmem:[%s28802_s5 + $0xdc8] sm:$0xf] }
 0x7d8   :  { %8186 = vmatmul.bf16.vlgmr.msrb.gmra.mxu2 %v25616_v29  ;;  %8157 = vmatpush.bf16.msrb.mxu0 %v15902_v41  ;;  %v19203_v18 = vld [vmem:[%s28802_s5 + $0x1004] sm:$0xf] }
 0x7d9   :  { %8248 = vmatpush.bf16.msra.mxu3 %v16274_v37  ;;  %8290 = vmatpush.bf16.msrb.mxu2 %v16022_v57  ;;  %v19146_v37 = vld [vmem:[%s28802_s5 + $0xe34] sm:$0xf0]  ;;  %v16255_v57 = vld [vmem:[%s28802_s5 + $0x1050] sm:$0xf0] }
 0x7da   :  { %8227 = vmatpush.bf16.msra.mxu1 %v15906_v23  ;;  %v16258_v60 = vor.u32 %v19211_v48, %v16255_v57  ;;  %v15990_v41 = vor.u32 %v19146_v37, %v15989_v27  ;;  %v16239_v23 = vld [vmem:[%s28802_s5 + $0x1030] sm:$0xf0]  ;;  %v16429_v27 = vld [vmem:[%s28802_s5 + $0x11a0] sm:$0xf]  ;;  %v19257_v37 = vld [vmem:[%s28802_s5 + $0x11ac] sm:$0xf0]  ;;  %v25675_v48 = vpop.f32.mrf.mxu2 }
 0x7db   :  { %28952 = vst [vmem:[#allocation41_spill] sm:$0xff] %v25675_v48  ;;  %v16430_v57 = vor.u32 %v19257_v37, %v16429_v27  ;;  %v16463_v27 = vld [vmem:[%s28802_s5 + $0x11f0] sm:$0xf0] }
 0x7dc   :  { %8210 = vmatpush.bf16.msra.mxu0 %v16462_v56  ;;  %v16242_v56 = vor.u32 %v19207_v5, %v16239_v23  ;;  %v19138_v5 = vld [vmem:[%s28802_s5 + $0xdf4] sm:$0xf0]  ;;  %v16226_v23 = vor.u32 %v19203_v18, %v16223_v33  ;;  %v16207_v33 = vld [vmem:[%s28802_s5 + $0xff0] sm:$0xf0] }
 0x7dd   :  { %8291 = vmatpush.bf16.msrb.mxu2 %v16006_v46  ;;  %8249 = vmatpush.bf16.msra.mxu3 %v16258_v60  ;;  %v7230_v46 = vpop.f32.mrf.mxu0  ;;  %v15974_v60 = vor.u32 %v19142_v11, %v15973_v26  ;;  %v16413_v26 = vld [vmem:[%s28802_s5 + $0x1180] sm:$0xf]  ;;  %v19253_v11 = vld [vmem:[%s28802_s5 + $0x118c] sm:$0xf0]  ;;  %v16447_v48 = vld [vmem:[%s28802_s5 + $0x11d0] sm:$0xf0] }
 0x7de   :  { %v16414_v37 = vor.u32 %v19253_v11, %v16413_v26 }
 0x7e0   :  { %8211 = vmatpush.bf16.msra.mxu0 %v16446_v25  ;;  %v15957_v25 = vld [vmem:[%s28802_s5 + $0xde8] sm:$0xf] }
 0x7e1   :  { %8292 = vmatpush.bf16.msrb.mxu2 %v15990_v41  ;;  %8250 = vmatpush.bf16.msra.mxu3 %v16242_v56  ;;  %v25689_v41 = vpop.f32.mrf.mxu3  ;;  %v19263_v56 = vld [vmem:[%s28802_s5 + $0x11e4] sm:$0xf]  ;;  %v15958_v18 = vor.u32 %v19138_v5, %v15957_v25 }
 0x7e2   :  { %28953 = vst [vmem:[#allocation42_spill] sm:$0xff] %v25689_v41  ;;  %v19134_v41 = vld [vmem:[%s28802_s5 + $0xdd4] sm:$0xf0]  ;;  %v16466_v25 = vor.u32 %v19263_v56, %v16463_v27  ;;  %v19259_v5 = vld [vmem:[%s28802_s5 + $0x11c4] sm:$0xf] }
 0x7e3   :  { %v16191_v56 = vld [vmem:[%s28802_s5 + $0xfd0] sm:$0xf0]  ;;  %v15942_v27 = vor.u32 %v19134_v41, %v15941_v24  ;;  %v19255_v24 = vld [vmem:[%s28802_s5 + $0x11a4] sm:$0xf] }
 0x7e4   :  { %8212 = vmatpush.bf16.msra.mxu0 %v16430_v57  ;;  %v19199_v57 = vld [vmem:[%s28802_s5 + $0xfe4] sm:$0xf]  ;;  %v16431_v41 = vld [vmem:[%s28802_s5 + $0x11b0] sm:$0xf0] }
 0x7e5   :  { %8293 = vmatpush.bf16.msrb.mxu2 %v15974_v60  ;;  %8251 = vmatpush.bf16.msra.mxu3 %v16226_v23  ;;  %v16210_v26 = vor.u32 %v19199_v57, %v16207_v33  ;;  %v7232_v60 = vpop.f32.mrf.mxu0  ;;  %v16194_v57 = vor.u32 %v19195_v36, %v16191_v56  ;;  %v19126_v56 = vld [vmem:[%s28802_s5 + $0xd94] sm:$0xf0] }
 0x7e6   :  { %v25718_v11 = vpack.c.bf16 %v7232_v60, %v7230_v46  ;;  %v15925_v46 = vld [vmem:[%s28802_s5 + $0xda8] sm:$0xf]  ;;  %v16450_v60 = vor.u32 %v19259_v5, %v16447_v48 }
 0x7e7   :  { %v7127_v23 = vpop.f32.mrf.mxu2 }
 0x7e8   :  { %8213 = vmatpush.bf16.msra.mxu0 %v16414_v37  ;;  %v19130_v37 = vld [vmem:[%s28802_s5 + $0xdb4] sm:$0xf0]  ;;  %8172 = vmatmul.bf16.vlgmr.msrb.gmra.mxu1 %v25718_v11 }
 0x7e9   :  { %8294 = vmatpush.bf16.msrb.mxu2 %v15958_v18  ;;  %8252 = vmatpush.bf16.msra.mxu3 %v16210_v26  ;;  %v19191_v18 = vld [vmem:[%s28802_s5 + $0xfa4] sm:$0xf]  ;;  %v16175_v26 = vld [vmem:[%s28802_s5 + $0xfb0] sm:$0xf0] }
 0x7ea   :  { %8242 = vmatmul.bf16.vlgmr.msra.gmra.mxu2 %v25718_v11  ;;  %8280 = vmatpush.bf16.msrb.mxu1 %v16466_v25  ;;  %v15926_v25 = vor.u32 %v19130_v37, %v15925_v46  ;;  %v16178_v48 = vor.u32 %v19191_v18, %v16175_v26  ;;  %v19251_v37 = vld [vmem:[%s28802_s5 + $0x1184] sm:$0xf] }
 0x7ed   :  { %v7141_v33 = vpop.f32.mrf.mxu3  ;;  %8295 = vmatpush.bf16.msrb.mxu2 %v15942_v27  ;;  %8253 = vmatpush.bf16.msra.mxu3 %v16194_v57  ;;  %v19266_v27 = vld [vmem:[%s28802_s5 + $0x11f4] sm:$0xf0]  ;;  %v16434_v57 = vor.u32 %v19255_v24, %v16431_v41  ;;  %v16159_v24 = vld [vmem:[%s28802_s5 + $0xf90] sm:$0xf0] }
 0x7ee   :  { %v7142_v36 = vadd.f32 %v7141_v33, %v7127_v23  ;;  %v15909_v23 = vld [vmem:[%s28802_s5 + $0xd88] sm:$0xf]  ;;  %8281 = vmatpush.bf16.msrb.mxu1 %v16450_v60  ;;  %v19187_v60 = vld [vmem:[%s28802_s5 + $0xf84] sm:$0xf] }
 0x7ef   :  { %v16469_v33 = vld [vmem:[%s28802_s5 + $0x11e8] sm:$0xf]  ;;  %v25762_v46 = vpop.f32.mrf.mxu2  ;;  %v15910_v18 = vor.u32 %v19126_v56, %v15909_v23  ;;  %v16162_v41 = vor.u32 %v19187_v60, %v16159_v24 }
 0x7f0   :  { %v7156_v5 = vadd.f32 %v25564_v4, %v7142_v36  ;;  %28954 = vst [vmem:[#allocation23_spill] sm:$0xff] %v25762_v46  ;;  %v16415_v36 = vld [vmem:[%s28802_s5 + $0x1190] sm:$0xf0]  ;;  %v16437_v56 = vld [vmem:[%s28802_s5 + $0x11a8] sm:$0xf] }
 0x7f1   :  { %8296 = vmatpush.bf16.msrb.mxu2 %v15926_v25  ;;  %8254 = vmatpush.bf16.msra.mxu3 %v16178_v48  ;;  %v19262_v25 = vld [vmem:[%s28802_s5 + $0x11d4] sm:$0xf0]  ;;  %v16418_v48 = vor.u32 %v19251_v37, %v16415_v36  ;;  %v16421_v36 = vld [vmem:[%s28802_s5 + $0x1188] sm:$0xf] }
 0x7f2   :  { %v7170_v4 = vadd.f32 %v25468_v8, %v7156_v5  ;;  %v16470_v8 = vor.u32 %v19266_v27, %v16469_v33  ;;  %v16453_v5 = vld [vmem:[%s28802_s5 + $0x11c8] sm:$0xf]  ;;  %8282 = vmatpush.bf16.msrb.mxu1 %v16434_v57  ;;  %v19258_v33 = vld [vmem:[%s28802_s5 + $0x11b4] sm:$0xf0] }
 0x7f3   :  { %v16454_v23 = vor.u32 %v19262_v25, %v16453_v5  ;;  %v16438_v24 = vor.u32 %v19258_v33, %v16437_v56  ;;  %v16405_v5 = vld [vmem:[%s28802_s5 + $0x1168] sm:$0xf]  ;;  %v19250_v25 = vld [vmem:[%s28802_s5 + $0x1174] sm:$0xf0] }
 0x7f4   :  { %v16357_v46 = vld [vmem:[%s28802_s5 + $0x1108] sm:$0xf] }
 0x7f5   :  { %v25777_v26 = vpop.f32.mrf.mxu3  ;;  %8297 = vmatpush.bf16.msrb.mxu2 %v15910_v18  ;;  %8255 = vmatpush.bf16.msra.mxu3 %v16162_v41  ;;  %v19254_v18 = vld [vmem:[%s28802_s5 + $0x1194] sm:$0xf0] }
 0x7f6   :  { %28955 = vst [vmem:[#allocation28_spill] sm:$0xff] %v25777_v26  ;;  %8283 = vmatpush.bf16.msrb.mxu1 %v16418_v48  ;;  %v19248_v48 = vld [vmem:[%s28802_s5 + $0x116c] sm:$0xf]  ;;  %v16351_v26 = vld [vmem:[%s28802_s5 + $0x1110] sm:$0xf0] }
 0x7f7   :  { %v7183_v27 = vpop.f32.mrf.mxu2 }
 0x7f8   :  { %v7184_v60 = vadd.f32 %v7183_v27, %v7170_v4  ;;  %v19247_v4 = vld [vmem:[%s28802_s5 + $0x1164] sm:$0xf] }
 0x7f9   :  { %8350 = vmatpush.bf16.msra.mxu2 %v16470_v8  ;;  %v16422_v8 = vor.u32 %v19254_v18, %v16421_v36  ;;  %v19243_v36 = vld [vmem:[%s28802_s5 + $0x1144] sm:$0xf]  ;;  %v16383_v18 = vld [vmem:[%s28802_s5 + $0x1150] sm:$0xf0] }
 0x7fa   :  { %v25792_v57 = vadd.f32 %v7184_v60, %v24790_v20  ;;  %v16399_v20 = vld [vmem:[%s28802_s5 + $0x1170] sm:$0xf0]  ;;  %v16406_v60 = vor.u32 %v19250_v25, %v16405_v5 }
 0x7fb   :  { %v16402_v33 = vor.u32 %v19247_v4, %v16399_v20  ;;  %v16391_v4 = vld [vmem:[%s28802_s5 + $0x1158] sm:$0xf0]  ;;  %v16386_v20 = vor.u32 %v19243_v36, %v16383_v18 }
 0x7fd   :  { %8351 = vmatpush.bf16.msra.mxu2 %v16454_v23  ;;  %v7216_v37 = vpop.f32.mrf.mxu3  ;;  %v16407_v23 = vld [vmem:[%s28802_s5 + $0x1178] sm:$0xf0] }
 0x7ff   :  { %v25800_v41 = vpop.f32.mrf.mxu2 }
 0x800   :  { %28956 = vst [vmem:[#allocation39_spill] sm:$0xff] %v25800_v41  ;;  %v16389_v41 = vld [vmem:[%s28802_s5 + $0x1148] sm:$0xf] }
 0x801   :  { %8352 = vmatpush.bf16.msra.mxu2 %v16438_v24  ;;  %v16410_v24 = vor.u32 %v19248_v48, %v16407_v23  ;;  %v19239_v23 = vld [vmem:[%s28802_s5 + $0x1124] sm:$0xf] }
 0x805   :  { %8353 = vmatpush.bf16.msra.mxu2 %v16422_v8  ;;  %v7218_v56 = vpop.f32.mrf.mxu3  ;;  %v19246_v8 = vld [vmem:[%s28802_s5 + $0x1154] sm:$0xf0] }
 0x806   :  { %v25820_v27 = vpack.c.bf16 %v7218_v56, %v7216_v37  ;;  %v19244_v37 = vld [vmem:[%s28802_s5 + $0x114c] sm:$0xf]  ;;  %v16390_v25 = vor.u32 %v19246_v8, %v16389_v41  ;;  %v16367_v56 = vld [vmem:[%s28802_s5 + $0x1130] sm:$0xf0] }
 0x807   :  { %v7258_v5 = vpop.f32.mrf.mxu2  ;;  %v16394_v48 = vor.u32 %v19244_v37, %v16391_v4  ;;  %v19240_v41 = vld [vmem:[%s28802_s5 + $0x112c] sm:$0xf]  ;;  %v16370_v18 = vor.u32 %v19239_v23, %v16367_v56  ;;  %v19235_v4 = vld [vmem:[%s28802_s5 + $0x1104] sm:$0xf]  ;;  %v16149_v23 = vld [vmem:[%s28802_s5 + $0xf68] sm:$0xf] }
 0x808   :  { %8158 = vmatmul.bf16.vlgmr.msrb.gmra.mxu0 %v25820_v27  ;;  %8228 = vmatmul.bf16.vlgmr.msra.gmra.mxu1 %v25820_v27  ;;  %v19186_v56 = vld [vmem:[%s28802_s5 + $0xf74] sm:$0xf0] }
 0x809   :  { %8262 = vmatpush.bf16.msrb.mxu0 %v16402_v33  ;;  %8298 = vmatmul.bf16.vlgmr.msrb.gmra.mxu2 %v25820_v27  ;;  %v16373_v33 = vld [vmem:[%s28802_s5 + $0x1128] sm:$0xf] }
 0x80a   :  { %8332 = vmatpush.bf16.msra.mxu1 %v16406_v60  ;;  %8402 = vmatpush.bf16.msrb.mxu2 %v16410_v24  ;;  %v19242_v60 = vld [vmem:[%s28802_s5 + $0x1134] sm:$0xf0]  ;;  %v16375_v24 = vld [vmem:[%s28802_s5 + $0x1138] sm:$0xf0] }
 0x80b   :  { %v16374_v8 = vor.u32 %v19242_v60, %v16373_v33  ;;  %v16378_v37 = vor.u32 %v19240_v41, %v16375_v24  ;;  %v16354_v33 = vor.u32 %v19235_v4, %v16351_v26  ;;  %v16150_v26 = vor.u32 %v19186_v56, %v16149_v23  ;;  %v19227_v56 = vld [vmem:[%s28802_s5 + $0x10c4] sm:$0xf] }
 0x80d   :  { %8263 = vmatpush.bf16.msrb.mxu0 %v16386_v20  ;;  %v7272_v36 = vpop.f32.mrf.mxu3  ;;  %v19238_v20 = vld [vmem:[%s28802_s5 + $0x1114] sm:$0xf0] }
 0x80e   :  { %8333 = vmatpush.bf16.msra.mxu1 %v16390_v25  ;;  %8403 = vmatpush.bf16.msrb.mxu2 %v16394_v48  ;;  %v19236_v25 = vld [vmem:[%s28802_s5 + $0x110c] sm:$0xf]  ;;  %v16359_v48 = vld [vmem:[%s28802_s5 + $0x1118] sm:$0xf0]  ;;  %v16358_v41 = vor.u32 %v19238_v20, %v16357_v46  ;;  %v19234_v46 = vld [vmem:[%s28802_s5 + $0x10f4] sm:$0xf0]  ;;  %v16338_v20 = vor.u32 %v19231_v7, %v16335_v35 }
 0x80f   :  { %v7260_v60 = vpop.f32.mrf.mxu2  ;;  %v16362_v24 = vor.u32 %v19236_v25, %v16359_v48  ;;  %v16342_v48 = vor.u32 %v19234_v46, %v16341_v19  ;;  %v19230_v7 = vld [vmem:[%s28802_s5 + $0x10d4] sm:$0xf0]  ;;  %v19228_v19 = vld [vmem:[%s28802_s5 + $0x10cc] sm:$0xf] }
 0x810   :  { %v25894_v28 = vpack.c.bf16 %v7260_v60, %v7258_v5  ;;  %v19182_v5 = vld [vmem:[%s28802_s5 + $0xf54] sm:$0xf0]  ;;  %v16319_v60 = vld [vmem:[%s28802_s5 + $0x10d0] sm:$0xf0] }
 0x811   :  { %8264 = vmatpush.bf16.msrb.mxu0 %v16370_v18  ;;  %v19232_v18 = vld [vmem:[%s28802_s5 + $0x10ec] sm:$0xf] }
 0x812   :  { %8334 = vmatpush.bf16.msra.mxu1 %v16374_v8  ;;  %8404 = vmatpush.bf16.msrb.mxu2 %v16378_v37  ;;  %v16343_v8 = vld [vmem:[%s28802_s5 + $0x10f8] sm:$0xf0]  ;;  %v16133_v37 = vld [vmem:[%s28802_s5 + $0xf48] sm:$0xf] }
 0x813   :  { %8200 = vmatmul.bf16.vlgmr.msrb.gmra.mxu3 %v25894_v28  ;;  %v16346_v23 = vor.u32 %v19232_v18, %v16343_v8  ;;  %v16134_v35 = vor.u32 %v19182_v5, %v16133_v37  ;;  %v19223_v8 = vld [vmem:[%s28802_s5 + $0x10a4] sm:$0xf]  ;;  %v16303_v37 = vld [vmem:[%s28802_s5 + $0x10b0] sm:$0xf0]  ;;  %v16309_v5 = vld [vmem:[%s28802_s5 + $0x10a8] sm:$0xf] }
 0x814   :  { %8304 = vmatpush.bf16.msrb.mxu3 %v16150_v26  ;;  %v16322_v26 = vor.u32 %v19227_v56, %v16319_v60  ;;  %v16101_v56 = vld [vmem:[%s28802_s5 + $0xf08] sm:$0xf]  ;;  %v19174_v60 = vld [vmem:[%s28802_s5 + $0xf14] sm:$0xf0] }
 0x815   :  { %8265 = vmatpush.bf16.msrb.mxu0 %v16354_v33  ;;  %v7274_v4 = vpop.f32.mrf.mxu3  ;;  %v16325_v33 = vld [vmem:[%s28802_s5 + $0x10c8] sm:$0xf] }
 0x816   :  { %8335 = vmatpush.bf16.msra.mxu1 %v16358_v41  ;;  %8405 = vmatpush.bf16.msrb.mxu2 %v16362_v24  ;;  %v25912_v25 = vpack.c.bf16 %v7274_v4, %v7272_v36  ;;  %v16327_v36 = vld [vmem:[%s28802_s5 + $0x10d8] sm:$0xf0]  ;;  %v16117_v41 = vld [vmem:[%s28802_s5 + $0xf28] sm:$0xf]  ;;  %v19178_v24 = vld [vmem:[%s28802_s5 + $0xf34] sm:$0xf0]  ;;  %v16326_v46 = vor.u32 %v19230_v7, %v16325_v33  ;;  %v16306_v33 = vor.u32 %v19223_v8, %v16303_v37 }
 0x817   :  { %v16330_v18 = vor.u32 %v19228_v19, %v16327_v36  ;;  %v16118_v4 = vor.u32 %v19178_v24, %v16117_v41  ;;  %v16287_v36 = vld [vmem:[%s28802_s5 + $0x1090] sm:$0xf0]  ;;  %v16293_v41 = vld [vmem:[%s28802_s5 + $0x1088] sm:$0xf]  ;;  %v19222_v24 = vld [vmem:[%s28802_s5 + $0x1094] sm:$0xf0] }
 0x818   :  { %16475 = vmatmul.msk.bf16.vlgmr.msra.gmra.mxu0 %vm4667_vm4, %v25912_v25  ;;  %16476 = vmatmul.msk.bf16.vlgmr.msrb.gmra.mxu1 %vm4667_vm4, %v25912_v25  ;;  %v16085_v8 = vld [vmem:[%s28802_s5 + $0xee8] sm:$0xf]  ;;  %v19170_v37 = vld [vmem:[%s28802_s5 + $0xef4] sm:$0xf0] }
 0x819   :  { %8266 = vmatpush.bf16.msrb.mxu0 %v16338_v20  ;;  %16477 = vmatmul.msk.bf16.vlgmr.msra.gmra.mxu2 %vm4667_vm4, %v25912_v25  ;;  %v19226_v20 = vld [vmem:[%s28802_s5 + $0x10b4] sm:$0xf0]  ;;  %v16086_v62 = vor.u32 %v19170_v37, %v16085_v8  ;;  %v16245_v37 = vld [vmem:[%s28802_s5 + $0x1028] sm:$0xf] }
 0x81a   :  { %8336 = vmatpush.bf16.msra.mxu1 %v16342_v48  ;;  %8406 = vmatpush.bf16.msrb.mxu2 %v16346_v23  ;;  %v19224_v48 = vld [vmem:[%s28802_s5 + $0x10ac] sm:$0xf]  ;;  %v16311_v23 = vld [vmem:[%s28802_s5 + $0x10b8] sm:$0xf0]  ;;  %v16310_v7 = vor.u32 %v19226_v20, %v16309_v5  ;;  %v16277_v5 = vld [vmem:[%s28802_s5 + $0x1068] sm:$0xf] }
 0x81b   :  { %8305 = vmatpush.bf16.msrb.mxu3 %v16134_v35  ;;  %v19219_v35 = vld [vmem:[%s28802_s5 + $0x1084] sm:$0xf]  ;;  %v16314_v19 = vor.u32 %v19224_v48, %v16311_v23  ;;  %v19216_v48 = vld [vmem:[%s28802_s5 + $0x106c] sm:$0xf]  ;;  %v16279_v23 = vld [vmem:[%s28802_s5 + $0x1078] sm:$0xf0] }
 0x81c   :  { %v16290_v20 = vor.u32 %v19219_v35, %v16287_v36  ;;  %v16282_v35 = vor.u32 %v19216_v48, %v16279_v23  ;;  %v19166_v36 = vld [vmem:[%s28802_s5 + $0xed4] sm:$0xf0] }
 0x81d   :  { %8267 = vmatpush.bf16.msrb.mxu0 %v16322_v26  ;;  %v16102_v26 = vor.u32 %v19174_v60, %v16101_v56  ;;  %v16294_v56 = vor.u32 %v19222_v24, %v16293_v41  ;;  %v16263_v41 = vld [vmem:[%s28802_s5 + $0x1058] sm:$0xf0]  ;;  %v19162_v8 = vld [vmem:[%s28802_s5 + $0xeb4] sm:$0xf0] }
 0x81e   :  { %8337 = vmatpush.bf16.msra.mxu1 %v16326_v46  ;;  %8407 = vmatpush.bf16.msrb.mxu2 %v16330_v18  ;;  %v19220_v46 = vld [vmem:[%s28802_s5 + $0x108c] sm:$0xf]  ;;  %v16295_v18 = vld [vmem:[%s28802_s5 + $0x1098] sm:$0xf0]  ;;  %v19206_v23 = vld [vmem:[%s28802_s5 + $0x1014] sm:$0xf0] }
 0x81f   :  { %8306 = vmatpush.bf16.msrb.mxu3 %v16118_v4  ;;  %v19218_v4 = vld [vmem:[%s28802_s5 + $0x1074] sm:$0xf0]  ;;  %v16298_v60 = vor.u32 %v19220_v46, %v16295_v18  ;;  %v16053_v46 = vld [vmem:[%s28802_s5 + $0xea8] sm:$0xf] }
 0x820   :  { %v16278_v0 = vor.u32 %v19218_v4, %v16277_v5  ;;  %v16037_v4 = vld [vmem:[%s28802_s5 + $0xe88] sm:$0xf] }
 0x821   :  { %8268 = vmatpush.bf16.msrb.mxu0 %v16306_v33  ;;  %v16069_v33 = vld [vmem:[%s28802_s5 + $0xec8] sm:$0xf] }
 0x822   :  { %8338 = vmatpush.bf16.msra.mxu1 %v16310_v7  ;;  %8408 = vmatpush.bf16.msrb.mxu2 %v16314_v19  ;;  %v19214_v7 = vld [vmem:[%s28802_s5 + $0x1054] sm:$0xf0]  ;;  %v19212_v19 = vld [vmem:[%s28802_s5 + $0x104c] sm:$0xf]  ;;  %v16070_v24 = vor.u32 %v19166_v36, %v16069_v33  ;;  %v16023_v33 = vld [vmem:[%s28802_s5 + $0xe78] sm:$0xf0] }
 0x823   :  { %8307 = vmatpush.bf16.msrb.mxu3 %v16102_v26  ;;  %v16262_v26 = vor.u32 %v19214_v7, %v16261_v32  ;;  %v16266_v18 = vor.u32 %v19212_v19, %v16263_v41  ;;  %v16054_v32 = vor.u32 %v19162_v8, %v16053_v46  ;;  %v16213_v41 = vld [vmem:[%s28802_s5 + $0xfe8] sm:$0xf]  ;;  %v16215_v46 = vld [vmem:[%s28802_s5 + $0xff8] sm:$0xf0] }
 0x824   :  { %8256 = vmatmul.bf16.vlgmr.msra.gmra.mxu3 %v25616_v29 }
 0x825   :  { %8269 = vmatpush.bf16.msrb.mxu0 %v16290_v20  ;;  %v19158_v20 = vld [vmem:[%s28802_s5 + $0xe94] sm:$0xf0] }
 0x826   :  { %8339 = vmatpush.bf16.msra.mxu1 %v16294_v56  ;;  %8409 = vmatpush.bf16.msrb.mxu2 %v16298_v60  ;;  %v19204_v56 = vld [vmem:[%s28802_s5 + $0x100c] sm:$0xf]  ;;  %v16231_v60 = vld [vmem:[%s28802_s5 + $0x1018] sm:$0xf0] }
 0x827   :  { %8308 = vmatpush.bf16.msrb.mxu3 %v16086_v62  ;;  %v16247_v62 = vld [vmem:[%s28802_s5 + $0x1038] sm:$0xf0]  ;;  %v16234_v7 = vor.u32 %v19204_v56, %v16231_v60 }
 0x828   :  { %8270 = vmatmul.bf16.vlgmr.msrb.gmra.mxu0 %v25894_v28 }
 0x829   :  { %8318 = vmatpush.bf16.msra.mxu0 %v16278_v0  ;;  %v19210_v0 = vld [vmem:[%s28802_s5 + $0x1034] sm:$0xf0]  ;;  %8340 = vmatmul.bf16.vlgmr.msra.gmra.mxu1 %v25894_v28 }
 0x82a   :  { %8388 = vmatpush.bf16.msrb.mxu1 %v16282_v35  ;;  %8482 = vmatpush.bf16.msra.mxu2 %v22288_v50  ;;  %v19208_v50 = vld [vmem:[%s28802_s5 + $0x102c] sm:$0xf]  ;;  %v16246_v5 = vor.u32 %v19210_v0, %v16245_v37  ;;  %v16038_v35 = vor.u32 %v19158_v20, %v16037_v4  ;;  %v16483_v37 = vld [vmem:[%s28801_s4 + $0x20] sm:$0xf]  ;;  %v19267_v0 = vld [vmem:[%s28801_s4 + $0x20] sm:$0x70] }
 0x82b   :  { %8410 = vmatmul.bf16.vlgmr.msrb.gmra.mxu2 %v25894_v28  ;;  %8309 = vmatpush.bf16.msrb.mxu3 %v16070_v24  ;;  %v16250_v48 = vor.u32 %v19208_v50, %v16247_v62  ;;  %v16229_v28 = vld [vmem:[%s28802_s5 + $0x1008] sm:$0xf]  ;;  %v19202_v24 = vld [vmem:[%s28802_s5 + $0xff4] sm:$0xf0]  ;;  %v19196_v4 = vld [vmem:[%s28802_s5 + $0xfcc] sm:$0xf] }
 0x82c   :  { %v16230_v36 = vor.u32 %v19206_v23, %v16229_v28  ;;  %v16214_v8 = vor.u32 %v19202_v24, %v16213_v41  ;;  %v16199_v20 = vld [vmem:[%s28802_s5 + $0xfd8] sm:$0xf0]  ;;  %v26114_v23 = vor.u32 %v19267_v0, %v16483_v37  ;;  %v19136_v0 = vld [vmem:[%s28802_s5 + $0xdec] sm:$0xf] }
 0x82d   :  { %8319 = vmatpush.bf16.msra.mxu0 %v16262_v26  ;;  %v19200_v26 = vld [vmem:[%s28802_s5 + $0xfec] sm:$0xf]  ;;  %v15991_v28 = vld [vmem:[%s28802_s5 + $0xe38] sm:$0xf0]  ;;  %v16202_v60 = vor.u32 %v19196_v4, %v16199_v20 }
 0x82e   :  { %8389 = vmatpush.bf16.msrb.mxu1 %v16266_v18  ;;  %8483 = vmatpush.bf16.msra.mxu2 %v22275_v16  ;;  %v19152_v16 = vld [vmem:[%s28802_s5 + $0xe6c] sm:$0xf]  ;;  %v16007_v18 = vld [vmem:[%s28802_s5 + $0xe58] sm:$0xf0]  ;;  %v16218_v50 = vor.u32 %v19200_v26, %v16215_v46 }
 0x82f   :  { %8310 = vmatpush.bf16.msrb.mxu3 %v16054_v32  ;;  %v16026_v19 = vor.u32 %v19152_v16, %v16023_v33  ;;  %v16197_v32 = vld [vmem:[%s28802_s5 + $0xfc8] sm:$0xf]  ;;  %v15975_v41 = vld [vmem:[%s28802_s5 + $0xe18] sm:$0xf0] }
 0x830   :  { %v16181_v33 = vld [vmem:[%s28802_s5 + $0xfa8] sm:$0xf]  ;;  %v16167_v37 = vld [vmem:[%s28802_s5 + $0xf98] sm:$0xf0] }
 0x831   :  { %8320 = vmatpush.bf16.msra.mxu0 %v16246_v5  ;;  %v19198_v5 = vld [vmem:[%s28802_s5 + $0xfd4] sm:$0xf0] }
 0x832   :  { %8390 = vmatpush.bf16.msrb.mxu1 %v16250_v48  ;;  %8484 = vmatpush.bf16.msra.mxu2 %v22234_v49  ;;  %v19148_v49 = vld [vmem:[%s28802_s5 + $0xe4c] sm:$0xf]  ;;  %v16198_v56 = vor.u32 %v19198_v5, %v16197_v32  ;;  %v16151_v32 = vld [vmem:[%s28802_s5 + $0xf78] sm:$0xf0] }
 0x833   :  { %8311 = vmatpush.bf16.msrb.mxu3 %v16038_v35  ;;  %v16010_v62 = vor.u32 %v19148_v49, %v16007_v18  ;;  %v19144_v48 = vld [vmem:[%s28802_s5 + $0xe2c] sm:$0xf]  ;;  %v19194_v35 = vld [vmem:[%s28802_s5 + $0xfb4] sm:$0xf0]  ;;  %v16165_v49 = vld [vmem:[%s28802_s5 + $0xf88] sm:$0xf] }
 0x834   :  { %v15994_v16 = vor.u32 %v19144_v48, %v15991_v28  ;;  %v16182_v24 = vor.u32 %v19194_v35, %v16181_v33  ;;  %v19190_v18 = vld [vmem:[%s28802_s5 + $0xf94] sm:$0xf0]  ;;  %v19132_v28 = vld [vmem:[%s28802_s5 + $0xdcc] sm:$0xf] }
 0x835   :  { %8321 = vmatpush.bf16.msra.mxu0 %v16230_v36  ;;  %v19192_v36 = vld [vmem:[%s28802_s5 + $0xfac] sm:$0xf]  ;;  %v16166_v5 = vor.u32 %v19190_v18, %v16165_v49  ;;  %v16471_v18 = vld [vmem:[%s28802_s5 + $0x11f8] sm:$0xf0] }
 0x836   :  { %8391 = vmatpush.bf16.msrb.mxu1 %v16234_v7  ;;  %8312 = vmatmul.bf16.vlgmr.msrb.gmra.mxu3 %v25718_v11  ;;  %v16183_v7 = vld [vmem:[%s28802_s5 + $0xfb8] sm:$0xf0]  ;;  %v19172_v49 = vld [vmem:[%s28802_s5 + $0xf0c] sm:$0xf] }
 0x837   :  { %8360 = vmatpush.bf16.msra.mxu3 %v16026_v19  ;;  %v19140_v19 = vld [vmem:[%s28802_s5 + $0xe0c] sm:$0xf]  ;;  %v16186_v26 = vor.u32 %v19192_v36, %v16183_v7  ;;  %v15927_v7 = vld [vmem:[%s28802_s5 + $0xdb8] sm:$0xf0] }
 0x838   :  { %v15978_v46 = vor.u32 %v19140_v19, %v15975_v41  ;;  %v19128_v36 = vld [vmem:[%s28802_s5 + $0xdac] sm:$0xf]  ;;  %v16119_v41 = vld [vmem:[%s28802_s5 + $0xf38] sm:$0xf0] }
 0x839   :  { %8322 = vmatpush.bf16.msra.mxu0 %v16214_v8  ;;  %v19188_v8 = vld [vmem:[%s28802_s5 + $0xf8c] sm:$0xf] }
 0x83a   :  { %8392 = vmatpush.bf16.msrb.mxu1 %v16218_v50  ;;  %v15959_v50 = vld [vmem:[%s28802_s5 + $0xdf8] sm:$0xf0]  ;;  %v16170_v4 = vor.u32 %v19188_v8, %v16167_v37  ;;  %v19176_v19 = vld [vmem:[%s28802_s5 + $0xf2c] sm:$0xf] }
 0x83b   :  { %8361 = vmatpush.bf16.msra.mxu3 %v16010_v62  ;;  %16487 = vmatmul.msk.bf16.vlgmr.msra.gmra.mxu2 %vm3477_vm3, %v26114_v23  ;;  %v19184_v62 = vld [vmem:[%s28802_s5 + $0xf6c] sm:$0xf]  ;;  %v15962_v20 = vor.u32 %v19136_v0, %v15959_v50 }
 0x83c   :  { %v16154_v48 = vor.u32 %v19184_v62, %v16151_v32  ;;  %v19168_v50 = vld [vmem:[%s28802_s5 + $0xeec] sm:$0xf]  ;;  %v16087_v62 = vld [vmem:[%s28802_s5 + $0xef8] sm:$0xf0] }
 0x83d   :  { %8323 = vmatpush.bf16.msra.mxu0 %v16198_v56  ;;  %v15943_v56 = vld [vmem:[%s28802_s5 + $0xdd8] sm:$0xf0]  ;;  %v19260_v32 = vld [vmem:[%s28802_s5 + $0x11cc] sm:$0xf] }
 0x83e   :  { %8393 = vmatpush.bf16.msrb.mxu1 %v16202_v60  ;;  %v19180_v60 = vld [vmem:[%s28802_s5 + $0xf4c] sm:$0xf]  ;;  %v15946_v33 = vor.u32 %v19132_v28, %v15943_v56  ;;  %v16439_v56 = vld [vmem:[%s28802_s5 + $0x11b8] sm:$0xf0] }
 0x83f   :  { %8362 = vmatpush.bf16.msra.mxu3 %v15994_v16  ;;  %v16135_v16 = vld [vmem:[%s28802_s5 + $0xf58] sm:$0xf0]  ;;  %v19256_v28 = vld [vmem:[%s28802_s5 + $0x11ac] sm:$0xf] }
 0x840   :  { %v16138_v35 = vor.u32 %v19180_v60, %v16135_v16  ;;  %v16442_v16 = vor.u32 %v19256_v28, %v16439_v56 }
 0x841   :  { %8324 = vmatpush.bf16.msra.mxu0 %v16182_v24  ;;  %v16122_v24 = vor.u32 %v19176_v19, %v16119_v41  ;;  %v19156_v41 = vld [vmem:[%s28802_s5 + $0xe8c] sm:$0xf] }
 0x842   :  { %8394 = vmatpush.bf16.msrb.mxu1 %v16186_v26  ;;  %v19124_v26 = vld [vmem:[%s28802_s5 + $0xd8c] sm:$0xf] }
 0x843   :  { %8363 = vmatpush.bf16.msra.mxu3 %v15978_v46  ;;  %v15911_v46 = vld [vmem:[%s28802_s5 + $0xd98] sm:$0xf0] }
 0x844   :  { %v15914_v8 = vor.u32 %v19124_v26, %v15911_v46  ;;  %v19354_v46 = vld [vmem:[%s28802_s5 + $0x14ac] sm:$0xf0] }
 0x845   :  { %8325 = vmatpush.bf16.msra.mxu0 %v16166_v5  ;;  %v16455_v5 = vld [vmem:[%s28802_s5 + $0x11d8] sm:$0xf0] }
 0x846   :  { %8395 = vmatpush.bf16.msrb.mxu1 %v16170_v4  ;;  %v16458_v4 = vor.u32 %v19260_v32, %v16455_v5  ;;  %v16940_v32 = vld [vmem:[%s28802_s5 + $0x1460] sm:$0xf]  ;;  %v19346_v5 = vld [vmem:[%s28802_s5 + $0x146c] sm:$0xf0] }
 0x847   :  { %8364 = vmatpush.bf16.msra.mxu3 %v15962_v20  ;;  %v19164_v20 = vld [vmem:[%s28802_s5 + $0xecc] sm:$0xf] }
 0x848   :  { %8326 = vmatmul.bf16.vlgmr.msra.gmra.mxu0 %v25616_v29 }
 0x849   :  { %8374 = vmatpush.bf16.msrb.mxu0 %v16154_v48  ;;  %8396 = vmatmul.bf16.vlgmr.msrb.gmra.mxu1 %v25616_v29  ;;  %v16103_v29 = vld [vmem:[%s28802_s5 + $0xf18] sm:$0xf0] }
 0x84a   :  { %8468 = vmatpush.bf16.msra.mxu1 %v22183_v40  ;;  %v15930_v40 = vor.u32 %v19128_v36, %v15927_v7  ;;  %v16106_v37 = vor.u32 %v19172_v49, %v16103_v29  ;;  %v16071_v48 = vld [vmem:[%s28802_s5 + $0xed8] sm:$0xf0]  ;;  %v19252_v36 = vld [vmem:[%s28802_s5 + $0x118c] sm:$0xf] }
 0x84b   :  { %8365 = vmatpush.bf16.msra.mxu3 %v15946_v33  ;;  %v16074_v60 = vor.u32 %v19164_v20, %v16071_v48  ;;  %v19160_v33 = vld [vmem:[%s28802_s5 + $0xeac] sm:$0xf]  ;;  %v19342_v20 = vld [vmem:[%s28802_s5 + $0x144c] sm:$0xf0] }
 0x84d   :  { %8375 = vmatpush.bf16.msrb.mxu0 %v16138_v35  ;;  %v16055_v35 = vld [vmem:[%s28802_s5 + $0xeb8] sm:$0xf0] }
 0x84e   :  { %8469 = vmatpush.bf16.msra.mxu1 %v22173_v3  ;;  %v19264_v3 = vld [vmem:[%s28802_s5 + $0x11ec] sm:$0xf]  ;;  %v16058_v7 = vor.u32 %v19160_v33, %v16055_v35  ;;  %v16876_v35 = vld [vmem:[%s28802_s5 + $0x13e0] sm:$0xf] }
 0x84f   :  { %8366 = vmatpush.bf16.msra.mxu3 %v15930_v40  ;;  %v16474_v0 = vor.u32 %v19264_v3, %v16471_v18  ;;  %v16039_v40 = vld [vmem:[%s28802_s5 + $0xe98] sm:$0xf0]  ;;  %v16956_v3 = vld [vmem:[%s28802_s5 + $0x1480] sm:$0xf]  ;;  %v19350_v18 = vld [vmem:[%s28802_s5 + $0x148c] sm:$0xf0] }
 0x851   :  { %8376 = vmatpush.bf16.msrb.mxu0 %v16122_v24  ;;  %v16042_v24 = vor.u32 %v19156_v41, %v16039_v40  ;;  %v19328_v41 = vld [vmem:[%s28802_s5 + $0x13e4] sm:$0xf]  ;;  %v16878_v40 = vld [vmem:[%s28802_s5 + $0x13f0] sm:$0xf0] }
 0x852   :  { %8470 = vmatpush.bf16.msra.mxu1 %v22151_v43  ;;  %v16090_v43 = vor.u32 %v19168_v50, %v16087_v62 }
 0x853   :  { %8367 = vmatpush.bf16.msra.mxu3 %v15914_v8  ;;  %v16957_v8 = vor.u32 %v19350_v18, %v16956_v3  ;;  %v16844_v3 = vld [vmem:[%s28802_s5 + $0x13a0] sm:$0xf]  ;;  %v19322_v18 = vld [vmem:[%s28802_s5 + $0x13ac] sm:$0xf0] }
 0x855   :  { %8377 = vmatpush.bf16.msrb.mxu0 %v16106_v37 }
 0x856   :  { %8368 = vmatmul.bf16.vlgmr.msra.gmra.mxu3 %v25820_v27  ;;  %v16423_v27 = vld [vmem:[%s28802_s5 + $0x1198] sm:$0xf0] }
 0x857   :  { %8420 = vmatpush.bf16.msrb.mxu3 %v16474_v0  ;;  %v16426_v19 = vor.u32 %v19252_v36, %v16423_v27  ;;  %v19330_v36 = vld [vmem:[%s28802_s5 + $0x13ec] sm:$0xf0]  ;;  %v16892_v27 = vld [vmem:[%s28802_s5 + $0x1400] sm:$0xf] }
 0x859   :  { %8378 = vmatpush.bf16.msrb.mxu0 %v16090_v43  ;;  %16486 = vmatmul.msk.bf16.vlgmr.msra.gmra.mxu1 %vm3477_vm3, %v26114_v23  ;;  %v16941_v43 = vor.u32 %v19346_v5, %v16940_v32  ;;  %v16828_v32 = vld [vmem:[%s28802_s5 + $0x1380] sm:$0xf]  ;;  %v19318_v5 = vld [vmem:[%s28802_s5 + $0x138c] sm:$0xf0] }
 0x85b   :  { %8421 = vmatpush.bf16.msrb.mxu3 %v16458_v4  ;;  %v8187_v26 = vpop.f32.mrf.mxu2 }
 0x85d   :  { %8379 = vmatpush.bf16.msrb.mxu0 %v16074_v60  ;;  %v16908_v60 = vld [vmem:[%s28802_s5 + $0x1420] sm:$0xf] }
 0x85f   :  { %8422 = vmatpush.bf16.msrb.mxu3 %v16442_v16  ;;  %v19338_v16 = vld [vmem:[%s28802_s5 + $0x142c] sm:$0xf0] }
 0x860   :  { %v16909_v33 = vor.u32 %v19338_v16, %v16908_v60 }
 0x861   :  { %8380 = vmatpush.bf16.msrb.mxu0 %v16058_v7  ;;  %v16877_v7 = vor.u32 %v19330_v36, %v16876_v35 }
 0x863   :  { %8423 = vmatpush.bf16.msrb.mxu3 %v16426_v19  ;;  %v19334_v19 = vld [vmem:[%s28802_s5 + $0x140c] sm:$0xf0]  ;;  %9406 = vmatpush.bf16.msrb.mxu2 %v16877_v7 }
 0x864   :  { %v19314_v7 = vld [vmem:[%s28802_s5 + $0x136c] sm:$0xf0] }
 0x865   :  { %8381 = vmatpush.bf16.msrb.mxu0 %v16042_v24 }
 0x866   :  { %16478 = vmatmul.msk.bf16.vlgmr.msrb.gmra.mxu3 %vm4667_vm4, %v25912_v25  ;;  %v16972_v25 = vld [vmem:[%s28802_s5 + $0x14a0] sm:$0xf] }
 0x867   :  { %8496 = vmatpush.bf16.msra.mxu3 %v22281_v55  ;;  %v26262_v55 = vpop.f32.mrf.mxu2  ;;  %v16973_v49 = vor.u32 %v19354_v46, %v16972_v25 }
 0x868   :  { %8382 = vmatmul.bf16.vlgmr.msrb.gmra.mxu0 %v25718_v11 }
 0x869   :  { %8454 = vmatpush.bf16.msra.mxu0 %v22192_v38  ;;  %v8173_v38 = vpop.f32.mrf.mxu1 }
 0x86b   :  { %8497 = vmatpush.bf16.msra.mxu3 %v22284_v45 }
 0x86d   :  { %8455 = vmatpush.bf16.msra.mxu0 %v22178_v47  ;;  %v17004_v47 = vld [vmem:[%s28802_s5 + $0x14e0] sm:$0xf] }
 0x86f   :  { %8498 = vmatpush.bf16.msra.mxu3 %v22290_v1  ;;  %v8243_v1 = vpop.f32.mrf.mxu2 }
 0x871   :  { %8456 = vmatpush.bf16.msra.mxu0 %v22161_v9  ;;  %v19362_v9 = vld [vmem:[%s28802_s5 + $0x14ec] sm:$0xf0] }
 0x872   :  { %v17005_v45 = vor.u32 %v19362_v9, %v17004_v47  ;;  %v16881_v47 = vor.u32 %v19328_v41, %v16878_v40  ;;  %v16860_v9 = vld [vmem:[%s28802_s5 + $0x13c0] sm:$0xf]  ;;  %v16814_v41 = vld [vmem:[%s28802_s5 + $0x1370] sm:$0xf0] }
 0x874   :  { %9420 = vmatpush.bf16.msrb.mxu3 %v17005_v45  ;;  %v19326_v45 = vld [vmem:[%s28802_s5 + $0x13cc] sm:$0xf0] }
 0x875   :  { %8510 = vmatpush.bf16.msrb.mxu0 %v22340_v21  ;;  %v16988_v21 = vld [vmem:[%s28802_s5 + $0x14c0] sm:$0xf] }
 0x876   :  { %16488 = vmatmul.msk.bf16.vlgmr.msra.gmra.mxu3 %vm3477_vm3, %v26114_v23 }
 0x877   :  { %v26290_v29 = vpop.f32.mrf.mxu2 }
 0x878   :  { %16485 = vmatmul.msk.bf16.vlgmr.msra.gmra.mxu0 %vm3477_vm3, %v26114_v23 }
 0x879   :  { %8511 = vmatpush.bf16.msrb.mxu0 %v22353_v53  ;;  %v19358_v53 = vld [vmem:[%s28802_s5 + $0x14cc] sm:$0xf0] }
 0x87a   :  { %v16989_v11 = vor.u32 %v19358_v53, %v16988_v21  ;;  %v16861_v53 = vor.u32 %v19326_v45, %v16860_v9  ;;  %v19394_v9 = vld [vmem:[%s28802_s5 + $0x15ec] sm:$0xf0] }
 0x87c   :  { %9421 = vmatpush.bf16.msrb.mxu3 %v16989_v11  ;;  %v16862_v11 = vld [vmem:[%s28802_s5 + $0x13d0] sm:$0xf0]  ;;  %9407 = vmatpush.bf16.msrb.mxu2 %v16861_v53 }
 0x87d   :  { %8512 = vmatpush.bf16.msrb.mxu0 %v22363_v17  ;;  %v26282_v17 = vpop.f32.mrf.mxu1 }
 0x880   :  { %9422 = vmatpush.bf16.msrb.mxu3 %v16973_v49 }
 0x884   :  { %9423 = vmatpush.bf16.msrb.mxu3 %v16957_v8  ;;  %v19320_v8 = vld [vmem:[%s28802_s5 + $0x13a4] sm:$0xf] }
 0x885   :  { %v8159_v37 = vpop.f32.mrf.mxu0  ;;  %v8229_v0 = vpop.f32.mrf.mxu1 }
 0x886   :  { %v8174_v50 = vadd.f32 %v8173_v38, %v8159_v37  ;;  %v26300_v62 = vadd.f32 %v8243_v1, %v8229_v0  ;;  %v16893_v38 = vor.u32 %v19334_v19, %v16892_v27  ;;  %v19324_v1 = vld [vmem:[%s28802_s5 + $0x13c4] sm:$0xf]  ;;  %v16845_v0 = vor.u32 %v19322_v18, %v16844_v3  ;;  %v16812_v27 = vld [vmem:[%s28802_s5 + $0x1360] sm:$0xf] }
 0x887   :  { %v16865_v25 = vor.u32 %v19324_v1, %v16862_v11  ;;  %v16813_v19 = vor.u32 %v19314_v7, %v16812_v27  ;;  %v16796_v1 = vld [vmem:[%s28802_s5 + $0x1340] sm:$0xf]  ;;  %v19308_v11 = vld [vmem:[%s28802_s5 + $0x1344] sm:$0xf] }
 0x888   :  { %16489 = vmatmul.msk.bf16.vlgmr.msrb.gmra.mxu0 %vm3477_vm3, %v26114_v23  ;;  %v8188_v4 = vadd.f32 %v8187_v26, %v8174_v50  ;;  %9424 = vmatpush.bf16.msrb.mxu3 %v16941_v43  ;;  %v16924_v23 = vld [vmem:[%s28802_s5 + $0x1440] sm:$0xf]  ;;  %v16846_v50 = vld [vmem:[%s28802_s5 + $0x13b0] sm:$0xf0] }
 0x889   :  { %v16925_v48 = vor.u32 %v19342_v20, %v16924_v23  ;;  %v19316_v23 = vld [vmem:[%s28802_s5 + $0x1384] sm:$0xf]  ;;  %v16830_v20 = vld [vmem:[%s28802_s5 + $0x1390] sm:$0xf0]  ;;  %9408 = vmatpush.bf16.msrb.mxu2 %v16845_v0  ;;  %v17100_v7 = vld [vmem:[%s28802_s5 + $0x15a0] sm:$0xf] }
 0x88c   :  { %v26314_v28 = vpop.f32.mrf.mxu2  ;;  %9425 = vmatpush.bf16.msrb.mxu3 %v16925_v48  ;;  %v16829_v48 = vor.u32 %v19318_v5, %v16828_v32  ;;  %v16780_v32 = vld [vmem:[%s28802_s5 + $0x1320] sm:$0xf]  ;;  %v19306_v5 = vld [vmem:[%s28802_s5 + $0x132c] sm:$0xf0] }
 0x88d   :  { %v26316_v56 = vpop.f32.mrf.mxu0  ;;  %v26342_v24 = vpop.f32.mrf.mxu1 }
 0x88e   :  { %9409 = vmatpush.bf16.msrb.mxu2 %v16829_v48 }
 0x890   :  { %9426 = vmatpush.bf16.msrb.mxu3 %v16909_v33  ;;  %v16833_v33 = vor.u32 %v19316_v23, %v16830_v20  ;;  %v19304_v23 = vld [vmem:[%s28802_s5 + $0x1324] sm:$0xf]  ;;  %v16782_v20 = vld [vmem:[%s28802_s5 + $0x1330] sm:$0xf0] }
 0x891   :  { %v16785_v48 = vor.u32 %v19304_v23, %v16782_v20 }
 0x892   :  { %9410 = vmatpush.bf16.msrb.mxu2 %v16813_v19  ;;  %v19386_v19 = vld [vmem:[%s28802_s5 + $0x15ac] sm:$0xf0] }
 0x894   :  { %v26344_v26 = vpop.f32.mrf.mxu2  ;;  %9427 = vmatpush.bf16.msrb.mxu3 %v16893_v38 }
 0x895   :  { %v8215_v21 = vpop.f32.mrf.mxu0  ;;  %v8285_v16 = vpop.f32.mrf.mxu1 }
 0x896   :  { %v8201_v46 = vpop.f32.mrf.mxu3 }
 0x897   :  { %v8202_v49 = vadd.f32 %v8201_v46, %v8188_v4  ;;  %v16849_v4 = vor.u32 %v19320_v8, %v16846_v50  ;;  %v17116_v8 = vld [vmem:[%s28802_s5 + $0x15c0] sm:$0xf] }
 0x898   :  { %9476 = vmatpush.bf16.msra.mxu3 %v16881_v47  ;;  %v17132_v47 = vld [vmem:[%s28802_s5 + $0x15e0] sm:$0xf] }
 0x899   :  { %v8216_v37 = vadd.f32 %v8215_v21, %v8202_v49  ;;  %v17133_v45 = vor.u32 %v19394_v9, %v17132_v47  ;;  %v19310_v21 = vld [vmem:[%s28802_s5 + $0x134c] sm:$0xf0]  ;;  %v16748_v47 = vld [vmem:[%s28802_s5 + $0x12e0] sm:$0xf] }
 0x89a   :  { %v16797_v53 = vor.u32 %v19310_v21, %v16796_v1  ;;  %v19298_v9 = vld [vmem:[%s28802_s5 + $0x12ec] sm:$0xf0] }
 0x89b   :  { %v26385_v60 = vadd.f32 %v8216_v37, %v25395_v2  ;;  %v19312_v2 = vld [vmem:[%s28802_s5 + $0x1364] sm:$0xf]  ;;  %9434 = vmatpush.bf16.msra.mxu0 %v17133_v45  ;;  %v19390_v37 = vld [vmem:[%s28802_s5 + $0x15cc] sm:$0xf0] }
 0x89c   :  { %9477 = vmatpush.bf16.msra.mxu3 %v16865_v25  ;;  %v26376_v43 = vpop.f32.mrf.mxu2  ;;  %v16817_v38 = vor.u32 %v19312_v2, %v16814_v41  ;;  %v16798_v25 = vld [vmem:[%s28802_s5 + $0x1350] sm:$0xf0]  ;;  %9411 = vmatpush.bf16.msrb.mxu2 %v16797_v53  ;;  %v17117_v50 = vor.u32 %v19390_v37, %v17116_v8  ;;  %v17101_v2 = vor.u32 %v19386_v19, %v17100_v7  ;;  %v16764_v41 = vld [vmem:[%s28802_s5 + $0x1300] sm:$0xf]  ;;  %v19296_v45 = vld [vmem:[%s28802_s5 + $0x12e4] sm:$0xf] }
 0x89d   :  { %v26387_v35 = vpop.f32.mrf.mxu0  ;;  %v26423_v46 = vpop.f32.mrf.mxu1  ;;  %v16801_v3 = vor.u32 %v19308_v11, %v16798_v25  ;;  %v16749_v53 = vor.u32 %v19298_v9, %v16748_v47  ;;  %v16750_v11 = vld [vmem:[%s28802_s5 + $0x12f0] sm:$0xf0]  ;;  %v19300_v25 = vld [vmem:[%s28802_s5 + $0x1304] sm:$0xf]  ;;  %v19382_v37 = vld [vmem:[%s28802_s5 + $0x158c] sm:$0xf0] }
 0x89e   :  { %v26389_v36 = vpop.f32.mrf.mxu3  ;;  %v16716_v19 = vld [vmem:[%s28802_s5 + $0x12a0] sm:$0xf] }
 0x89f   :  { %9435 = vmatpush.bf16.msra.mxu0 %v17117_v50  ;;  %9392 = vmatpush.bf16.msrb.mxu1 %v16749_v53  ;;  %v19294_v50 = vld [vmem:[%s28802_s5 + $0x12cc] sm:$0xf0]  ;;  %v17052_v9 = vld [vmem:[%s28802_s5 + $0x1540] sm:$0xf] }
 0x8a0   :  { %9478 = vmatpush.bf16.msra.mxu3 %v16849_v4  ;;  %v16781_v4 = vor.u32 %v19306_v5, %v16780_v32  ;;  %v16700_v53 = vld [vmem:[%s28802_s5 + $0x1280] sm:$0xf] }
 0x8a2   :  { %9412 = vmatpush.bf16.msrb.mxu2 %v16781_v4  ;;  %v16734_v4 = vld [vmem:[%s28802_s5 + $0x12d0] sm:$0xf0] }
 0x8a3   :  { %9436 = vmatpush.bf16.msra.mxu0 %v17101_v2  ;;  %v19290_v2 = vld [vmem:[%s28802_s5 + $0x12ac] sm:$0xf0] }
 0x8a4   :  { %9479 = vmatpush.bf16.msra.mxu3 %v16833_v33  ;;  %v26403_v40 = vpop.f32.mrf.mxu2 }
 0x8a5   :  { %v8271_v0 = vpop.f32.mrf.mxu0 }
 0x8a6   :  { %v26484_v8 = vpop.f32.mrf.mxu1 }
 0x8a7   :  { %v8257_v49 = vpop.f32.mrf.mxu3 }
 0x8a8   :  { %9480 = vmatpush.bf16.msra.mxu3 %v16817_v38  ;;  %v8258_v18 = vadd.f32 %v8257_v49, %v26300_v62  ;;  %v16766_v49 = vld [vmem:[%s28802_s5 + $0x1310] sm:$0xf0] }
 0x8aa   :  { %v8272_v62 = vadd.f32 %v8271_v0, %v8258_v18  ;;  %v17084_v18 = vld [vmem:[%s28802_s5 + $0x1580] sm:$0xf] }
 0x8ab   :  { %v16732_v0 = vld [vmem:[%s28802_s5 + $0x12c0] sm:$0xf]  ;;  %v17085_v32 = vor.u32 %v19382_v37, %v17084_v18 }
 0x8ac   :  { %9481 = vmatpush.bf16.msra.mxu3 %v16801_v3  ;;  %v8286_v33 = vadd.f32 %v8285_v16, %v8272_v62  ;;  %v19302_v16 = vld [vmem:[%s28802_s5 + $0x130c] sm:$0xf0]  ;;  %v16753_v3 = vor.u32 %v19296_v45, %v16750_v11  ;;  %v16733_v5 = vor.u32 %v19294_v50, %v16732_v0  ;;  %v19292_v62 = vld [vmem:[%s28802_s5 + $0x12c4] sm:$0xf] }
 0x8ad   :  { %v16765_v38 = vor.u32 %v19302_v16, %v16764_v41  ;;  %v16737_v23 = vor.u32 %v19292_v62, %v16734_v4  ;;  %9437 = vmatpush.bf16.msra.mxu0 %v17085_v32  ;;  %v19288_v41 = vld [vmem:[%s28802_s5 + $0x12a4] sm:$0xf]  ;;  %v16717_v16 = vor.u32 %v19290_v2, %v16716_v19  ;;  %v19374_v45 = vld [vmem:[%s28802_s5 + $0x154c] sm:$0xf0]  ;;  %v26540_v0 = vpop.f32.mrf.mxu0  ;;  %v17036_v62 = vld [vmem:[%s28802_s5 + $0x1520] sm:$0xf] }
 0x8ae   :  { %v26444_v27 = vpop.f32.mrf.mxu2  ;;  %v26468_v1 = vadd.f32 %v8286_v33, %v25505_v22  ;;  %v16769_v22 = vor.u32 %v19300_v25, %v16766_v49  ;;  %v19378_v33 = vld [vmem:[%s28802_s5 + $0x156c] sm:$0xf0]  ;;  %9393 = vmatpush.bf16.msrb.mxu1 %v16733_v5  ;;  %v17053_v25 = vor.u32 %v19374_v45, %v17052_v9  ;;  %v26542_v32 = vpop.f32.mrf.mxu1  ;;  %v16686_v19 = vld [vmem:[%s28802_s5 + $0x1270] sm:$0xf0]  ;;  %v16756_v2 = vld [vmem:[%s28802_s5 + $0x12e8] sm:$0xf] }
 0x8af   :  { %v26470_v21 = vpop.f32.mrf.mxu3  ;;  %9413 = vmatpush.bf16.msrb.mxu2 %v16765_v38  ;;  %v16718_v38 = vld [vmem:[%s28802_s5 + $0x12b0] sm:$0xf0]  ;;  %v19286_v49 = vld [vmem:[%s28802_s5 + $0x128c] sm:$0xf0]  ;;  %v19360_v45 = vld [vmem:[%s28802_s5 + $0x14e4] sm:$0xf] }
 0x8b0   :  { %9482 = vmatpush.bf16.msra.mxu3 %v16785_v48  ;;  %v17068_v48 = vld [vmem:[%s28802_s5 + $0x1560] sm:$0xf]  ;;  %v16721_v47 = vor.u32 %v19288_v41, %v16718_v38  ;;  %v16701_v37 = vor.u32 %v19286_v49, %v16700_v53  ;;  %v19370_v4 = vld [vmem:[%s28802_s5 + $0x152c] sm:$0xf0]  ;;  %v17006_v53 = vld [vmem:[%s28802_s5 + $0x14f0] sm:$0xf0] }
 0x8b1   :  { %v17069_v7 = vor.u32 %v19378_v33, %v17068_v48  ;;  %v19282_v48 = vld [vmem:[%s28802_s5 + $0x126c] sm:$0xf0]  ;;  %v19280_v33 = vld [vmem:[%s28802_s5 + $0x1264] sm:$0xf]  ;;  %v16668_v49 = vld [vmem:[%s28802_s5 + $0x1240] sm:$0xf] }
 0x8b2   :  { %9394 = vmatpush.bf16.msrb.mxu1 %v16717_v16  ;;  %v16689_v41 = vor.u32 %v19280_v33, %v16686_v19  ;;  %v17020_v16 = vld [vmem:[%s28802_s5 + $0x1500] sm:$0xf]  ;;  %v19366_v38 = vld [vmem:[%s28802_s5 + $0x150c] sm:$0xf0] }
 0x8b3   :  { %9462 = vmatpush.bf16.msra.mxu2 %v16753_v3  ;;  %9438 = vmatpush.bf16.msra.mxu0 %v17069_v7  ;;  %v19284_v3 = vld [vmem:[%s28802_s5 + $0x1284] sm:$0xf]  ;;  %v17021_v9 = vor.u32 %v19366_v38, %v17020_v16 }
 0x8b4   :  { %9483 = vmatpush.bf16.msra.mxu3 %v16769_v22  ;;  %v16702_v22 = vld [vmem:[%s28802_s5 + $0x1290] sm:$0xf0]  ;;  %v19272_v38 = vld [vmem:[%s28802_s5 + $0x1224] sm:$0xf] }
 0x8b5   :  { %v16705_v50 = vor.u32 %v19284_v3, %v16702_v22  ;;  %v19278_v3 = vld [vmem:[%s28802_s5 + $0x124c] sm:$0xf0]  ;;  %v19276_v22 = vld [vmem:[%s28802_s5 + $0x1244] sm:$0xf] }
 0x8b6   :  { %v26501_v20 = vpop.f32.mrf.mxu2  ;;  %9395 = vmatpush.bf16.msrb.mxu1 %v16701_v37 }
 0x8b7   :  { %28957 = vst [vmem:[#allocation40_spill] sm:$0xff] %v26501_v20  ;;  %9463 = vmatpush.bf16.msra.mxu2 %v16737_v23  ;;  %9439 = vmatpush.bf16.msra.mxu0 %v17053_v25  ;;  %v16684_v23 = vld [vmem:[%s28802_s5 + $0x1260] sm:$0xf]  ;;  %v17009_v25 = vor.u32 %v19360_v45, %v17006_v53  ;;  %v16654_v45 = vld [vmem:[%s28802_s5 + $0x1230] sm:$0xf0] }
 0x8b8   :  { %v16685_v7 = vor.u32 %v19282_v48, %v16684_v23  ;;  %v16740_v48 = vld [vmem:[%s28802_s5 + $0x12c8] sm:$0xf] }
 0x8b9   :  { %v8313_v11 = vpop.f32.mrf.mxu3 }
 0x8ba   :  { %v8314_v18 = vadd.f32 %v8313_v11, %v26314_v28  ;;  %v17037_v28 = vor.u32 %v19370_v4, %v17036_v62  ;;  %9396 = vmatpush.bf16.msrb.mxu1 %v16685_v7  ;;  %v16669_v62 = vor.u32 %v19278_v3, %v16668_v49  ;;  %v16670_v4 = vld [vmem:[%s28802_s5 + $0x1250] sm:$0xf0]  ;;  %v19352_v3 = vld [vmem:[%s28802_s5 + $0x14a4] sm:$0xf] }
 0x8bb   :  { %9464 = vmatpush.bf16.msra.mxu2 %v16721_v47  ;;  %v19299_v47 = vld [vmem:[%s28802_s5 + $0x12f4] sm:$0xf0]  ;;  %v16673_v33 = vor.u32 %v19276_v22, %v16670_v4  ;;  %v16974_v22 = vld [vmem:[%s28802_s5 + $0x14b0] sm:$0xf0]  ;;  %v19268_v4 = vld [vmem:[%s28802_s5 + $0x1204] sm:$0xf] }
 0x8bc   :  { %9440 = vmatpush.bf16.msra.mxu0 %v17037_v28  ;;  %v16757_v23 = vor.u32 %v19299_v47, %v16756_v2  ;;  %v19356_v2 = vld [vmem:[%s28802_s5 + $0x14c4] sm:$0xf] }
 0x8be   :  { %v8486_v5 = vpop.f32.mrf.mxu2  ;;  %9397 = vmatpush.bf16.msrb.mxu1 %v16669_v62  ;;  %v19270_v62 = vld [vmem:[%s28802_s5 + $0x120c] sm:$0xf0] }
 0x8bf   :  { %9465 = vmatpush.bf16.msra.mxu2 %v16705_v50 }
 0x8c0   :  { %9441 = vmatpush.bf16.msra.mxu0 %v17021_v9 }
 0x8c3   :  { %9466 = vmatpush.bf16.msra.mxu2 %v16689_v41  ;;  %v16990_v41 = vld [vmem:[%s28802_s5 + $0x14d0] sm:$0xf0] }
 0x8c4   :  { %9490 = vmatpush.bf16.msrb.mxu0 %v17009_v25  ;;  %v16993_v16 = vor.u32 %v19356_v2, %v16990_v41  ;;  %v16657_v25 = vor.u32 %v19272_v38, %v16654_v45  ;;  %v19348_v38 = vld [vmem:[%s28802_s5 + $0x1484] sm:$0xf]  ;;  %v17180_v45 = vld [vmem:[%s28802_s5 + $0x1640] sm:$0xf] }
 0x8c5   :  { %v8327_v11 = vpop.f32.mrf.mxu0 }
 0x8c6   :  { %v8328_v37 = vadd.f32 %v8327_v11, %v8314_v18  ;;  %v26589_v50 = vpop.f32.mrf.mxu1  ;;  %v8488_v28 = vpop.f32.mrf.mxu2  ;;  %v19295_v18 = vld [vmem:[%s28802_s5 + $0x12d4] sm:$0xf0]  ;;  %v16724_v11 = vld [vmem:[%s28802_s5 + $0x12a8] sm:$0xf] }
 0x8c7   :  { %v26598_v19 = vpack.c.bf16 %v8488_v28, %v8486_v5  ;;  %9467 = vmatpush.bf16.msra.mxu2 %v16673_v33  ;;  %v19274_v5 = vld [vmem:[%s28802_s5 + $0x122c] sm:$0xf0]  ;;  %v16741_v53 = vor.u32 %v19295_v18, %v16740_v48  ;;  %v16638_v48 = vld [vmem:[%s28802_s5 + $0x1210] sm:$0xf0]  ;;  %v17196_v33 = vld [vmem:[%s28802_s5 + $0x1660] sm:$0xf] }
 0x8c8   :  { %v8342_v7 = vadd.f32 %v26484_v8, %v8328_v37  ;;  %v16652_v8 = vld [vmem:[%s28802_s5 + $0x1220] sm:$0xf]  ;;  %9491 = vmatpush.bf16.msrb.mxu0 %v16993_v16  ;;  %v16977_v37 = vor.u32 %v19352_v3, %v16974_v22  ;;  %v16641_v2 = vor.u32 %v19268_v4, %v16638_v48  ;;  %v26658_v16 = vpop.f32.mrf.mxu3  ;;  %v19283_v3 = vld [vmem:[%s28802_s5 + $0x1274] sm:$0xf0]  ;;  %v19344_v22 = vld [vmem:[%s28802_s5 + $0x1464] sm:$0xf] }
 0x8c9   :  { %9428 = vmatmul.bf16.vlgmr.msrb.gmra.mxu3 %v26598_v19  ;;  %v16653_v9 = vor.u32 %v19274_v5, %v16652_v8  ;;  %v16708_v8 = vld [vmem:[%s28802_s5 + $0x1288] sm:$0xf]  ;;  %v19287_v5 = vld [vmem:[%s28802_s5 + $0x1294] sm:$0xf0]  ;;  %v17164_v4 = vld [vmem:[%s28802_s5 + $0x1620] sm:$0xf] }
 0x8ca   :  { %v8356_v47 = vadd.f32 %v26376_v43, %v8342_v7  ;;  %9532 = vmatpush.bf16.msrb.mxu3 %v16757_v23  ;;  %v19291_v43 = vld [vmem:[%s28802_s5 + $0x12b4] sm:$0xf0]  ;;  %v19410_v7 = vld [vmem:[%s28802_s5 + $0x166c] sm:$0xf0] }
 0x8cb   :  { %9398 = vmatpush.bf16.msrb.mxu1 %v16653_v9  ;;  %9468 = vmatpush.bf16.msra.mxu2 %v16657_v25  ;;  %v16725_v18 = vor.u32 %v19291_v43, %v16724_v11  ;;  %v17197_v41 = vor.u32 %v19410_v7, %v17196_v33  ;;  %v16709_v11 = vor.u32 %v19287_v5, %v16708_v8  ;;  %v16692_v25 = vld [vmem:[%s28802_s5 + $0x1268] sm:$0xf]  ;;  %v16926_v8 = vld [vmem:[%s28802_s5 + $0x1450] sm:$0xf0] }
 0x8cc   :  { %v26627_v49 = vadd.f32 %v8356_v47, %v25605_v34  ;;  %v16636_v34 = vld [vmem:[%s28802_s5 + $0x1200] sm:$0xf]  ;;  %9492 = vmatpush.bf16.msrb.mxu0 %v16977_v37  ;;  %v16958_v47 = vld [vmem:[%s28802_s5 + $0x1490] sm:$0xf0]  ;;  %v16693_v48 = vor.u32 %v19283_v3, %v16692_v25  ;;  %v16676_v33 = vld [vmem:[%s28802_s5 + $0x1248] sm:$0xf] }
 0x8cd   :  { %v16637_v23 = vor.u32 %v19270_v62, %v16636_v34  ;;  %v16961_v9 = vor.u32 %v19348_v38, %v16958_v47  ;;  %v16942_v37 = vld [vmem:[%s28802_s5 + $0x1470] sm:$0xf0]  ;;  %v17148_v38 = vld [vmem:[%s28802_s5 + $0x1600] sm:$0xf]  ;;  %v19398_v47 = vld [vmem:[%s28802_s5 + $0x160c] sm:$0xf0] }
 0x8ce   :  { %v26647_v28 = vpop.f32.mrf.mxu1  ;;  %9533 = vmatpush.bf16.msrb.mxu3 %v16741_v53  ;;  %v19406_v53 = vld [vmem:[%s28802_s5 + $0x164c] sm:$0xf0]  ;;  %v16945_v34 = vor.u32 %v19344_v22, %v16942_v37  ;;  %v17149_v25 = vor.u32 %v19398_v47, %v17148_v38  ;;  %v19275_v3 = vld [vmem:[%s28802_s5 + $0x1234] sm:$0xf0] }
 0x8cf   :  { %28958 = vst [vmem:[#allocation24_spill] sm:$0xff] %v26647_v28  ;;  %9399 = vmatpush.bf16.msrb.mxu1 %v16637_v23  ;;  %9469 = vmatpush.bf16.msra.mxu2 %v16641_v2  ;;  %v17181_v43 = vor.u32 %v19406_v53, %v17180_v45  ;;  %v19402_v23 = vld [vmem:[%s28802_s5 + $0x162c] sm:$0xf0]  ;;  %v19279_v2 = vld [vmem:[%s28802_s5 + $0x1254] sm:$0xf0] }
 0x8d0   :  { %9493 = vmatpush.bf16.msrb.mxu0 %v16961_v9  ;;  %v17165_v7 = vor.u32 %v19402_v23, %v17164_v4  ;;  %v26714_v9 = vpop.f32.mrf.mxu0  ;;  %v16677_v45 = vor.u32 %v19279_v2, %v16676_v33  ;;  %v19408_v53 = vld [vmem:[%s28802_s5 + $0x1664] sm:$0xf]  ;;  %v16910_v4 = vld [vmem:[%s28802_s5 + $0x1430] sm:$0xf0]  ;;  %v19411_v38 = vld [vmem:[%s28802_s5 + $0x1674] sm:$0xf0] }
 0x8d1   :  { %v19404_v33 = vld [vmem:[%s28802_s5 + $0x1644] sm:$0xf] }
 0x8d2   :  { %9534 = vmatpush.bf16.msrb.mxu3 %v16725_v18 }
 0x8d3   :  { %9452 = vmatpush.bf16.msra.mxu1 %v17197_v41  ;;  %v19340_v41 = vld [vmem:[%s28802_s5 + $0x1444] sm:$0xf] }
 0x8d4   :  { %9494 = vmatpush.bf16.msrb.mxu0 %v16945_v34  ;;  %v16929_v5 = vor.u32 %v19340_v41, %v16926_v8  ;;  %v19336_v34 = vld [vmem:[%s28802_s5 + $0x1424] sm:$0xf]  ;;  %v16644_v8 = vld [vmem:[%s28802_s5 + $0x1208] sm:$0xf] }
 0x8d5   :  { %v16913_v2 = vor.u32 %v19336_v34, %v16910_v4  ;;  %v17188_v4 = vld [vmem:[%s28802_s5 + $0x1648] sm:$0xf] }
 0x8d6   :  { %v8472_v62 = vpop.f32.mrf.mxu1  ;;  %9535 = vmatpush.bf16.msrb.mxu3 %v16709_v11  ;;  %v17198_v11 = vld [vmem:[%s28802_s5 + $0x1670] sm:$0xf0] }
 0x8d7   :  { %9453 = vmatpush.bf16.msra.mxu1 %v17181_v43  ;;  %v16660_v43 = vld [vmem:[%s28802_s5 + $0x1228] sm:$0xf]  ;;  %v17201_v37 = vor.u32 %v19408_v53, %v17198_v11  ;;  %v16894_v53 = vld [vmem:[%s28802_s5 + $0x1410] sm:$0xf0] }
 0x8d8   :  { %9495 = vmatpush.bf16.msrb.mxu0 %v16929_v5  ;;  %v17204_v5 = vld [vmem:[%s28802_s5 + $0x1668] sm:$0xf] }
 0x8d9   :  { %v8369_v18 = vpop.f32.mrf.mxu3  ;;  %v17205_v34 = vor.u32 %v19411_v38, %v17204_v5  ;;  %v19403_v38 = vld [vmem:[%s28802_s5 + $0x1634] sm:$0xf0] }
 0x8da   :  { %9536 = vmatpush.bf16.msrb.mxu3 %v16693_v48  ;;  %v16661_v48 = vor.u32 %v19275_v3, %v16660_v43  ;;  %v19400_v43 = vld [vmem:[%s28802_s5 + $0x1624] sm:$0xf]  ;;  %v17166_v3 = vld [vmem:[%s28802_s5 + $0x1630] sm:$0xf0] }
 0x8db   :  { %9454 = vmatpush.bf16.msra.mxu1 %v17165_v7  ;;  %v17182_v7 = vld [vmem:[%s28802_s5 + $0x1650] sm:$0xf0] }
 0x8dc   :  { %v17185_v47 = vor.u32 %v19404_v33, %v17182_v7  ;;  %9496 = vmatpush.bf16.msrb.mxu0 %v16913_v2  ;;  %v17169_v7 = vor.u32 %v19400_v43, %v17166_v3  ;;  %v19396_v2 = vld [vmem:[%s28802_s5 + $0x1604] sm:$0xf]  ;;  %v19399_v43 = vld [vmem:[%s28802_s5 + $0x1614] sm:$0xf0] }
 0x8de   :  { %v8474_v22 = vpop.f32.mrf.mxu1  ;;  %9537 = vmatpush.bf16.msrb.mxu3 %v16677_v45  ;;  %v19332_v45 = vld [vmem:[%s28802_s5 + $0x1404] sm:$0xf] }
 0x8df   :  { %9455 = vmatpush.bf16.msra.mxu1 %v17149_v25  ;;  %v26734_v23 = vpack.c.bf16 %v8474_v22, %v8472_v62  ;;  %v19271_v62 = vld [vmem:[%s28802_s5 + $0x1214] sm:$0xf0]  ;;  %v16897_v22 = vor.u32 %v19332_v45, %v16894_v53 }
 0x8e0   :  { %v16645_v25 = vor.u32 %v19271_v62, %v16644_v8 }
 0x8e1   :  { %v26742_v41 = vpop.f32.mrf.mxu3  ;;  %9414 = vmatmul.bf16.vlgmr.msrb.gmra.mxu2 %v26734_v23  ;;  %9484 = vmatmul.bf16.vlgmr.msra.gmra.mxu3 %v26734_v23 }
 0x8e2   :  { %9522 = vmatpush.bf16.msrb.mxu2 %v17201_v37  ;;  %9538 = vmatpush.bf16.msrb.mxu3 %v16661_v48  ;;  %v19407_v48 = vld [vmem:[%s28802_s5 + $0x1654] sm:$0xf0] }
 0x8e3   :  { %9497 = vmatpush.bf16.msrb.mxu0 %v16897_v22  ;;  %v17189_v5 = vor.u32 %v19407_v48, %v17188_v4  ;;  %v17134_v4 = vld [vmem:[%s28802_s5 + $0x15f0] sm:$0xf0]  ;;  %v17140_v48 = vld [vmem:[%s28802_s5 + $0x15e8] sm:$0xf] }
 0x8e5   :  { %v8383_v11 = vpop.f32.mrf.mxu0 }
 0x8e6   :  { %v8384_v37 = vadd.f32 %v8383_v11, %v8369_v18  ;;  %9523 = vmatpush.bf16.msrb.mxu2 %v17185_v47  ;;  %9539 = vmatpush.bf16.msrb.mxu3 %v16645_v25  ;;  %v17150_v18 = vld [vmem:[%s28802_s5 + $0x1610] sm:$0xf0]  ;;  %v17156_v25 = vld [vmem:[%s28802_s5 + $0x1608] sm:$0xf] }
 0x8e7   :  { %v17153_v45 = vor.u32 %v19396_v2, %v17150_v18  ;;  %v17157_v22 = vor.u32 %v19399_v43, %v17156_v25  ;;  %v17142_v2 = vld [vmem:[%s28802_s5 + $0x15f8] sm:$0xf0]  ;;  %v19389_v25 = vld [vmem:[%s28802_s5 + $0x15cc] sm:$0xf] }
 0x8e8   :  { %v8398_v33 = vadd.f32 %v26589_v50, %v8384_v37  ;;  %v17172_v50 = vld [vmem:[%s28802_s5 + $0x1628] sm:$0xf]  ;;  %v17126_v43 = vld [vmem:[%s28802_s5 + $0x15d8] sm:$0xf0] }
 0x8e9   :  { %v8425_v62 = vpop.f32.mrf.mxu3 }
 0x8ea   :  { %v8412_v8 = vadd.f32 %v26444_v27, %v8398_v33  ;;  %9592 = vmatpush.bf16.msra.mxu3 %v17205_v34  ;;  %9524 = vmatpush.bf16.msrb.mxu2 %v17169_v7  ;;  %v17173_v27 = vor.u32 %v19403_v38, %v17172_v50  ;;  %v19395_v33 = vld [vmem:[%s28802_s5 + $0x15f4] sm:$0xf0]  ;;  %v19393_v7 = vld [vmem:[%s28802_s5 + $0x15ec] sm:$0xf]  ;;  %v19388_v38 = vld [vmem:[%s28802_s5 + $0x15c4] sm:$0xf] }
 0x8eb   :  { %v17145_v50 = vor.u32 %v19393_v7, %v17142_v2  ;;  %v19384_v7 = vld [vmem:[%s28802_s5 + $0x15a4] sm:$0xf]  ;;  %v17102_v2 = vld [vmem:[%s28802_s5 + $0x15b0] sm:$0xf0] }
 0x8ec   :  { %v8426_v47 = vadd.f32 %v8425_v62, %v8412_v8 }
 0x8ed   :  { %v26790_v53 = vpop.f32.mrf.mxu0 }
 0x8ee   :  { %28959 = vst [vmem:[#allocation50_spill] sm:$0xff] %v26790_v53  ;;  %v26793_v11 = vadd.f32 %v8426_v47, %v25792_v57  ;;  %9593 = vmatpush.bf16.msra.mxu3 %v17189_v5  ;;  %9525 = vmatpush.bf16.msrb.mxu2 %v17153_v45  ;;  %v19392_v57 = vld [vmem:[%s28802_s5 + $0x15e4] sm:$0xf]  ;;  %v17141_v5 = vor.u32 %v19395_v33, %v17140_v48  ;;  %v17118_v47 = vld [vmem:[%s28802_s5 + $0x15d0] sm:$0xf0] }
 0x8ef   :  { %v17137_v8 = vor.u32 %v19392_v57, %v17134_v4  ;;  %v17124_v45 = vld [vmem:[%s28802_s5 + $0x15c8] sm:$0xf]  ;;  %v17121_v57 = vor.u32 %v19388_v38, %v17118_v47  ;;  %v17129_v33 = vor.u32 %v19389_v25, %v17126_v43  ;;  %v17110_v47 = vld [vmem:[%s28802_s5 + $0x15b8] sm:$0xf0]  ;;  %v17105_v25 = vor.u32 %v19384_v7, %v17102_v2  ;;  %v19357_v53 = vld [vmem:[%s28802_s5 + $0x14cc] sm:$0xf] }
 0x8f0   :  { %28960 = vst [vmem:[#allocation51_spill] sm:$0xff] %v26793_v11  ;;  %v17094_v7 = vld [vmem:[%s28802_s5 + $0x1598] sm:$0xf0]  ;;  %v16852_v2 = vld [vmem:[%s28802_s5 + $0x13a8] sm:$0xf] }
 0x8f1   :  { %v26801_v3 = vpop.f32.mrf.mxu3 }
 0x8f2   :  { %28961 = vst [vmem:[#allocation49_spill] sm:$0xff] %v26801_v3  ;;  %9594 = vmatpush.bf16.msra.mxu3 %v17173_v27  ;;  %v19391_v27 = vld [vmem:[%s28802_s5 + $0x15d4] sm:$0xf0] }
 0x8f3   :  { %v17125_v48 = vor.u32 %v19391_v27, %v17124_v45  ;;  %v16868_v45 = vld [vmem:[%s28802_s5 + $0x13c8] sm:$0xf] }
 0x8f5   :  { %v8458_v37 = vpop.f32.mrf.mxu0 }
 0x8f6   :  { %9595 = vmatpush.bf16.msra.mxu3 %v17157_v22  ;;  %v16884_v22 = vld [vmem:[%s28802_s5 + $0x13e8] sm:$0xf] }
 0x8f9   :  { %v8500_v34 = vpop.f32.mrf.mxu3 }
 0x8fd   :  { %v8460_v18 = vpop.f32.mrf.mxu0 }
 0x8fe   :  { %v26821_v62 = vpack.c.bf16 %v8460_v18, %v8458_v37  ;;  %v19331_v37 = vld [vmem:[%s28802_s5 + $0x13f4] sm:$0xf0]  ;;  %v17108_v18 = vld [vmem:[%s28802_s5 + $0x15a8] sm:$0xf] }
 0x8ff   :  { %v16885_v38 = vor.u32 %v19331_v37, %v16884_v22  ;;  %v19380_v37 = vld [vmem:[%s28802_s5 + $0x1584] sm:$0xf] }
 0x900   :  { %9400 = vmatmul.bf16.vlgmr.msrb.gmra.mxu1 %v26821_v62  ;;  %9470 = vmatmul.bf16.vlgmr.msra.gmra.mxu2 %v26821_v62 }
 0x901   :  { %9504 = vmatpush.bf16.msrb.mxu1 %v17137_v8  ;;  %9540 = vmatmul.bf16.vlgmr.msrb.gmra.mxu3 %v26821_v62  ;;  %v8502_v4 = vpop.f32.mrf.mxu3 }
 0x902   :  { %9574 = vmatpush.bf16.msra.mxu2 %v17141_v5  ;;  %9644 = vmatpush.bf16.msrb.mxu3 %v17145_v50  ;;  %v26859_v8 = vpack.c.bf16 %v8502_v4, %v8500_v34  ;;  %v19387_v5 = vld [vmem:[%s28802_s5 + $0x15b4] sm:$0xf0]  ;;  %v19385_v50 = vld [vmem:[%s28802_s5 + $0x15ac] sm:$0xf]  ;;  %v17086_v4 = vld [vmem:[%s28802_s5 + $0x1590] sm:$0xf0] }
 0x903   :  { %v19327_v34 = vld [vmem:[%s28802_s5 + $0x13d4] sm:$0xf0]  ;;  %v17109_v43 = vor.u32 %v19387_v5, %v17108_v18  ;;  %v17113_v22 = vor.u32 %v19385_v50, %v17110_v47  ;;  %v19376_v47 = vld [vmem:[%s28802_s5 + $0x1564] sm:$0xf] }
 0x904   :  { %9442 = vmatmul.bf16.vlgmr.msra.gmra.mxu0 %v26859_v8  ;;  %v16869_v11 = vor.u32 %v19327_v34, %v16868_v45  ;;  %v19323_v18 = vld [vmem:[%s28802_s5 + $0x13b4] sm:$0xf0]  ;;  %v17070_v45 = vld [vmem:[%s28802_s5 + $0x1570] sm:$0xf0]  ;;  %v17076_v34 = vld [vmem:[%s28802_s5 + $0x1568] sm:$0xf] }
 0x905   :  { %9505 = vmatpush.bf16.msrb.mxu1 %v17121_v57  ;;  %v8514_v27 = vpop.f32.mrf.mxu0  ;;  %v17092_v57 = vld [vmem:[%s28802_s5 + $0x1588] sm:$0xf]  ;;  %9546 = vmatpush.bf16.msra.mxu0 %v16885_v38  ;;  %v17089_v38 = vor.u32 %v19380_v37, %v17086_v4  ;;  %v16853_v3 = vor.u32 %v19323_v18, %v16852_v2  ;;  %v19372_v2 = vld [vmem:[%s28802_s5 + $0x1544] sm:$0xf]  ;;  %v17054_v18 = vld [vmem:[%s28802_s5 + $0x1550] sm:$0xf0] }
 0x906   :  { %9575 = vmatpush.bf16.msra.mxu2 %v17125_v48  ;;  %9645 = vmatpush.bf16.msrb.mxu3 %v17129_v33  ;;  %v19383_v48 = vld [vmem:[%s28802_s5 + $0x1594] sm:$0xf0]  ;;  %v19381_v33 = vld [vmem:[%s28802_s5 + $0x158c] sm:$0xf]  ;;  %v16836_v37 = vld [vmem:[%s28802_s5 + $0x1388] sm:$0xf] }
 0x907   :  { %v17093_v5 = vor.u32 %v19383_v48, %v17092_v57  ;;  %v17097_v50 = vor.u32 %v19381_v33, %v17094_v7  ;;  %v17073_v57 = vor.u32 %v19376_v47, %v17070_v45  ;;  %v19315_v45 = vld [vmem:[%s28802_s5 + $0x1374] sm:$0xf0] }
 0x909   :  { %9506 = vmatpush.bf16.msrb.mxu1 %v17105_v25  ;;  %9547 = vmatpush.bf16.msra.mxu0 %v16869_v11  ;;  %v19379_v25 = vld [vmem:[%s28802_s5 + $0x1574] sm:$0xf0] }
 0x90a   :  { %9576 = vmatpush.bf16.msra.mxu2 %v17109_v43  ;;  %9646 = vmatpush.bf16.msrb.mxu3 %v17113_v22  ;;  %v19377_v43 = vld [vmem:[%s28802_s5 + $0x156c] sm:$0xf]  ;;  %v17078_v22 = vld [vmem:[%s28802_s5 + $0x1578] sm:$0xf0]  ;;  %v19319_v11 = vld [vmem:[%s28802_s5 + $0x1394] sm:$0xf0]  ;;  %v17077_v33 = vor.u32 %v19379_v25, %v17076_v34  ;;  %v17057_v34 = vor.u32 %v19372_v2, %v17054_v18 }
 0x90b   :  { %v17081_v7 = vor.u32 %v19377_v43, %v17078_v22  ;;  %v16837_v47 = vor.u32 %v19319_v11, %v16836_v37  ;;  %v19368_v22 = vld [vmem:[%s28802_s5 + $0x1524] sm:$0xf]  ;;  %v17038_v37 = vld [vmem:[%s28802_s5 + $0x1530] sm:$0xf0]  ;;  %v17044_v11 = vld [vmem:[%s28802_s5 + $0x1528] sm:$0xf] }
 0x90c   :  { %v16804_v2 = vld [vmem:[%s28802_s5 + $0x1348] sm:$0xf]  ;;  %v19311_v18 = vld [vmem:[%s28802_s5 + $0x1354] sm:$0xf0] }
 0x90d   :  { %9507 = vmatpush.bf16.msrb.mxu1 %v17089_v38  ;;  %v8516_v4 = vpop.f32.mrf.mxu0  ;;  %v17060_v38 = vld [vmem:[%s28802_s5 + $0x1548] sm:$0xf]  ;;  %9548 = vmatpush.bf16.msra.mxu0 %v16853_v3 }
 0x90e   :  { %9577 = vmatpush.bf16.msra.mxu2 %v17093_v5  ;;  %v26925_v48 = vpack.c.bf16 %v8516_v4, %v8514_v27  ;;  %9647 = vmatpush.bf16.msrb.mxu3 %v17097_v50  ;;  %v19375_v27 = vld [vmem:[%s28802_s5 + $0x1554] sm:$0xf0]  ;;  %v19373_v5 = vld [vmem:[%s28802_s5 + $0x154c] sm:$0xf]  ;;  %v17062_v50 = vld [vmem:[%s28802_s5 + $0x1558] sm:$0xf0] }
 0x90f   :  { %v16820_v3 = vld [vmem:[%s28802_s5 + $0x1368] sm:$0xf]  ;;  %v17061_v25 = vor.u32 %v19375_v27, %v17060_v38  ;;  %v17065_v43 = vor.u32 %v19373_v5, %v17062_v50  ;;  %v17041_v38 = vor.u32 %v19368_v22, %v17038_v37  ;;  %v17022_v50 = vld [vmem:[%s28802_s5 + $0x1510] sm:$0xf0]  ;;  %v19361_v22 = vld [vmem:[%s28802_s5 + $0x14ec] sm:$0xf] }
 0x910   :  { %17210 = vmatmul.msk.bf16.vlgmr.msra.gmra.mxu1 %vm4667_vm4, %v26925_v48  ;;  %17211 = vmatmul.msk.bf16.vlgmr.msrb.gmra.mxu2 %vm4667_vm4, %v26925_v48  ;;  %v16821_v4 = vor.u32 %v19315_v45, %v16820_v3  ;;  %v17028_v3 = vld [vmem:[%s28802_s5 + $0x1508] sm:$0xf]  ;;  %v19367_v45 = vld [vmem:[%s28802_s5 + $0x1514] sm:$0xf0]  ;;  %v17014_v37 = vld [vmem:[%s28802_s5 + $0x14f8] sm:$0xf0] }
 0x911   :  { %9508 = vmatpush.bf16.msrb.mxu1 %v17073_v57  ;;  %17212 = vmatmul.msk.bf16.vlgmr.msra.gmra.mxu3 %vm4667_vm4, %v26925_v48  ;;  %v19371_v57 = vld [vmem:[%s28802_s5 + $0x1534] sm:$0xf0]  ;;  %v17017_v20 = vor.u32 %v19361_v22, %v17014_v37  ;;  %v16980_v22 = vld [vmem:[%s28802_s5 + $0x14a8] sm:$0xf] }
 0x912   :  { %9578 = vmatpush.bf16.msra.mxu2 %v17077_v33  ;;  %9648 = vmatpush.bf16.msrb.mxu3 %v17081_v7  ;;  %v19369_v33 = vld [vmem:[%s28802_s5 + $0x152c] sm:$0xf]  ;;  %v17046_v7 = vld [vmem:[%s28802_s5 + $0x1538] sm:$0xf0]  ;;  %v17045_v27 = vor.u32 %v19371_v57, %v17044_v11  ;;  %v19355_v37 = vld [vmem:[%s28802_s5 + $0x14b4] sm:$0xf0] }
 0x913   :  { %9549 = vmatpush.bf16.msra.mxu0 %v16837_v47  ;;  %v19364_v47 = vld [vmem:[%s28802_s5 + $0x1504] sm:$0xf]  ;;  %v17049_v5 = vor.u32 %v19369_v33, %v17046_v7  ;;  %v19365_v11 = vld [vmem:[%s28802_s5 + $0x150c] sm:$0xf]  ;;  %v16788_v33 = vld [vmem:[%s28802_s5 + $0x1328] sm:$0xf] }
 0x914   :  { %9498 = vmatmul.bf16.vlgmr.msrb.gmra.mxu0 %v26598_v19  ;;  %v17025_v57 = vor.u32 %v19364_v47, %v17022_v50  ;;  %v19307_v7 = vld [vmem:[%s28802_s5 + $0x1334] sm:$0xf0] }
 0x915   :  { %9509 = vmatpush.bf16.msrb.mxu1 %v17057_v34  ;;  %v16805_v34 = vor.u32 %v19311_v18, %v16804_v2  ;;  %v17029_v2 = vor.u32 %v19367_v45, %v17028_v3  ;;  %v19359_v47 = vld [vmem:[%s28802_s5 + $0x14d4] sm:$0xf0]  ;;  %v16789_v50 = vor.u32 %v19307_v7, %v16788_v33  ;;  %v16742_v33 = vld [vmem:[%s28802_s5 + $0x12d8] sm:$0xf0] }
 0x916   :  { %9579 = vmatpush.bf16.msra.mxu2 %v17061_v25  ;;  %9649 = vmatpush.bf16.msrb.mxu3 %v17065_v43  ;;  %v17012_v25 = vld [vmem:[%s28802_s5 + $0x14e8] sm:$0xf]  ;;  %v19363_v43 = vld [vmem:[%s28802_s5 + $0x14f4] sm:$0xf0] }
 0x917   :  { %9550 = vmatpush.bf16.msra.mxu0 %v16821_v4  ;;  %v17030_v4 = vld [vmem:[%s28802_s5 + $0x1518] sm:$0xf0]  ;;  %v17013_v18 = vor.u32 %v19363_v43, %v17012_v25  ;;  %v19303_v3 = vld [vmem:[%s28802_s5 + $0x1314] sm:$0xf0] }
 0x918   :  { %v17033_v28 = vor.u32 %v19365_v11, %v17030_v4  ;;  %v16758_v25 = vld [vmem:[%s28802_s5 + $0x12f8] sm:$0xf0]  ;;  %v19353_v4 = vld [vmem:[%s28802_s5 + $0x14ac] sm:$0xf] }
 0x919   :  { %9510 = vmatpush.bf16.msrb.mxu1 %v17041_v38  ;;  %v16996_v38 = vld [vmem:[%s28802_s5 + $0x14c8] sm:$0xf] }
 0x91a   :  { %9580 = vmatpush.bf16.msra.mxu2 %v17045_v27  ;;  %9650 = vmatpush.bf16.msrb.mxu3 %v17049_v5  ;;  %v16998_v27 = vld [vmem:[%s28802_s5 + $0x14d8] sm:$0xf0]  ;;  %v16772_v5 = vld [vmem:[%s28802_s5 + $0x1308] sm:$0xf]  ;;  %v16997_v45 = vor.u32 %v19359_v47, %v16996_v38 }
 0x91b   :  { %9551 = vmatpush.bf16.msra.mxu0 %v16805_v34  ;;  %v19297_v34 = vld [vmem:[%s28802_s5 + $0x12ec] sm:$0xf]  ;;  %v17001_v43 = vor.u32 %v19357_v53, %v16998_v27  ;;  %v16773_v11 = vor.u32 %v19303_v3, %v16772_v5  ;;  %v16981_v53 = vor.u32 %v19355_v37, %v16980_v22  ;;  %v16966_v38 = vld [vmem:[%s28802_s5 + $0x1498] sm:$0xf0] }
 0x91c   :  { %v19289_v27 = vld [vmem:[%s28802_s5 + $0x12ac] sm:$0xf]  ;;  %v16726_v5 = vld [vmem:[%s28802_s5 + $0x12b8] sm:$0xf0] }
 0x91d   :  { %9511 = vmatpush.bf16.msrb.mxu1 %v17025_v57  ;;  %v19293_v57 = vld [vmem:[%s28802_s5 + $0x12cc] sm:$0xf]  ;;  %v16729_v22 = vor.u32 %v19289_v27, %v16726_v5  ;;  %v16918_v5 = vld [vmem:[%s28802_s5 + $0x1438] sm:$0xf0] }
 0x91e   :  { %9581 = vmatpush.bf16.msra.mxu2 %v17029_v2  ;;  %9651 = vmatpush.bf16.msrb.mxu3 %v17033_v28  ;;  %v16761_v28 = vor.u32 %v19297_v34, %v16758_v25  ;;  %v16964_v2 = vld [vmem:[%s28802_s5 + $0x1488] sm:$0xf]  ;;  %v16745_v47 = vor.u32 %v19293_v57, %v16742_v33  ;;  %v19347_v34 = vld [vmem:[%s28802_s5 + $0x1474] sm:$0xf0]  ;;  %v19345_v25 = vld [vmem:[%s28802_s5 + $0x146c] sm:$0xf] }
 0x91f   :  { %9552 = vmatpush.bf16.msra.mxu0 %v16789_v50  ;;  %v19341_v57 = vld [vmem:[%s28802_s5 + $0x144c] sm:$0xf]  ;;  %v16934_v33 = vld [vmem:[%s28802_s5 + $0x1458] sm:$0xf0] }
 0x920   :  { %9512 = vmatmul.bf16.vlgmr.msrb.gmra.mxu1 %v26859_v8  ;;  %v19337_v27 = vld [vmem:[%s28802_s5 + $0x142c] sm:$0xf] }
 0x921   :  { %9560 = vmatpush.bf16.msra.mxu1 %v17013_v18  ;;  %9582 = vmatmul.bf16.vlgmr.msra.gmra.mxu2 %v26859_v8  ;;  %v19349_v18 = vld [vmem:[%s28802_s5 + $0x148c] sm:$0xf] }
 0x922   :  { %9630 = vmatpush.bf16.msrb.mxu2 %v17017_v20  ;;  %v16982_v20 = vld [vmem:[%s28802_s5 + $0x14b8] sm:$0xf0]  ;;  %9652 = vmatmul.bf16.vlgmr.msrb.gmra.mxu3 %v26859_v8  ;;  %v19351_v8 = vld [vmem:[%s28802_s5 + $0x1494] sm:$0xf0]  ;;  %v16969_v3 = vor.u32 %v19349_v18, %v16966_v38  ;;  %v16937_v38 = vor.u32 %v19341_v57, %v16934_v33  ;;  %v19273_v33 = vld [vmem:[%s28802_s5 + $0x122c] sm:$0xf] }
 0x923   :  { %v16985_v7 = vor.u32 %v19353_v4, %v16982_v20  ;;  %9553 = vmatpush.bf16.msra.mxu0 %v16773_v11  ;;  %v16965_v50 = vor.u32 %v19351_v8, %v16964_v2  ;;  %v19285_v11 = vld [vmem:[%s28802_s5 + $0x128c] sm:$0xf]  ;;  %v16710_v4 = vld [vmem:[%s28802_s5 + $0x1298] sm:$0xf0] }
 0x924   :  { %v19281_v8 = vld [vmem:[%s28802_s5 + $0x126c] sm:$0xf]  ;;  %v16694_v18 = vld [vmem:[%s28802_s5 + $0x1278] sm:$0xf0] }
 0x925   :  { %9561 = vmatpush.bf16.msra.mxu1 %v16997_v45  ;;  %v16948_v45 = vld [vmem:[%s28802_s5 + $0x1468] sm:$0xf] }
 0x926   :  { %9631 = vmatpush.bf16.msrb.mxu2 %v17001_v43  ;;  %9554 = vmatmul.bf16.vlgmr.msra.gmra.mxu0 %v26734_v23  ;;  %v16950_v43 = vld [vmem:[%s28802_s5 + $0x1478] sm:$0xf0]  ;;  %v16949_v37 = vor.u32 %v19347_v34, %v16948_v45  ;;  %v19277_v34 = vld [vmem:[%s28802_s5 + $0x124c] sm:$0xf] }
 0x927   :  { %9602 = vmatpush.bf16.msrb.mxu0 %v16761_v28  ;;  %v16953_v20 = vor.u32 %v19345_v25, %v16950_v43  ;;  %v16932_v28 = vld [vmem:[%s28802_s5 + $0x1448] sm:$0xf]  ;;  %v16678_v25 = vld [vmem:[%s28802_s5 + $0x1258] sm:$0xf0]  ;;  %v16921_v43 = vor.u32 %v19337_v27, %v16918_v5 }
 0x928   :  { %v16646_v27 = vld [vmem:[%s28802_s5 + $0x1218] sm:$0xf0] }
 0x929   :  { %9562 = vmatpush.bf16.msra.mxu1 %v16981_v53  ;;  %v19343_v53 = vld [vmem:[%s28802_s5 + $0x1454] sm:$0xf0] }
 0x92a   :  { %9632 = vmatpush.bf16.msrb.mxu2 %v16985_v7  ;;  %v16713_v7 = vor.u32 %v19285_v11, %v16710_v4  ;;  %v16933_v2 = vor.u32 %v19343_v53, %v16932_v28  ;;  %v19333_v11 = vld [vmem:[%s28802_s5 + $0x140c] sm:$0xf]  ;;  %v16902_v4 = vld [vmem:[%s28802_s5 + $0x1418] sm:$0xf0]  ;;  %v16681_v53 = vor.u32 %v19277_v34, %v16678_v25 }
 0x92b   :  { %9603 = vmatpush.bf16.msrb.mxu0 %v16745_v47  ;;  %v16916_v47 = vld [vmem:[%s28802_s5 + $0x1428] sm:$0xf]  ;;  %v16886_v28 = vld [vmem:[%s28802_s5 + $0x13f8] sm:$0xf0]  ;;  %v19321_v34 = vld [vmem:[%s28802_s5 + $0x13ac] sm:$0xf] }
 0x92c   :  { %v16854_v25 = vld [vmem:[%s28802_s5 + $0x13b8] sm:$0xf0] }
 0x92d   :  { %9563 = vmatpush.bf16.msra.mxu1 %v16965_v50  ;;  %v19339_v50 = vld [vmem:[%s28802_s5 + $0x1434] sm:$0xf0] }
 0x92e   :  { %9633 = vmatpush.bf16.msrb.mxu2 %v16969_v3  ;;  %v16697_v3 = vor.u32 %v19281_v8, %v16694_v18  ;;  %v16917_v45 = vor.u32 %v19339_v50, %v16916_v47  ;;  %v19325_v18 = vld [vmem:[%s28802_s5 + $0x13cc] sm:$0xf] }
 0x92f   :  { %9604 = vmatpush.bf16.msrb.mxu0 %v16729_v22  ;;  %v16900_v22 = vld [vmem:[%s28802_s5 + $0x1408] sm:$0xf]  ;;  %v19269_v50 = vld [vmem:[%s28802_s5 + $0x120c] sm:$0xf] }
 0x931   :  { %9564 = vmatpush.bf16.msra.mxu1 %v16949_v37  ;;  %v19335_v37 = vld [vmem:[%s28802_s5 + $0x1414] sm:$0xf0] }
 0x932   :  { %9634 = vmatpush.bf16.msrb.mxu2 %v16953_v20  ;;  %v19329_v20 = vld [vmem:[%s28802_s5 + $0x13ec] sm:$0xf]  ;;  %v16901_v57 = vor.u32 %v19335_v37, %v16900_v22  ;;  %v16857_v37 = vor.u32 %v19321_v34, %v16854_v25 }
 0x933   :  { %9605 = vmatpush.bf16.msrb.mxu0 %v16713_v7  ;;  %v16662_v7 = vld [vmem:[%s28802_s5 + $0x1238] sm:$0xf0]  ;;  %v16889_v8 = vor.u32 %v19329_v20, %v16886_v28  ;;  %v19317_v20 = vld [vmem:[%s28802_s5 + $0x138c] sm:$0xf] }
 0x934   :  { %v16665_v47 = vor.u32 %v19273_v33, %v16662_v7  ;;  %v16838_v28 = vld [vmem:[%s28802_s5 + $0x1398] sm:$0xf0]  ;;  %v19313_v7 = vld [vmem:[%s28802_s5 + $0x136c] sm:$0xf] }
 0x935   :  { %9565 = vmatpush.bf16.msra.mxu1 %v16933_v2  ;;  %v16905_v2 = vor.u32 %v19333_v11, %v16902_v4  ;;  %v19405_v11 = vld [vmem:[%s28802_s5 + $0x164c] sm:$0xf]  ;;  %v17190_v4 = vld [vmem:[%s28802_s5 + $0x1658] sm:$0xf0] }
 0x936   :  { %9635 = vmatpush.bf16.msrb.mxu2 %v16937_v38  ;;  %v16870_v38 = vld [vmem:[%s28802_s5 + $0x13d8] sm:$0xf0]  ;;  %v19301_v25 = vld [vmem:[%s28802_s5 + $0x130c] sm:$0xf] }
 0x937   :  { %9606 = vmatpush.bf16.msrb.mxu0 %v16697_v3  ;;  %v16873_v5 = vor.u32 %v19325_v18, %v16870_v38  ;;  %v19409_v3 = vld [vmem:[%s28802_s5 + $0x166c] sm:$0xf]  ;;  %v17174_v33 = vld [vmem:[%s28802_s5 + $0x1638] sm:$0xf0] }
 0x938   :  { %v19397_v38 = vld [vmem:[%s28802_s5 + $0x160c] sm:$0xf] }
 0x939   :  { %9566 = vmatpush.bf16.msra.mxu1 %v16917_v45  ;;  %v17206_v45 = vld [vmem:[%s28802_s5 + $0x1678] sm:$0xf0] }
 0x93a   :  { %9636 = vmatpush.bf16.msrb.mxu2 %v16921_v43  ;;  %v16649_v43 = vor.u32 %v19269_v50, %v16646_v27  ;;  %v17209_v22 = vor.u32 %v19409_v3, %v17206_v45  ;;  %v16806_v50 = vld [vmem:[%s28802_s5 + $0x1358] sm:$0xf0]  ;;  %v19305_v3 = vld [vmem:[%s28802_s5 + $0x132c] sm:$0xf] }
 0x93b   :  { %9607 = vmatpush.bf16.msrb.mxu0 %v16681_v53  ;;  %v16841_v53 = vor.u32 %v19317_v20, %v16838_v28  ;;  %v16790_v45 = vld [vmem:[%s28802_s5 + $0x1338] sm:$0xf0] }
 0x93c   :  { %v16793_v34 = vor.u32 %v19305_v3, %v16790_v45 }
 0x93d   :  { %9567 = vmatpush.bf16.msra.mxu1 %v16901_v57  ;;  %v19401_v57 = vld [vmem:[%s28802_s5 + $0x162c] sm:$0xf] }
 0x93e   :  { %9637 = vmatpush.bf16.msrb.mxu2 %v16905_v2  ;;  %v16822_v2 = vld [vmem:[%s28802_s5 + $0x1378] sm:$0xf0] }
 0x93f   :  { %9608 = vmatpush.bf16.msrb.mxu0 %v16665_v47  ;;  %v16825_v18 = vor.u32 %v19313_v7, %v16822_v2  ;;  %v19309_v47 = vld [vmem:[%s28802_s5 + $0x134c] sm:$0xf] }
 0x940   :  { %9568 = vmatmul.bf16.vlgmr.msra.gmra.mxu1 %v26598_v19 }
 0x941   :  { %9616 = vmatpush.bf16.msrb.mxu1 %v16889_v8  ;;  %9638 = vmatmul.bf16.vlgmr.msrb.gmra.mxu2 %v26598_v19  ;;  %v17193_v19 = vor.u32 %v19405_v11, %v17190_v4  ;;  %v17177_v8 = vor.u32 %v19401_v57, %v17174_v33  ;;  %v4697_v11 = vadd.f32 %v23699_v44, %v23812_v54 }
 0x942   :  { %v8176_v44 = vadd.f32 %v26282_v17, %v26316_v56  ;;  %v4767_v54 = vadd.f32 %v23972_v59, %v23958_v10 }
 0x943   :  { %9609 = vmatpush.bf16.msrb.mxu0 %v16649_v43  ;;  %v16774_v43 = vld [vmem:[%s28802_s5 + $0x1318] sm:$0xf0]  ;;  %v4711_v4 = vadd.f32 %v23691_v12, %v4697_v11 }
 0x945   :  { %9617 = vmatpush.bf16.msrb.mxu1 %v16873_v5  ;;  %v16809_v5 = vor.u32 %v19309_v47, %v16806_v50  ;;  %v4725_v28 = vadd.f32 %v23970_v61, %v4711_v4 }
 0x946   :  { %9610 = vmatmul.bf16.vlgmr.msrb.gmra.mxu0 %v26821_v62  ;;  %v17158_v62 = vld [vmem:[%s28802_s5 + $0x1618] sm:$0xf0]  ;;  %s12231_s5 = sshll.u32 %s28814_s17, 4  ;;  %s12232_s5 = int_to_ptr.hbm [resolvable:$true] %s12231_s5 }
 0x947   :  { %9662 = vmatpush.bf16.msra.mxu0 %v17209_v22  ;;  %v17161_v27 = vor.u32 %v19397_v38, %v17158_v62  ;;  %v16777_v22 = vor.u32 %v19301_v25, %v16774_v43  ;;  %v4739_v57 = vadd.f32 %v23939_v42, %v4725_v28  ;;  %v28964_v25 = vld [vmem:[#allocation19_spill] sm:$0xff]  ;;  %v28966_v28 = vld [vmem:[#allocation45_spill] sm:$0xff] }
 0x949   :  { %9618 = vmatpush.bf16.msrb.mxu1 %v16857_v37  ;;  %v5686_v7 = vadd.f32 %v24283_v31, %v4739_v57  ;;  %v28967_v57 = vld [vmem:[#allocation8_spill] sm:$0xff] }
 0x94b   :  { %9663 = vmatpush.bf16.msra.mxu0 %v17193_v19  ;;  %v5700_v2 = vadd.f32 %v24267_v14, %v5686_v7  ;;  %v28968_v7 = vld [vmem:[#allocation13_spill] sm:$0xff] }
 0x94d   :  { %9619 = vmatpush.bf16.msrb.mxu1 %v16841_v53  ;;  %v9429_v53 = vpop.f32.mrf.mxu3  ;;  %v5714_v31 = vadd.f32 %v24265_v30, %v5700_v2  ;;  %v27263_v30 = vld [vmem:[%s28803_s6] sm:$0xf] }
 0x94f   :  { %9664 = vmatpush.bf16.msra.mxu0 %v17177_v8  ;;  %v5728_v17 = vadd.f32 %v24363_v15, %v5714_v31  ;;  %v28963_v15 = vld [vmem:[#allocation15_spill] sm:$0xff] }
 0x951   :  { %9620 = vmatpush.bf16.msrb.mxu1 %v16825_v18  ;;  %v4781_v18 = vadd.f32 %v24074_v63, %v4767_v54 }
 0x953   :  { %9665 = vmatpush.bf16.msra.mxu0 %v17161_v27 }
 0x955   :  { %9621 = vmatpush.bf16.msrb.mxu1 %v16809_v5  ;;  %v9431_v42 = vpop.f32.mrf.mxu3 }
 0x956   :  { %17213 = vmatmul.msk.bf16.vlgmr.msra.gmra.mxu0 %vm4667_vm4, %v26925_v48 }
 0x959   :  { %9622 = vmatpush.bf16.msrb.mxu1 %v16793_v34 }
 0x95d   :  { %9623 = vmatpush.bf16.msrb.mxu1 %v16777_v22 }
 0x960   :  { %9624 = vmatmul.bf16.vlgmr.msrb.gmra.mxu1 %v26734_v23  ;;  %v6934_v23 = vadd.f32 %v25286_v6, %v25333_v39  ;;  %v8190_v6 = vadd.f32 %v26262_v55, %v8176_v44  ;;  %v28969_v44 = vld [vmem:[#allocation7_spill] sm:$0xff] }
 0x962   :  { %v6948_v8 = vadd.f32 %v25262_v13, %v6934_v23  ;;  %v8204_v56 = vadd.f32 %v26389_v36, %v8190_v6  ;;  %v4795_v13 = vadd.f32 %v24085_v52, %v4781_v18  ;;  %v28970_v6 = vld [vmem:[#allocation27_spill] sm:$0xff] }
 0x964   :  { %v9415_v37 = vpop.f32.mrf.mxu2  ;;  %v6962_v38 = vadd.f32 %v25413_v51, %v6948_v8  ;;  %v28962_v51 = vld [vmem:[#allocation25_spill] sm:$0xff]  ;;  %v8218_v50 = vadd.f32 %v26387_v35, %v8204_v56  ;;  %v4809_v5 = vadd.f32 %v28963_v15, %v4795_v13  ;;  %v9485_v45 = vpop.f32.mrf.mxu3  ;;  %v28971_v56 = vld [vmem:[#allocation35_spill] sm:$0xff] }
 0x965   :  { %v5742_v55 = vadd.f32 %v28962_v51, %v5728_v17  ;;  %v28973_v51 = vld [vmem:[#allocation38_spill] sm:$0xff] }
 0x966   :  { %v6976_v47 = vadd.f32 %v25406_v58, %v6962_v38  ;;  %v9682_v58 = vperm.slane %v27263_v30, 0  ;;  %v5756_v43 = vadd.f32 %v28964_v25, %v4809_v5 }
 0x968   :  { %v7192_v3 = vadd.f32 %v6976_v47, %v5742_v55 }
 0x96c   :  { %v9417_v19 = vpop.f32.mrf.mxu2 }
 0x97d   :  { %v9401_v20 = vpop.f32.mrf.mxu1 }
 0x97e   :  { %v9416_v12 = vadd.f32 %v9415_v37, %v9401_v20  ;;  %v8434_v37 = vadd.f32 %v8218_v50, %v7192_v3  ;;  %v28965_v20 = vld [vmem:[#allocation47_spill] sm:$0xff]  ;;  %v9683_v3 = vperm.slane %v27263_v30, 1 }
 0x97f   :  { %v7004_v35 = vadd.f32 %v28966_v28, %v28965_v20 }
 0x980   :  { %v9430_v14 = vadd.f32 %v9429_v53, %v9416_v12 }
 0x981   :  { %v9443_v33 = vpop.f32.mrf.mxu0 }
 0x982   :  { %v9444_v10 = vadd.f32 %v9443_v33, %v9430_v14  ;;  %v5770_v33 = vadd.f32 %v28967_v57, %v5756_v43  ;;  %v27306_v57 = vld [vmem:[%s28804_s7 + $0x4] sm:$0x7] }
 0x983   :  { %v9471_v61 = vpop.f32.mrf.mxu2 }
 0x984   :  { %v9486_v23 = vadd.f32 %v9485_v45, %v9471_v61  ;;  %v5784_v12 = vadd.f32 %v28969_v44, %v5770_v33 }
 0x985   :  { %v9403_v48 = vpop.f32.mrf.mxu1 }
 0x986   :  { %v9418_v59 = vadd.f32 %v9417_v19, %v9403_v48  ;;  %v7018_v48 = vadd.f32 %v28968_v7, %v7004_v35 }
 0x988   :  { %v9432_v27 = vadd.f32 %v9431_v42, %v9418_v59  ;;  %v7032_v14 = vadd.f32 %v28970_v6, %v7018_v48  ;;  %v28972_v59 = vld [vmem:[#allocation43_spill] sm:$0xff]  ;;  %v28978_v48 = vld [vmem:[#allocation30_spill] sm:$0xff]  ;;  %v8316_v6 = vadd.f32 %v26658_v16, %v26344_v26 }
 0x989   :  { %v9445_v39 = vpop.f32.mrf.mxu0 }
 0x98a   :  { %v9446_v34 = vadd.f32 %v9445_v39, %v9432_v27  ;;  %v9487_v39 = vpop.f32.mrf.mxu3  ;;  %v7046_v13 = vadd.f32 %v28972_v59, %v7032_v14  ;;  %v28985_v59 = vld [vmem:[#allocation11_spill] sm:$0xff] }
 0x98b   :  { %v9473_v36 = vpop.f32.mrf.mxu2 }
 0x98c   :  { %v9488_v47 = vadd.f32 %v9487_v39, %v9473_v36  ;;  %v28975_v36 = vld [vmem:[#allocation5_spill] sm:$0xff] }
 0x98d   :  { %v9457_v62 = vpop.f32.mrf.mxu1 }
 0x98e   :  { %v9458_v63 = vadd.f32 %v9457_v62, %v9444_v10  ;;  %v5798_v10 = vadd.f32 %v28971_v56, %v5784_v12  ;;  %v28980_v12 = vld [vmem:[#allocation46_spill] sm:$0xff] }
 0x990   :  { %v9672_v52 = vadd.f32 %v9458_v63, %v26385_v60  ;;  %v8246_v60 = vadd.f32 %v26290_v29, %v26342_v24 }
 0x991   :  { %v9499_v4 = vpop.f32.mrf.mxu0 }
 0x992   :  { %v9690_v19 = vadd.f32 %v9682_v58, %v9672_v52  ;;  %v8260_v54 = vadd.f32 %v26470_v21, %v8246_v60  ;;  %v9500_v42 = vadd.f32 %v9499_v4, %v9486_v23  ;;  %v27289_v21 = vld [vmem:[%s28804_s7] sm:$0x7]  ;;  %v9541_v25 = vpop.f32.mrf.mxu3 }
 0x993   :  { %v9527_v31 = vpop.f32.mrf.mxu2 }
 0x994   :  { %v9698_v8 = vmax.f32 %v9690_v19, 0.0  ;;  %v8274_v29 = vadd.f32 %v26540_v0, %v8260_v54  ;;  %v5812_v0 = vadd.f32 %v28973_v51, %v5798_v10  ;;  %v28977_v19 = vld [vmem:[#allocation17_spill] sm:$0xff]  ;;  %v8330_v10 = vadd.f32 %v26714_v9, %v8316_v6  ;;  %v28986_v51 = vld [vmem:[#allocation36_spill] sm:$0xff]  ;;  %v28995_v6 = vld [vmem:[#allocation23_spill] sm:$0xff] }
 0x995   :  { %v9459_v22 = vpop.f32.mrf.mxu1  ;;  %v28981_v54 = vld [vmem:[#allocation41_spill] sm:$0xff] }
 0x996   :  { %v9460_v11 = vadd.f32 %v9459_v22, %v9446_v34  ;;  %v8288_v55 = vadd.f32 %v26423_v46, %v8274_v29  ;;  %v7193_v15 = vadd.f32 %v7046_v13, %v5812_v0  ;;  %v28974_v34 = vld [vmem:[#allocation29_spill] sm:$0xff] }
 0x997   :  { %v4837_v52 = vadd.f32 %v28975_v36, %v28974_v34 }
 0x998   :  { %v9676_v53 = vadd.f32 %v9460_v11, %v8434_v37  ;;  %v8435_v43 = vadd.f32 %v8288_v55, %v7193_v15  ;;  %v28976_v11 = vld [vmem:[#allocation16_spill] sm:$0xff]  ;;  %v8344_v55 = vadd.f32 %v26542_v32, %v8330_v10 }
 0x999   :  { %v9501_v61 = vpop.f32.mrf.mxu0  ;;  %v4851_v4 = vadd.f32 %v28976_v11, %v4837_v52  ;;  %v28990_v11 = vld [vmem:[#allocation18_spill] sm:$0xff] }
 0x99a   :  { %v9694_v2 = vadd.f32 %v9682_v58, %v9676_v53  ;;  %v9502_v50 = vadd.f32 %v9501_v61, %v9488_v47  ;;  %v9543_v33 = vpop.f32.mrf.mxu3 }
 0x99b   :  { %v9529_v58 = vpop.f32.mrf.mxu2  ;;  %v4865_v53 = vadd.f32 %v28977_v19, %v4851_v4 }
 0x99c   :  { %v9702_v18 = vmax.f32 %v9694_v2, 0.0  ;;  %v28979_v2 = vld [vmem:[#allocation37_spill] sm:$0xff] }
 0x99d   :  { %v9513_v38 = vpop.f32.mrf.mxu1  ;;  %v4879_v60 = vadd.f32 %v28978_v48, %v4865_v53 }
 0x99e   :  { %v9514_v62 = vadd.f32 %v9513_v38, %v9500_v42  ;;  %v9706_v17 = vpack.c.bf16 %v9702_v18, %v9698_v8  ;;  %v7074_v8 = vadd.f32 %v28981_v54, %v28980_v12  ;;  %v28982_v42 = vld [vmem:[#allocation31_spill] sm:$0xff]  ;;  %v28994_v12 = vld [vmem:[#allocation22_spill] sm:$0xff] }
 0x99f   :  { %v5826_v44 = vadd.f32 %v28979_v2, %v4879_v60  ;;  %v28993_v2 = vld [vmem:[#allocation10_spill] sm:$0xff] }
 0x9a0   :  { %v27283_v24 = vsel %vm9715_vm5, %v9706_v17, 0  ;;  %v9528_v63 = vadd.f32 %v9527_v31, %v9514_v62  ;;  %v28983_v31 = vld [vmem:[#allocation42_spill] sm:$0xff]  ;;  %v28984_v17 = vld [vmem:[#allocation21_spill] sm:$0xff] }
 0x9a1   :  { %9735 = vmatpush.bf16.msra.mxu1 %v27283_v24  ;;  %v5840_v18 = vadd.f32 %v28982_v42, %v5826_v44  ;;  %v7088_v38 = vadd.f32 %v28983_v31, %v7074_v8  ;;  %v17337_v8 = vld [vmem:[%s28805_s8 + $0x230] sm:$0xf]  ;;  %v19483_v42 = vld [vmem:[%s28805_s8 + $0x234] sm:$0xf0] }
 0x9a2   :  { %v9673_v5 = vadd.f32 %v9528_v63, %v26468_v1  ;;  %v9597_v61 = vpop.f32.mrf.mxu3  ;;  %v17338_v31 = vor.u32 %v19483_v42, %v17337_v8 }
 0x9a3   :  { %v9555_v23 = vpop.f32.mrf.mxu0  ;;  %v5854_v56 = vadd.f32 %v28984_v17, %v5840_v18  ;;  %v7102_v13 = vadd.f32 %v28985_v59, %v7088_v38  ;;  %v17329_v18 = vld [vmem:[%s28805_s8 + $0x220] sm:$0xf]  ;;  %v19481_v38 = vld [vmem:[%s28805_s8 + $0x224] sm:$0xf0] }
 0x9a4   :  { %17214 = vmatmul.msk.bf16.vlgmr.msra.gmra.mxu1 %vm9711_vm6, %v27289_v21  ;;  %v9691_v37 = vadd.f32 %v9683_v3, %v9673_v5  ;;  %v9556_v14 = vadd.f32 %v9555_v23, %v9541_v25  ;;  %v9583_v39 = vpop.f32.mrf.mxu2  ;;  %v28988_v5 = vld [vmem:[#allocation6_spill] sm:$0xff]  ;;  %v9684_v25 = vperm.slane %v27263_v30, 2 }
 0x9a5   :  { %9852 = vmatpush.bf16.msrb.mxu1 %v27283_v24  ;;  %v9515_v27 = vpop.f32.mrf.mxu1  ;;  %v5868_v0 = vadd.f32 %v28986_v51, %v5854_v56 }
 0x9a6   :  { %v9516_v45 = vadd.f32 %v9515_v27, %v9502_v50  ;;  %v9699_v28 = vmax.f32 %v9691_v37, 0.0  ;;  %v28987_v50 = vld [vmem:[#allocation48_spill] sm:$0xff] }
 0x9a7   :  { %v7116_v27 = vadd.f32 %v28987_v50, %v7102_v13  ;;  %v29000_v50 = vld [vmem:[#allocation24_spill] sm:$0xff] }
 0x9a8   :  { %v9530_v22 = vadd.f32 %v9529_v58, %v9516_v45  ;;  %v8358_v45 = vadd.f32 %v26403_v40, %v8344_v55 }
 0x9a9   :  { %10241 = vmatpush.bf16.msra.mxu1 %v17338_v31 }
 0x9aa   :  { %v9677_v46 = vadd.f32 %v9530_v22, %v8435_v43  ;;  %v9599_v43 = vpop.f32.mrf.mxu3 }
 0x9ab   :  { %v9557_v63 = vpop.f32.mrf.mxu0 }
 0x9ac   :  { %v9695_v20 = vadd.f32 %v9683_v3, %v9677_v46  ;;  %v9558_v26 = vadd.f32 %v9557_v63, %v9543_v33  ;;  %v5882_v3 = vadd.f32 %v28988_v5, %v5868_v0  ;;  %v9585_v34 = vpop.f32.mrf.mxu2  ;;  %v28989_v46 = vld [vmem:[#allocation33_spill] sm:$0xff]  ;;  %v28992_v33 = vld [vmem:[#allocation34_spill] sm:$0xff]  ;;  %v19479_v63 = vld [vmem:[%s28805_s8 + $0x214] sm:$0xf0] }
 0x9ad   :  { %v4907_v4 = vadd.f32 %v28990_v11, %v28989_v46  ;;  %v28999_v0 = vld [vmem:[#allocation12_spill] sm:$0xff] }
 0x9ae   :  { %v9703_v35 = vmax.f32 %v9695_v20, 0.0  ;;  %v7194_v36 = vadd.f32 %v7116_v27, %v5882_v3  ;;  %v29006_v11 = vld [vmem:[#allocation44_spill] sm:$0xff] }
 0x9b0   :  { %v9707_v1 = vpack.c.bf16 %v9703_v35, %v9699_v28  ;;  %v8436_v32 = vadd.f32 %v8358_v45, %v7194_v36  ;;  %v28991_v35 = vld [vmem:[#allocation9_spill] sm:$0xff]  ;;  %v29002_v45 = vld [vmem:[#allocation14_spill] sm:$0xff] }
 0x9b1   :  { %v4921_v19 = vadd.f32 %v28991_v35, %v4907_v4 }
 0x9b2   :  { %v27309_v7 = vsel %vm9715_vm5, %v9707_v1, 0  ;;  %v9653_v51 = vpop.f32.mrf.mxu3 }
 0x9b3   :  { %9748 = vmatpush.bf16.msra.mxu2 %v27309_v7  ;;  %v4935_v48 = vadd.f32 %v28992_v33, %v4921_v19  ;;  %v9685_v33 = vperm.slane %v27263_v30, 3  ;;  %v19475_v30 = vld [vmem:[%s28805_s8 + $0x1f4] sm:$0xf0] }
 0x9b4   :  { %17219 = vmatmul.msk.bf16.vlgmr.msrb.gmra.mxu1 %vm9711_vm6, %v27306_v57 }
 0x9b5   :  { %v4949_v44 = vadd.f32 %v28993_v2, %v4935_v48  ;;  %v17313_v48 = vld [vmem:[%s28805_s8 + $0x200] sm:$0xf] }
 0x9b6   :  { %17215 = vmatmul.msk.bf16.vlgmr.msra.gmra.mxu2 %vm9711_vm6, %v27289_v21 }
 0x9b7   :  { %9865 = vmatpush.bf16.msrb.mxu2 %v27309_v7  ;;  %v5896_v54 = vadd.f32 %v28994_v12, %v4949_v44  ;;  %v17305_v12 = vld [vmem:[%s28805_s8 + $0x1f0] sm:$0xf] }
 0x9b8   :  { %v17306_v42 = vor.u32 %v19475_v30, %v17305_v12  ;;  %v19489_v12 = vld [vmem:[%s28805_s8 + $0x264] sm:$0xf0] }
 0x9ba   :  { %v9655_v35 = vpop.f32.mrf.mxu3 }
 0x9bd   :  { %v9569_v62 = vpop.f32.mrf.mxu1 }
 0x9be   :  { %v9570_v29 = vadd.f32 %v9569_v62, %v9556_v14  ;;  %v28996_v14 = vld [vmem:[#allocation28_spill] sm:$0xff]  ;;  %v28997_v62 = vld [vmem:[#allocation50_spill] sm:$0xff] }
 0x9bf   :  { %v8386_v17 = vadd.f32 %v28997_v62, %v26742_v41 }
 0x9c0   :  { %v9584_v47 = vadd.f32 %v9583_v39, %v9570_v29  ;;  %v7144_v39 = vadd.f32 %v28996_v14, %v28995_v6  ;;  %v17330_v29 = vor.u32 %v19481_v38, %v17329_v18  ;;  %v17297_v38 = vld [vmem:[%s28805_s8 + $0x1e0] sm:$0xf]  ;;  %v19473_v6 = vld [vmem:[%s28805_s8 + $0x1e4] sm:$0xf0] }
 0x9c1   :  { %v8400_v41 = vadd.f32 %v29000_v50, %v8386_v17  ;;  %v19496_v50 = vld [vmem:[%s28805_s8 + $0x2a4] sm:$0xf] }
 0x9c2   :  { %v9598_v16 = vadd.f32 %v9597_v61, %v9584_v47  ;;  %v28998_v61 = vld [vmem:[#allocation32_spill] sm:$0xff]  ;;  %v17321_v47 = vld [vmem:[%s28805_s8 + $0x210] sm:$0xf]  ;;  %v7158_v55 = vadd.f32 %v28999_v0, %v7144_v39  ;;  %10242 = vmatpush.bf16.msra.mxu1 %v17330_v29  ;;  %v17298_v39 = vor.u32 %v19473_v6, %v17297_v38 }
 0x9c3   :  { %v9611_v22 = vpop.f32.mrf.mxu0  ;;  %v5910_v59 = vadd.f32 %v28998_v61, %v5896_v54  ;;  %v17465_v38 = vld [vmem:[%s28805_s8 + $0x330] sm:$0xf] }
 0x9c4   :  { %v9674_v52 = vadd.f32 %v9598_v16, %v26627_v49  ;;  %v9639_v56 = vpop.f32.mrf.mxu2  ;;  %v17322_v16 = vor.u32 %v19479_v63, %v17321_v47  ;;  %v19469_v47 = vld [vmem:[%s28805_s8 + $0x1c4] sm:$0xf0]  ;;  %v19498_v63 = vld [vmem:[%s28805_s8 + $0x2b4] sm:$0xf] }
 0x9c5   :  { %v9571_v15 = vpop.f32.mrf.mxu1 }
 0x9c6   :  { %v9572_v9 = vadd.f32 %v9571_v15, %v9558_v26  ;;  %17220 = vmatmul.msk.bf16.vlgmr.msrb.gmra.mxu2 %vm9711_vm6, %v27306_v57  ;;  %v9692_v40 = vadd.f32 %v9684_v25, %v9674_v52  ;;  %v29001_v15 = vld [vmem:[#allocation26_spill] sm:$0xff]  ;;  %10243 = vmatpush.bf16.msra.mxu1 %v17322_v16 }
 0x9c7   :  { %v5924_v5 = vadd.f32 %v29001_v15, %v5910_v59  ;;  %v17401_v15 = vld [vmem:[%s28805_s8 + $0x2b0] sm:$0xf] }
 0x9c8   :  { %v9586_v58 = vadd.f32 %v9585_v34, %v9572_v9  ;;  %v9700_v53 = vmax.f32 %v9692_v40, 0.0  ;;  %v7172_v9 = vadd.f32 %v29002_v45, %v7158_v55  ;;  %v29003_v34 = vld [vmem:[#allocation40_spill] sm:$0xff] }
 0x9c9   :  { %v8414_v36 = vadd.f32 %v29003_v34, %v8400_v41  ;;  %v17395_v41 = vld [vmem:[%s28805_s8 + $0x2a8] sm:$0xf0]  ;;  %v17393_v34 = vld [vmem:[%s28805_s8 + $0x2a0] sm:$0xf] }
 0x9ca   :  { %v9600_v37 = vadd.f32 %v9599_v43, %v9586_v58  ;;  %v29004_v58 = vld [vmem:[#allocation20_spill] sm:$0xff]  ;;  %v29005_v43 = vld [vmem:[#allocation39_spill] sm:$0xff] }
 0x9cb   :  { %v9613_v60 = vpop.f32.mrf.mxu0 }
 0x9cc   :  { %v9678_v20 = vadd.f32 %v9600_v37, %v8436_v32  ;;  %v7186_v32 = vadd.f32 %v29005_v43, %v7172_v9  ;;  %v9641_v46 = vpop.f32.mrf.mxu2  ;;  %v17379_v9 = vld [vmem:[%s28805_s8 + $0x288] sm:$0xf0] }
 0x9ce   :  { %v9696_v28 = vadd.f32 %v9684_v25, %v9678_v20  ;;  %v5938_v25 = vadd.f32 %v29004_v58, %v5924_v5  ;;  %v29007_v20 = vld [vmem:[#allocation49_spill] sm:$0xff]  ;;  %v19499_v5 = vld [vmem:[%s28805_s8 + $0x2b4] sm:$0xf0]  ;;  %v19490_v58 = vld [vmem:[%s28805_s8 + $0x274] sm:$0xf] }
 0x9cf   :  { %v8428_v40 = vadd.f32 %v29007_v20, %v8414_v36  ;;  %v17402_v45 = vor.u32 %v19499_v5, %v17401_v15  ;;  %v19497_v36 = vld [vmem:[%s28805_s8 + $0x2a4] sm:$0xf0]  ;;  %v19508_v5 = vld [vmem:[%s28805_s8 + $0x304] sm:$0xf] }
 0x9d0   :  { %v9704_v49 = vmax.f32 %v9696_v28, 0.0  ;;  %v5952_v4 = vadd.f32 %v29006_v11, %v5938_v25  ;;  %v17371_v25 = vld [vmem:[%s28805_s8 + $0x278] sm:$0xf0]  ;;  %v17394_v43 = vor.u32 %v19497_v36, %v17393_v34  ;;  %v17363_v11 = vld [vmem:[%s28805_s8 + $0x268] sm:$0xf0] }
 0x9d1   :  { %10254 = vmatpush.bf16.msra.mxu2 %v17402_v45  ;;  %v19493_v20 = vld [vmem:[%s28805_s8 + $0x284] sm:$0xf0]  ;;  %v17443_v45 = vld [vmem:[%s28805_s8 + $0x308] sm:$0xf0]  ;;  %v17433_v34 = vld [vmem:[%s28805_s8 + $0x2f0] sm:$0xf] }
 0x9d2   :  { %v9708_v1 = vpack.c.bf16 %v9704_v49, %v9700_v53  ;;  %v7195_v19 = vadd.f32 %v7186_v32, %v5952_v4  ;;  %v29008_v53 = vld [vmem:[#allocation51_spill] sm:$0xff]  ;;  %v17374_v32 = vor.u32 %v19490_v58, %v17371_v25  ;;  %v17377_v4 = vld [vmem:[%s28805_s8 + $0x280] sm:$0xf]  ;;  %v19509_v15 = vld [vmem:[%s28805_s8 + $0x304] sm:$0xf0] }
 0x9d3   :  { %v9667_v26 = vpop.f32.mrf.mxu0  ;;  %v19507_v36 = vld [vmem:[%s28805_s8 + $0x2f4] sm:$0xf0]  ;;  %v17691_v58 = vld [vmem:[%s28805_s8 + $0x170] sm:$0xf] }
 0x9d4   :  { %v27342_v23 = vsel %vm9715_vm5, %v9708_v1, 0  ;;  %v8437_v54 = vadd.f32 %v8428_v40, %v7195_v19  ;;  %v17378_v19 = vor.u32 %v19493_v20, %v17377_v4  ;;  %v19459_v25 = vld [vmem:[%s28805_s8 + $0x174] sm:$0xf0]  ;;  %v17425_v20 = vld [vmem:[%s28805_s8 + $0x2e0] sm:$0xf] }
 0x9d5   :  { %9761 = vmatpush.bf16.msra.mxu3 %v27342_v23  ;;  %10255 = vmatpush.bf16.msra.mxu2 %v17394_v43  ;;  %v17434_v43 = vor.u32 %v19507_v36, %v17433_v34  ;;  %v17491_v34 = vld [vmem:[%s28805_s8 + $0x368] sm:$0xf0] }
 0x9d8   :  { %17216 = vmatmul.msk.bf16.vlgmr.msra.gmra.mxu3 %vm9711_vm6, %v27289_v21 }
 0x9d9   :  { %9878 = vmatpush.bf16.msrb.mxu3 %v27342_v23 }
 0x9db   :  { %v9669_v2 = vpop.f32.mrf.mxu0 }
 0x9dd   :  { %v9625_v10 = vpop.f32.mrf.mxu1 }
 0x9de   :  { %v9626_v13 = vadd.f32 %v9625_v10, %v9611_v22  ;;  %v19471_v10 = vld [vmem:[%s28805_s8 + $0x1d4] sm:$0xf0] }
 0x9e0   :  { %v9640_v27 = vadd.f32 %v9639_v56, %v9626_v13  ;;  %v17289_v56 = vld [vmem:[%s28805_s8 + $0x1d0] sm:$0xf]  ;;  %v17281_v13 = vld [vmem:[%s28805_s8 + $0x1c0] sm:$0xf] }
 0x9e1   :  { %v17290_v61 = vor.u32 %v19471_v10, %v17289_v56  ;;  %v17282_v0 = vor.u32 %v19469_v47, %v17281_v13  ;;  %v19512_v13 = vld [vmem:[%s28805_s8 + $0x324] sm:$0xf] }
 0x9e2   :  { %v9654_v3 = vadd.f32 %v9653_v51, %v9640_v27  ;;  %v17403_v51 = vld [vmem:[%s28805_s8 + $0x2b8] sm:$0xf0]  ;;  %v17398_v27 = vor.u32 %v19496_v50, %v17395_v41  ;;  %v19510_v50 = vld [vmem:[%s28805_s8 + $0x314] sm:$0xf] }
 0x9e3   :  { %v17406_v55 = vor.u32 %v19498_v63, %v17403_v51  ;;  %v17459_v63 = vld [vmem:[%s28805_s8 + $0x328] sm:$0xf0] }
 0x9e4   :  { %v9668_v22 = vadd.f32 %v9667_v26, %v9654_v3  ;;  %v19494_v26 = vld [vmem:[%s28805_s8 + $0x294] sm:$0xf]  ;;  %v19492_v3 = vld [vmem:[%s28805_s8 + $0x284] sm:$0xf]  ;;  %v17462_v51 = vor.u32 %v19512_v13, %v17459_v63  ;;  %v19521_v13 = vld [vmem:[%s28805_s8 + $0x364] sm:$0xf0] }
 0x9e5   :  { %v9627_v52 = vpop.f32.mrf.mxu1 }
 0x9e6   :  { %v9628_v37 = vadd.f32 %v9627_v52, %v9613_v60  ;;  %v9675_v49 = vadd.f32 %v9668_v22, %v29008_v53  ;;  %v19477_v60 = vld [vmem:[%s28805_s8 + $0x204] sm:$0xf0]  ;;  %v17382_v52 = vor.u32 %v19492_v3, %v17379_v9  ;;  %v17385_v22 = vld [vmem:[%s28805_s8 + $0x290] sm:$0xf]  ;;  %v17446_v9 = vor.u32 %v19508_v5, %v17443_v45 }
 0x9e7   :  { %v17314_v44 = vor.u32 %v19477_v60, %v17313_v48  ;;  %v17347_v60 = vld [vmem:[%s28805_s8 + $0x248] sm:$0xf0]  ;;  %v19449_v45 = vld [vmem:[%s28805_s8 + $0x124] sm:$0xf0] }
 0x9e8   :  { %v9642_v28 = vadd.f32 %v9641_v46, %v9628_v37  ;;  %17221 = vmatmul.msk.bf16.vlgmr.msrb.gmra.mxu3 %vm9711_vm6, %v27306_v57  ;;  %v9693_v31 = vadd.f32 %v9685_v33, %v9675_v49  ;;  %v19488_v37 = vld [vmem:[%s28805_s8 + $0x264] sm:$0xf]  ;;  %v17369_v49 = vld [vmem:[%s28805_s8 + $0x270] sm:$0xf] }
 0x9e9   :  { %10244 = vmatpush.bf16.msra.mxu1 %v17314_v44  ;;  %v17366_v40 = vor.u32 %v19488_v37, %v17363_v11  ;;  %v17361_v44 = vld [vmem:[%s28805_s8 + $0x260] sm:$0xf]  ;;  %v17692_v37 = vor.u32 %v19459_v25, %v17691_v58  ;;  %v19457_v11 = vld [vmem:[%s28805_s8 + $0x164] sm:$0xf0]  ;;  %v19518_v25 = vld [vmem:[%s28805_s8 + $0x354] sm:$0xf] }
 0x9ea   :  { %v9656_v1 = vadd.f32 %v9655_v35, %v9642_v28  ;;  %v9701_v62 = vmax.f32 %v9693_v31, 0.0  ;;  %v19486_v28 = vld [vmem:[%s28805_s8 + $0x254] sm:$0xf]  ;;  %v17355_v35 = vld [vmem:[%s28805_s8 + $0x258] sm:$0xf0]  ;;  %v17362_v30 = vor.u32 %v19489_v12, %v17361_v44 }
 0x9eb   :  { %v17358_v53 = vor.u32 %v19486_v28, %v17355_v35  ;;  %v19485_v31 = vld [vmem:[%s28805_s8 + $0x244] sm:$0xf0]  ;;  %v19504_v28 = vld [vmem:[%s28805_s8 + $0x2e4] sm:$0xf]  ;;  %v17419_v12 = vld [vmem:[%s28805_s8 + $0x2d8] sm:$0xf0] }
 0x9ec   :  { %v9670_v8 = vadd.f32 %v9669_v2, %v9656_v1  ;;  %v19491_v1 = vld [vmem:[%s28805_s8 + $0x274] sm:$0xf0]  ;;  %v19517_v58 = vld [vmem:[%s28805_s8 + $0x344] sm:$0xf0] }
 0x9ed   :  { %10245 = vmatpush.bf16.msra.mxu1 %v17306_v42  ;;  %v17370_v48 = vor.u32 %v19491_v1, %v17369_v49  ;;  %v17675_v1 = vld [vmem:[%s28805_s8 + $0x150] sm:$0xf] }
 0x9ee   :  { %v9679_v18 = vadd.f32 %v9670_v8, %v8437_v54  ;;  %v17353_v54 = vld [vmem:[%s28805_s8 + $0x250] sm:$0xf]  ;;  %v19487_v8 = vld [vmem:[%s28805_s8 + $0x254] sm:$0xf0] }
 0x9ef   :  { %v17354_v42 = vor.u32 %v19487_v8, %v17353_v54  ;;  %v19523_v54 = vld [vmem:[%s28805_s8 + $0x374] sm:$0xf0] }
 0x9f0   :  { %v9697_v14 = vadd.f32 %v9685_v33, %v9679_v18  ;;  %v19484_v33 = vld [vmem:[%s28805_s8 + $0x244] sm:$0xf]  ;;  %v17345_v18 = vld [vmem:[%s28805_s8 + $0x240] sm:$0xf] }
 0x9f1   :  { %10246 = vmatpush.bf16.msra.mxu1 %v17298_v39  ;;  %v17350_v2 = vor.u32 %v19484_v33, %v17347_v60  ;;  %v17346_v6 = vor.u32 %v19485_v31, %v17345_v18  ;;  %v19514_v39 = vld [vmem:[%s28805_s8 + $0x334] sm:$0xf]  ;;  %v19455_v33 = vld [vmem:[%s28805_s8 + $0x154] sm:$0xf0]  ;;  %v17667_v18 = vld [vmem:[%s28805_s8 + $0x140] sm:$0xf] }
 0x9f2   :  { %v9705_v17 = vmax.f32 %v9697_v14, 0.0  ;;  %v19515_v14 = vld [vmem:[%s28805_s8 + $0x334] sm:$0xf0]  ;;  %v19453_v31 = vld [vmem:[%s28805_s8 + $0x144] sm:$0xf0] }
 0x9f3   :  { %v19503_v60 = vld [vmem:[%s28805_s8 + $0x2d4] sm:$0xf0] }
 0x9f4   :  { %v9709_v29 = vpack.c.bf16 %v9705_v17, %v9701_v62  ;;  %v17467_v62 = vld [vmem:[%s28805_s8 + $0x338] sm:$0xf0]  ;;  %v17466_v17 = vor.u32 %v19515_v14, %v17465_v38 }
 0x9f5   :  { %10247 = vmatpush.bf16.msra.mxu1 %v17290_v61  ;;  %v17470_v56 = vor.u32 %v19514_v39, %v17467_v62  ;;  %v19513_v61 = vld [vmem:[%s28805_s8 + $0x324] sm:$0xf0]  ;;  %v17409_v39 = vld [vmem:[%s28805_s8 + $0x2c0] sm:$0xf] }
 0x9f6   :  { %v27411_v59 = vsel %vm9715_vm5, %v9709_v29, 0  ;;  %10267 = vmatpush.bf16.msra.mxu3 %v17466_v17  ;;  %v17457_v29 = vld [vmem:[%s28805_s8 + $0x320] sm:$0xf]  ;;  %v19501_v62 = vld [vmem:[%s28805_s8 + $0x2c4] sm:$0xf0] }
 0x9f7   :  { %9774 = vmatpush.bf16.msrb.mxu0 %v27411_v59  ;;  %v17458_v47 = vor.u32 %v19513_v61, %v17457_v29  ;;  %v19500_v17 = vld [vmem:[%s28805_s8 + $0x2c4] sm:$0xf]  ;;  %v17411_v29 = vld [vmem:[%s28805_s8 + $0x2c8] sm:$0xf0]  ;;  %v17489_v61 = vld [vmem:[%s28805_s8 + $0x360] sm:$0xf] }
 0x9f8   :  { %v17490_v63 = vor.u32 %v19521_v13, %v17489_v61  ;;  %v19464_v13 = vld [vmem:[%s28805_s8 + $0x1a4] sm:$0xf] }
 0x9f9   :  { %10248 = vmatpush.bf16.msra.mxu1 %v17282_v0  ;;  %v17449_v0 = vld [vmem:[%s28805_s8 + $0x310] sm:$0xf] }
 0x9fa   :  { %17217 = vmatmul.msk.bf16.vlgmr.msrb.gmra.mxu0 %vm9711_vm6, %v27289_v21  ;;  %v17387_v21 = vld [vmem:[%s28805_s8 + $0x298] sm:$0xf0]  ;;  %10268 = vmatpush.bf16.msra.mxu3 %v17458_v47  ;;  %v17414_v47 = vor.u32 %v19500_v17, %v17411_v29  ;;  %v19463_v29 = vld [vmem:[%s28805_s8 + $0x194] sm:$0xf0] }
 0x9fb   :  { %9891 = vmatpush.bf16.msra.mxu0 %v27411_v59  ;;  %v17390_v16 = vor.u32 %v19494_v26, %v17387_v21 }
 0x9fd   :  { %10306 = vmatpush.bf16.msrb.mxu1 %v17406_v55  ;;  %v19511_v55 = vld [vmem:[%s28805_s8 + $0x314] sm:$0xf0] }
 0x9fe   :  { %v17450_v41 = vor.u32 %v19511_v55, %v17449_v0  ;;  %v17499_v0 = vld [vmem:[%s28805_s8 + $0x378] sm:$0xf0]  ;;  %v17668_v55 = vor.u32 %v19453_v31, %v17667_v18  ;;  %v19466_v31 = vld [vmem:[%s28805_s8 + $0x1b4] sm:$0xf] }
 0xa00   :  { %10269 = vmatpush.bf16.msra.mxu3 %v17450_v41  ;;  %v17659_v41 = vld [vmem:[%s28805_s8 + $0x130] sm:$0xf] }
 0xa01   :  { %10307 = vmatpush.bf16.msrb.mxu1 %v17398_v27  ;;  %v17451_v27 = vld [vmem:[%s28805_s8 + $0x318] sm:$0xf0] }
 0xa02   :  { %v17454_v26 = vor.u32 %v19510_v50, %v17451_v27  ;;  %v19451_v27 = vld [vmem:[%s28805_s8 + $0x134] sm:$0xf0] }
 0xa03   :  { %v17660_v5 = vor.u32 %v19451_v27, %v17659_v41  ;;  %v17699_v41 = vld [vmem:[%s28805_s8 + $0x180] sm:$0xf]  ;;  %v19461_v27 = vld [vmem:[%s28805_s8 + $0x184] sm:$0xf0] }
 0xa05   :  { %10308 = vmatpush.bf16.msrb.mxu1 %v17390_v16  ;;  %v17441_v16 = vld [vmem:[%s28805_s8 + $0x300] sm:$0xf] }
 0xa06   :  { %v17442_v3 = vor.u32 %v19509_v15, %v17441_v16  ;;  %v19520_v16 = vld [vmem:[%s28805_s8 + $0x364] sm:$0xf] }
 0xa07   :  { %v17494_v36 = vor.u32 %v19520_v16, %v17491_v34  ;;  %v17709_v16 = vld [vmem:[%s28805_s8 + $0x198] sm:$0xf0]  ;;  %v19460_v34 = vld [vmem:[%s28805_s8 + $0x184] sm:$0xf] }
 0xa08   :  { %10270 = vmatpush.bf16.msra.mxu3 %v17442_v3  ;;  %v17651_v3 = vld [vmem:[%s28805_s8 + $0x120] sm:$0xf] }
 0xa09   :  { %10309 = vmatpush.bf16.msrb.mxu1 %v17382_v52  ;;  %v19506_v52 = vld [vmem:[%s28805_s8 + $0x2f4] sm:$0xf] }
 0xa0a   :  { %17222 = vmatmul.msk.bf16.vlgmr.msra.gmra.mxu0 %vm9711_vm6, %v27306_v57  ;;  %v19495_v57 = vld [vmem:[%s28805_s8 + $0x294] sm:$0xf0] }
 0xa0b   :  { %v17386_v46 = vor.u32 %v19495_v57, %v17385_v22 }
 0xa0c   :  { %10271 = vmatpush.bf16.msra.mxu3 %v17434_v43 }
 0xa0d   :  { %10310 = vmatpush.bf16.msrb.mxu1 %v17374_v32  ;;  %10256 = vmatpush.bf16.msra.mxu2 %v17386_v46  ;;  %v17435_v32 = vld [vmem:[%s28805_s8 + $0x2f8] sm:$0xf0]  ;;  %v17683_v46 = vld [vmem:[%s28805_s8 + $0x160] sm:$0xf] }
 0xa0e   :  { %v17438_v22 = vor.u32 %v19506_v52, %v17435_v32  ;;  %v17684_v49 = vor.u32 %v19457_v11, %v17683_v46  ;;  %v17473_v52 = vld [vmem:[%s28805_s8 + $0x340] sm:$0xf]  ;;  %v17483_v32 = vld [vmem:[%s28805_s8 + $0x358] sm:$0xf0]  ;;  %v17652_v46 = vor.u32 %v19449_v45, %v17651_v3  ;;  %v17643_v11 = vld [vmem:[%s28805_s8 + $0x110] sm:$0xf] }
 0xa0f   :  { %v17474_v43 = vor.u32 %v19517_v58, %v17473_v52  ;;  %v17307_v3 = vld [vmem:[%s28805_s8 + $0x1f8] sm:$0xf0] }
 0xa11   :  { %10311 = vmatpush.bf16.msrb.mxu1 %v17366_v40  ;;  %10257 = vmatpush.bf16.msra.mxu2 %v17378_v19  ;;  %v19505_v40 = vld [vmem:[%s28805_s8 + $0x2e4] sm:$0xf0]  ;;  %v17427_v19 = vld [vmem:[%s28805_s8 + $0x2e8] sm:$0xf0] }
 0xa12   :  { %v17426_v35 = vor.u32 %v19505_v40, %v17425_v20  ;;  %v19447_v40 = vld [vmem:[%s28805_s8 + $0x114] sm:$0xf0] }
 0xa14   :  { %10272 = vmatpush.bf16.msra.mxu3 %v17426_v35  ;;  %v19467_v35 = vld [vmem:[%s28805_s8 + $0x1b4] sm:$0xf0] }
 0xa15   :  { %10312 = vmatpush.bf16.msrb.mxu1 %v17358_v53  ;;  %10258 = vmatpush.bf16.msra.mxu2 %v17370_v48  ;;  %v17430_v53 = vor.u32 %v19504_v28, %v17427_v19  ;;  %v17417_v48 = vld [vmem:[%s28805_s8 + $0x2d0] sm:$0xf]  ;;  %v19516_v19 = vld [vmem:[%s28805_s8 + $0x344] sm:$0xf] }
 0xa16   :  { %v17418_v44 = vor.u32 %v19503_v60, %v17417_v48  ;;  %v17723_v28 = vld [vmem:[%s28805_s8 + $0x1b0] sm:$0xf]  ;;  %v19480_v60 = vld [vmem:[%s28805_s8 + $0x224] sm:$0xf] }
 0xa17   :  { %v17724_v48 = vor.u32 %v19467_v35, %v17723_v28  ;;  %v17563_v35 = vld [vmem:[%s28805_s8 + $0x70] sm:$0xf] }
 0xa18   :  { %10273 = vmatpush.bf16.msra.mxu3 %v17418_v44 }
 0xa19   :  { %10313 = vmatpush.bf16.msrb.mxu1 %v17350_v2  ;;  %10259 = vmatpush.bf16.msra.mxu2 %v17362_v30  ;;  %v19502_v2 = vld [vmem:[%s28805_s8 + $0x2d4] sm:$0xf]  ;;  %v17497_v30 = vld [vmem:[%s28805_s8 + $0x370] sm:$0xf] }
 0xa1a   :  { %v17422_v38 = vor.u32 %v19502_v2, %v17419_v12  ;;  %v17331_v2 = vld [vmem:[%s28805_s8 + $0x228] sm:$0xf0]  ;;  %v19445_v12 = vld [vmem:[%s28805_s8 + $0x104] sm:$0xf0] }
 0xa1b   :  { %v17334_v18 = vor.u32 %v19480_v60, %v17331_v2  ;;  %v19425_v2 = vld [vmem:[%s28805_s8 + $0x64] sm:$0xf0] }
 0xa1d   :  { %10260 = vmatpush.bf16.msra.mxu2 %v17354_v42  ;;  %v17676_v42 = vor.u32 %v19455_v33, %v17675_v1  ;;  %v17644_v1 = vor.u32 %v19447_v40, %v17643_v11  ;;  %v17635_v33 = vld [vmem:[%s28805_s8 + $0x100] sm:$0xf]  ;;  %v17283_v40 = vld [vmem:[%s28805_s8 + $0x1c8] sm:$0xf0] }
 0xa21   :  { %v27533_v10 = vpop.f32.mrf.mxu1  ;;  %10261 = vmatpush.bf16.msra.mxu2 %v17346_v6  ;;  %v17498_v6 = vor.u32 %v19523_v54, %v17497_v30  ;;  %v17715_v30 = vld [vmem:[%s28805_s8 + $0x1a0] sm:$0xf]  ;;  %v19465_v54 = vld [vmem:[%s28805_s8 + $0x1a4] sm:$0xf0] }
 0xa23   :  { %10284 = vmatpush.bf16.msrb.mxu0 %v17498_v6  ;;  %v19478_v6 = vld [vmem:[%s28805_s8 + $0x214] sm:$0xf] }
 0xa25   :  { %10319 = vmatpush.bf16.msrb.mxu2 %v17470_v56  ;;  %v17410_v56 = vor.u32 %v19501_v62, %v17409_v39  ;;  %v17636_v39 = vor.u32 %v19445_v12, %v17635_v33  ;;  %v17716_v62 = vor.u32 %v19465_v54, %v17715_v30  ;;  %v17557_v12 = vld [vmem:[%s28805_s8 + $0x68] sm:$0xf0] }
 0xa27   :  { %10274 = vmatpush.bf16.msra.mxu3 %v17410_v56  ;;  %10285 = vmatpush.bf16.msrb.mxu0 %v17490_v63  ;;  %v17707_v56 = vld [vmem:[%s28805_s8 + $0x190] sm:$0xf] }
 0xa28   :  { %v17708_v63 = vor.u32 %v19463_v29, %v17707_v56  ;;  %v19421_v56 = vld [vmem:[%s28805_s8 + $0x44] sm:$0xf0]  ;;  %v19420_v29 = vld [vmem:[%s28805_s8 + $0x44] sm:$0xf] }
 0xa29   :  { %10320 = vmatpush.bf16.msrb.mxu2 %v17462_v51  ;;  %v9739_v21 = vpop.f32.mrf.mxu1  ;;  %v19522_v51 = vld [vmem:[%s28805_s8 + $0x374] sm:$0xf] }
 0xa2a   :  { %v17502_v50 = vor.u32 %v19522_v51, %v17499_v0  ;;  %v19519_v21 = vld [vmem:[%s28805_s8 + $0x354] sm:$0xf0]  ;;  %v19476_v51 = vld [vmem:[%s28805_s8 + $0x204] sm:$0xf]  ;;  %v17315_v0 = vld [vmem:[%s28805_s8 + $0x208] sm:$0xf0] }
 0xa2c   :  { %10336 = vmatpush.bf16.msrb.mxu3 %v17502_v50 }
 0xa2d   :  { %10321 = vmatpush.bf16.msrb.mxu2 %v17454_v26  ;;  %v17481_v26 = vld [vmem:[%s28805_s8 + $0x350] sm:$0xf] }
 0xa30   :  { %10337 = vmatpush.bf16.msrb.mxu3 %v17494_v36  ;;  %v17701_v36 = vld [vmem:[%s28805_s8 + $0x188] sm:$0xf0] }
 0xa31   :  { %10322 = vmatpush.bf16.msrb.mxu2 %v17446_v9  ;;  %v9854_v57 = vpop.f32.mrf.mxu1  ;;  %v17482_v9 = vor.u32 %v19519_v21, %v17481_v26  ;;  %v17318_v26 = vor.u32 %v19476_v51, %v17315_v0  ;;  %v19462_v21 = vld [vmem:[%s28805_s8 + $0x194] sm:$0xf]  ;;  %v17531_v51 = vld [vmem:[%s28805_s8 + $0x30] sm:$0xf]  ;;  %v19419_v0 = vld [vmem:[%s28805_s8 + $0x34] sm:$0xf0] }
 0xa32   :  { %v27595_v4 = vpack.c.bf16 %v9854_v57, %v9854_v57  ;;  %v19482_v57 = vld [vmem:[%s28805_s8 + $0x234] sm:$0xf]  ;;  %v17712_v45 = vor.u32 %v19462_v21, %v17709_v16  ;;  %v19417_v16 = vld [vmem:[%s28805_s8 + $0x24] sm:$0xf0] }
 0xa33   :  { %10286 = vmatpush.bf16.msrb.mxu0 %v17482_v9 }
 0xa34   :  { %10249 = vmatmul.bf16.vlgmr.msra.gmra.mxu1 %v27595_v4 }
 0xa35   :  { %10323 = vmatpush.bf16.msrb.mxu2 %v17438_v22  ;;  %10654 = vmatpush.bf16.msra.mxu1 %v17692_v37  ;;  %v17486_v22 = vor.u32 %v19518_v25, %v17483_v32  ;;  %v17339_v37 = vld [vmem:[%s28805_s8 + $0x238] sm:$0xf0]  ;;  %v19472_v25 = vld [vmem:[%s28805_s8 + $0x1e4] sm:$0xf]  ;;  %v17704_v32 = vor.u32 %v19460_v34, %v17701_v36  ;;  %v19415_v34 = vld [vmem:[%s28805_s8 + $0x14] sm:$0xf0] }
 0xa36   :  { %v17342_v20 = vor.u32 %v19482_v57, %v17339_v37  ;;  %v19470_v57 = vld [vmem:[%s28805_s8 + $0x1d4] sm:$0xf]  ;;  %v17291_v37 = vld [vmem:[%s28805_s8 + $0x1d8] sm:$0xf0] }
 0xa37   :  { %10287 = vmatpush.bf16.msrb.mxu0 %v17474_v43  ;;  %10338 = vmatpush.bf16.msrb.mxu3 %v17486_v22  ;;  %v17299_v43 = vld [vmem:[%s28805_s8 + $0x1e8] sm:$0xf0]  ;;  %v19414_v36 = vld [vmem:[%s28805_s8 + $0x14] sm:$0xf] }
 0xa38   :  { %v17302_v22 = vor.u32 %v19472_v25, %v17299_v43  ;;  %v17627_v25 = vld [vmem:[%s28805_s8 + $0xf0] sm:$0xf]  ;;  %v19443_v43 = vld [vmem:[%s28805_s8 + $0xf4] sm:$0xf0] }
 0xa39   :  { %10324 = vmatpush.bf16.msrb.mxu2 %v17430_v53  ;;  %10655 = vmatpush.bf16.msra.mxu1 %v17684_v49  ;;  %v27634_v8 = vpop.f32.mrf.mxu2  ;;  %v9856_v14 = vpop.f32.mrf.mxu1  ;;  %v17475_v53 = vld [vmem:[%s28805_s8 + $0x348] sm:$0xf0] }
 0xa3a   :  { %v17323_v14 = vld [vmem:[%s28805_s8 + $0x218] sm:$0xf0] }
 0xa3b   :  { %10293 = vmatpush.bf16.msra.mxu0 %v17342_v20  ;;  %v17326_v61 = vor.u32 %v19478_v6, %v17323_v14  ;;  %v19468_v20 = vld [vmem:[%s28805_s8 + $0x1c4] sm:$0xf] }
 0xa3c   :  { %v17286_v28 = vor.u32 %v19468_v20, %v17283_v40  ;;  %v17509_v20 = vld [vmem:[%s28805_s8 + $0x8] sm:$0xf0] }
 0xa3d   :  { %10325 = vmatpush.bf16.msrb.mxu2 %v17422_v38  ;;  %10656 = vmatpush.bf16.msra.mxu1 %v17676_v42  ;;  %v17478_v42 = vor.u32 %v19516_v19, %v17475_v53  ;;  %v17725_v38 = vld [vmem:[%s28805_s8 + $0x1b8] sm:$0xf0]  ;;  %v19427_v19 = vld [vmem:[%s28805_s8 + $0x74] sm:$0xf0] }
 0xa3e   :  { %v17728_v17 = vor.u32 %v19466_v31, %v17725_v38  ;;  %v17565_v53 = vld [vmem:[%s28805_s8 + $0x78] sm:$0xf0]  ;;  %v19422_v31 = vld [vmem:[%s28805_s8 + $0x54] sm:$0xf] }
 0xa3f   :  { %10339 = vmatpush.bf16.msrb.mxu3 %v17478_v42  ;;  %10294 = vmatpush.bf16.msra.mxu0 %v17334_v18  ;;  %v17547_v42 = vld [vmem:[%s28805_s8 + $0x50] sm:$0xf]  ;;  %v19423_v18 = vld [vmem:[%s28805_s8 + $0x54] sm:$0xf0]  ;;  %v17549_v38 = vld [vmem:[%s28805_s8 + $0x58] sm:$0xf0] }
 0xa40   :  { %v17548_v6 = vor.u32 %v19423_v18, %v17547_v42  ;;  %v17552_v14 = vor.u32 %v19422_v31, %v17549_v38  ;;  %v19438_v31 = vld [vmem:[%s28805_s8 + $0xd4] sm:$0xf]  ;;  %v17613_v38 = vld [vmem:[%s28805_s8 + $0xd8] sm:$0xf0] }
 0xa41   :  { %10326 = vmatpush.bf16.msrb.mxu2 %v17414_v47  ;;  %10657 = vmatpush.bf16.msra.mxu1 %v17668_v55  ;;  %v9752_v15 = vpop.f32.mrf.mxu2  ;;  %v17717_v47 = vld [vmem:[%s28805_s8 + $0x1a8] sm:$0xf0] }
 0xa42   :  { %v17720_v50 = vor.u32 %v19464_v13, %v17717_v47  ;;  %v17700_v15 = vor.u32 %v19461_v27, %v17699_v41  ;;  %v17532_v41 = vor.u32 %v19419_v0, %v17531_v51  ;;  %v19434_v51 = vld [vmem:[%s28805_s8 + $0xb4] sm:$0xf]  ;;  %v17597_v0 = vld [vmem:[%s28805_s8 + $0xb8] sm:$0xf0] }
 0xa43   :  { %10295 = vmatpush.bf16.msra.mxu0 %v17326_v61  ;;  %v17541_v61 = vld [vmem:[%s28805_s8 + $0x48] sm:$0xf0] }
 0xa45   :  { %10658 = vmatpush.bf16.msra.mxu1 %v17660_v5  ;;  %v19474_v5 = vld [vmem:[%s28805_s8 + $0x1f4] sm:$0xf] }
 0xa46   :  { %v17310_v9 = vor.u32 %v19474_v5, %v17307_v3  ;;  %v17525_v5 = vld [vmem:[%s28805_s8 + $0x28] sm:$0xf0] }
 0xa47   :  { %10296 = vmatpush.bf16.msra.mxu0 %v17318_v26  ;;  %v17523_v26 = vld [vmem:[%s28805_s8 + $0x20] sm:$0xf] }
 0xa48   :  { %v17524_v3 = vor.u32 %v19417_v16, %v17523_v26  ;;  %v19432_v26 = vld [vmem:[%s28805_s8 + $0xa4] sm:$0xf] }
 0xa49   :  { %10659 = vmatpush.bf16.msra.mxu1 %v17652_v46  ;;  %v9867_v49 = vpop.f32.mrf.mxu2  ;;  %v17294_v46 = vor.u32 %v19470_v57, %v17291_v37  ;;  %v17507_v57 = vld [vmem:[%s28805_s8] sm:$0xf] }
 0xa4a   :  { %v9898_v44 = vpack.c.bf16 %v9867_v49, %v9867_v49 }
 0xa4b   :  { %10297 = vmatpush.bf16.msra.mxu0 %v17310_v9  ;;  %v17515_v9 = vld [vmem:[%s28805_s8 + $0x10] sm:$0xf] }
 0xa4c   :  { %10314 = vmatmul.bf16.vlgmr.msrb.gmra.mxu1 %v9898_v44  ;;  %10262 = vmatmul.bf16.vlgmr.msra.gmra.mxu2 %v9898_v44  ;;  %v19424_v44 = vld [vmem:[%s28805_s8 + $0x64] sm:$0xf] }
 0xa4d   :  { %10660 = vmatpush.bf16.msra.mxu1 %v17644_v1  ;;  %10671 = vmatpush.bf16.msra.mxu2 %v17724_v48  ;;  %v17564_v1 = vor.u32 %v19427_v19, %v17563_v35  ;;  %v17555_v48 = vld [vmem:[%s28805_s8 + $0x60] sm:$0xf]  ;;  %v17560_v54 = vor.u32 %v19424_v44, %v17557_v12  ;;  %v19442_v35 = vld [vmem:[%s28805_s8 + $0xf4] sm:$0xf]  ;;  %v17629_v19 = vld [vmem:[%s28805_s8 + $0xf8] sm:$0xf0] }
 0xa4e   :  { %v17556_v30 = vor.u32 %v19425_v2, %v17555_v48  ;;  %v17621_v2 = vld [vmem:[%s28805_s8 + $0xe8] sm:$0xf0]  ;;  %v17611_v44 = vld [vmem:[%s28805_s8 + $0xd0] sm:$0xf]  ;;  %v19439_v12 = vld [vmem:[%s28805_s8 + $0xd4] sm:$0xf0] }
 0xa4f   :  { %10298 = vmatpush.bf16.msra.mxu0 %v17302_v22  ;;  %v17612_v18 = vor.u32 %v19439_v12, %v17611_v44  ;;  %v19444_v12 = vld [vmem:[%s28805_s8 + $0x104] sm:$0xf] }
 0xa51   :  { %10661 = vmatpush.bf16.msra.mxu1 %v17636_v39  ;;  %10672 = vmatpush.bf16.msra.mxu2 %v17716_v62  ;;  %v9869_v55 = vpop.f32.mrf.mxu2  ;;  %v17539_v39 = vld [vmem:[%s28805_s8 + $0x40] sm:$0xf] }
 0xa52   :  { %v17540_v47 = vor.u32 %v19421_v56, %v17539_v39  ;;  %v19418_v55 = vld [vmem:[%s28805_s8 + $0x34] sm:$0xf]  ;;  %v17595_v39 = vld [vmem:[%s28805_s8 + $0xb0] sm:$0xf]  ;;  %v17605_v56 = vld [vmem:[%s28805_s8 + $0xc8] sm:$0xf0] }
 0xa53   :  { %10299 = vmatpush.bf16.msra.mxu0 %v17294_v46  ;;  %v19413_v46 = vld [vmem:[%s28805_s8 + $0x4] sm:$0xf0] }
 0xa55   :  { %10723 = vmatpush.bf16.msrb.mxu1 %v17728_v17  ;;  %10673 = vmatpush.bf16.msra.mxu2 %v17708_v63  ;;  %v17544_v63 = vor.u32 %v19420_v29, %v17541_v61  ;;  %v27980_v29 = vld [vmem:[%s28804_s7 + $0x8] sm:$0x7] }
 0xa57   :  { %10300 = vmatpush.bf16.msra.mxu0 %v17286_v28  ;;  %v17628_v28 = vor.u32 %v19443_v43, %v17627_v25  ;;  %v19428_v43 = vld [vmem:[%s28805_s8 + $0x84] sm:$0xf] }
 0xa59   :  { %10724 = vmatpush.bf16.msrb.mxu1 %v17720_v50  ;;  %10674 = vmatpush.bf16.msra.mxu2 %v17700_v15  ;;  %v17533_v50 = vld [vmem:[%s28805_s8 + $0x38] sm:$0xf0]  ;;  %v19416_v15 = vld [vmem:[%s28805_s8 + $0x24] sm:$0xf] }
 0xa5a   :  { %v17536_v27 = vor.u32 %v19418_v55, %v17533_v50  ;;  %v17600_v50 = vor.u32 %v19434_v51, %v17597_v0 }
 0xa5b   :  { %v9763_v52 = vpop.f32.mrf.mxu3 }
 0xa5c   :  { %v27798_v58 = vpack.c.bf16 %v9763_v52, %v9763_v52  ;;  %v17517_v52 = vld [vmem:[%s28805_s8 + $0x18] sm:$0xf0] }
 0xa5d   :  { %10725 = vmatpush.bf16.msrb.mxu1 %v17712_v45  ;;  %v17528_v45 = vor.u32 %v19416_v15, %v17525_v5  ;;  %v17520_v22 = vor.u32 %v19414_v36, %v17517_v52  ;;  %v17571_v15 = vld [vmem:[%s28805_s8 + $0x80] sm:$0xf]  ;;  %v19429_v5 = vld [vmem:[%s28805_s8 + $0x84] sm:$0xf0] }
 0xa5e   :  { %10662 = vmatmul.bf16.vlgmr.msra.gmra.mxu1 %v27798_v58  ;;  %v17572_v36 = vor.u32 %v19429_v5, %v17571_v15  ;;  %v17826_v5 = vld [vmem:[%s28805_s8 + $0x3c0] sm:$0xf] }
 0xa61   :  { %10726 = vmatpush.bf16.msrb.mxu1 %v17704_v32  ;;  %v17516_v32 = vor.u32 %v19415_v34, %v17515_v9  ;;  %v19458_v9 = vld [vmem:[%s28805_s8 + $0x174] sm:$0xf]  ;;  %v17693_v34 = vld [vmem:[%s28805_s8 + $0x178] sm:$0xf0] }
 0xa62   :  { %v17696_v25 = vor.u32 %v19458_v9, %v17693_v34  ;;  %v17890_v9 = vld [vmem:[%s28805_s8 + $0x440] sm:$0xf]  ;;  %v19549_v34 = vld [vmem:[%s28805_s8 + $0x444] sm:$0xf0] }
 0xa63   :  { %v9765_v11 = vpop.f32.mrf.mxu3 }
 0xa64   :  { %v19412_v11 = vld [vmem:[%s28805_s8 + $0x4] sm:$0xf] }
 0xa65   :  { %10744 = vmatpush.bf16.msra.mxu1 %v27283_v24  ;;  %v19426_v24 = vld [vmem:[%s28805_s8 + $0x74] sm:$0xf] }
 0xa66   :  { %v17568_v33 = vor.u32 %v19426_v24, %v17565_v53  ;;  %v17619_v24 = vld [vmem:[%s28805_s8 + $0xe0] sm:$0xf]  ;;  %v19441_v53 = vld [vmem:[%s28805_s8 + $0xe4] sm:$0xf0] }
 0xa67   :  { %v17620_v48 = vor.u32 %v19441_v53, %v17619_v24  ;;  %v19450_v24 = vld [vmem:[%s28805_s8 + $0x134] sm:$0xf] }
 0xa6b   :  { %v9880_v49 = vpop.f32.mrf.mxu3 }
 0xa6c   :  { %v9899_v60 = vpack.c.bf16 %v9880_v49, %v9880_v49  ;;  %v17508_v49 = vor.u32 %v19413_v46, %v17507_v57  ;;  %v17685_v57 = vld [vmem:[%s28805_s8 + $0x168] sm:$0xf0]  ;;  %v9781_v46 = vpack.c.bf16 %v27634_v8, %v27634_v8  ;;  %v19452_v8 = vld [vmem:[%s28805_s8 + $0x144] sm:$0xf] }
 0xa6e   :  { %10275 = vmatmul.bf16.vlgmr.msra.gmra.mxu3 %v9899_v60  ;;  %10327 = vmatmul.bf16.vlgmr.msrb.gmra.mxu2 %v9899_v60  ;;  %v19440_v60 = vld [vmem:[%s28805_s8 + $0xe4] sm:$0xf] }
 0xa6f   :  { %10628 = vmatpush.bf16.msra.mxu3 %v17564_v1  ;;  %10680 = vmatpush.bf16.msrb.mxu2 %v17568_v33  ;;  %v17512_v1 = vor.u32 %v19412_v11, %v17509_v20  ;;  %v17632_v33 = vor.u32 %v19442_v35, %v17629_v19  ;;  %v17624_v42 = vor.u32 %v19440_v60, %v17621_v2  ;;  %v19454_v20 = vld [vmem:[%s28805_s8 + $0x154] sm:$0xf]  ;;  %v17669_v35 = vld [vmem:[%s28805_s8 + $0x148] sm:$0xf0]  ;;  %v17645_v2 = vld [vmem:[%s28805_s8 + $0x118] sm:$0xf0] }
 0xa70   :  { %v17672_v19 = vor.u32 %v19452_v8, %v17669_v35  ;;  %v19446_v60 = vld [vmem:[%s28805_s8 + $0x114] sm:$0xf]  ;;  %v19545_v35 = vld [vmem:[%s28805_s8 + $0x424] sm:$0xf0] }
 0xa71   :  { %v17648_v44 = vor.u32 %v19446_v60, %v17645_v2  ;;  %v17866_v60 = vld [vmem:[%s28805_s8 + $0x410] sm:$0xf]  ;;  %v19543_v2 = vld [vmem:[%s28805_s8 + $0x414] sm:$0xf0] }
 0xa73   :  { %10629 = vmatpush.bf16.msra.mxu3 %v17556_v30  ;;  %10681 = vmatpush.bf16.msrb.mxu2 %v17560_v54  ;;  %v9882_v62 = vpop.f32.mrf.mxu3  ;;  %v9780_v30 = vpack.c.bf16 %v27533_v10, %v27533_v10  ;;  %v17603_v10 = vld [vmem:[%s28805_s8 + $0xc0] sm:$0xf] }
 0xa74   :  { %v19435_v62 = vld [vmem:[%s28805_s8 + $0xb4] sm:$0xf0] }
 0xa75   :  { %v17596_v61 = vor.u32 %v19435_v62, %v17595_v39  ;;  %v17850_v39 = vld [vmem:[%s28805_s8 + $0x3f0] sm:$0xf] }
 0xa76   :  { %v17914_v62 = vld [vmem:[%s28805_s8 + $0x470] sm:$0xf] }
 0xa77   :  { %v9776_v17 = vpop.f32.mrf.mxu0  ;;  %10630 = vmatpush.bf16.msra.mxu3 %v17548_v6  ;;  %10682 = vmatpush.bf16.msrb.mxu2 %v17552_v14  ;;  %v17616_v6 = vor.u32 %v19438_v31, %v17613_v38 }
 0xa78   :  { %v9783_v13 = vpack.c.bf16 %v9776_v17, %v9776_v17  ;;  %v19436_v17 = vld [vmem:[%s28805_s8 + $0xc4] sm:$0xf] }
 0xa7a   :  { %17730 = vmatmul.msk.bf16.vlgmr.msrb.gmra.mxu1 %vm4667_vm4, %v9783_v13 }
 0xa7b   :  { %10631 = vmatpush.bf16.msra.mxu3 %v17540_v47  ;;  %10683 = vmatpush.bf16.msrb.mxu2 %v17544_v63  ;;  %v17587_v47 = vld [vmem:[%s28805_s8 + $0xa0] sm:$0xf]  ;;  %v19433_v63 = vld [vmem:[%s28805_s8 + $0xa4] sm:$0xf0] }
 0xa7c   :  { %v17588_v55 = vor.u32 %v19433_v63, %v17587_v47  ;;  %v17906_v47 = vld [vmem:[%s28805_s8 + $0x460] sm:$0xf]  ;;  %v19553_v63 = vld [vmem:[%s28805_s8 + $0x464] sm:$0xf0] }
 0xa7e   :  { %17729 = vmatmul.msk.bf16.vlgmr.msra.gmra.mxu2 %vm4667_vm4, %v9783_v13  ;;  %v17608_v13 = vor.u32 %v19436_v17, %v17605_v56  ;;  %v19555_v17 = vld [vmem:[%s28805_s8 + $0x474] sm:$0xf0] }
 0xa7f   :  { %v9778_v21 = vpop.f32.mrf.mxu0  ;;  %10632 = vmatpush.bf16.msra.mxu3 %v17532_v41  ;;  %10684 = vmatpush.bf16.msrb.mxu2 %v17536_v27  ;;  %v17579_v41 = vld [vmem:[%s28805_s8 + $0x90] sm:$0xf]  ;;  %v19431_v27 = vld [vmem:[%s28805_s8 + $0x94] sm:$0xf0]  ;;  %v17915_v56 = vor.u32 %v19555_v17, %v17914_v62 }
 0xa80   :  { %v17580_v21 = vor.u32 %v19431_v27, %v17579_v41  ;;  %v17834_v41 = vld [vmem:[%s28805_s8 + $0x3d0] sm:$0xf]  ;;  %v19535_v27 = vld [vmem:[%s28805_s8 + $0x3d4] sm:$0xf0] }
 0xa83   :  { %10633 = vmatpush.bf16.msra.mxu3 %v17524_v3  ;;  %10685 = vmatpush.bf16.msrb.mxu2 %v17528_v45  ;;  %v19430_v3 = vld [vmem:[%s28805_s8 + $0x94] sm:$0xf]  ;;  %v17581_v45 = vld [vmem:[%s28805_s8 + $0x98] sm:$0xf0] }
 0xa84   :  { %v17584_v52 = vor.u32 %v19430_v3, %v17581_v45  ;;  %v19533_v3 = vld [vmem:[%s28805_s8 + $0x3c4] sm:$0xf0] }
 0xa85   :  { %v17827_v45 = vor.u32 %v19533_v3, %v17826_v5  ;;  %v17954_v5 = vld [vmem:[%s28805_s8 + $0x4c0] sm:$0xf]  ;;  %v19565_v3 = vld [vmem:[%s28805_s8 + $0x4c4] sm:$0xf0] }
 0xa87   :  { %v9893_v37 = vpop.f32.mrf.mxu0  ;;  %10634 = vmatpush.bf16.msra.mxu3 %v17516_v32  ;;  %10686 = vmatpush.bf16.msrb.mxu2 %v17520_v22  ;;  %v17573_v32 = vld [vmem:[%s28805_s8 + $0x88] sm:$0xf0]  ;;  %v19456_v22 = vld [vmem:[%s28805_s8 + $0x164] sm:$0xf] }
 0xa88   :  { %v9900_v40 = vpack.c.bf16 %v9893_v37, %v9893_v37  ;;  %v17576_v37 = vor.u32 %v19428_v43, %v17573_v32  ;;  %v17688_v11 = vor.u32 %v19456_v22, %v17685_v57  ;;  %v17818_v43 = vld [vmem:[%s28805_s8 + $0x3b0] sm:$0xf]  ;;  %v19531_v32 = vld [vmem:[%s28805_s8 + $0x3b4] sm:$0xf0] }
 0xa89   :  { %v17819_v22 = vor.u32 %v19531_v32, %v17818_v43  ;;  %v17882_v57 = vld [vmem:[%s28805_s8 + $0x430] sm:$0xf] }
 0xa8a   :  { %17503 = vmatmul.msk.bf16.vlgmr.msrb.gmra.mxu0 %vm4667_vm4, %v9900_v40  ;;  %17504 = vmatmul.msk.bf16.vlgmr.msrb.gmra.mxu3 %vm4667_vm4, %v9900_v40  ;;  %v17677_v40 = vld [vmem:[%s28805_s8 + $0x158] sm:$0xf0] }
 0xa8b   :  { %10641 = vmatpush.bf16.msrb.mxu0 %v17628_v28  ;;  %10635 = vmatpush.bf16.msra.mxu3 %v17508_v49  ;;  %v17680_v28 = vor.u32 %v19454_v20, %v17677_v40  ;;  %v19448_v49 = vld [vmem:[%s28805_s8 + $0x124] sm:$0xf]  ;;  %v17810_v20 = vld [vmem:[%s28805_s8 + $0x3a0] sm:$0xf]  ;;  %v19529_v40 = vld [vmem:[%s28805_s8 + $0x3a4] sm:$0xf0] }
 0xa8c   :  { %10687 = vmatpush.bf16.msrb.mxu2 %v17512_v1  ;;  %17732 = vmatmul.msk.bf16.vlgmr.msra.gmra.mxu1 %vm9711_vm6, %v27980_v29  ;;  %v17653_v1 = vld [vmem:[%s28805_s8 + $0x128] sm:$0xf0]  ;;  %v17811_v8 = vor.u32 %v19529_v40, %v17810_v20 }
 0xa8d   :  { %v17892_v40 = vld [vmem:[%s28805_s8 + $0x448] sm:$0xf0] }
 0xa8f   :  { %10693 = vmatpush.bf16.msrb.mxu3 %v17632_v33  ;;  %v9895_v54 = vpop.f32.mrf.mxu0  ;;  %10642 = vmatpush.bf16.msrb.mxu0 %v17620_v48  ;;  %v17656_v48 = vor.u32 %v19448_v49, %v17653_v1  ;;  %v17978_v1 = vld [vmem:[%s28805_s8 + $0x4f0] sm:$0xf] }
 0xa90   :  { %10757 = vmatpush.bf16.msra.mxu2 %v27309_v7  ;;  %v19437_v7 = vld [vmem:[%s28805_s8 + $0xc4] sm:$0xf0] }
 0xa91   :  { %10688 = vmatmul.bf16.vlgmr.msrb.gmra.mxu2 %v9780_v30  ;;  %v17604_v14 = vor.u32 %v19437_v7, %v17603_v10 }
 0xa93   :  { %10694 = vmatpush.bf16.msrb.mxu3 %v17624_v42  ;;  %10643 = vmatpush.bf16.msrb.mxu0 %v17612_v18 }
 0xa94   :  { %11146 = vmatpush.bf16.msrb.mxu2 %v17915_v56 }
 0xa97   :  { %10695 = vmatpush.bf16.msrb.mxu3 %v17616_v6  ;;  %10644 = vmatpush.bf16.msrb.mxu0 %v17604_v14 }
 0xa9a   :  { %10301 = vmatmul.bf16.vlgmr.msra.gmra.mxu0 %v27595_v4  ;;  %10636 = vmatmul.bf16.vlgmr.msra.gmra.mxu3 %v9780_v30  ;;  %v17589_v4 = vld [vmem:[%s28805_s8 + $0xa8] sm:$0xf0] }
 0xa9b   :  { %10645 = vmatpush.bf16.msrb.mxu0 %v17596_v61  ;;  %10696 = vmatpush.bf16.msrb.mxu3 %v17608_v13  ;;  %v17592_v16 = vor.u32 %v19432_v26, %v17589_v4  ;;  %v17637_v30 = vld [vmem:[%s28805_s8 + $0x108] sm:$0xf0]  ;;  %v19537_v61 = vld [vmem:[%s28805_s8 + $0x3e4] sm:$0xf0]  ;;  %v17835_v26 = vor.u32 %v19535_v27, %v17834_v41  ;;  %v17898_v4 = vld [vmem:[%s28805_s8 + $0x450] sm:$0xf] }
 0xa9c   :  { %v17640_v42 = vor.u32 %v19444_v12, %v17637_v30  ;;  %v17867_v12 = vor.u32 %v19543_v2, %v17866_v60  ;;  %v17908_v41 = vld [vmem:[%s28805_s8 + $0x468] sm:$0xf0]  ;;  %v17938_v60 = vld [vmem:[%s28805_s8 + $0x4a0] sm:$0xf]  ;;  %v19546_v2 = vld [vmem:[%s28805_s8 + $0x434] sm:$0xf] }
 0xa9f   :  { %10646 = vmatpush.bf16.msrb.mxu0 %v17588_v55  ;;  %10697 = vmatpush.bf16.msrb.mxu3 %v17600_v50  ;;  %v17907_v55 = vor.u32 %v19553_v63, %v17906_v47  ;;  %v17962_v63 = vld [vmem:[%s28805_s8 + $0x4d0] sm:$0xf] }
 0xaa1   :  { %17733 = vmatmul.msk.bf16.vlgmr.msra.gmra.mxu2 %vm9711_vm6, %v27980_v29 }
 0xaa2   :  { %11147 = vmatpush.bf16.msrb.mxu2 %v17907_v55  ;;  %v19552_v55 = vld [vmem:[%s28805_s8 + $0x464] sm:$0xf] }
 0xaa3   :  { %10647 = vmatpush.bf16.msrb.mxu0 %v17580_v21  ;;  %10698 = vmatpush.bf16.msrb.mxu3 %v17592_v16  ;;  %v19551_v21 = vld [vmem:[%s28805_s8 + $0x454] sm:$0xf0] }
 0xaa4   :  { %v17899_v15 = vor.u32 %v19551_v21, %v17898_v4  ;;  %v19568_v4 = vld [vmem:[%s28805_s8 + $0x4e4] sm:$0xf]  ;;  %v17972_v21 = vld [vmem:[%s28805_s8 + $0x4e8] sm:$0xf0] }
 0xaa6   :  { %11148 = vmatpush.bf16.msrb.mxu2 %v17899_v15  ;;  %v17975_v15 = vor.u32 %v19568_v4, %v17972_v21 }
 0xaa7   :  { %10648 = vmatpush.bf16.msrb.mxu0 %v17572_v36  ;;  %10699 = vmatpush.bf16.msrb.mxu3 %v17584_v52 }
 0xaaa   :  { %10649 = vmatmul.bf16.vlgmr.msrb.gmra.mxu0 %v9781_v46 }
 0xaab   :  { %10706 = vmatpush.bf16.msra.mxu0 %v17696_v25  ;;  %10700 = vmatpush.bf16.msrb.mxu3 %v17576_v37  ;;  %v17891_v25 = vor.u32 %v19549_v34, %v17890_v9  ;;  %v19547_v37 = vld [vmem:[%s28805_s8 + $0x434] sm:$0xf0]  ;;  %v17955_v9 = vor.u32 %v19565_v3, %v17954_v5  ;;  %v17900_v34 = vld [vmem:[%s28805_s8 + $0x458] sm:$0xf0]  ;;  %v19542_v5 = vld [vmem:[%s28805_s8 + $0x414] sm:$0xf] }
 0xaad   :  { %11149 = vmatpush.bf16.msrb.mxu2 %v17891_v25 }
 0xaae   :  { %10701 = vmatmul.bf16.vlgmr.msrb.gmra.mxu3 %v9781_v46 }
 0xaaf   :  { %10707 = vmatpush.bf16.msra.mxu0 %v17688_v11  ;;  %10770 = vmatpush.bf16.msra.mxu3 %v27342_v23  ;;  %v17661_v23 = vld [vmem:[%s28805_s8 + $0x138] sm:$0xf0]  ;;  %v17883_v11 = vor.u32 %v19547_v37, %v17882_v57  ;;  %v17946_v37 = vld [vmem:[%s28805_s8 + $0x4b0] sm:$0xf] }
 0xab0   :  { %v17664_v53 = vor.u32 %v19450_v24, %v17661_v23  ;;  %v17802_v23 = vld [vmem:[%s28805_s8 + $0x390] sm:$0xf] }
 0xab1   :  { %v10250_v33 = vpop.f32.mrf.mxu1  ;;  %11150 = vmatpush.bf16.msrb.mxu2 %v17883_v11  ;;  %v19548_v11 = vld [vmem:[%s28805_s8 + $0x444] sm:$0xf] }
 0xab3   :  { %10708 = vmatpush.bf16.msra.mxu0 %v17680_v28  ;;  %v17874_v28 = vld [vmem:[%s28805_s8 + $0x420] sm:$0xf] }
 0xab7   :  { %10709 = vmatpush.bf16.msra.mxu0 %v17672_v19  ;;  %v17875_v19 = vor.u32 %v19545_v35, %v17874_v28 }
 0xab9   :  { %v10252_v54 = vpop.f32.mrf.mxu1  ;;  %11151 = vmatpush.bf16.msrb.mxu2 %v17875_v19  ;;  %v19564_v19 = vld [vmem:[%s28805_s8 + $0x4c4] sm:$0xf] }
 0xaba   :  { %v17794_v54 = vld [vmem:[%s28805_s8 + $0x380] sm:$0xf] }
 0xabb   :  { %10710 = vmatpush.bf16.msra.mxu0 %v17664_v53  ;;  %v19527_v53 = vld [vmem:[%s28805_s8 + $0x394] sm:$0xf0] }
 0xabc   :  { %v17803_v49 = vor.u32 %v19527_v53, %v17802_v23  ;;  %v17956_v23 = vld [vmem:[%s28805_s8 + $0x4c8] sm:$0xf0] }
 0xabd   :  { %11152 = vmatpush.bf16.msrb.mxu2 %v17867_v12 }
 0xabe   :  { %17734 = vmatmul.msk.bf16.vlgmr.msra.gmra.mxu3 %vm9711_vm6, %v27980_v29 }
 0xabf   :  { %10711 = vmatpush.bf16.msra.mxu0 %v17656_v48 }
 0xac3   :  { %10712 = vmatpush.bf16.msra.mxu0 %v17648_v44 }
 0xac7   :  { %10713 = vmatpush.bf16.msra.mxu0 %v17640_v42  ;;  %v19525_v42 = vld [vmem:[%s28805_s8 + $0x384] sm:$0xf0] }
 0xac9   :  { %v28084_v18 = vpop.f32.mrf.mxu1 }
 0xaca   :  { %10714 = vmatmul.bf16.vlgmr.msra.gmra.mxu0 %v27798_v58 }
 0xacb   :  { %10783 = vmatpush.bf16.msrb.mxu0 %v27411_v59  ;;  %v19539_v59 = vld [vmem:[%s28805_s8 + $0x3f4] sm:$0xf0] }
 0xacc   :  { %v17851_v58 = vor.u32 %v19539_v59, %v17850_v39  ;;  %v17916_v39 = vld [vmem:[%s28805_s8 + $0x478] sm:$0xf0]  ;;  %v17858_v59 = vld [vmem:[%s28805_s8 + $0x400] sm:$0xf] }
 0xace   :  { %11133 = vmatpush.bf16.msrb.mxu1 %v17851_v58  ;;  %v19541_v58 = vld [vmem:[%s28805_s8 + $0x404] sm:$0xf0] }
 0xacf   :  { %v10263_v31 = vpop.f32.mrf.mxu2  ;;  %v17859_v56 = vor.u32 %v19541_v58, %v17858_v59  ;;  %v17930_v59 = vld [vmem:[%s28805_s8 + $0x490] sm:$0xf] }
 0xad0   :  { %v10264_v38 = vadd.f32 %v10263_v31, %v10250_v33  ;;  %v19571_v33 = vld [vmem:[%s28805_s8 + $0x4f4] sm:$0xf0]  ;;  %v17795_v31 = vor.u32 %v19525_v42, %v17794_v54  ;;  %v17884_v54 = vld [vmem:[%s28805_s8 + $0x438] sm:$0xf0]  ;;  %v19562_v42 = vld [vmem:[%s28805_s8 + $0x4b4] sm:$0xf] }
 0xad1   :  { %v10317_v10 = vpop.f32.mrf.mxu1  ;;  %v17979_v48 = vor.u32 %v19571_v33, %v17978_v1  ;;  %11153 = vmatpush.bf16.msrb.mxu2 %v17859_v56  ;;  %v18010_v1 = vld [vmem:[%s28805_s8 + $0x530] sm:$0xf]  ;;  %v19579_v33 = vld [vmem:[%s28805_s8 + $0x534] sm:$0xf0]  ;;  %v19544_v56 = vld [vmem:[%s28805_s8 + $0x424] sm:$0xf] }
 0xad2   :  { %v19569_v10 = vld [vmem:[%s28805_s8 + $0x4e4] sm:$0xf0] }
 0xad3   :  { %11159 = vmatpush.bf16.msrb.mxu3 %v17979_v48  ;;  %v18011_v48 = vor.u32 %v19579_v33, %v18010_v1  ;;  %v19556_v1 = vld [vmem:[%s28805_s8 + $0x484] sm:$0xf]  ;;  %v17924_v33 = vld [vmem:[%s28805_s8 + $0x488] sm:$0xf0] }
 0xad5   :  { %11176 = vmatpush.bf16.msra.mxu0 %v18011_v48 }
 0xad7   :  { %v10265_v7 = vpop.f32.mrf.mxu2 }
 0xad8   :  { %v19554_v7 = vld [vmem:[%s28805_s8 + $0x474] sm:$0xf] }
 0xad9   :  { %v17919_v17 = vor.u32 %v19554_v7, %v17916_v39  ;;  %v17887_v7 = vor.u32 %v19546_v2, %v17884_v54  ;;  %v19577_v39 = vld [vmem:[%s28805_s8 + $0x524] sm:$0xf0]  ;;  %v17844_v2 = vld [vmem:[%s28805_s8 + $0x3e8] sm:$0xf0] }
 0xada   :  { %17735 = vmatmul.msk.bf16.vlgmr.msrb.gmra.mxu0 %vm9711_vm6, %v27980_v29  ;;  %v17842_v29 = vld [vmem:[%s28805_s8 + $0x3e0] sm:$0xf] }
 0xadb   :  { %v28088_v6 = vpop.f32.mrf.mxu1  ;;  %v17843_v13 = vor.u32 %v19537_v61, %v17842_v29  ;;  %v19570_v29 = vld [vmem:[%s28805_s8 + $0x4f4] sm:$0xf]  ;;  %v17980_v61 = vld [vmem:[%s28805_s8 + $0x4f8] sm:$0xf0] }
 0xadd   :  { %11134 = vmatpush.bf16.msrb.mxu1 %v17843_v13  ;;  %v17983_v13 = vor.u32 %v19570_v29, %v17980_v61  ;;  %v17876_v29 = vld [vmem:[%s28805_s8 + $0x428] sm:$0xf0] }
 0xadf   :  { %11211 = vmatpush.bf16.msra.mxu2 %v17983_v13 }
 0xae1   :  { %11135 = vmatpush.bf16.msrb.mxu1 %v17835_v26  ;;  %v17911_v26 = vor.u32 %v19552_v55, %v17908_v41  ;;  %v17994_v55 = vld [vmem:[%s28805_s8 + $0x510] sm:$0xf] }
 0xae3   :  { %v10665_v14 = vpop.f32.mrf.mxu1  ;;  %11212 = vmatpush.bf16.msra.mxu2 %v17975_v15  ;;  %v17922_v15 = vld [vmem:[%s28805_s8 + $0x480] sm:$0xf] }
 0xae5   :  { %11136 = vmatpush.bf16.msrb.mxu1 %v17827_v45  ;;  %v19550_v45 = vld [vmem:[%s28805_s8 + $0x454] sm:$0xf] }
 0xae6   :  { %v17903_v32 = vor.u32 %v19550_v45, %v17900_v34  ;;  %v17868_v45 = vld [vmem:[%s28805_s8 + $0x418] sm:$0xf0] }
 0xae7   :  { %v17871_v34 = vor.u32 %v19542_v5, %v17868_v45  ;;  %v17796_v5 = vld [vmem:[%s28805_s8 + $0x388] sm:$0xf0] }
 0xae9   :  { %11137 = vmatpush.bf16.msrb.mxu1 %v17819_v22 }
 0xaed   :  { %11138 = vmatpush.bf16.msrb.mxu1 %v17811_v8  ;;  %v17895_v8 = vor.u32 %v19548_v11, %v17892_v40  ;;  %v19538_v11 = vld [vmem:[%s28805_s8 + $0x3f4] sm:$0xf]  ;;  %v19540_v40 = vld [vmem:[%s28805_s8 + $0x404] sm:$0xf] }
 0xaf1   :  { %v28114_v51 = vpop.f32.mrf.mxu2  ;;  %v10276_v0 = vpop.f32.mrf.mxu3  ;;  %11139 = vmatpush.bf16.msrb.mxu1 %v17803_v49  ;;  %v17959_v49 = vor.u32 %v19564_v19, %v17956_v23  ;;  %v18012_v19 = vld [vmem:[%s28805_s8 + $0x538] sm:$0xf0] }
 0xaf2   :  { %v10277_v50 = vadd.f32 %v10276_v0, %v10264_v38  ;;  %v17970_v38 = vld [vmem:[%s28805_s8 + $0x4e0] sm:$0xf]  ;;  %v19567_v0 = vld [vmem:[%s28805_s8 + $0x4d4] sm:$0xf0] }
 0xaf3   :  { %v17971_v14 = vor.u32 %v19569_v10, %v17970_v38 }
 0xaf5   :  { %11140 = vmatpush.bf16.msrb.mxu1 %v17795_v31  ;;  %11160 = vmatpush.bf16.msrb.mxu3 %v17971_v14  ;;  %v17948_v31 = vld [vmem:[%s28805_s8 + $0x4b8] sm:$0xf0] }
 0xaf6   :  { %v17951_v14 = vor.u32 %v19562_v42, %v17948_v31  ;;  %v18004_v42 = vld [vmem:[%s28805_s8 + $0x528] sm:$0xf0] }
 0xaf7   :  { %v28128_v16 = vpop.f32.mrf.mxu1 }
 0xaf9   :  { %v10330_v36 = vpop.f32.mrf.mxu2  ;;  %v10278_v52 = vpop.f32.mrf.mxu3  ;;  %11198 = vmatpush.bf16.msra.mxu1 %v17919_v17  ;;  %v19559_v17 = vld [vmem:[%s28805_s8 + $0x494] sm:$0xf0] }
 0xafa   :  { %v19566_v36 = vld [vmem:[%s28805_s8 + $0x4d4] sm:$0xf]  ;;  %v17964_v52 = vld [vmem:[%s28805_s8 + $0x4d8] sm:$0xf0]  ;;  %v17931_v13 = vor.u32 %v19559_v17, %v17930_v59  ;;  %v19532_v17 = vld [vmem:[%s28805_s8 + $0x3c4] sm:$0xf] }
 0xafb   :  { %v17967_v22 = vor.u32 %v19566_v36, %v17964_v52  ;;  %v19558_v36 = vld [vmem:[%s28805_s8 + $0x494] sm:$0xf]  ;;  %v17932_v52 = vld [vmem:[%s28805_s8 + $0x498] sm:$0xf0] }
 0xafd   :  { %11199 = vmatpush.bf16.msra.mxu1 %v17911_v26  ;;  %11213 = vmatpush.bf16.msra.mxu2 %v17967_v22  ;;  %v19575_v26 = vld [vmem:[%s28805_s8 + $0x514] sm:$0xf0]  ;;  %v19573_v22 = vld [vmem:[%s28805_s8 + $0x504] sm:$0xf0] }
 0xafe   :  { %v17995_v21 = vor.u32 %v19575_v26, %v17994_v55 }
 0xaff   :  { %v10730_v46 = vpop.f32.mrf.mxu1 }
 0xb00   :  { %v19563_v46 = vld [vmem:[%s28805_s8 + $0x4b4] sm:$0xf0] }
 0xb01   :  { %v28166_v24 = vpop.f32.mrf.mxu2  ;;  %v17947_v20 = vor.u32 %v19563_v46, %v17946_v37  ;;  %11200 = vmatpush.bf16.msra.mxu1 %v17903_v32  ;;  %11214 = vmatpush.bf16.msra.mxu2 %v17959_v49  ;;  %v17986_v32 = vld [vmem:[%s28805_s8 + $0x500] sm:$0xf] }
 0xb02   :  { %v17987_v46 = vor.u32 %v19573_v22, %v17986_v32 }
 0xb05   :  { %11201 = vmatpush.bf16.msra.mxu1 %v17895_v8  ;;  %11215 = vmatpush.bf16.msra.mxu2 %v17951_v14  ;;  %v17860_v8 = vld [vmem:[%s28805_s8 + $0x408] sm:$0xf0] }
 0xb07   :  { %v10289_v44 = vpop.f32.mrf.mxu0 }
 0xb08   :  { %v28186_v30 = vadd.f32 %v10289_v44, %v10277_v50  ;;  %v17963_v50 = vor.u32 %v19567_v0, %v17962_v63  ;;  %v17879_v63 = vor.u32 %v19544_v56, %v17876_v29  ;;  %v17940_v0 = vld [vmem:[%s28805_s8 + $0x4a8] sm:$0xf0]  ;;  %v19572_v56 = vld [vmem:[%s28805_s8 + $0x504] sm:$0xf] }
 0xb09   :  { %v10678_v62 = vpop.f32.mrf.mxu2  ;;  %v10746_v25 = vpop.f32.mrf.mxu1  ;;  %11202 = vmatpush.bf16.msra.mxu1 %v17887_v7  ;;  %v17836_v7 = vld [vmem:[%s28805_s8 + $0x3d8] sm:$0xf0] }
 0xb0a   :  { %11161 = vmatpush.bf16.msrb.mxu3 %v17963_v50  ;;  %v28256_v57 = vpack.c.bf16 %v10746_v25, %v10746_v25 }
 0xb0c   :  { %11141 = vmatmul.bf16.vlgmr.msrb.gmra.mxu1 %v28256_v57 }
 0xb0d   :  { %v28218_v47 = vpop.f32.mrf.mxu3  ;;  %11203 = vmatpush.bf16.msra.mxu1 %v17879_v63 }
 0xb0e   :  { %11162 = vmatpush.bf16.msrb.mxu3 %v17955_v9 }
 0xb0f   :  { %v10291_v27 = vpop.f32.mrf.mxu0 }
 0xb11   :  { %v10748_v38 = vpop.f32.mrf.mxu1  ;;  %11204 = vmatpush.bf16.msra.mxu1 %v17871_v34 }
 0xb12   :  { %11163 = vmatpush.bf16.msrb.mxu3 %v17947_v20  ;;  %v17852_v20 = vld [vmem:[%s28805_s8 + $0x3f8] sm:$0xf0] }
 0xb14   :  { %v10689_v43 = vpop.f32.mrf.mxu2 }
 0xb15   :  { %v10343_v28 = vpop.f32.mrf.mxu3 }
 0xb16   :  { %v17855_v28 = vor.u32 %v19538_v11, %v17852_v20 }
 0xb17   :  { %v10302_v35 = vpop.f32.mrf.mxu0 }
 0xb18   :  { %v10316_v53 = vadd.f32 %v28084_v18, %v10302_v35  ;;  %v19561_v18 = vld [vmem:[%s28805_s8 + $0x4a4] sm:$0xf0]  ;;  %v19578_v35 = vld [vmem:[%s28805_s8 + $0x534] sm:$0xf] }
 0xb19   :  { %v17939_v12 = vor.u32 %v19561_v18, %v17938_v60  ;;  %v18015_v49 = vor.u32 %v19578_v35, %v18012_v19  ;;  %v17927_v60 = vor.u32 %v19556_v1, %v17924_v33  ;;  %v19536_v18 = vld [vmem:[%s28805_s8 + $0x3e4] sm:$0xf]  ;;  %v11239_v1 = vld [vmem:[%s28806_s9] sm:$0x3] }
 0xb1a   :  { %v10329_v44 = vadd.f32 %v28114_v51, %v10316_v53  ;;  %v18002_v51 = vld [vmem:[%s28805_s8 + $0x520] sm:$0xf]  ;;  %v17863_v53 = vor.u32 %v19540_v40, %v17860_v8  ;;  %v17847_v54 = vor.u32 %v19536_v18, %v17844_v2 }
 0xb1b   :  { %11164 = vmatpush.bf16.msrb.mxu3 %v17939_v12  ;;  %v18003_v62 = vor.u32 %v19577_v39, %v18002_v51  ;;  %v17996_v39 = vld [vmem:[%s28805_s8 + $0x518] sm:$0xf0] }
 0xb1c   :  { %v10691_v10 = vpop.f32.mrf.mxu2  ;;  %v10342_v58 = vadd.f32 %v28218_v47, %v10329_v44  ;;  %v19560_v47 = vld [vmem:[%s28805_s8 + $0x4a4] sm:$0xf]  ;;  %11205 = vmatpush.bf16.msra.mxu1 %v17863_v53 }
 0xb1d   :  { %v10637_v61 = vpop.f32.mrf.mxu3  ;;  %v17943_v27 = vor.u32 %v19560_v47, %v17940_v0  ;;  %11177 = vmatpush.bf16.msra.mxu0 %v18003_v62  ;;  %v19576_v44 = vld [vmem:[%s28805_s8 + $0x524] sm:$0xf]  ;;  %v19534_v10 = vld [vmem:[%s28805_s8 + $0x3d4] sm:$0xf]  ;;  %v17820_v0 = vld [vmem:[%s28805_s8 + $0x3b8] sm:$0xf0] }
 0xb1e   :  { %v10638_v50 = vadd.f32 %v10637_v61, %v28186_v30  ;;  %v28332_v41 = vadd.f32 %v10689_v43, %v10342_v58  ;;  %v19557_v30 = vld [vmem:[%s28805_s8 + $0x484] sm:$0xf0]  ;;  %v17935_v43 = vor.u32 %v19558_v36, %v17932_v52  ;;  %v18007_v31 = vor.u32 %v19576_v44, %v18004_v42  ;;  %v19530_v47 = vld [vmem:[%s28805_s8 + $0x3b4] sm:$0xf] }
 0xb1f   :  { %v10304_v4 = vpop.f32.mrf.mxu0  ;;  %11165 = vmatpush.bf16.msrb.mxu3 %v17931_v13  ;;  %11216 = vmatpush.bf16.msra.mxu2 %v17943_v27  ;;  %v17923_v3 = vor.u32 %v19557_v30, %v17922_v15  ;;  %v17839_v51 = vor.u32 %v19534_v10, %v17836_v7  ;;  %v17988_v13 = vld [vmem:[%s28805_s8 + $0x508] sm:$0xf0]  ;;  %v17823_v55 = vor.u32 %v19530_v47, %v17820_v0  ;;  %v19524_v30 = vld [vmem:[%s28805_s8 + $0x384] sm:$0xf]  ;;  %v11251_v10 = vld [vmem:[%s28807_s10] sm:$0x1] }
 0xb20   :  { %v17991_v63 = vor.u32 %v19572_v56, %v17988_v13  ;;  %v17812_v27 = vld [vmem:[%s28805_s8 + $0x3a8] sm:$0xf0]  ;;  %v19526_v4 = vld [vmem:[%s28805_s8 + $0x394] sm:$0xf]  ;;  %v17799_v45 = vor.u32 %v19524_v30, %v17796_v5  ;;  %v19599_v7 = vld [vmem:[%s28808_s11 + $0x98] sm:$0xff]  ;;  %v11242_v56 = vperm.slane %v11239_v1, 1 }
 0xb21   :  { %11178 = vmatpush.bf16.msra.mxu0 %v17995_v21  ;;  %v17804_v21 = vld [vmem:[%s28805_s8 + $0x398] sm:$0xf0]  ;;  %v19601_v30 = vld [vmem:[%s28808_s11 + $0xa8] sm:$0xff] }
 0xb22   :  { %v17807_v15 = vor.u32 %v19526_v4, %v17804_v21  ;;  %v19602_v4 = vld [vmem:[%s28808_s11 + $0xb0] sm:$0xff]  ;;  %v19589_v5 = vld [vmem:[%s28808_s11 + $0x48] sm:$0xff] }
 0xb23   :  { %11166 = vmatpush.bf16.msrb.mxu3 %v17923_v3  ;;  %11217 = vmatpush.bf16.msra.mxu2 %v17935_v43  ;;  %v19590_v21 = vld [vmem:[%s28808_s11 + $0x50] sm:$0xff] }
 0xb24   :  { %v10759_v9 = vpop.f32.mrf.mxu2 }
 0xb25   :  { %v10790_v25 = vpack.c.bf16 %v10759_v9, %v10759_v9  ;;  %v10639_v37 = vpop.f32.mrf.mxu3  ;;  %11179 = vmatpush.bf16.msra.mxu0 %v17987_v46 }
 0xb27   :  { %11154 = vmatmul.bf16.vlgmr.msrb.gmra.mxu2 %v10790_v25  ;;  %v10650_v23 = vpop.f32.mrf.mxu0  ;;  %11228 = vmatpush.bf16.msra.mxu3 %v18015_v49 }
 0xb28   :  { %v10651_v48 = vadd.f32 %v10650_v23, %v10638_v50  ;;  %11218 = vmatpush.bf16.msra.mxu2 %v17927_v60  ;;  %11206 = vmatmul.bf16.vlgmr.msra.gmra.mxu1 %v10790_v25  ;;  %v11241_v60 = vperm.slane %v11239_v1, 0 }
 0xb29   :  { %11185 = vmatpush.bf16.msrb.mxu0 %v17855_v28 }
 0xb2a   :  { %v10664_v12 = vadd.f32 %v28088_v6, %v10651_v48  ;;  %v19574_v6 = vld [vmem:[%s28805_s8 + $0x514] sm:$0xf] }
 0xb2b   :  { %11229 = vmatpush.bf16.msra.mxu3 %v18007_v31  ;;  %v17999_v59 = vor.u32 %v19574_v6, %v17996_v39  ;;  %v18020_v31 = vld [vmem:[%s28807_s10 + $0x1] sm:$0x1]  ;;  %v19587_v6 = vld [vmem:[%s28808_s11 + $0x38] sm:$0xff] }
 0xb2c   :  { %v10761_v38 = vpop.f32.mrf.mxu2  ;;  %v28408_v14 = vadd.f32 %v28166_v24, %v10664_v12  ;;  %v17828_v24 = vld [vmem:[%s28805_s8 + $0x3c8] sm:$0xf0] }
 0xb2d   :  { %11186 = vmatpush.bf16.msrb.mxu0 %v17847_v54  ;;  %v17831_v61 = vor.u32 %v19532_v17, %v17828_v24 }
 0xb2f   :  { %v10652_v58 = vpop.f32.mrf.mxu0  ;;  %11230 = vmatpush.bf16.msra.mxu3 %v17999_v59  ;;  %v19586_v59 = vld [vmem:[%s28808_s11 + $0x30] sm:$0xff] }
 0xb31   :  { %11187 = vmatpush.bf16.msrb.mxu0 %v17839_v51  ;;  %v10702_v62 = vpop.f32.mrf.mxu3  ;;  %v19598_v51 = vld [vmem:[%s28808_s11 + $0x90] sm:$0xff] }
 0xb32   :  { %v10703_v29 = vadd.f32 %v10702_v62, %v28332_v41  ;;  %v19528_v41 = vld [vmem:[%s28805_s8 + $0x3a4] sm:$0xf]  ;;  %v19597_v62 = vld [vmem:[%s28808_s11 + $0x88] sm:$0xff] }
 0xb33   :  { %11231 = vmatpush.bf16.msra.mxu3 %v17991_v63  ;;  %v17815_v26 = vor.u32 %v19528_v41, %v17812_v27  ;;  %v19596_v63 = vld [vmem:[%s28808_s11 + $0x80] sm:$0xff]  ;;  %v19591_v41 = vld [vmem:[%s28808_s11 + $0x58] sm:$0xff] }
 0xb34   :  { %v19595_v27 = vld [vmem:[%s28808_s11 + $0x78] sm:$0xff] }
 0xb35   :  { %11188 = vmatpush.bf16.msrb.mxu0 %v17831_v61 }
 0xb39   :  { %11189 = vmatpush.bf16.msrb.mxu0 %v17823_v55  ;;  %v10704_v50 = vpop.f32.mrf.mxu3 }
 0xb3a   :  { %v19603_v50 = vld [vmem:[%s28808_s11 + $0xb8] sm:$0xff] }
 0xb3d   :  { %11190 = vmatpush.bf16.msrb.mxu0 %v17815_v26 }
 0xb41   :  { %11191 = vmatpush.bf16.msrb.mxu0 %v17807_v15  ;;  %v10772_v3 = vpop.f32.mrf.mxu3  ;;  %v19594_v15 = vld [vmem:[%s28808_s11 + $0x70] sm:$0xff] }
 0xb42   :  { %v10791_v9 = vpack.c.bf16 %v10772_v3, %v10772_v3  ;;  %v19600_v3 = vld [vmem:[%s28808_s11 + $0xa0] sm:$0xff] }
 0xb44   :  { %11167 = vmatmul.bf16.vlgmr.msrb.gmra.mxu3 %v10791_v9  ;;  %11219 = vmatmul.bf16.vlgmr.msra.gmra.mxu2 %v10791_v9  ;;  %v19593_v9 = vld [vmem:[%s28808_s11 + $0x68] sm:$0xff] }
 0xb45   :  { %11192 = vmatpush.bf16.msrb.mxu0 %v17799_v45  ;;  %v19588_v45 = vld [vmem:[%s28808_s11 + $0x40] sm:$0xff] }
 0xb47   :  { %v10715_v34 = vpop.f32.mrf.mxu0 }
 0xb48   :  { %v10716_v36 = vadd.f32 %v10715_v34, %v10703_v29  ;;  %v19585_v29 = vld [vmem:[%s28808_s11 + $0x28] sm:$0xff]  ;;  %v19583_v34 = vld [vmem:[%s28808_s11 + $0x18] sm:$0xff] }
 0xb49   :  { %v10774_v52 = vpop.f32.mrf.mxu3 }
 0xb4a   :  { %v10729_v17 = vadd.f32 %v28128_v16, %v10716_v36  ;;  %v19584_v16 = vld [vmem:[%s28808_s11 + $0x20] sm:$0xff]  ;;  %v19582_v52 = vld [vmem:[%s28808_s11 + $0x10] sm:$0xff] }
 0xb4b   :  { %v19592_v36 = vld [vmem:[%s28808_s11 + $0x60] sm:$0xff] }
 0xb4f   :  { %v10717_v25 = vpop.f32.mrf.mxu0 }
 0xb50   :  { %v19581_v25 = vld [vmem:[%s28808_s11 + $0x8] sm:$0xff] }
 0xb57   :  { %v10785_v43 = vpop.f32.mrf.mxu0 }
 0xb58   :  { %v10792_v32 = vpack.c.bf16 %v10785_v43, %v10785_v43  ;;  %v19580_v43 = vld [vmem:[%s28808_s11] sm:$0xff] }
 0xb5a   :  { %18016 = vmatmul.msk.bf16.vlgmr.msra.gmra.mxu0 %vm4667_vm4, %v10792_v32  ;;  %18017 = vmatmul.msk.bf16.vlgmr.msra.gmra.mxu3 %vm4667_vm4, %v10792_v32 }
 0xb5f   :  { %v10787_v22 = vpop.f32.mrf.mxu0 }
 0xb6a   :  { %11193 = vmatmul.bf16.vlgmr.msrb.gmra.mxu0 %v28256_v57 }
 0xb89   :  { %v11142_v37 = vpop.f32.mrf.mxu1 }
 0xb91   :  { %v11144_v46 = vpop.f32.mrf.mxu1 }
 0xba5   :  { %v11207_v20 = vpop.f32.mrf.mxu1 }
 0xbaa   :  { %v11155_v11 = vpop.f32.mrf.mxu2 }
 0xbab   :  { %v11156_v19 = vadd.f32 %v11155_v11, %v11142_v37 }
 0xbad   :  { %v11209_v28 = vpop.f32.mrf.mxu1 }
 0xbae   :  { %v19610_v28 = vld [vmem:[%s28808_s11 + $0xf0] sm:$0xff] }
 0xbb2   :  { %v11157_v40 = vpop.f32.mrf.mxu2 }
 0xbc7   :  { %v11168_v8 = vpop.f32.mrf.mxu3  ;;  %v11220_v35 = vpop.f32.mrf.mxu2 }
 0xbc8   :  { %v11169_v49 = vadd.f32 %v11168_v8, %v11156_v19  ;;  %v19609_v8 = vld [vmem:[%s28808_s11 + $0xe8] sm:$0xff] }
 0xbcf   :  { %v11170_v23 = vpop.f32.mrf.mxu3  ;;  %v11222_v53 = vpop.f32.mrf.mxu2 }
 0xbd7   :  { %v11181_v33 = vpop.f32.mrf.mxu0 }
 0xbd8   :  { %v11182_v48 = vadd.f32 %v11181_v33, %v11169_v49  ;;  %v18145_v33 = vld [vmem:[%s28807_s10 + $0x2] sm:$0x1] }
 0xbda   :  { %v11237_v57 = vadd.f32 %v11182_v48, %v28408_v14  ;;  %v19608_v48 = vld [vmem:[%s28808_s11 + $0xe0] sm:$0xff] }
 0xbdc   :  { %v11245_v18 = vadd.f32 %v11241_v60, %v11237_v57  ;;  %v19607_v60 = vld [vmem:[%s28808_s11 + $0xd8] sm:$0xff] }
 0xbdd   :  { %v11233_v2 = vpop.f32.mrf.mxu3  ;;  %v19615_v57 = vld [vmem:[%s28808_s11 + $0x118] sm:$0xff] }
 0xbde   :  { %v11247_v44 = vmax.f32 %v11245_v18, 0.0  ;;  %v19606_v18 = vld [vmem:[%s28808_s11 + $0xd0] sm:$0xff] }
 0xbdf   :  { %v11183_v12 = vpop.f32.mrf.mxu0 }
 0xbe0   :  { %v11249_v54 = vpack.c.bf16 %v11247_v44, %v11247_v44  ;;  %v19605_v44 = vld [vmem:[%s28808_s11 + $0xc8] sm:$0xff] }
 0xbe1   :  { %v19613_v12 = vld [vmem:[%s28808_s11 + $0x108] sm:$0xff] }
 0xbe2   :  { %v11258_v42 = vsel %vm11256_vm7, %v11249_v54, 0 }
 0xbe3   :  { %11270 = vmatpush.bf16.msrb.mxu3 %v11258_v42  ;;  %11327 = vmatpush.bf16.msrb.mxu1 %v11258_v42 }
 0xbe5   :  { %v11235_v38 = vpop.f32.mrf.mxu3 }
 0xbe6   :  { %18021 = vmatmul.msk.bf16.vlgmr.msrb.gmra.mxu1 %vm11252_vm8, %v18020_v31  ;;  %18018 = vmatmul.msk.bf16.vlgmr.msrb.gmra.mxu3 %vm11252_vm8, %v11251_v10  ;;  %v19612_v38 = vld [vmem:[%s28808_s11 + $0x100] sm:$0xff] }
 0xbe7   :  { %v11194_v14 = vpop.f32.mrf.mxu0  ;;  %11448 = vmatpush.bf16.msra.mxu3 %v19599_v7  ;;  %11549 = vmatpush.bf16.msra.mxu1 %v19587_v6  ;;  %v18271_v6 = vld [vmem:[%s28810_s13 + $0x60] sm:$0xf] }
 0xbe8   :  { %v11208_v39 = vadd.f32 %v11207_v20, %v11194_v14  ;;  %v19611_v20 = vld [vmem:[%s28808_s11 + $0xf8] sm:$0xff]  ;;  %v19630_v14 = vld [vmem:[%s28810_s13 + $0x6c] sm:$0xf0] }
 0xbea   :  { %v11221_v58 = vadd.f32 %v11220_v35, %v11208_v39  ;;  %v18272_v39 = vor.u32 %v19630_v14, %v18271_v6  ;;  %v19647_v6 = vld [vmem:[%s28812_s15 + $0x78] sm:$0xff]  ;;  %v19638_v14 = vld [vmem:[%s28812_s15 + $0x30] sm:$0xff] }
 0xbeb   :  { %11449 = vmatpush.bf16.msra.mxu3 %v19598_v51  ;;  %11550 = vmatpush.bf16.msra.mxu1 %v19586_v59  ;;  %v19628_v51 = vld [vmem:[%s28810_s13 + $0x64] sm:$0xf]  ;;  %v18273_v59 = vld [vmem:[%s28810_s13 + $0x70] sm:$0xf0] }
 0xbec   :  { %v11234_v24 = vadd.f32 %v11233_v2, %v11221_v58  ;;  %v19614_v2 = vld [vmem:[%s28808_s11 + $0x110] sm:$0xff]  ;;  %v18279_v58 = vld [vmem:[%s28810_s13 + $0x68] sm:$0xf] }
 0xbee   :  { %v11238_v61 = vadd.f32 %v11234_v24, %v10729_v17  ;;  %v18276_v17 = vor.u32 %v19628_v51, %v18273_v59  ;;  %v19654_v51 = vld [vmem:[%s28812_s15 + $0xb0] sm:$0xff] }
 0xbef   :  { %v11196_v13 = vpop.f32.mrf.mxu0  ;;  %11450 = vmatpush.bf16.msra.mxu3 %v19597_v62  ;;  %11551 = vmatpush.bf16.msra.mxu1 %v19585_v29  ;;  %v19631_v62 = vld [vmem:[%s28810_s13 + $0x74] sm:$0xf0] }
 0xbf0   :  { %v11246_v47 = vadd.f32 %v11242_v56, %v11238_v61  ;;  %v18280_v24 = vor.u32 %v19631_v62, %v18279_v58  ;;  %v19665_v62 = vld [vmem:[%s28809_s12] ss:$0 sm:$0xff] }
 0xbf2   :  { %v11248_v0 = vmax.f32 %v11246_v47, 0.0 }
 0xbf3   :  { %11451 = vmatpush.bf16.msra.mxu3 %v19596_v63  ;;  %11552 = vmatpush.bf16.msra.mxu1 %v19584_v16 }
 0xbf4   :  { %v11250_v55 = vpack.c.bf16 %v11248_v0, %v11248_v0 }
 0xbf6   :  { %v11261_v26 = vsel %vm11256_vm7, %v11250_v55, 0 }
 0xbf7   :  { %11283 = vmatpush.bf16.msra.mxu0 %v11261_v26  ;;  %11340 = vmatpush.bf16.msrb.mxu2 %v11261_v26 }
 0xbf8   :  { %11452 = vmatpush.bf16.msra.mxu3 %v19595_v27  ;;  %11553 = vmatpush.bf16.msra.mxu1 %v19583_v34 }
 0xbfa   :  { %18022 = vmatmul.msk.bf16.vlgmr.msrb.gmra.mxu2 %vm11252_vm8, %v18020_v31  ;;  %18019 = vmatmul.msk.bf16.vlgmr.msra.gmra.mxu0 %vm11252_vm8, %v11251_v10  ;;  %v19604_v31 = vld [vmem:[%s28808_s11 + $0xc0] sm:$0xff] }
 0xbfb   :  { %11465 = vmatpush.bf16.msrb.mxu0 %v19603_v50  ;;  %11566 = vmatpush.bf16.msra.mxu2 %v19591_v41 }
 0xbfc   :  { %11453 = vmatpush.bf16.msra.mxu3 %v19594_v15  ;;  %11554 = vmatpush.bf16.msra.mxu1 %v19582_v52  ;;  %v19624_v15 = vld [vmem:[%s28810_s13 + $0x44] sm:$0xf]  ;;  %v19622_v52 = vld [vmem:[%s28810_s13 + $0x2c] sm:$0xf0] }
 0xbff   :  { %11466 = vmatpush.bf16.msrb.mxu0 %v19602_v4  ;;  %11567 = vmatpush.bf16.msra.mxu2 %v19590_v21  ;;  %v18255_v4 = vld [vmem:[%s28810_s13 + $0x40] sm:$0xf]  ;;  %v19626_v21 = vld [vmem:[%s28810_s13 + $0x4c] sm:$0xf0] }
 0xc00   :  { %11454 = vmatpush.bf16.msra.mxu3 %v19593_v9  ;;  %11555 = vmatpush.bf16.msra.mxu1 %v19581_v25  ;;  %v19620_v25 = vld [vmem:[%s28810_s13 + $0x24] sm:$0xf] }
 0xc03   :  { %11467 = vmatpush.bf16.msrb.mxu0 %v19601_v30  ;;  %11568 = vmatpush.bf16.msra.mxu2 %v19589_v5  ;;  %v18256_v30 = vor.u32 %v19626_v21, %v18255_v4  ;;  %v18257_v5 = vld [vmem:[%s28810_s13 + $0x50] sm:$0xf0]  ;;  %v19643_v4 = vld [vmem:[%s28812_s15 + $0x58] sm:$0xff] }
 0xc04   :  { %11455 = vmatpush.bf16.msra.mxu3 %v19592_v36  ;;  %11556 = vmatpush.bf16.msra.mxu1 %v19580_v43  ;;  %v18260_v9 = vor.u32 %v19624_v15, %v18257_v5  ;;  %v18239_v36 = vld [vmem:[%s28810_s13 + $0x20] sm:$0xf]  ;;  %v19662_v21 = vld [vmem:[%s28812_s15 + $0xf0] sm:$0xff]  ;;  %v19633_v5 = vld [vmem:[%s28812_s15 + $0x8] sm:$0xff] }
 0xc05   :  { %v18240_v43 = vor.u32 %v19622_v52, %v18239_v36  ;;  %v19634_v15 = vld [vmem:[%s28812_s15 + $0x10] sm:$0xff]  ;;  %v19648_v36 = vld [vmem:[%s28812_s15 + $0x80] sm:$0xff] }
 0xc06   :  { %v19660_v52 = vld [vmem:[%s28812_s15 + $0xe0] sm:$0xff] }
 0xc07   :  { %11468 = vmatpush.bf16.msrb.mxu0 %v19600_v3  ;;  %11569 = vmatpush.bf16.msra.mxu2 %v19588_v45  ;;  %v18263_v3 = vld [vmem:[%s28810_s13 + $0x48] sm:$0xf]  ;;  %v19627_v45 = vld [vmem:[%s28810_s13 + $0x54] sm:$0xf0] }
 0xc08   :  { %11708 = vmatpush.bf16.msrb.mxu3 %v19611_v20  ;;  %11855 = vmatpush.bf16.msrb.mxu1 %v18272_v39  ;;  %v18264_v34 = vor.u32 %v19627_v45, %v18263_v3  ;;  %v18223_v20 = vld [vmem:[%s28810_s13] sm:$0xf]  ;;  %v19646_v39 = vld [vmem:[%s28812_s15 + $0x70] sm:$0xff]  ;;  %v19649_v3 = vld [vmem:[%s28812_s15 + $0x88] sm:$0xff] }
 0xc09   :  { %v19661_v45 = vld [vmem:[%s28812_s15 + $0xe8] sm:$0xff] }
 0xc0b   :  { %11587 = vmatpush.bf16.msra.mxu0 %v11258_v42  ;;  %11600 = vmatpush.bf16.msrb.mxu2 %v11261_v26 }
 0xc0c   :  { %11709 = vmatpush.bf16.msrb.mxu3 %v19610_v28  ;;  %11856 = vmatpush.bf16.msrb.mxu1 %v18256_v30  ;;  %v19616_v28 = vld [vmem:[%s28810_s13 + $0x4] sm:$0xf]  ;;  %v19650_v30 = vld [vmem:[%s28812_s15 + $0x90] sm:$0xff] }
 0xc10   :  { %11710 = vmatpush.bf16.msrb.mxu3 %v19609_v8  ;;  %11857 = vmatpush.bf16.msrb.mxu1 %v18240_v43  ;;  %v19659_v43 = vld [vmem:[%s28812_s15 + $0xd8] sm:$0xff] }
 0xc14   :  { %11711 = vmatpush.bf16.msrb.mxu3 %v19608_v48 }
 0xc18   :  { %11712 = vmatpush.bf16.msrb.mxu3 %v19607_v60  ;;  %v19625_v60 = vld [vmem:[%s28810_s13 + $0x4c] sm:$0xf] }
 0xc1c   :  { %11713 = vmatpush.bf16.msrb.mxu3 %v19606_v18 }
 0xc20   :  { %11714 = vmatpush.bf16.msrb.mxu3 %v19605_v44  ;;  %v18249_v44 = vld [vmem:[%s28810_s13 + $0x38] sm:$0xf0] }
 0xc24   :  { %11715 = vmatpush.bf16.msrb.mxu3 %v19604_v31 }
 0xc63   :  { %v11329_v32 = vpop.f32.mrf.mxu1 }
 0xc64   :  { %v11346_v22 = vpack.c.bf16 %v11329_v32, %v11329_v32  ;;  %v18241_v32 = vld [vmem:[%s28810_s13 + $0x30] sm:$0xf0] }
 0xc66   :  { %11456 = vmatmul.bf16.vlgmr.msra.gmra.mxu3 %v11346_v22  ;;  %v18247_v22 = vld [vmem:[%s28810_s13 + $0x28] sm:$0xf] }
 0xc67   :  { %12184 = vmatpush.bf16.msra.mxu3 %v19647_v6 }
 0xc69   :  { %v11272_v37 = vpop.f32.mrf.mxu3 }
 0xc6a   :  { %v11289_v46 = vpack.c.bf16 %v11272_v37, %v11272_v37  ;;  %v19623_v37 = vld [vmem:[%s28810_s13 + $0x34] sm:$0xf0] }
 0xc6b   :  { %v11331_v11 = vpop.f32.mrf.mxu1  ;;  %12185 = vmatpush.bf16.msra.mxu3 %v19646_v39 }
 0xc6c   :  { %11557 = vmatmul.bf16.vlgmr.msra.gmra.mxu1 %v11289_v46  ;;  %v18244_v46 = vor.u32 %v19620_v25, %v18241_v32  ;;  %v18248_v11 = vor.u32 %v19623_v37, %v18247_v22  ;;  %v19641_v25 = vld [vmem:[%s28812_s15 + $0x48] sm:$0xff]  ;;  %v19640_v32 = vld [vmem:[%s28812_s15 + $0x40] sm:$0xff]  ;;  %v19658_v22 = vld [vmem:[%s28812_s15 + $0xd0] sm:$0xff] }
 0xc6d   :  { %v19657_v37 = vld [vmem:[%s28812_s15 + $0xc8] sm:$0xff] }
 0xc71   :  { %v11274_v40 = vpop.f32.mrf.mxu3 }
 0xc72   :  { %v19618_v40 = vld [vmem:[%s28810_s13 + $0xc] sm:$0xf0] }
 0xc73   :  { %v18224_v8 = vor.u32 %v19618_v40, %v18223_v20 }
 0xc75   :  { %11858 = vmatpush.bf16.msrb.mxu1 %v18224_v8 }
 0xc77   :  { %v11285_v35 = vpop.f32.mrf.mxu0 }
 0xc78   :  { %v11290_v19 = vpack.c.bf16 %v11285_v35, %v11285_v35  ;;  %v18225_v35 = vld [vmem:[%s28810_s13 + $0x10] sm:$0xf0] }
 0xc7a   :  { %18144 = vmatmul.msk.bf16.vlgmr.msra.gmra.mxu2 %vm4667_vm4, %v11290_v19  ;;  %v18231_v19 = vld [vmem:[%s28810_s13 + $0x8] sm:$0xf] }
 0xc7b   :  { %11868 = vmatpush.bf16.msra.mxu2 %v18276_v17  ;;  %v19637_v17 = vld [vmem:[%s28812_s15 + $0x28] sm:$0xff] }
 0xc7d   :  { %v11342_v23 = vpop.f32.mrf.mxu2 }
 0xc7e   :  { %v11347_v53 = vpack.c.bf16 %v11342_v23, %v11342_v23  ;;  %v19619_v23 = vld [vmem:[%s28810_s13 + $0x14] sm:$0xf0] }
 0xc7f   :  { %v11287_v49 = vpop.f32.mrf.mxu0  ;;  %11869 = vmatpush.bf16.msra.mxu2 %v18260_v9  ;;  %v19642_v9 = vld [vmem:[%s28812_s15 + $0x50] sm:$0xff] }
 0xc80   :  { %18095 = vmatmul.msk.bf16.vlgmr.msrb.gmra.mxu0 %vm4667_vm4, %v11347_v53  ;;  %v18228_v53 = vor.u32 %v19616_v28, %v18225_v35  ;;  %v18232_v49 = vor.u32 %v19619_v23, %v18231_v19 }
 0xc81   :  { %11725 = vmatpush.bf16.msrb.mxu0 %v19615_v57  ;;  %v18265_v57 = vld [vmem:[%s28810_s13 + $0x58] sm:$0xf0] }
 0xc82   :  { %v18268_v18 = vor.u32 %v19625_v60, %v18265_v57 }
 0xc83   :  { %11870 = vmatpush.bf16.msra.mxu2 %v18244_v46  ;;  %v19656_v46 = vld [vmem:[%s28812_s15 + $0xc0] sm:$0xff] }
 0xc85   :  { %v11344_v1 = vpop.f32.mrf.mxu2  ;;  %11726 = vmatpush.bf16.msrb.mxu0 %v19614_v2  ;;  %v19621_v2 = vld [vmem:[%s28810_s13 + $0x2c] sm:$0xf] }
 0xc86   :  { %v19629_v1 = vld [vmem:[%s28810_s13 + $0x6c] sm:$0xf] }
 0xc87   :  { %11871 = vmatpush.bf16.msra.mxu2 %v18228_v53 }
 0xc89   :  { %11727 = vmatpush.bf16.msrb.mxu0 %v19613_v12  ;;  %v18252_v12 = vor.u32 %v19621_v2, %v18249_v44 }
 0xc8a   :  { %18147 = vmatmul.msk.bf16.vlgmr.msrb.gmra.mxu2 %vm11252_vm8, %v18145_v33 }
 0xc8d   :  { %11728 = vmatpush.bf16.msrb.mxu0 %v19612_v38 }
 0xc90   :  { %18146 = vmatmul.msk.bf16.vlgmr.msra.gmra.mxu0 %vm11252_vm8, %v18145_v33  ;;  %v18281_v33 = vld [vmem:[%s28810_s13 + $0x78] sm:$0xf0] }
 0xc91   :  { %11881 = vmatpush.bf16.msra.mxu0 %v18280_v24  ;;  %v18284_v48 = vor.u32 %v19629_v1, %v18281_v33  ;;  %v19653_v24 = vld [vmem:[%s28812_s15 + $0xa8] sm:$0xff] }
 0xc93   :  { %11894 = vmatpush.bf16.msra.mxu1 %v18284_v48 }
 0xc95   :  { %11882 = vmatpush.bf16.msra.mxu0 %v18264_v34  ;;  %v19632_v34 = vld [vmem:[%s28812_s15] sm:$0xff] }
 0xc97   :  { %11895 = vmatpush.bf16.msra.mxu1 %v18268_v18 }
 0xc99   :  { %11883 = vmatpush.bf16.msra.mxu0 %v18248_v11  ;;  %v11758_v11 = vld [vmem:[%s28811_s14] sm:$0xf] }
 0xc9a   :  { %v11760_v20 = vperm.slane %v11758_v11, 0  ;;  %v11762_v40 = vperm.slane %v11758_v11, 2  ;;  %v11761_v53 = vperm.slane %v11758_v11, 1 }
 0xc9b   :  { %11896 = vmatpush.bf16.msra.mxu1 %v18252_v12  ;;  %v11763_v12 = vperm.slane %v11758_v11, 3 }
 0xc9d   :  { %11884 = vmatpush.bf16.msra.mxu0 %v18232_v49 }
 0xce9   :  { %v11457_v54 = vpop.f32.mrf.mxu3  ;;  %v11558_v42 = vpop.f32.mrf.mxu1 }
 0xcf1   :  { %v11459_v10 = vpop.f32.mrf.mxu3  ;;  %v11560_v7 = vpop.f32.mrf.mxu1 }
 0xcf2   :  { %v19639_v10 = vld [vmem:[%s28812_s15 + $0x38] sm:$0xff] }
 0xcf3   :  { %v19655_v7 = vld [vmem:[%s28812_s15 + $0xb8] sm:$0xff]  ;;  %12171 = vmatpush.bf16.msrb.mxu2 %v19639_v10 }
 0xcf7   :  { %12172 = vmatpush.bf16.msrb.mxu2 %v19638_v14 }
 0xcfb   :  { %12173 = vmatpush.bf16.msrb.mxu2 %v19637_v17 }
 0xcfd   :  { %v11470_v56 = vpop.f32.mrf.mxu0  ;;  %v11571_v29 = vpop.f32.mrf.mxu2 }
 0xcfe   :  { %v11471_v61 = vadd.f32 %v11470_v56, %v11457_v54  ;;  %v19617_v54 = vld [vmem:[%s28810_s13 + $0xc] sm:$0xf] }
 0xd00   :  { %v11559_v13 = vadd.f32 %v11558_v42, %v11471_v61  ;;  %v18233_v42 = vld [vmem:[%s28810_s13 + $0x18] sm:$0xf0] }
 0xd01   :  { %v18236_v31 = vor.u32 %v19617_v54, %v18233_v42 }
 0xd02   :  { %v28603_v63 = vadd.f32 %v11571_v29, %v11559_v13  ;;  %v19645_v29 = vld [vmem:[%s28812_s15 + $0x68] sm:$0xff] }
 0xd03   :  { %11897 = vmatpush.bf16.msra.mxu1 %v18236_v31  ;;  %12186 = vmatpush.bf16.msra.mxu3 %v19645_v29 }
 0xd05   :  { %v11472_v47 = vpop.f32.mrf.mxu0  ;;  %v11573_v16 = vpop.f32.mrf.mxu2 }
 0xd06   :  { %v19636_v47 = vld [vmem:[%s28812_s15 + $0x20] sm:$0xff] }
 0xd07   :  { %v19652_v16 = vld [vmem:[%s28812_s15 + $0xa0] sm:$0xff]  ;;  %12174 = vmatpush.bf16.msrb.mxu2 %v19636_v47 }
 0xd0d   :  { %v11589_v0 = vpop.f32.mrf.mxu0  ;;  %v11602_v55 = vpop.f32.mrf.mxu2 }
 0xd0e   :  { %v11606_v50 = vpack.c.bf16 %v11589_v0, %v11589_v0  ;;  %v11607_v41 = vpack.c.bf16 %v11602_v55, %v11602_v55  ;;  %v19644_v0 = vld [vmem:[%s28812_s15 + $0x60] sm:$0xff] }
 0xd0f   :  { %12187 = vmatpush.bf16.msra.mxu3 %v19644_v0 }
 0xd10   :  { %11716 = vmatmul.bf16.vlgmr.msrb.gmra.mxu3 %v11606_v50  ;;  %18220 = vmatmul.msk.bf16.vlgmr.msrb.gmra.mxu0 %vm4667_vm4, %v11607_v41 }
 0xd11   :  { %12197 = vmatpush.bf16.msrb.mxu0 %v19655_v7 }
 0xd13   :  { %12188 = vmatpush.bf16.msra.mxu3 %v19643_v4 }
 0xd15   :  { %v11591_v27 = vpop.f32.mrf.mxu0  ;;  %v11604_v26 = vpop.f32.mrf.mxu2  ;;  %12198 = vmatpush.bf16.msrb.mxu0 %v19654_v51  ;;  %v19666_v51 = vld [vmem:[%s28813_s16] ss:$0 sm:$0xff] }
 0xd16   :  { %v19635_v27 = vld [vmem:[%s28812_s15 + $0x18] sm:$0xff] }
 0xd17   :  { %v19651_v26 = vld [vmem:[%s28812_s15 + $0x98] sm:$0xff]  ;;  %12175 = vmatpush.bf16.msrb.mxu2 %v19635_v27  ;;  %12189 = vmatpush.bf16.msra.mxu3 %v19642_v9 }
 0xd19   :  { %12199 = vmatpush.bf16.msrb.mxu0 %v19653_v24 }
 0xd1b   :  { %12176 = vmatpush.bf16.msrb.mxu2 %v19634_v15  ;;  %12190 = vmatpush.bf16.msra.mxu3 %v19641_v25 }
 0xd1d   :  { %12200 = vmatpush.bf16.msrb.mxu0 %v19652_v16 }
 0xd1f   :  { %12177 = vmatpush.bf16.msrb.mxu2 %v19633_v5  ;;  %12191 = vmatpush.bf16.msra.mxu3 %v19640_v32 }
 0xd21   :  { %12201 = vmatpush.bf16.msrb.mxu0 %v19651_v26 }
 0xd23   :  { %12178 = vmatpush.bf16.msrb.mxu2 %v19632_v34 }
 0xd25   :  { %12202 = vmatpush.bf16.msrb.mxu0 %v19650_v30 }
 0xd29   :  { %12203 = vmatpush.bf16.msrb.mxu0 %v19649_v3 }
 0xd2d   :  { %12204 = vmatpush.bf16.msrb.mxu0 %v19648_v36 }
 0xd8d   :  { %v11730_v38 = vpop.f32.mrf.mxu0 }
 0xd93   :  { %v11717_v59 = vpop.f32.mrf.mxu3 }
 0xd94   :  { %v11731_v58 = vadd.f32 %v11730_v38, %v11717_v59 }
 0xd95   :  { %v11732_v56 = vpop.f32.mrf.mxu0 }
 0xd96   :  { %v11734_v61 = vadd.f32 %v11731_v58, %v28603_v63  ;;  %v19663_v63 = vld [vmem:[%s28812_s15 + $0xf8] sm:$0xff] }
 0xd98   :  { %v11739_v13 = vadd.f32 %v19665_v62, %v11734_v61 }
 0xd9a   :  { %v11740_v55 = vmax.f32 %v11739_v13, 0.0 }
 0xd9b   :  { %v11719_v50 = vpop.f32.mrf.mxu3 }
 0xd9c   :  { %v11741_v41 = vpack.c.bf16 %v11740_v55, %v11740_v55 }
 0xd9e   :  { %18285 = vmatmul.msk.bf16.vlgmr.msrb.gmra.mxu1 %vm4667_vm4, %v11741_v41  ;;  %18286 = vmatmul.msk.bf16.vlgmr.msra.gmra.mxu2 %vm4667_vm4, %v11741_v41 }
 0xd9f   :  { %18287 = vmatmul.msk.bf16.vlgmr.msra.gmra.mxu0 %vm4667_vm4, %v11741_v41  ;;  %12210 = vmatpush.bf16.msrb.mxu1 %v19663_v63 }
 0xda3   :  { %12211 = vmatpush.bf16.msrb.mxu1 %v19662_v21 }
 0xda7   :  { %12212 = vmatpush.bf16.msrb.mxu1 %v19661_v45 }
 0xdab   :  { %12213 = vmatpush.bf16.msrb.mxu1 %v19660_v52 }
 0xdae   :  { %18288 = vmatmul.msk.bf16.vlgmr.msra.gmra.mxu1 %vm4667_vm4, %v11741_v41 }
 0xdaf   :  { %12214 = vmatpush.bf16.msrb.mxu1 %v19659_v43 }
 0xdb3   :  { %12215 = vmatpush.bf16.msrb.mxu1 %v19658_v22 }
 0xdb7   :  { %12216 = vmatpush.bf16.msrb.mxu1 %v19657_v37 }
 0xdbb   :  { %12217 = vmatpush.bf16.msrb.mxu1 %v19656_v46 }
 0xe1b   :  { %v11860_v28 = vpop.f32.mrf.mxu1 }
 0xe1c   :  { %v11861_v8 = vadd.f32 %v11860_v28, %v11760_v20  ;;  %v11886_v35 = vpop.f32.mrf.mxu0 }
 0xe1d   :  { %v11887_v19 = vadd.f32 %v11886_v35, %v11762_v40 }
 0xe1e   :  { %v11903_v23 = vmax.f32 %v11861_v8, 0.0 }
 0xe1f   :  { %v11905_v49 = vmax.f32 %v11887_v19, 0.0 }
 0xe20   :  { %v11907_v1 = vpack.c.bf16 %v11903_v23, %v11903_v23 }
 0xe21   :  { %v11909_v33 = vpack.c.bf16 %v11905_v49, %v11905_v49  ;;  %v11873_v48 = vpop.f32.mrf.mxu2 }
 0xe22   :  { %v11874_v60 = vadd.f32 %v11873_v48, %v11761_v53  ;;  %12179 = vmatmul.bf16.vlgmr.msrb.gmra.mxu2 %v11907_v1 }
 0xe23   :  { %12205 = vmatmul.bf16.vlgmr.msrb.gmra.mxu0 %v11909_v33  ;;  %v11862_v57 = vpop.f32.mrf.mxu1 }
 0xe24   :  { %v11904_v18 = vmax.f32 %v11874_v60, 0.0  ;;  %v11888_v2 = vpop.f32.mrf.mxu0 }
 0xe26   :  { %v11908_v44 = vpack.c.bf16 %v11904_v18, %v11904_v18 }
 0xe28   :  { %12192 = vmatmul.bf16.vlgmr.msra.gmra.mxu3 %v11908_v44 }
 0xe29   :  { %v11875_v54 = vpop.f32.mrf.mxu2 }
 0xe2b   :  { %v11899_v42 = vpop.f32.mrf.mxu1 }
 0xe2c   :  { %v11900_v31 = vadd.f32 %v11899_v42, %v11763_v12 }
 0xe2e   :  { %v11906_v38 = vmax.f32 %v11900_v31, 0.0 }
 0xe30   :  { %v11910_v10 = vpack.c.bf16 %v11906_v38, %v11906_v38 }
 0xe32   :  { %12218 = vmatmul.bf16.vlgmr.msrb.gmra.mxu1 %v11910_v10 }
 0xe33   :  { %v11901_v7 = vpop.f32.mrf.mxu1 }
 0xea0   :  { %v12206_v6 = vpop.f32.mrf.mxu0 }
 0xea5   :  { %v12180_v14 = vpop.f32.mrf.mxu2 }
 0xea6   :  { %v12181_v59 = vadd.f32 %v19666_v51, %v12180_v14 }
 0xea8   :  { %v12208_v39 = vpop.f32.mrf.mxu0 }
 0xeab   :  { %v12193_v58 = vpop.f32.mrf.mxu3 }
 0xeac   :  { %v12194_v62 = vadd.f32 %v12193_v58, %v12181_v59 }
 0xead   :  { %v12182_v17 = vpop.f32.mrf.mxu2 }
 0xeae   :  { %v12207_v24 = vadd.f32 %v12206_v6, %v12194_v62 }
 0xeaf   :  { %v12219_v56 = vpop.f32.mrf.mxu1 }
 0xeb0   :  { %v12220_v29 = vadd.f32 %v12219_v56, %v12207_v24 }
 0xeb2   :  { %12223 = vst [vmem:[#allocation2] sm:$0x3] %v12220_v29 }
 0xeb3   :  { %v12195_v61 = vpop.f32.mrf.mxu3  ;;  %12234 = dma.vmem_to_hbm [thread:$0]  %s12230_s20, 32, %s12232_s5, [#allocation3]  }
 0xeb7   :  { %v12221_v13 = vpop.f32.mrf.mxu1 }
 0xeb8   :  { %19691 = dma.done.wait [#allocation3], 32  }
 0xeb9   :  { %19692 = vsyncadd [#allocation3], 4294967264 }
 0xeba   :  { %12239 = vsyncpa [#allocation3], 1 }

</bundles_post_ra>
